<compile_context>
chip_gen: v7x
topology: tpu7x:2x2x1
jax: 0.10.0
libtpu: 0.0.40
codegen_flags: <defaults>
</compile_context>

<pallas_src>
import numpy as np

import jax
import jax.numpy as jnp
from jax import lax
from jax.experimental import pallas as pl
from jax.experimental.pallas import tpu as pltpu

LEAKY_SLOPE = 0.2
BN_EPS = 1e-5
KH = KW = 4
STRIDE = 2
PAD = 1
C_PAD = 128          # every channel axis is zero-padded to one full lane width


# ---------------------------------------------------------------------------
# Fused Pallas kernel: conv1 -> leaky -> (conv -> BN -> leaky) x3 -> fc -> sigmoid
# ---------------------------------------------------------------------------
def _disc_fused_kernel(x_ref, s1_ref, w1_ref, b1_ref,
                       s2_ref, w2_ref, b2_ref, g2_ref, be2_ref,
                       s3_ref, w3_ref, b3_ref, g3_ref, be3_ref,
                       s4_ref, w4_ref, b4_ref, g4_ref, be4_ref,
                       wf_ref, bf_ref, out_ref):
    f32, bf16 = jnp.float32, jnp.bfloat16
    n = out_ref.shape[0]
    taps = KH * KW

    def leaky(y):
        return jnp.where(y > 0, y, LEAKY_SLOPE * y)

    def conv_fold(act, sel_ref, w_ref, b_ref):
        """4x4 / stride-2 / pad-1 conv on the flat [N*HW_in, 128] activation.

        One stacked-selector GEMM per batch element gathers all 16 taps at
        once (rows are tap-major: (t, m_out)); the per-tap row blocks are then
        laid side by side along lanes and a single fat weight GEMM
        ([N*HW_out, 16*128] @ [16*128, 128]) applies the conv weights for the
        whole batch.  Zero padding is implicit (all-zero selector rows)."""
        hw_out = sel_ref.shape[0] // taps
        hw_in = sel_ref.shape[1]
        sel = sel_ref[...]
        a_bf = act.astype(bf16)
        per_batch = []
        for b in range(n):                       # unrolled at trace time (N small)
            tapped = jnp.dot(sel, a_bf[b * hw_in:(b + 1) * hw_in, :],
                             preferred_element_type=f32).astype(bf16)
            per_batch.append(jnp.concatenate(
                [tapped[t * hw_out:(t + 1) * hw_out, :] for t in range(taps)],
                axis=1))                          # [hw_out, 16*128], lanes = (t, c)
        patches = per_batch[0] if n == 1 else jnp.concatenate(per_batch, axis=0)
        return jnp.dot(patches, w_ref[...],
                       preferred_element_type=f32) + b_ref[...]

    def bn_leaky(y, g_ref, be_ref):
        # Training-mode BatchNorm2d: per-channel batch mean / biased variance
        # over all N*H*W rows, computed in a single pass (E[x^2] - E[x]^2).
        inv_m = 1.0 / y.shape[0]
        mean = jnp.sum(y, axis=0, keepdims=True) * inv_m
        mean_sq = jnp.sum(y * y, axis=0, keepdims=True) * inv_m
        var = mean_sq - mean * mean
        scale = g_ref[...] * lax.rsqrt(var + BN_EPS)   # padded gamma = 0 -> inert
        shift = be_ref[...] - mean * scale
        return leaky(y * scale + shift)

    a1 = leaky(conv_fold(x_ref[...], s1_ref, w1_ref, b1_ref))
    a2 = bn_leaky(conv_fold(a1, s2_ref, w2_ref, b2_ref), g2_ref, be2_ref)
    a3 = bn_leaky(conv_fold(a2, s3_ref, w3_ref, b3_ref), g3_ref, be3_ref)
    a4 = bn_leaky(conv_fold(a3, s4_ref, w4_ref, b4_ref), g4_ref, be4_ref)
    # fc: 1x1 conv on the 1x1 feature map == dense [N, 128] @ [128, 1].
    logit = jnp.dot(a4.astype(bf16), wf_ref[...],
                    preferred_element_type=f32) + bf_ref[...]
    out_ref[...] = pl.reciprocal(1.0 + jnp.exp(-logit), approx=True)


# ---------------------------------------------------------------------------
# Host-side packing helpers (run once, outside the per-call path)
# ---------------------------------------------------------------------------
def _full_spec(shape):
    return pl.BlockSpec(shape, lambda *_: (0,) * len(shape))


def _tap_selector(h_in, w_in):
    """Batch-independent stacked selector for a 4x4 / stride-2 / pad-1 conv.

    S[t*HW_out + m_out, m_in] = 1 iff output spatial position m_out reads
    input spatial position m_in at kernel tap t; taps that fall in the zero
    padding have all-zero rows."""
    h_out, w_out = h_in // STRIDE, w_in // STRIDE
    sel = np.zeros((KH * KW * h_out * w_out, h_in * w_in), np.float32)
    for ki in range(KH):
        for kj in range(KW):
            t = ki * KW + kj
            for oh in range(h_out):
                hi = STRIDE * oh + ki - PAD
                if not 0 <= hi < h_in:
                    continue
                for ow in range(w_out):
                    wi = STRIDE * ow + kj - PAD
                    if not 0 <= wi < w_in:
                        continue
                    sel[t * (h_out * w_out) + oh * w_out + ow,
                        hi * w_in + wi] = 1.0
    return sel


def _tap_weight(w):
    """[Cout, Cin, KH, KW] -> [16*128, 128] bf16, rows ordered (tap, c_in),
    zero-padded to full lane width on both channel axes."""
    cout, cin = w.shape[0], w.shape[1]
    wt = jnp.transpose(w, (2, 3, 1, 0)).reshape(KH * KW, cin, cout)
    wt = jnp.pad(wt, ((0, 0), (0, C_PAD - cin), (0, C_PAD - cout)))
    return wt.reshape(KH * KW * C_PAD, C_PAD).astype(jnp.bfloat16)


def _row(v, width=C_PAD):
    v = v.reshape(1, -1).astype(jnp.float32)
    return jnp.pad(v, ((0, 0), (0, width - v.shape[1])))


def pack_params(p):
    """Pre-pack weights / selectors into the kernel's layouts (done once)."""
    sel1 = jnp.asarray(_tap_selector(16, 16), jnp.bfloat16)   # [1024, 256]
    sel2 = jnp.asarray(_tap_selector(8, 8), jnp.bfloat16)     # [256, 64]
    sel3 = jnp.asarray(_tap_selector(4, 4), jnp.bfloat16)     # [64, 16]
    sel4 = jnp.asarray(_tap_selector(2, 2), jnp.bfloat16)     # [16, 4]
    wf = p["wf"].reshape(-1, 1)
    wf = jnp.pad(wf, ((0, C_PAD - wf.shape[0]), (0, 0))).astype(jnp.bfloat16)
    bf = p["bf"].reshape(1, 1).astype(jnp.float32)
    return (
        sel1, _tap_weight(p["w1"]), _row(p["b1"]),
        sel2, _tap_weight(p["w2"]), _row(p["b2"]), _row(p["g2"]), _row(p["be2"]),
        sel3, _tap_weight(p["w3"]), _row(p["b3"]), _row(p["g3"]), _row(p["be3"]),
        sel4, _tap_weight(p["w4"]), _row(p["b4"]), _row(p["g4"]), _row(p["be4"]),
        wf, bf,
    )


# ---------------------------------------------------------------------------
# Discriminator forward
# ---------------------------------------------------------------------------
def discriminator_forward(x, packed):
    n, cin, h, w = x.shape
    # TODO(synk): the fused fc stage assumes image_size == 16 (conv4 output is
    # 1x1, so fc degenerates to a dense layer); generalize for larger images.
    assert h == w == 16, "fused kernel is specialized to image_size=16"
    hw = h * w

    # Only remaining out-of-kernel input prep: NHWC flatten + channel zero-pad.
    x_flat = jnp.transpose(x, (0, 2, 3, 1)).reshape(n * hw, cin)
    x_pad = jnp.pad(x_flat, ((0, 0), (0, C_PAD - cin))).astype(jnp.bfloat16)

    args = (x_pad,) + tuple(packed)
    out = pl.pallas_call(
        _disc_fused_kernel,
        grid=(1,),
        in_specs=[_full_spec(a.shape) for a in args],
        out_specs=_full_spec((n, 1)),
        out_shape=jax.ShapeDtypeStruct((n, 1), jnp.float32),
        compiler_params=pltpu.CompilerParams(
            dimension_semantics=("arbitrary",),
            vmem_limit_bytes=32 * 1024 * 1024),
    )(*args)
    return out.reshape(n, 1, 1, 1)


# ---------------------------------------------------------------------------
# Parameters (mirrors Discriminator.__init__ + weight_init(0.0, 0.02))
# ---------------------------------------------------------------------------
def init_params(key, image_size=16, conv_dim=8):
    d = conv_dim
    ks = jax.random.split(key, 5)
    std = 0.02

    def conv_w(k, cout, cin, kh, kw):
        return std * jax.random.normal(k, (cout, cin, kh, kw), jnp.float32)

    return {
        "w1": conv_w(ks[0], d, 3, 4, 4),         "b1": jnp.zeros((d,), jnp.float32),
        "w2": conv_w(ks[1], 2 * d, d, 4, 4),     "b2": jnp.zeros((2 * d,), jnp.float32),
        "g2": jnp.ones((2 * d,), jnp.float32),   "be2": jnp.zeros((2 * d,), jnp.float32),
        "w3": conv_w(ks[2], 4 * d, 2 * d, 4, 4), "b3": jnp.zeros((4 * d,), jnp.float32),
        "g3": jnp.ones((4 * d,), jnp.float32),   "be3": jnp.zeros((4 * d,), jnp.float32),
        "w4": conv_w(ks[3], 8 * d, 4 * d, 4, 4), "b4": jnp.zeros((8 * d,), jnp.float32),
        "g4": jnp.ones((8 * d,), jnp.float32),   "be4": jnp.zeros((8 * d,), jnp.float32),
        "wf": conv_w(ks[4], 1, 8 * d, image_size // 16, image_size // 16),
        "bf": jnp.zeros((1,), jnp.float32),
    }


# ---------------------------------------------------------------------------
# Pure-XLA f32 reference (mirrors the PyTorch module) for a numerical check
# ---------------------------------------------------------------------------
def _reference_forward(x, p):
    def conv(x, w, b, stride, pad):
        y = lax.conv_general_dilated(
            x, w, (stride, stride), [(pad, pad), (pad, pad)],
            dimension_numbers=("NCHW", "OIHW", "NCHW"))
        return y + b.reshape(1, -1, 1, 1)

    def bn(x, g, be):
        mean = jnp.mean(x, axis=(0, 2, 3), keepdims=True)
        var = jnp.mean(jnp.square(x - mean), axis=(0, 2, 3), keepdims=True)
        return ((x - mean) * lax.rsqrt(var + BN_EPS) * g.reshape(1, -1, 1, 1)
                + be.reshape(1, -1, 1, 1))

    def leaky(x):
        return jnp.where(x > 0, x, LEAKY_SLOPE * x)

    h1 = leaky(conv(x, p["w1"], p["b1"], 2, 1))
    h2 = leaky(bn(conv(h1, p["w2"], p["b2"], 2, 1), p["g2"], p["be2"]))
    h3 = leaky(bn(conv(h2, p["w3"], p["b3"], 2, 1), p["g3"], p["be3"]))
    h4 = leaky(bn(conv(h3, p["w4"], p["b4"], 2, 1), p["g4"], p["be4"]))
    return 1.0 / (1.0 + jnp.exp(-conv(h4, p["wf"], p["bf"], 1, 0)))


if __name__ == "__main__":
    key = jax.random.PRNGKey(0)
    k_param, k_x = jax.random.split(key)

    image_size, conv_dim, batch = 16, 8, 2
    params = init_params(k_param, image_size=image_size, conv_dim=conv_dim)
    packed = pack_params(params)
    x = jax.random.normal(k_x, (batch, 3, image_size, image_size), jnp.float32)

    fwd = jax.jit(discriminator_forward)
    out = jax.block_until_ready(fwd(x, packed))
    ref = _reference_forward(x, params)

    assert out.shape == (batch, 1, 1, 1)
    assert bool(jnp.all(jnp.isfinite(out)))
    # approx-reciprocal sigmoid may overshoot [0, 1] by ~1e-4
    assert bool(jnp.all((out > -1e-3) & (out < 1.0 + 1e-3)))
    err = float(jnp.max(jnp.abs(out - ref)))
    assert err < 2e-2, f"max abs error vs f32 reference: {err}"
    print("KERNEL_OK")
</pallas_src>

<mosaic_0001>
module attributes {stable_mosaic.version = 11 : i64} {
  func.func @_disc_fused_kernel(%arg0: i32, %arg1: memref<512x128xbf16, #tpu.memory_space<vmem>>, %arg2: memref<1024x256xbf16, #tpu.memory_space<vmem>>, %arg3: memref<2048x128xbf16, #tpu.memory_space<vmem>>, %arg4: memref<1x128xf32, #tpu.memory_space<vmem>>, %arg5: memref<256x64xbf16, #tpu.memory_space<vmem>>, %arg6: memref<2048x128xbf16, #tpu.memory_space<vmem>>, %arg7: memref<1x128xf32, #tpu.memory_space<vmem>>, %arg8: memref<1x128xf32, #tpu.memory_space<vmem>>, %arg9: memref<1x128xf32, #tpu.memory_space<vmem>>, %arg10: memref<64x16xbf16, #tpu.memory_space<vmem>>, %arg11: memref<2048x128xbf16, #tpu.memory_space<vmem>>, %arg12: memref<1x128xf32, #tpu.memory_space<vmem>>, %arg13: memref<1x128xf32, #tpu.memory_space<vmem>>, %arg14: memref<1x128xf32, #tpu.memory_space<vmem>>, %arg15: memref<16x4xbf16, #tpu.memory_space<vmem>>, %arg16: memref<2048x128xbf16, #tpu.memory_space<vmem>>, %arg17: memref<1x128xf32, #tpu.memory_space<vmem>>, %arg18: memref<1x128xf32, #tpu.memory_space<vmem>>, %arg19: memref<1x128xf32, #tpu.memory_space<vmem>>, %arg20: memref<128x1xbf16, #tpu.memory_space<vmem>>, %arg21: memref<1x1xf32, #tpu.memory_space<vmem>>, %arg22: memref<2x1xf32, #tpu.memory_space<vmem>>) attributes {dimension_semantics = [#tpu.dimension_semantics<arbitrary>], iteration_bounds = array<i64: 1>, scalar_prefetch = 0 : i64, scratch_operands = 0 : i64, tpu.core_type = #tpu.core_type<tc>, window_params = [{pipeline_mode = #tpu.pipeline_mode<synchronous>, transform_indices = @transform_0, window_bounds = array<i64: 512, 128>}, {pipeline_mode = #tpu.pipeline_mode<synchronous>, transform_indices = @transform_1, window_bounds = array<i64: 1024, 256>}, {pipeline_mode = #tpu.pipeline_mode<synchronous>, transform_indices = @transform_2, window_bounds = array<i64: 2048, 128>}, {pipeline_mode = #tpu.pipeline_mode<synchronous>, transform_indices = @transform_3, window_bounds = array<i64: 1, 128>}, {pipeline_mode = #tpu.pipeline_mode<synchronous>, transform_indices = @transform_4, window_bounds = array<i64: 256, 64>}, {pipeline_mode = #tpu.pipeline_mode<synchronous>, transform_indices = @transform_5, window_bounds = array<i64: 2048, 128>}, {pipeline_mode = #tpu.pipeline_mode<synchronous>, transform_indices = @transform_6, window_bounds = array<i64: 1, 128>}, {pipeline_mode = #tpu.pipeline_mode<synchronous>, transform_indices = @transform_7, window_bounds = array<i64: 1, 128>}, {pipeline_mode = #tpu.pipeline_mode<synchronous>, transform_indices = @transform_8, window_bounds = array<i64: 1, 128>}, {pipeline_mode = #tpu.pipeline_mode<synchronous>, transform_indices = @transform_9, window_bounds = array<i64: 64, 16>}, {pipeline_mode = #tpu.pipeline_mode<synchronous>, transform_indices = @transform_10, window_bounds = array<i64: 2048, 128>}, {pipeline_mode = #tpu.pipeline_mode<synchronous>, transform_indices = @transform_11, window_bounds = array<i64: 1, 128>}, {pipeline_mode = #tpu.pipeline_mode<synchronous>, transform_indices = @transform_12, window_bounds = array<i64: 1, 128>}, {pipeline_mode = #tpu.pipeline_mode<synchronous>, transform_indices = @transform_13, window_bounds = array<i64: 1, 128>}, {pipeline_mode = #tpu.pipeline_mode<synchronous>, transform_indices = @transform_14, window_bounds = array<i64: 16, 4>}, {pipeline_mode = #tpu.pipeline_mode<synchronous>, transform_indices = @transform_15, window_bounds = array<i64: 2048, 128>}, {pipeline_mode = #tpu.pipeline_mode<synchronous>, transform_indices = @transform_16, window_bounds = array<i64: 1, 128>}, {pipeline_mode = #tpu.pipeline_mode<synchronous>, transform_indices = @transform_17, window_bounds = array<i64: 1, 128>}, {pipeline_mode = #tpu.pipeline_mode<synchronous>, transform_indices = @transform_18, window_bounds = array<i64: 1, 128>}, {pipeline_mode = #tpu.pipeline_mode<synchronous>, transform_indices = @transform_19, window_bounds = array<i64: 128, 1>}, {pipeline_mode = #tpu.pipeline_mode<synchronous>, transform_indices = @transform_20, window_bounds = array<i64: 1, 1>}, {pipeline_mode = #tpu.pipeline_mode<synchronous>, transform_indices = @transform_21, window_bounds = array<i64: 2, 1>}]} {
    %c0 = arith.constant 0 : index
    %c0_0 = arith.constant 0 : index
    %0 = vector.load %arg1[%c0, %c0_0] : memref<512x128xbf16, #tpu.memory_space<vmem>>, vector<512x128xbf16>
    %c0_1 = arith.constant 0 : index
    %c0_2 = arith.constant 0 : index
    %1 = vector.load %arg2[%c0_1, %c0_2] : memref<1024x256xbf16, #tpu.memory_space<vmem>>, vector<1024x256xbf16>
    %2 = vector.extract_strided_slice %0 {offsets = [0, 0], sizes = [256, 128], strides = [1, 1]} : vector<512x128xbf16> to vector<256x128xbf16>
    %cst = arith.constant dense<0.000000e+00> : vector<1024x128xf32>
    %3 = tpu.matmul %1, %2, %cst {dimension_numbers = #tpu.dot_dimension_numbers<[1], [0], [0], [1], [0, 0, 1, 1], [], []>} : vector<1024x256xbf16>, vector<256x128xbf16>, vector<1024x128xf32> -> vector<1024x128xf32>
    %4 = arith.truncf %3 : vector<1024x128xf32> to vector<1024x128xbf16>
    %5 = vector.extract_strided_slice %4 {offsets = [0, 0], sizes = [64, 128], strides = [1, 1]} : vector<1024x128xbf16> to vector<64x128xbf16>
    %6 = vector.extract_strided_slice %4 {offsets = [64, 0], sizes = [64, 128], strides = [1, 1]} : vector<1024x128xbf16> to vector<64x128xbf16>
    %7 = vector.extract_strided_slice %4 {offsets = [128, 0], sizes = [64, 128], strides = [1, 1]} : vector<1024x128xbf16> to vector<64x128xbf16>
    %8 = vector.extract_strided_slice %4 {offsets = [192, 0], sizes = [64, 128], strides = [1, 1]} : vector<1024x128xbf16> to vector<64x128xbf16>
    %9 = vector.extract_strided_slice %4 {offsets = [256, 0], sizes = [64, 128], strides = [1, 1]} : vector<1024x128xbf16> to vector<64x128xbf16>
    %10 = vector.extract_strided_slice %4 {offsets = [320, 0], sizes = [64, 128], strides = [1, 1]} : vector<1024x128xbf16> to vector<64x128xbf16>
    %11 = vector.extract_strided_slice %4 {offsets = [384, 0], sizes = [64, 128], strides = [1, 1]} : vector<1024x128xbf16> to vector<64x128xbf16>
    %12 = vector.extract_strided_slice %4 {offsets = [448, 0], sizes = [64, 128], strides = [1, 1]} : vector<1024x128xbf16> to vector<64x128xbf16>
    %13 = vector.extract_strided_slice %4 {offsets = [512, 0], sizes = [64, 128], strides = [1, 1]} : vector<1024x128xbf16> to vector<64x128xbf16>
    %14 = vector.extract_strided_slice %4 {offsets = [576, 0], sizes = [64, 128], strides = [1, 1]} : vector<1024x128xbf16> to vector<64x128xbf16>
    %15 = vector.extract_strided_slice %4 {offsets = [640, 0], sizes = [64, 128], strides = [1, 1]} : vector<1024x128xbf16> to vector<64x128xbf16>
    %16 = vector.extract_strided_slice %4 {offsets = [704, 0], sizes = [64, 128], strides = [1, 1]} : vector<1024x128xbf16> to vector<64x128xbf16>
    %17 = vector.extract_strided_slice %4 {offsets = [768, 0], sizes = [64, 128], strides = [1, 1]} : vector<1024x128xbf16> to vector<64x128xbf16>
    %18 = vector.extract_strided_slice %4 {offsets = [832, 0], sizes = [64, 128], strides = [1, 1]} : vector<1024x128xbf16> to vector<64x128xbf16>
    %19 = vector.extract_strided_slice %4 {offsets = [896, 0], sizes = [64, 128], strides = [1, 1]} : vector<1024x128xbf16> to vector<64x128xbf16>
    %20 = vector.extract_strided_slice %4 {offsets = [960, 0], sizes = [64, 128], strides = [1, 1]} : vector<1024x128xbf16> to vector<64x128xbf16>
    %21 = tpu.concatenate %5, %6, %7, %8, %9, %10, %11, %12, %13, %14, %15, %16, %17, %18, %19, %20 in 1 : vector<64x128xbf16>, vector<64x128xbf16>, vector<64x128xbf16>, vector<64x128xbf16>, vector<64x128xbf16>, vector<64x128xbf16>, vector<64x128xbf16>, vector<64x128xbf16>, vector<64x128xbf16>, vector<64x128xbf16>, vector<64x128xbf16>, vector<64x128xbf16>, vector<64x128xbf16>, vector<64x128xbf16>, vector<64x128xbf16>, vector<64x128xbf16> -> vector<64x2048xbf16>
    %22 = vector.extract_strided_slice %0 {offsets = [256, 0], sizes = [256, 128], strides = [1, 1]} : vector<512x128xbf16> to vector<256x128xbf16>
    %cst_3 = arith.constant dense<0.000000e+00> : vector<1024x128xf32>
    %23 = tpu.matmul %1, %22, %cst_3 {dimension_numbers = #tpu.dot_dimension_numbers<[1], [0], [0], [1], [0, 0, 1, 1], [], []>} : vector<1024x256xbf16>, vector<256x128xbf16>, vector<1024x128xf32> -> vector<1024x128xf32>
    %24 = arith.truncf %23 : vector<1024x128xf32> to vector<1024x128xbf16>
    %25 = vector.extract_strided_slice %24 {offsets = [0, 0], sizes = [64, 128], strides = [1, 1]} : vector<1024x128xbf16> to vector<64x128xbf16>
    %26 = vector.extract_strided_slice %24 {offsets = [64, 0], sizes = [64, 128], strides = [1, 1]} : vector<1024x128xbf16> to vector<64x128xbf16>
    %27 = vector.extract_strided_slice %24 {offsets = [128, 0], sizes = [64, 128], strides = [1, 1]} : vector<1024x128xbf16> to vector<64x128xbf16>
    %28 = vector.extract_strided_slice %24 {offsets = [192, 0], sizes = [64, 128], strides = [1, 1]} : vector<1024x128xbf16> to vector<64x128xbf16>
    %29 = vector.extract_strided_slice %24 {offsets = [256, 0], sizes = [64, 128], strides = [1, 1]} : vector<1024x128xbf16> to vector<64x128xbf16>
    %30 = vector.extract_strided_slice %24 {offsets = [320, 0], sizes = [64, 128], strides = [1, 1]} : vector<1024x128xbf16> to vector<64x128xbf16>
    %31 = vector.extract_strided_slice %24 {offsets = [384, 0], sizes = [64, 128], strides = [1, 1]} : vector<1024x128xbf16> to vector<64x128xbf16>
    %32 = vector.extract_strided_slice %24 {offsets = [448, 0], sizes = [64, 128], strides = [1, 1]} : vector<1024x128xbf16> to vector<64x128xbf16>
    %33 = vector.extract_strided_slice %24 {offsets = [512, 0], sizes = [64, 128], strides = [1, 1]} : vector<1024x128xbf16> to vector<64x128xbf16>
    %34 = vector.extract_strided_slice %24 {offsets = [576, 0], sizes = [64, 128], strides = [1, 1]} : vector<1024x128xbf16> to vector<64x128xbf16>
    %35 = vector.extract_strided_slice %24 {offsets = [640, 0], sizes = [64, 128], strides = [1, 1]} : vector<1024x128xbf16> to vector<64x128xbf16>
    %36 = vector.extract_strided_slice %24 {offsets = [704, 0], sizes = [64, 128], strides = [1, 1]} : vector<1024x128xbf16> to vector<64x128xbf16>
    %37 = vector.extract_strided_slice %24 {offsets = [768, 0], sizes = [64, 128], strides = [1, 1]} : vector<1024x128xbf16> to vector<64x128xbf16>
    %38 = vector.extract_strided_slice %24 {offsets = [832, 0], sizes = [64, 128], strides = [1, 1]} : vector<1024x128xbf16> to vector<64x128xbf16>
    %39 = vector.extract_strided_slice %24 {offsets = [896, 0], sizes = [64, 128], strides = [1, 1]} : vector<1024x128xbf16> to vector<64x128xbf16>
    %40 = vector.extract_strided_slice %24 {offsets = [960, 0], sizes = [64, 128], strides = [1, 1]} : vector<1024x128xbf16> to vector<64x128xbf16>
    %41 = tpu.concatenate %25, %26, %27, %28, %29, %30, %31, %32, %33, %34, %35, %36, %37, %38, %39, %40 in 1 : vector<64x128xbf16>, vector<64x128xbf16>, vector<64x128xbf16>, vector<64x128xbf16>, vector<64x128xbf16>, vector<64x128xbf16>, vector<64x128xbf16>, vector<64x128xbf16>, vector<64x128xbf16>, vector<64x128xbf16>, vector<64x128xbf16>, vector<64x128xbf16>, vector<64x128xbf16>, vector<64x128xbf16>, vector<64x128xbf16>, vector<64x128xbf16> -> vector<64x2048xbf16>
    %42 = tpu.concatenate %21, %41 in 0 : vector<64x2048xbf16>, vector<64x2048xbf16> -> vector<128x2048xbf16>
    %c0_4 = arith.constant 0 : index
    %c0_5 = arith.constant 0 : index
    %43 = vector.load %arg3[%c0_4, %c0_5] : memref<2048x128xbf16, #tpu.memory_space<vmem>>, vector<2048x128xbf16>
    %cst_6 = arith.constant dense<0.000000e+00> : vector<128x128xf32>
    %44 = tpu.matmul %42, %43, %cst_6 {dimension_numbers = #tpu.dot_dimension_numbers<[1], [0], [0], [1], [0, 0, 1, 1], [], []>} : vector<128x2048xbf16>, vector<2048x128xbf16>, vector<128x128xf32> -> vector<128x128xf32>
    %c0_7 = arith.constant 0 : index
    %c0_8 = arith.constant 0 : index
    %45 = vector.load %arg4[%c0_7, %c0_8] : memref<1x128xf32, #tpu.memory_space<vmem>>, vector<1x128xf32>
    %46 = vector.broadcast %45 : vector<1x128xf32> to vector<128x128xf32>
    %47 = arith.addf %44, %46 : vector<128x128xf32>
    %cst_9 = arith.constant 0.000000e+00 : f32
    %48 = vector.broadcast %cst_9 : f32 to vector<128x128xf32>
    %49 = arith.cmpf ogt, %47, %48 : vector<128x128xf32>
    %cst_10 = arith.constant 2.000000e-01 : f32
    %50 = vector.broadcast %cst_10 : f32 to vector<128x128xf32>
    %51 = arith.mulf %50, %47 : vector<128x128xf32>
    %52 = arith.select %49, %47, %51 : vector<128x128xi1>, vector<128x128xf32>
    %c0_11 = arith.constant 0 : index
    %c0_12 = arith.constant 0 : index
    %53 = vector.load %arg5[%c0_11, %c0_12] : memref<256x64xbf16, #tpu.memory_space<vmem>>, vector<256x64xbf16>
    %54 = arith.truncf %52 : vector<128x128xf32> to vector<128x128xbf16>
    %55 = vector.extract_strided_slice %54 {offsets = [0, 0], sizes = [64, 128], strides = [1, 1]} : vector<128x128xbf16> to vector<64x128xbf16>
    %cst_13 = arith.constant dense<0.000000e+00> : vector<256x128xf32>
    %56 = tpu.matmul %53, %55, %cst_13 {dimension_numbers = #tpu.dot_dimension_numbers<[1], [0], [0], [1], [0, 0, 1, 1], [], []>} : vector<256x64xbf16>, vector<64x128xbf16>, vector<256x128xf32> -> vector<256x128xf32>
    %57 = arith.truncf %56 : vector<256x128xf32> to vector<256x128xbf16>
    %58 = vector.extract_strided_slice %57 {offsets = [0, 0], sizes = [16, 128], strides = [1, 1]} : vector<256x128xbf16> to vector<16x128xbf16>
    %59 = vector.extract_strided_slice %57 {offsets = [16, 0], sizes = [16, 128], strides = [1, 1]} : vector<256x128xbf16> to vector<16x128xbf16>
    %60 = vector.extract_strided_slice %57 {offsets = [32, 0], sizes = [16, 128], strides = [1, 1]} : vector<256x128xbf16> to vector<16x128xbf16>
    %61 = vector.extract_strided_slice %57 {offsets = [48, 0], sizes = [16, 128], strides = [1, 1]} : vector<256x128xbf16> to vector<16x128xbf16>
    %62 = vector.extract_strided_slice %57 {offsets = [64, 0], sizes = [16, 128], strides = [1, 1]} : vector<256x128xbf16> to vector<16x128xbf16>
    %63 = vector.extract_strided_slice %57 {offsets = [80, 0], sizes = [16, 128], strides = [1, 1]} : vector<256x128xbf16> to vector<16x128xbf16>
    %64 = vector.extract_strided_slice %57 {offsets = [96, 0], sizes = [16, 128], strides = [1, 1]} : vector<256x128xbf16> to vector<16x128xbf16>
    %65 = vector.extract_strided_slice %57 {offsets = [112, 0], sizes = [16, 128], strides = [1, 1]} : vector<256x128xbf16> to vector<16x128xbf16>
    %66 = vector.extract_strided_slice %57 {offsets = [128, 0], sizes = [16, 128], strides = [1, 1]} : vector<256x128xbf16> to vector<16x128xbf16>
    %67 = vector.extract_strided_slice %57 {offsets = [144, 0], sizes = [16, 128], strides = [1, 1]} : vector<256x128xbf16> to vector<16x128xbf16>
    %68 = vector.extract_strided_slice %57 {offsets = [160, 0], sizes = [16, 128], strides = [1, 1]} : vector<256x128xbf16> to vector<16x128xbf16>
    %69 = vector.extract_strided_slice %57 {offsets = [176, 0], sizes = [16, 128], strides = [1, 1]} : vector<256x128xbf16> to vector<16x128xbf16>
    %70 = vector.extract_strided_slice %57 {offsets = [192, 0], sizes = [16, 128], strides = [1, 1]} : vector<256x128xbf16> to vector<16x128xbf16>
    %71 = vector.extract_strided_slice %57 {offsets = [208, 0], sizes = [16, 128], strides = [1, 1]} : vector<256x128xbf16> to vector<16x128xbf16>
    %72 = vector.extract_strided_slice %57 {offsets = [224, 0], sizes = [16, 128], strides = [1, 1]} : vector<256x128xbf16> to vector<16x128xbf16>
    %73 = vector.extract_strided_slice %57 {offsets = [240, 0], sizes = [16, 128], strides = [1, 1]} : vector<256x128xbf16> to vector<16x128xbf16>
    %74 = tpu.concatenate %58, %59, %60, %61, %62, %63, %64, %65, %66, %67, %68, %69, %70, %71, %72, %73 in 1 : vector<16x128xbf16>, vector<16x128xbf16>, vector<16x128xbf16>, vector<16x128xbf16>, vector<16x128xbf16>, vector<16x128xbf16>, vector<16x128xbf16>, vector<16x128xbf16>, vector<16x128xbf16>, vector<16x128xbf16>, vector<16x128xbf16>, vector<16x128xbf16>, vector<16x128xbf16>, vector<16x128xbf16>, vector<16x128xbf16>, vector<16x128xbf16> -> vector<16x2048xbf16>
    %75 = vector.extract_strided_slice %54 {offsets = [64, 0], sizes = [64, 128], strides = [1, 1]} : vector<128x128xbf16> to vector<64x128xbf16>
    %cst_14 = arith.constant dense<0.000000e+00> : vector<256x128xf32>
    %76 = tpu.matmul %53, %75, %cst_14 {dimension_numbers = #tpu.dot_dimension_numbers<[1], [0], [0], [1], [0, 0, 1, 1], [], []>} : vector<256x64xbf16>, vector<64x128xbf16>, vector<256x128xf32> -> vector<256x128xf32>
    %77 = arith.truncf %76 : vector<256x128xf32> to vector<256x128xbf16>
    %78 = vector.extract_strided_slice %77 {offsets = [0, 0], sizes = [16, 128], strides = [1, 1]} : vector<256x128xbf16> to vector<16x128xbf16>
    %79 = vector.extract_strided_slice %77 {offsets = [16, 0], sizes = [16, 128], strides = [1, 1]} : vector<256x128xbf16> to vector<16x128xbf16>
    %80 = vector.extract_strided_slice %77 {offsets = [32, 0], sizes = [16, 128], strides = [1, 1]} : vector<256x128xbf16> to vector<16x128xbf16>
    %81 = vector.extract_strided_slice %77 {offsets = [48, 0], sizes = [16, 128], strides = [1, 1]} : vector<256x128xbf16> to vector<16x128xbf16>
    %82 = vector.extract_strided_slice %77 {offsets = [64, 0], sizes = [16, 128], strides = [1, 1]} : vector<256x128xbf16> to vector<16x128xbf16>
    %83 = vector.extract_strided_slice %77 {offsets = [80, 0], sizes = [16, 128], strides = [1, 1]} : vector<256x128xbf16> to vector<16x128xbf16>
    %84 = vector.extract_strided_slice %77 {offsets = [96, 0], sizes = [16, 128], strides = [1, 1]} : vector<256x128xbf16> to vector<16x128xbf16>
    %85 = vector.extract_strided_slice %77 {offsets = [112, 0], sizes = [16, 128], strides = [1, 1]} : vector<256x128xbf16> to vector<16x128xbf16>
    %86 = vector.extract_strided_slice %77 {offsets = [128, 0], sizes = [16, 128], strides = [1, 1]} : vector<256x128xbf16> to vector<16x128xbf16>
    %87 = vector.extract_strided_slice %77 {offsets = [144, 0], sizes = [16, 128], strides = [1, 1]} : vector<256x128xbf16> to vector<16x128xbf16>
    %88 = vector.extract_strided_slice %77 {offsets = [160, 0], sizes = [16, 128], strides = [1, 1]} : vector<256x128xbf16> to vector<16x128xbf16>
    %89 = vector.extract_strided_slice %77 {offsets = [176, 0], sizes = [16, 128], strides = [1, 1]} : vector<256x128xbf16> to vector<16x128xbf16>
    %90 = vector.extract_strided_slice %77 {offsets = [192, 0], sizes = [16, 128], strides = [1, 1]} : vector<256x128xbf16> to vector<16x128xbf16>
    %91 = vector.extract_strided_slice %77 {offsets = [208, 0], sizes = [16, 128], strides = [1, 1]} : vector<256x128xbf16> to vector<16x128xbf16>
    %92 = vector.extract_strided_slice %77 {offsets = [224, 0], sizes = [16, 128], strides = [1, 1]} : vector<256x128xbf16> to vector<16x128xbf16>
    %93 = vector.extract_strided_slice %77 {offsets = [240, 0], sizes = [16, 128], strides = [1, 1]} : vector<256x128xbf16> to vector<16x128xbf16>
    %94 = tpu.concatenate %78, %79, %80, %81, %82, %83, %84, %85, %86, %87, %88, %89, %90, %91, %92, %93 in 1 : vector<16x128xbf16>, vector<16x128xbf16>, vector<16x128xbf16>, vector<16x128xbf16>, vector<16x128xbf16>, vector<16x128xbf16>, vector<16x128xbf16>, vector<16x128xbf16>, vector<16x128xbf16>, vector<16x128xbf16>, vector<16x128xbf16>, vector<16x128xbf16>, vector<16x128xbf16>, vector<16x128xbf16>, vector<16x128xbf16>, vector<16x128xbf16> -> vector<16x2048xbf16>
    %95 = tpu.concatenate %74, %94 in 0 : vector<16x2048xbf16>, vector<16x2048xbf16> -> vector<32x2048xbf16>
    %c0_15 = arith.constant 0 : index
    %c0_16 = arith.constant 0 : index
    %96 = vector.load %arg6[%c0_15, %c0_16] : memref<2048x128xbf16, #tpu.memory_space<vmem>>, vector<2048x128xbf16>
    %cst_17 = arith.constant dense<0.000000e+00> : vector<32x128xf32>
    %97 = tpu.matmul %95, %96, %cst_17 {dimension_numbers = #tpu.dot_dimension_numbers<[1], [0], [0], [1], [0, 0, 1, 1], [], []>} : vector<32x2048xbf16>, vector<2048x128xbf16>, vector<32x128xf32> -> vector<32x128xf32>
    %c0_18 = arith.constant 0 : index
    %c0_19 = arith.constant 0 : index
    %98 = vector.load %arg7[%c0_18, %c0_19] : memref<1x128xf32, #tpu.memory_space<vmem>>, vector<1x128xf32>
    %99 = vector.broadcast %98 : vector<1x128xf32> to vector<32x128xf32>
    %100 = arith.addf %97, %99 : vector<32x128xf32>
    %cst_20 = arith.constant dense<0.000000e+00> : vector<128xf32>
    %101 = vector.multi_reduction <add>, %100, %cst_20 [0] : vector<32x128xf32> to vector<128xf32>
    %102 = vector.shape_cast %101 : vector<128xf32> to vector<1x128xf32>
    %cst_21 = arith.constant 3.125000e-02 : f32
    %103 = vector.broadcast %cst_21 : f32 to vector<1x128xf32>
    %104 = arith.mulf %102, %103 : vector<1x128xf32>
    %105 = arith.mulf %100, %100 : vector<32x128xf32>
    %cst_22 = arith.constant dense<0.000000e+00> : vector<128xf32>
    %106 = vector.multi_reduction <add>, %105, %cst_22 [0] : vector<32x128xf32> to vector<128xf32>
    %107 = vector.shape_cast %106 : vector<128xf32> to vector<1x128xf32>
    %cst_23 = arith.constant 3.125000e-02 : f32
    %108 = vector.broadcast %cst_23 : f32 to vector<1x128xf32>
    %109 = arith.mulf %107, %108 : vector<1x128xf32>
    %110 = arith.mulf %104, %104 : vector<1x128xf32>
    %111 = arith.subf %109, %110 : vector<1x128xf32>
    %c0_24 = arith.constant 0 : index
    %c0_25 = arith.constant 0 : index
    %112 = vector.load %arg8[%c0_24, %c0_25] : memref<1x128xf32, #tpu.memory_space<vmem>>, vector<1x128xf32>
    %cst_26 = arith.constant 9.99999974E-6 : f32
    %113 = vector.broadcast %cst_26 : f32 to vector<1x128xf32>
    %114 = arith.addf %111, %113 : vector<1x128xf32>
    %115 = math.rsqrt %114 : vector<1x128xf32>
    %116 = arith.mulf %112, %115 : vector<1x128xf32>
    %c0_27 = arith.constant 0 : index
    %c0_28 = arith.constant 0 : index
    %117 = vector.load %arg9[%c0_27, %c0_28] : memref<1x128xf32, #tpu.memory_space<vmem>>, vector<1x128xf32>
    %118 = arith.mulf %104, %116 : vector<1x128xf32>
    %119 = arith.subf %117, %118 : vector<1x128xf32>
    %120 = vector.broadcast %116 : vector<1x128xf32> to vector<32x128xf32>
    %121 = arith.mulf %100, %120 : vector<32x128xf32>
    %122 = vector.broadcast %119 : vector<1x128xf32> to vector<32x128xf32>
    %123 = arith.addf %121, %122 : vector<32x128xf32>
    %cst_29 = arith.constant 0.000000e+00 : f32
    %124 = vector.broadcast %cst_29 : f32 to vector<32x128xf32>
    %125 = arith.cmpf ogt, %123, %124 : vector<32x128xf32>
    %cst_30 = arith.constant 2.000000e-01 : f32
    %126 = vector.broadcast %cst_30 : f32 to vector<32x128xf32>
    %127 = arith.mulf %126, %123 : vector<32x128xf32>
    %128 = arith.select %125, %123, %127 : vector<32x128xi1>, vector<32x128xf32>
    %c0_31 = arith.constant 0 : index
    %c0_32 = arith.constant 0 : index
    %129 = vector.load %arg10[%c0_31, %c0_32] : memref<64x16xbf16, #tpu.memory_space<vmem>>, vector<64x16xbf16>
    %130 = arith.truncf %128 : vector<32x128xf32> to vector<32x128xbf16>
    %131 = vector.extract_strided_slice %130 {offsets = [0, 0], sizes = [16, 128], strides = [1, 1]} : vector<32x128xbf16> to vector<16x128xbf16>
    %cst_33 = arith.constant dense<0.000000e+00> : vector<64x128xf32>
    %132 = tpu.matmul %129, %131, %cst_33 {dimension_numbers = #tpu.dot_dimension_numbers<[1], [0], [0], [1], [0, 0, 1, 1], [], []>} : vector<64x16xbf16>, vector<16x128xbf16>, vector<64x128xf32> -> vector<64x128xf32>
    %133 = arith.truncf %132 : vector<64x128xf32> to vector<64x128xbf16>
    %134 = vector.extract_strided_slice %133 {offsets = [0, 0], sizes = [4, 128], strides = [1, 1]} : vector<64x128xbf16> to vector<4x128xbf16>
    %135 = vector.extract_strided_slice %133 {offsets = [4, 0], sizes = [4, 128], strides = [1, 1]} : vector<64x128xbf16> to vector<4x128xbf16>
    %136 = vector.extract_strided_slice %133 {offsets = [8, 0], sizes = [4, 128], strides = [1, 1]} : vector<64x128xbf16> to vector<4x128xbf16>
    %137 = vector.extract_strided_slice %133 {offsets = [12, 0], sizes = [4, 128], strides = [1, 1]} : vector<64x128xbf16> to vector<4x128xbf16>
    %138 = vector.extract_strided_slice %133 {offsets = [16, 0], sizes = [4, 128], strides = [1, 1]} : vector<64x128xbf16> to vector<4x128xbf16>
    %139 = vector.extract_strided_slice %133 {offsets = [20, 0], sizes = [4, 128], strides = [1, 1]} : vector<64x128xbf16> to vector<4x128xbf16>
    %140 = vector.extract_strided_slice %133 {offsets = [24, 0], sizes = [4, 128], strides = [1, 1]} : vector<64x128xbf16> to vector<4x128xbf16>
    %141 = vector.extract_strided_slice %133 {offsets = [28, 0], sizes = [4, 128], strides = [1, 1]} : vector<64x128xbf16> to vector<4x128xbf16>
    %142 = vector.extract_strided_slice %133 {offsets = [32, 0], sizes = [4, 128], strides = [1, 1]} : vector<64x128xbf16> to vector<4x128xbf16>
    %143 = vector.extract_strided_slice %133 {offsets = [36, 0], sizes = [4, 128], strides = [1, 1]} : vector<64x128xbf16> to vector<4x128xbf16>
    %144 = vector.extract_strided_slice %133 {offsets = [40, 0], sizes = [4, 128], strides = [1, 1]} : vector<64x128xbf16> to vector<4x128xbf16>
    %145 = vector.extract_strided_slice %133 {offsets = [44, 0], sizes = [4, 128], strides = [1, 1]} : vector<64x128xbf16> to vector<4x128xbf16>
    %146 = vector.extract_strided_slice %133 {offsets = [48, 0], sizes = [4, 128], strides = [1, 1]} : vector<64x128xbf16> to vector<4x128xbf16>
    %147 = vector.extract_strided_slice %133 {offsets = [52, 0], sizes = [4, 128], strides = [1, 1]} : vector<64x128xbf16> to vector<4x128xbf16>
    %148 = vector.extract_strided_slice %133 {offsets = [56, 0], sizes = [4, 128], strides = [1, 1]} : vector<64x128xbf16> to vector<4x128xbf16>
    %149 = vector.extract_strided_slice %133 {offsets = [60, 0], sizes = [4, 128], strides = [1, 1]} : vector<64x128xbf16> to vector<4x128xbf16>
    %150 = tpu.concatenate %134, %135, %136, %137, %138, %139, %140, %141, %142, %143, %144, %145, %146, %147, %148, %149 in 1 : vector<4x128xbf16>, vector<4x128xbf16>, vector<4x128xbf16>, vector<4x128xbf16>, vector<4x128xbf16>, vector<4x128xbf16>, vector<4x128xbf16>, vector<4x128xbf16>, vector<4x128xbf16>, vector<4x128xbf16>, vector<4x128xbf16>, vector<4x128xbf16>, vector<4x128xbf16>, vector<4x128xbf16>, vector<4x128xbf16>, vector<4x128xbf16> -> vector<4x2048xbf16>
    %151 = vector.extract_strided_slice %130 {offsets = [16, 0], sizes = [16, 128], strides = [1, 1]} : vector<32x128xbf16> to vector<16x128xbf16>
    %cst_34 = arith.constant dense<0.000000e+00> : vector<64x128xf32>
    %152 = tpu.matmul %129, %151, %cst_34 {dimension_numbers = #tpu.dot_dimension_numbers<[1], [0], [0], [1], [0, 0, 1, 1], [], []>} : vector<64x16xbf16>, vector<16x128xbf16>, vector<64x128xf32> -> vector<64x128xf32>
    %153 = arith.truncf %152 : vector<64x128xf32> to vector<64x128xbf16>
    %154 = vector.extract_strided_slice %153 {offsets = [0, 0], sizes = [4, 128], strides = [1, 1]} : vector<64x128xbf16> to vector<4x128xbf16>
    %155 = vector.extract_strided_slice %153 {offsets = [4, 0], sizes = [4, 128], strides = [1, 1]} : vector<64x128xbf16> to vector<4x128xbf16>
    %156 = vector.extract_strided_slice %153 {offsets = [8, 0], sizes = [4, 128], strides = [1, 1]} : vector<64x128xbf16> to vector<4x128xbf16>
    %157 = vector.extract_strided_slice %153 {offsets = [12, 0], sizes = [4, 128], strides = [1, 1]} : vector<64x128xbf16> to vector<4x128xbf16>
    %158 = vector.extract_strided_slice %153 {offsets = [16, 0], sizes = [4, 128], strides = [1, 1]} : vector<64x128xbf16> to vector<4x128xbf16>
    %159 = vector.extract_strided_slice %153 {offsets = [20, 0], sizes = [4, 128], strides = [1, 1]} : vector<64x128xbf16> to vector<4x128xbf16>
    %160 = vector.extract_strided_slice %153 {offsets = [24, 0], sizes = [4, 128], strides = [1, 1]} : vector<64x128xbf16> to vector<4x128xbf16>
    %161 = vector.extract_strided_slice %153 {offsets = [28, 0], sizes = [4, 128], strides = [1, 1]} : vector<64x128xbf16> to vector<4x128xbf16>
    %162 = vector.extract_strided_slice %153 {offsets = [32, 0], sizes = [4, 128], strides = [1, 1]} : vector<64x128xbf16> to vector<4x128xbf16>
    %163 = vector.extract_strided_slice %153 {offsets = [36, 0], sizes = [4, 128], strides = [1, 1]} : vector<64x128xbf16> to vector<4x128xbf16>
    %164 = vector.extract_strided_slice %153 {offsets = [40, 0], sizes = [4, 128], strides = [1, 1]} : vector<64x128xbf16> to vector<4x128xbf16>
    %165 = vector.extract_strided_slice %153 {offsets = [44, 0], sizes = [4, 128], strides = [1, 1]} : vector<64x128xbf16> to vector<4x128xbf16>
    %166 = vector.extract_strided_slice %153 {offsets = [48, 0], sizes = [4, 128], strides = [1, 1]} : vector<64x128xbf16> to vector<4x128xbf16>
    %167 = vector.extract_strided_slice %153 {offsets = [52, 0], sizes = [4, 128], strides = [1, 1]} : vector<64x128xbf16> to vector<4x128xbf16>
    %168 = vector.extract_strided_slice %153 {offsets = [56, 0], sizes = [4, 128], strides = [1, 1]} : vector<64x128xbf16> to vector<4x128xbf16>
    %169 = vector.extract_strided_slice %153 {offsets = [60, 0], sizes = [4, 128], strides = [1, 1]} : vector<64x128xbf16> to vector<4x128xbf16>
    %170 = tpu.concatenate %154, %155, %156, %157, %158, %159, %160, %161, %162, %163, %164, %165, %166, %167, %168, %169 in 1 : vector<4x128xbf16>, vector<4x128xbf16>, vector<4x128xbf16>, vector<4x128xbf16>, vector<4x128xbf16>, vector<4x128xbf16>, vector<4x128xbf16>, vector<4x128xbf16>, vector<4x128xbf16>, vector<4x128xbf16>, vector<4x128xbf16>, vector<4x128xbf16>, vector<4x128xbf16>, vector<4x128xbf16>, vector<4x128xbf16>, vector<4x128xbf16> -> vector<4x2048xbf16>
    %171 = tpu.concatenate %150, %170 in 0 : vector<4x2048xbf16>, vector<4x2048xbf16> -> vector<8x2048xbf16>
    %c0_35 = arith.constant 0 : index
    %c0_36 = arith.constant 0 : index
    %172 = vector.load %arg11[%c0_35, %c0_36] : memref<2048x128xbf16, #tpu.memory_space<vmem>>, vector<2048x128xbf16>
    %cst_37 = arith.constant dense<0.000000e+00> : vector<8x128xf32>
    %173 = tpu.matmul %171, %172, %cst_37 {dimension_numbers = #tpu.dot_dimension_numbers<[1], [0], [0], [1], [0, 0, 1, 1], [], []>} : vector<8x2048xbf16>, vector<2048x128xbf16>, vector<8x128xf32> -> vector<8x128xf32>
    %c0_38 = arith.constant 0 : index
    %c0_39 = arith.constant 0 : index
    %174 = vector.load %arg12[%c0_38, %c0_39] : memref<1x128xf32, #tpu.memory_space<vmem>>, vector<1x128xf32>
    %175 = vector.broadcast %174 : vector<1x128xf32> to vector<8x128xf32>
    %176 = arith.addf %173, %175 : vector<8x128xf32>
    %cst_40 = arith.constant dense<0.000000e+00> : vector<128xf32>
    %177 = vector.multi_reduction <add>, %176, %cst_40 [0] : vector<8x128xf32> to vector<128xf32>
    %178 = vector.shape_cast %177 : vector<128xf32> to vector<1x128xf32>
    %cst_41 = arith.constant 1.250000e-01 : f32
    %179 = vector.broadcast %cst_41 : f32 to vector<1x128xf32>
    %180 = arith.mulf %178, %179 : vector<1x128xf32>
    %181 = arith.mulf %176, %176 : vector<8x128xf32>
    %cst_42 = arith.constant dense<0.000000e+00> : vector<128xf32>
    %182 = vector.multi_reduction <add>, %181, %cst_42 [0] : vector<8x128xf32> to vector<128xf32>
    %183 = vector.shape_cast %182 : vector<128xf32> to vector<1x128xf32>
    %cst_43 = arith.constant 1.250000e-01 : f32
    %184 = vector.broadcast %cst_43 : f32 to vector<1x128xf32>
    %185 = arith.mulf %183, %184 : vector<1x128xf32>
    %186 = arith.mulf %180, %180 : vector<1x128xf32>
    %187 = arith.subf %185, %186 : vector<1x128xf32>
    %c0_44 = arith.constant 0 : index
    %c0_45 = arith.constant 0 : index
    %188 = vector.load %arg13[%c0_44, %c0_45] : memref<1x128xf32, #tpu.memory_space<vmem>>, vector<1x128xf32>
    %cst_46 = arith.constant 9.99999974E-6 : f32
    %189 = vector.broadcast %cst_46 : f32 to vector<1x128xf32>
    %190 = arith.addf %187, %189 : vector<1x128xf32>
    %191 = math.rsqrt %190 : vector<1x128xf32>
    %192 = arith.mulf %188, %191 : vector<1x128xf32>
    %c0_47 = arith.constant 0 : index
    %c0_48 = arith.constant 0 : index
    %193 = vector.load %arg14[%c0_47, %c0_48] : memref<1x128xf32, #tpu.memory_space<vmem>>, vector<1x128xf32>
    %194 = arith.mulf %180, %192 : vector<1x128xf32>
    %195 = arith.subf %193, %194 : vector<1x128xf32>
    %196 = vector.broadcast %192 : vector<1x128xf32> to vector<8x128xf32>
    %197 = arith.mulf %176, %196 : vector<8x128xf32>
    %198 = vector.broadcast %195 : vector<1x128xf32> to vector<8x128xf32>
    %199 = arith.addf %197, %198 : vector<8x128xf32>
    %cst_49 = arith.constant 0.000000e+00 : f32
    %200 = vector.broadcast %cst_49 : f32 to vector<8x128xf32>
    %201 = arith.cmpf ogt, %199, %200 : vector<8x128xf32>
    %cst_50 = arith.constant 2.000000e-01 : f32
    %202 = vector.broadcast %cst_50 : f32 to vector<8x128xf32>
    %203 = arith.mulf %202, %199 : vector<8x128xf32>
    %204 = arith.select %201, %199, %203 : vector<8x128xi1>, vector<8x128xf32>
    %c0_51 = arith.constant 0 : index
    %c0_52 = arith.constant 0 : index
    %205 = vector.load %arg15[%c0_51, %c0_52] : memref<16x4xbf16, #tpu.memory_space<vmem>>, vector<16x4xbf16>
    %206 = arith.truncf %204 : vector<8x128xf32> to vector<8x128xbf16>
    %207 = vector.extract_strided_slice %206 {offsets = [0, 0], sizes = [4, 128], strides = [1, 1]} : vector<8x128xbf16> to vector<4x128xbf16>
    %cst_53 = arith.constant dense<0.000000e+00> : vector<16x128xf32>
    %208 = tpu.matmul %205, %207, %cst_53 {dimension_numbers = #tpu.dot_dimension_numbers<[1], [0], [0], [1], [0, 0, 1, 1], [], []>} : vector<16x4xbf16>, vector<4x128xbf16>, vector<16x128xf32> -> vector<16x128xf32>
    %209 = arith.truncf %208 : vector<16x128xf32> to vector<16x128xbf16>
    %210 = vector.extract_strided_slice %209 {offsets = [0, 0], sizes = [1, 128], strides = [1, 1]} : vector<16x128xbf16> to vector<1x128xbf16>
    %211 = vector.extract_strided_slice %209 {offsets = [1, 0], sizes = [1, 128], strides = [1, 1]} : vector<16x128xbf16> to vector<1x128xbf16>
    %212 = vector.extract_strided_slice %209 {offsets = [2, 0], sizes = [1, 128], strides = [1, 1]} : vector<16x128xbf16> to vector<1x128xbf16>
    %213 = vector.extract_strided_slice %209 {offsets = [3, 0], sizes = [1, 128], strides = [1, 1]} : vector<16x128xbf16> to vector<1x128xbf16>
    %214 = vector.extract_strided_slice %209 {offsets = [4, 0], sizes = [1, 128], strides = [1, 1]} : vector<16x128xbf16> to vector<1x128xbf16>
    %215 = vector.extract_strided_slice %209 {offsets = [5, 0], sizes = [1, 128], strides = [1, 1]} : vector<16x128xbf16> to vector<1x128xbf16>
    %216 = vector.extract_strided_slice %209 {offsets = [6, 0], sizes = [1, 128], strides = [1, 1]} : vector<16x128xbf16> to vector<1x128xbf16>
    %217 = vector.extract_strided_slice %209 {offsets = [7, 0], sizes = [1, 128], strides = [1, 1]} : vector<16x128xbf16> to vector<1x128xbf16>
    %218 = vector.extract_strided_slice %209 {offsets = [8, 0], sizes = [1, 128], strides = [1, 1]} : vector<16x128xbf16> to vector<1x128xbf16>
    %219 = vector.extract_strided_slice %209 {offsets = [9, 0], sizes = [1, 128], strides = [1, 1]} : vector<16x128xbf16> to vector<1x128xbf16>
    %220 = vector.extract_strided_slice %209 {offsets = [10, 0], sizes = [1, 128], strides = [1, 1]} : vector<16x128xbf16> to vector<1x128xbf16>
    %221 = vector.extract_strided_slice %209 {offsets = [11, 0], sizes = [1, 128], strides = [1, 1]} : vector<16x128xbf16> to vector<1x128xbf16>
    %222 = vector.extract_strided_slice %209 {offsets = [12, 0], sizes = [1, 128], strides = [1, 1]} : vector<16x128xbf16> to vector<1x128xbf16>
    %223 = vector.extract_strided_slice %209 {offsets = [13, 0], sizes = [1, 128], strides = [1, 1]} : vector<16x128xbf16> to vector<1x128xbf16>
    %224 = vector.extract_strided_slice %209 {offsets = [14, 0], sizes = [1, 128], strides = [1, 1]} : vector<16x128xbf16> to vector<1x128xbf16>
    %225 = vector.extract_strided_slice %209 {offsets = [15, 0], sizes = [1, 128], strides = [1, 1]} : vector<16x128xbf16> to vector<1x128xbf16>
    %226 = tpu.concatenate %210, %211, %212, %213, %214, %215, %216, %217, %218, %219, %220, %221, %222, %223, %224, %225 in 1 : vector<1x128xbf16>, vector<1x128xbf16>, vector<1x128xbf16>, vector<1x128xbf16>, vector<1x128xbf16>, vector<1x128xbf16>, vector<1x128xbf16>, vector<1x128xbf16>, vector<1x128xbf16>, vector<1x128xbf16>, vector<1x128xbf16>, vector<1x128xbf16>, vector<1x128xbf16>, vector<1x128xbf16>, vector<1x128xbf16>, vector<1x128xbf16> -> vector<1x2048xbf16>
    %227 = vector.extract_strided_slice %206 {offsets = [4, 0], sizes = [4, 128], strides = [1, 1]} : vector<8x128xbf16> to vector<4x128xbf16>
    %cst_54 = arith.constant dense<0.000000e+00> : vector<16x128xf32>
    %228 = tpu.matmul %205, %227, %cst_54 {dimension_numbers = #tpu.dot_dimension_numbers<[1], [0], [0], [1], [0, 0, 1, 1], [], []>} : vector<16x4xbf16>, vector<4x128xbf16>, vector<16x128xf32> -> vector<16x128xf32>
    %229 = arith.truncf %228 : vector<16x128xf32> to vector<16x128xbf16>
    %230 = vector.extract_strided_slice %229 {offsets = [0, 0], sizes = [1, 128], strides = [1, 1]} : vector<16x128xbf16> to vector<1x128xbf16>
    %231 = vector.extract_strided_slice %229 {offsets = [1, 0], sizes = [1, 128], strides = [1, 1]} : vector<16x128xbf16> to vector<1x128xbf16>
    %232 = vector.extract_strided_slice %229 {offsets = [2, 0], sizes = [1, 128], strides = [1, 1]} : vector<16x128xbf16> to vector<1x128xbf16>
    %233 = vector.extract_strided_slice %229 {offsets = [3, 0], sizes = [1, 128], strides = [1, 1]} : vector<16x128xbf16> to vector<1x128xbf16>
    %234 = vector.extract_strided_slice %229 {offsets = [4, 0], sizes = [1, 128], strides = [1, 1]} : vector<16x128xbf16> to vector<1x128xbf16>
    %235 = vector.extract_strided_slice %229 {offsets = [5, 0], sizes = [1, 128], strides = [1, 1]} : vector<16x128xbf16> to vector<1x128xbf16>
    %236 = vector.extract_strided_slice %229 {offsets = [6, 0], sizes = [1, 128], strides = [1, 1]} : vector<16x128xbf16> to vector<1x128xbf16>
    %237 = vector.extract_strided_slice %229 {offsets = [7, 0], sizes = [1, 128], strides = [1, 1]} : vector<16x128xbf16> to vector<1x128xbf16>
    %238 = vector.extract_strided_slice %229 {offsets = [8, 0], sizes = [1, 128], strides = [1, 1]} : vector<16x128xbf16> to vector<1x128xbf16>
    %239 = vector.extract_strided_slice %229 {offsets = [9, 0], sizes = [1, 128], strides = [1, 1]} : vector<16x128xbf16> to vector<1x128xbf16>
    %240 = vector.extract_strided_slice %229 {offsets = [10, 0], sizes = [1, 128], strides = [1, 1]} : vector<16x128xbf16> to vector<1x128xbf16>
    %241 = vector.extract_strided_slice %229 {offsets = [11, 0], sizes = [1, 128], strides = [1, 1]} : vector<16x128xbf16> to vector<1x128xbf16>
    %242 = vector.extract_strided_slice %229 {offsets = [12, 0], sizes = [1, 128], strides = [1, 1]} : vector<16x128xbf16> to vector<1x128xbf16>
    %243 = vector.extract_strided_slice %229 {offsets = [13, 0], sizes = [1, 128], strides = [1, 1]} : vector<16x128xbf16> to vector<1x128xbf16>
    %244 = vector.extract_strided_slice %229 {offsets = [14, 0], sizes = [1, 128], strides = [1, 1]} : vector<16x128xbf16> to vector<1x128xbf16>
    %245 = vector.extract_strided_slice %229 {offsets = [15, 0], sizes = [1, 128], strides = [1, 1]} : vector<16x128xbf16> to vector<1x128xbf16>
    %246 = tpu.concatenate %230, %231, %232, %233, %234, %235, %236, %237, %238, %239, %240, %241, %242, %243, %244, %245 in 1 : vector<1x128xbf16>, vector<1x128xbf16>, vector<1x128xbf16>, vector<1x128xbf16>, vector<1x128xbf16>, vector<1x128xbf16>, vector<1x128xbf16>, vector<1x128xbf16>, vector<1x128xbf16>, vector<1x128xbf16>, vector<1x128xbf16>, vector<1x128xbf16>, vector<1x128xbf16>, vector<1x128xbf16>, vector<1x128xbf16>, vector<1x128xbf16> -> vector<1x2048xbf16>
    %247 = tpu.concatenate %226, %246 in 0 : vector<1x2048xbf16>, vector<1x2048xbf16> -> vector<2x2048xbf16>
    %c0_55 = arith.constant 0 : index
    %c0_56 = arith.constant 0 : index
    %248 = vector.load %arg16[%c0_55, %c0_56] : memref<2048x128xbf16, #tpu.memory_space<vmem>>, vector<2048x128xbf16>
    %cst_57 = arith.constant dense<0.000000e+00> : vector<2x128xf32>
    %249 = tpu.matmul %247, %248, %cst_57 {dimension_numbers = #tpu.dot_dimension_numbers<[1], [0], [0], [1], [0, 0, 1, 1], [], []>} : vector<2x2048xbf16>, vector<2048x128xbf16>, vector<2x128xf32> -> vector<2x128xf32>
    %c0_58 = arith.constant 0 : index
    %c0_59 = arith.constant 0 : index
    %250 = vector.load %arg17[%c0_58, %c0_59] : memref<1x128xf32, #tpu.memory_space<vmem>>, vector<1x128xf32>
    %251 = vector.broadcast %250 : vector<1x128xf32> to vector<2x128xf32>
    %252 = arith.addf %249, %251 : vector<2x128xf32>
    %cst_60 = arith.constant dense<0.000000e+00> : vector<128xf32>
    %253 = vector.multi_reduction <add>, %252, %cst_60 [0] : vector<2x128xf32> to vector<128xf32>
    %254 = vector.shape_cast %253 : vector<128xf32> to vector<1x128xf32>
    %cst_61 = arith.constant 5.000000e-01 : f32
    %255 = vector.broadcast %cst_61 : f32 to vector<1x128xf32>
    %256 = arith.mulf %254, %255 : vector<1x128xf32>
    %257 = arith.mulf %252, %252 : vector<2x128xf32>
    %cst_62 = arith.constant dense<0.000000e+00> : vector<128xf32>
    %258 = vector.multi_reduction <add>, %257, %cst_62 [0] : vector<2x128xf32> to vector<128xf32>
    %259 = vector.shape_cast %258 : vector<128xf32> to vector<1x128xf32>
    %cst_63 = arith.constant 5.000000e-01 : f32
    %260 = vector.broadcast %cst_63 : f32 to vector<1x128xf32>
    %261 = arith.mulf %259, %260 : vector<1x128xf32>
    %262 = arith.mulf %256, %256 : vector<1x128xf32>
    %263 = arith.subf %261, %262 : vector<1x128xf32>
    %c0_64 = arith.constant 0 : index
    %c0_65 = arith.constant 0 : index
    %264 = vector.load %arg18[%c0_64, %c0_65] : memref<1x128xf32, #tpu.memory_space<vmem>>, vector<1x128xf32>
    %cst_66 = arith.constant 9.99999974E-6 : f32
    %265 = vector.broadcast %cst_66 : f32 to vector<1x128xf32>
    %266 = arith.addf %263, %265 : vector<1x128xf32>
    %267 = math.rsqrt %266 : vector<1x128xf32>
    %268 = arith.mulf %264, %267 : vector<1x128xf32>
    %c0_67 = arith.constant 0 : index
    %c0_68 = arith.constant 0 : index
    %269 = vector.load %arg19[%c0_67, %c0_68] : memref<1x128xf32, #tpu.memory_space<vmem>>, vector<1x128xf32>
    %270 = arith.mulf %256, %268 : vector<1x128xf32>
    %271 = arith.subf %269, %270 : vector<1x128xf32>
    %272 = vector.broadcast %268 : vector<1x128xf32> to vector<2x128xf32>
    %273 = arith.mulf %252, %272 : vector<2x128xf32>
    %274 = vector.broadcast %271 : vector<1x128xf32> to vector<2x128xf32>
    %275 = arith.addf %273, %274 : vector<2x128xf32>
    %cst_69 = arith.constant 0.000000e+00 : f32
    %276 = vector.broadcast %cst_69 : f32 to vector<2x128xf32>
    %277 = arith.cmpf ogt, %275, %276 : vector<2x128xf32>
    %cst_70 = arith.constant 2.000000e-01 : f32
    %278 = vector.broadcast %cst_70 : f32 to vector<2x128xf32>
    %279 = arith.mulf %278, %275 : vector<2x128xf32>
    %280 = arith.select %277, %275, %279 : vector<2x128xi1>, vector<2x128xf32>
    %281 = arith.truncf %280 : vector<2x128xf32> to vector<2x128xbf16>
    %c0_71 = arith.constant 0 : index
    %c0_72 = arith.constant 0 : index
    %282 = vector.load %arg20[%c0_71, %c0_72] : memref<128x1xbf16, #tpu.memory_space<vmem>>, vector<128x1xbf16>
    %cst_73 = arith.constant dense<0.000000e+00> : vector<2x1xf32>
    %283 = tpu.matmul %281, %282, %cst_73 {dimension_numbers = #tpu.dot_dimension_numbers<[1], [0], [0], [1], [0, 0, 1, 1], [], []>} : vector<2x128xbf16>, vector<128x1xbf16>, vector<2x1xf32> -> vector<2x1xf32>
    %c0_74 = arith.constant 0 : index
    %c0_75 = arith.constant 0 : index
    %284 = vector.load %arg21[%c0_74, %c0_75] : memref<1x1xf32, #tpu.memory_space<vmem>>, vector<1x1xf32>
    %285 = vector.broadcast %284 : vector<1x1xf32> to vector<2x1xf32>
    %286 = arith.addf %283, %285 : vector<2x1xf32>
    %cst_76 = arith.constant 0.000000e+00 : f32
    %287 = vector.broadcast %cst_76 : f32 to vector<2x1xf32>
    %288 = arith.subf %287, %286 : vector<2x1xf32>
    %289 = math.exp %288 : vector<2x1xf32>
    %cst_77 = arith.constant 1.000000e+00 : f32
    %290 = vector.broadcast %cst_77 : f32 to vector<2x1xf32>
    %291 = arith.addf %290, %289 : vector<2x1xf32>
    %292 = tpu.reciprocal %291 {approx = true} : vector<2x1xf32> -> vector<2x1xf32>
    %c0_78 = arith.constant 0 : index
    %c0_79 = arith.constant 0 : index
    %293 = vector.load %arg22[%c0_78, %c0_79] : memref<2x1xf32, #tpu.memory_space<vmem>>, vector<2x1xf32>
    tpu.vector_store %arg22[%c0_78, %c0_79], %292 {strides = array<i32>} : memref<2x1xf32, #tpu.memory_space<vmem>>, vector<2x1xf32>,
    return
  }
  func.func @transform_0(%arg0: i32) -> (i32, i32) {
    %c0_i32 = arith.constant 0 : i32
    %c0_i32_0 = arith.constant 0 : i32
    %c0_i32_1 = arith.constant 0 : i32
    return %c0_i32, %c0_i32_0 : i32, i32
  }
  func.func @transform_1(%arg0: i32) -> (i32, i32) {
    %c0_i32 = arith.constant 0 : i32
    %c0_i32_0 = arith.constant 0 : i32
    %c0_i32_1 = arith.constant 0 : i32
    return %c0_i32, %c0_i32_0 : i32, i32
  }
  func.func @transform_2(%arg0: i32) -> (i32, i32) {
    %c0_i32 = arith.constant 0 : i32
    %c0_i32_0 = arith.constant 0 : i32
    %c0_i32_1 = arith.constant 0 : i32
    return %c0_i32, %c0_i32_0 : i32, i32
  }
  func.func @transform_3(%arg0: i32) -> (i32, i32) {
    %c0_i32 = arith.constant 0 : i32
    %c0_i32_0 = arith.constant 0 : i32
    %c0_i32_1 = arith.constant 0 : i32
    return %c0_i32, %c0_i32_0 : i32, i32
  }
  func.func @transform_4(%arg0: i32) -> (i32, i32) {
    %c0_i32 = arith.constant 0 : i32
    %c0_i32_0 = arith.constant 0 : i32
    %c0_i32_1 = arith.constant 0 : i32
    return %c0_i32, %c0_i32_0 : i32, i32
  }
  func.func @transform_5(%arg0: i32) -> (i32, i32) {
    %c0_i32 = arith.constant 0 : i32
    %c0_i32_0 = arith.constant 0 : i32
    %c0_i32_1 = arith.constant 0 : i32
    return %c0_i32, %c0_i32_0 : i32, i32
  }
  func.func @transform_6(%arg0: i32) -> (i32, i32) {
    %c0_i32 = arith.constant 0 : i32
    %c0_i32_0 = arith.constant 0 : i32
    %c0_i32_1 = arith.constant 0 : i32
    return %c0_i32, %c0_i32_0 : i32, i32
  }
  func.func @transform_7(%arg0: i32) -> (i32, i32) {
    %c0_i32 = arith.constant 0 : i32
    %c0_i32_0 = arith.constant 0 : i32
    %c0_i32_1 = arith.constant 0 : i32
    return %c0_i32, %c0_i32_0 : i32, i32
  }
  func.func @transform_8(%arg0: i32) -> (i32, i32) {
    %c0_i32 = arith.constant 0 : i32
    %c0_i32_0 = arith.constant 0 : i32
    %c0_i32_1 = arith.constant 0 : i32
    return %c0_i32, %c0_i32_0 : i32, i32
  }
  func.func @transform_9(%arg0: i32) -> (i32, i32) {
    %c0_i32 = arith.constant 0 : i32
    %c0_i32_0 = arith.constant 0 : i32
    %c0_i32_1 = arith.constant 0 : i32
    return %c0_i32, %c0_i32_0 : i32, i32
  }
  func.func @transform_10(%arg0: i32) -> (i32, i32) {
    %c0_i32 = arith.constant 0 : i32
    %c0_i32_0 = arith.constant 0 : i32
    %c0_i32_1 = arith.constant 0 : i32
    return %c0_i32, %c0_i32_0 : i32, i32
  }
  func.func @transform_11(%arg0: i32) -> (i32, i32) {
    %c0_i32 = arith.constant 0 : i32
    %c0_i32_0 = arith.constant 0 : i32
    %c0_i32_1 = arith.constant 0 : i32
    return %c0_i32, %c0_i32_0 : i32, i32
  }
  func.func @transform_12(%arg0: i32) -> (i32, i32) {
    %c0_i32 = arith.constant 0 : i32
    %c0_i32_0 = arith.constant 0 : i32
    %c0_i32_1 = arith.constant 0 : i32
    return %c0_i32, %c0_i32_0 : i32, i32
  }
  func.func @transform_13(%arg0: i32) -> (i32, i32) {
    %c0_i32 = arith.constant 0 : i32
    %c0_i32_0 = arith.constant 0 : i32
    %c0_i32_1 = arith.constant 0 : i32
    return %c0_i32, %c0_i32_0 : i32, i32
  }
  func.func @transform_14(%arg0: i32) -> (i32, i32) {
    %c0_i32 = arith.constant 0 : i32
    %c0_i32_0 = arith.constant 0 : i32
    %c0_i32_1 = arith.constant 0 : i32
    return %c0_i32, %c0_i32_0 : i32, i32
  }
  func.func @transform_15(%arg0: i32) -> (i32, i32) {
    %c0_i32 = arith.constant 0 : i32
    %c0_i32_0 = arith.constant 0 : i32
    %c0_i32_1 = arith.constant 0 : i32
    return %c0_i32, %c0_i32_0 : i32, i32
  }
  func.func @transform_16(%arg0: i32) -> (i32, i32) {
    %c0_i32 = arith.constant 0 : i32
    %c0_i32_0 = arith.constant 0 : i32
    %c0_i32_1 = arith.constant 0 : i32
    return %c0_i32, %c0_i32_0 : i32, i32
  }
  func.func @transform_17(%arg0: i32) -> (i32, i32) {
    %c0_i32 = arith.constant 0 : i32
    %c0_i32_0 = arith.constant 0 : i32
    %c0_i32_1 = arith.constant 0 : i32
    return %c0_i32, %c0_i32_0 : i32, i32
  }
  func.func @transform_18(%arg0: i32) -> (i32, i32) {
    %c0_i32 = arith.constant 0 : i32
    %c0_i32_0 = arith.constant 0 : i32
    %c0_i32_1 = arith.constant 0 : i32
    return %c0_i32, %c0_i32_0 : i32, i32
  }
  func.func @transform_19(%arg0: i32) -> (i32, i32) {
    %c0_i32 = arith.constant 0 : i32
    %c0_i32_0 = arith.constant 0 : i32
    %c0_i32_1 = arith.constant 0 : i32
    return %c0_i32, %c0_i32_0 : i32, i32
  }
  func.func @transform_20(%arg0: i32) -> (i32, i32) {
    %c0_i32 = arith.constant 0 : i32
    %c0_i32_0 = arith.constant 0 : i32
    %c0_i32_1 = arith.constant 0 : i32
    return %c0_i32, %c0_i32_0 : i32, i32
  }
  func.func @transform_21(%arg0: i32) -> (i32, i32) {
    %c0_i32 = arith.constant 0 : i32
    %c0_i32_0 = arith.constant 0 : i32
    %c0_i32_1 = arith.constant 0 : i32
    return %c0_i32, %c0_i32_0 : i32, i32
  }
}

</mosaic_0001>

<bundles_post_ra>
// kernel: discriminator_forward.1
= control target key start
LH: loop header
LB: loop body
LE: loop exit
PB: predicated region body
PF: predicated region fallthrough
CT: control target
= control target key end

     0   :  { %s15090_s0 = inlined_call_operand.vmem [shape: bf16[512,128], index: 0, kind: input, shape index: {}]   ;;  %s15091_s1 = inlined_call_operand.vmem [shape: bf16[1024,256], index: 1, kind: input, shape index: {}]   ;;  %s15092_s2 = inlined_call_operand.hbm [shape: bf16[2048,128], index: 2, kind: input, shape index: {}]   ;;  %s15093_s3 = inlined_call_operand.vmem [shape: f32[1,128], index: 3, kind: input, shape index: {}]   ;;  %s15094_s4 = inlined_call_operand.vmem [shape: bf16[256,64], index: 4, kind: input, shape index: {}]   ;;  %s15095_s5 = inlined_call_operand.hbm [shape: bf16[2048,128], index: 5, kind: input, shape index: {}]   ;;  %s15096_s6 = inlined_call_operand.vmem [shape: f32[1,128], index: 6, kind: input, shape index: {}]   ;;  %s15097_s7 = inlined_call_operand.vmem [shape: f32[1,128], index: 7, kind: input, shape index: {}]   ;;  %s15098_s8 = inlined_call_operand.vmem [shape: f32[1,128], index: 8, kind: input, shape index: {}]   ;;  %s15099_s9 = inlined_call_operand.vmem [shape: bf16[64,16], index: 9, kind: input, shape index: {}]   ;;  %s15100_s10 = inlined_call_operand.hbm [shape: bf16[2048,128], index: 10, kind: input, shape index: {}]   ;;  %s15101_s11 = inlined_call_operand.vmem [shape: f32[1,128], index: 11, kind: input, shape index: {}]   ;;  %s15102_s12 = inlined_call_operand.vmem [shape: f32[1,128], index: 12, kind: input, shape index: {}]   ;;  %s15103_s13 = inlined_call_operand.vmem [shape: f32[1,128], index: 13, kind: input, shape index: {}]   ;;  %s15104_s14 = inlined_call_operand.vmem [shape: bf16[16,4], index: 14, kind: input, shape index: {}]   ;;  %s15105_s15 = inlined_call_operand.hbm [shape: bf16[2048,128], index: 15, kind: input, shape index: {}]   ;;  %s15106_s16 = inlined_call_operand.vmem [shape: f32[1,128], index: 16, kind: input, shape index: {}]   ;;  %s15107_s17 = inlined_call_operand.vmem [shape: f32[1,128], index: 17, kind: input, shape index: {}]   ;;  %s15108_s18 = inlined_call_operand.vmem [shape: f32[1,128], index: 18, kind: input, shape index: {}]   ;;  %s15109_s19 = inlined_call_operand.vmem [shape: bf16[128,1], index: 19, kind: input, shape index: {}]   ;;  %s15110_s20 = inlined_call_operand.<no memory space> [shape: f32[1,1], index: 20, kind: input, shape index: {}]   ;;  %s15111_s21 = inlined_call_operand.vmem [shape: f32[2,1], index: 21, kind: output, shape index: {}]  }
   0x1   :  { %15228 = sst [smem:[#allocation107_spill]] %s15090_s0  ;;  %v26_v0 = vstv %s15110_s20 }
   0x2   :  { %15229 = sst [smem:[#allocation108_spill]] %s15091_s1  ;;  %27 = vst [vmem:[#allocation2] sm:$0x1] %v26_v0 }
   0x3   :  { %15230 = sst [smem:[#allocation109_spill]] %s15092_s2 }
   0x4   :  { %15231 = sst [smem:[#allocation110_spill]] %s15093_s3 }
   0x5   :  { %15232 = sst [smem:[#allocation111_spill]] %s15094_s4 }
   0x6   :  { %15233 = sst [smem:[#allocation112_spill]] %s15095_s5 }
   0x7   :  { %15234 = sst [smem:[#allocation113_spill]] %s15111_s21 }
   0x8   :  { %28 = vsyncpa [#allocation4], 0 }
   0x9   :  { %29 = vsyncpa [#allocation6], 0 }
   0xa   :  { %30 = vsyncpa [#allocation9], 0  ;;  %s12598_s26 = smov [#allocation5]   ;;  %s12599_s3 = smov [#allocation3]  }
   0xb   :  { %s56_s27 = sshll.u32 %s12598_s26, 4  ;;  %s40_s28 = sshll.u32 %s12599_s3, 4  ;;  %s57_s27 = int_to_ptr.vmem [resolvable:$true] %s56_s27  ;;  %s12720_s28 = int_to_ptr.vmem [resolvable:$true] %s40_s28 }
   0xc   :  { %s15235_s4 = sld [smem:[#allocation112_spill]] }
  0x12   :  { %s12504_s30 = scalar_lea.hbm %s15235_s4, 16384 }
  0x13   :  { %p12505_p0 = scmp.ne.s32.totalorder %s15235_s4, %s12504_s30  ;;  %p12508_p1 = scmp.lt.u32.totalorder %s12504_s30, %s15235_s4 }
  0x15   :  { %p12510_p2 = pnand %p12508_p1, %p12505_p0 }
  0x17   :  { %12513 = shalt.err (!%p12510_p2)
}
  0x18   :  { %s12514_s1 = scalar_lea.vmem %s57_s27, 16384  ;;  %p12519_p4 = scmp.lt.s32.totalorder %s57_s27, %s57_s27 }
  0x19   :  { %p12515_p3 = scmp.ne.s32.totalorder %s57_s27, %s12514_s1  ;;  %p12520_p5 = scmp.lt.s32.totalorder %s12514_s1, %s12514_s1 }
  0x1b   :  { %p12521_p6 = por %p12520_p5, %p12519_p4 }
  0x1d   :  { %p12522_p7 = pnand %p12521_p6, %p12515_p3 }
  0x1f   :  { %12525 = shalt.err (!%p12522_p7)
}
  0x20   :  { %s12600_s24 = smov 64   ;;  %s12601_s2 = smov 4  }
  0x21   :  { %62 = dma.hbm_to_vmem [thread:$0]  %s15235_s4, 16384, %s57_s27, [#allocation6], %s12600_s24, %s12600_s24, %s12601_s2  }
  0x22   :  { %s15236_s0 = sld [smem:[#allocation109_spill]] }
  0x28   :  { %s12526_s30 = scalar_lea.hbm %s15236_s0, 16384 }
  0x29   :  { %p12527_p8 = scmp.ne.s32.totalorder %s15236_s0, %s12526_s30  ;;  %p12530_p9 = scmp.lt.u32.totalorder %s12526_s30, %s15236_s0 }
  0x2b   :  { %p12532_p10 = pnand %p12530_p9, %p12527_p8 }
  0x2d   :  { %12535 = shalt.err (!%p12532_p10)
}
  0x2e   :  { %s12536_s1 = scalar_lea.vmem %s12720_s28, 16384  ;;  %p12541_p12 = scmp.lt.s32.totalorder %s12720_s28, %s12720_s28 }
  0x2f   :  { %p12537_p11 = scmp.ne.s32.totalorder %s12720_s28, %s12536_s1  ;;  %p12542_p13 = scmp.lt.s32.totalorder %s12536_s1, %s12536_s1 }
  0x31   :  { %p12543_p0 = por %p12542_p13, %p12541_p12 }
  0x33   :  { %p12544_p1 = pnand %p12543_p0, %p12537_p11 }
  0x35   :  { %12547 = shalt.err (!%p12544_p1)
}
  0x36   :  { %46 = dma.hbm_to_vmem [thread:$0]  %s15236_s0, 16384, %s12720_s28, [#allocation4], %s12600_s24, %s12600_s24, %s12601_s2  }
  0x37   :  { %s12602_s25 = smov [#allocation7]   ;;  %s12603_s3 = smov [#allocation8]  }
  0x38   :  { %s76_s26 = sshll.u32 %s12602_s25, 4  ;;  %s96_s29 = sshll.u32 %s12603_s3, 4  ;;  %s77_s26 = int_to_ptr.vmem [resolvable:$true] %s76_s26  ;;  %s12757_s29 = int_to_ptr.vmem [resolvable:$true] %s96_s29 }
  0x39   :  { %s12548_s22 = scalar_lea.hbm %s15100_s10, 16384 }
  0x3a   :  { %p12549_p2 = scmp.ne.s32.totalorder %s15100_s10, %s12548_s22  ;;  %p12552_p3 = scmp.lt.u32.totalorder %s12548_s22, %s15100_s10 }
  0x3c   :  { %p12554_p4 = pnand %p12552_p3, %p12549_p2 }
  0x3e   :  { %12557 = shalt.err (!%p12554_p4)
}
  0x3f   :  { %s12558_s28 = scalar_lea.vmem %s77_s26, 16384  ;;  %p12563_p6 = scmp.lt.s32.totalorder %s77_s26, %s77_s26 }
  0x40   :  { %p12559_p5 = scmp.ne.s32.totalorder %s77_s26, %s12558_s28  ;;  %p12564_p7 = scmp.lt.s32.totalorder %s12558_s28, %s12558_s28 }
  0x42   :  { %p12565_p8 = por %p12564_p7, %p12563_p6 }
  0x44   :  { %p12566_p9 = pnand %p12565_p8, %p12559_p5 }
  0x46   :  { %12569 = shalt.err (!%p12566_p9)
}
  0x47   :  { %82 = dma.hbm_to_vmem [thread:$0]  %s15100_s10, 16384, %s77_s26, [#allocation6], %s12600_s24, %s12600_s24, %s12601_s2  }
  0x48   :  { %s12570_s21 = scalar_lea.hbm %s15105_s15, 16384 }
  0x49   :  { %p12571_p10 = scmp.ne.s32.totalorder %s15105_s15, %s12570_s21  ;;  %p12574_p11 = scmp.lt.u32.totalorder %s12570_s21, %s15105_s15 }
  0x4b   :  { %p12576_p12 = pnand %p12574_p11, %p12571_p10 }
  0x4d   :  { %12579 = shalt.err (!%p12576_p12)
}
  0x4e   :  { %s12580_s20 = scalar_lea.vmem %s12757_s29, 16384  ;;  %p12585_p0 = scmp.lt.s32.totalorder %s12757_s29, %s12757_s29 }
  0x4f   :  { %p12581_p13 = scmp.ne.s32.totalorder %s12757_s29, %s12580_s20  ;;  %p12586_p1 = scmp.lt.s32.totalorder %s12580_s20, %s12580_s20 }
  0x51   :  { %p12587_p2 = por %p12586_p1, %p12585_p0 }
  0x53   :  { %p12588_p3 = pnand %p12587_p2, %p12581_p13 }
  0x55   :  { %12591 = shalt.err (!%p12588_p3)
}
  0x56   :  { %102 = dma.hbm_to_vmem [thread:$0]  %s15105_s15, 16384, %s12757_s29, [#allocation9], %s12600_s24, %s12600_s24, %s12601_s2  }
  0x57   :  { %12592 = dma.done.wait [#allocation4], 16384  }
  0x58   :  { %12593 = vsyncadd [#allocation4], 4294950912 }
  0x59   :  { %12594 = dma.done.wait [#allocation6], 32768  }
  0x5a   :  { %12595 = vsyncadd [#allocation6], 4294934528 }
  0x5b   :  { %12596 = dma.done.wait [#allocation9], 16384  }
  0x5c   :  { %12597 = vsyncadd [#allocation9], 4294950912  ;;  %v12604_v1 = vmov 0   ;;  %s15237_s28 = sld [smem:[#allocation107_spill]]  ;;  %s15238_s0 = sld [smem:[#allocation108_spill]]  ;;  %v11773_v36 = vld [vmem:[#allocation3 + $0x40] sm:$0xff]  }
  0x5d   :  { %1054 = vmatprep.subr.bf16.mxu0 %v12604_v1  ;;  %1759 = vmatprep.subr.bf16.mxu1 %v12604_v1  ;;  %v11775_v38 = vld [vmem:[#allocation3 + $0xc0] sm:$0xff]   ;;  %v11801_v41 = vld [vmem:[#allocation3 + $0x48] sm:$0xff]   ;;  %v11829_v51 = vld [vmem:[#allocation3 + $0x50] sm:$0xff]   ;;  %s15552_s26 = sld [smem:[#allocation110_spill]]  ;;  %s15571_s1 = sld [smem:[#allocation111_spill]]  ;;  %vm4343_vm0 = vcmask 523264  }
  0x5e   :  { %v11774_v39 = vld [vmem:[#allocation3] sm:$0xff]   ;;  %v11803_v42 = vld [vmem:[#allocation3 + $0xc8] sm:$0xff]   ;;  %v11830_v52 = vld [vmem:[#allocation3 + $0x10] sm:$0xff]   ;;  %s15574_s29 = sld [smem:[#allocation113_spill]] }
  0x5f   :  { %v11778_v40 = vld [vmem:[#allocation3 + $0x80] sm:$0xff]   ;;  %v11802_v43 = vld [vmem:[#allocation3 + $0x8] sm:$0xff]   ;;  %v11831_v53 = vld [vmem:[#allocation3 + $0xd0] sm:$0xff]  }
  0x60   :  { %v11806_v45 = vld [vmem:[#allocation3 + $0x88] sm:$0xff]   ;;  %v11834_v55 = vld [vmem:[#allocation3 + $0x90] sm:$0xff]  }
  0x62   :  { %v11729_v2 = vld [vmem:[%s15237_s28] sm:$0xff]   ;;  %v11731_v4 = vld [vmem:[%s15237_s28 + $0x8] sm:$0xff]   ;;  %v11733_v6 = vld [vmem:[%s15237_s28 + $0x10] sm:$0xff]  }
  0x63   :  { %v11730_v3 = vld [vmem:[%s15237_s28 + $0x80] sm:$0xff]   ;;  %1055 = vmatpush1.bf16.msra.mxu0 %v11729_v2  ;;  %v11732_v5 = vld [vmem:[%s15237_s28 + $0x88] sm:$0xff]   ;;  %v11734_v7 = vld [vmem:[%s15237_s28 + $0x90] sm:$0xff]  }
  0x64   :  { %1760 = vmatpush1.bf16.msra.mxu1 %v11730_v3  ;;  %1056 = vmatprep.subr.bf16.mxu0 %v12604_v1  ;;  %v11735_v8 = vld [vmem:[%s15237_s28 + $0x18] sm:$0xff]   ;;  %v11737_v10 = vld [vmem:[%s15237_s28 + $0x20] sm:$0xff]   ;;  %v11739_v12 = vld [vmem:[%s15237_s28 + $0x28] sm:$0xff]  }
  0x65   :  { %1761 = vmatprep.subr.bf16.mxu1 %v12604_v1  ;;  %v11736_v9 = vld [vmem:[%s15237_s28 + $0x98] sm:$0xff]   ;;  %v11738_v11 = vld [vmem:[%s15237_s28 + $0xa0] sm:$0xff]   ;;  %v11740_v13 = vld [vmem:[%s15237_s28 + $0xa8] sm:$0xff]  }
  0x66   :  { %v11741_v14 = vld [vmem:[%s15237_s28 + $0x30] sm:$0xff]   ;;  %v11743_v16 = vld [vmem:[%s15237_s28 + $0x38] sm:$0xff]   ;;  %v11745_v18 = vld [vmem:[%s15237_s28 + $0x40] sm:$0xff]  }
  0x67   :  { %1057 = vmatpush1.bf16.msra.mxu0 %v11731_v4  ;;  %v11742_v15 = vld [vmem:[%s15237_s28 + $0xb0] sm:$0xff]   ;;  %v11744_v17 = vld [vmem:[%s15237_s28 + $0xb8] sm:$0xff]   ;;  %v11746_v19 = vld [vmem:[%s15237_s28 + $0xc0] sm:$0xff]  }
  0x68   :  { %1762 = vmatpush1.bf16.msra.mxu1 %v11732_v5  ;;  %1058 = vmatprep.subr.bf16.mxu0 %v12604_v1  ;;  %v11763_v20 = vld [vmem:[%s15238_s0 + $0x4] ss:$8 sps:$4 sm:$0xff]   ;;  %v11749_v23 = vld [vmem:[%s15237_s28 + $0x50] sm:$0xff]   ;;  %v11751_v25 = vld [vmem:[%s15237_s28 + $0x58] sm:$0xff]  }
  0x69   :  { %1763 = vmatprep.subr.bf16.mxu1 %v12604_v1  ;;  %v11747_v21 = vld [vmem:[%s15237_s28 + $0x48] sm:$0xff]   ;;  %1086 = vmatprep.mubr.bf16.mxu0 %v11763_v20  ;;  %v11750_v24 = vld [vmem:[%s15237_s28 + $0xd0] sm:$0xff]   ;;  %v11752_v26 = vld [vmem:[%s15237_s28 + $0xd8] sm:$0xff]  }
  0x6a   :  { %v11748_v22 = vld [vmem:[%s15237_s28 + $0xc8] sm:$0xff]   ;;  %1791 = vmatprep.mubr.bf16.mxu1 %v11763_v20  ;;  %v11753_v27 = vld [vmem:[%s15237_s28 + $0x60] sm:$0xff]   ;;  %v11757_v31 = vld [vmem:[%s15237_s28 + $0x70] sm:$0xff]  }
  0x6b   :  { %1059 = vmatpush1.bf16.msra.mxu0 %v11733_v6  ;;  %v11754_v28 = vld [vmem:[%s15237_s28 + $0xe0] sm:$0xff]   ;;  %v11755_v29 = vld [vmem:[%s15237_s28 + $0x68] sm:$0xff]   ;;  %v11758_v32 = vld [vmem:[%s15237_s28 + $0xf0] sm:$0xff]  }
  0x6c   :  { %1764 = vmatpush1.bf16.msra.mxu1 %v11734_v7  ;;  %1060 = vmatprep.subr.bf16.mxu0 %v12604_v1  ;;  %v11756_v30 = vld [vmem:[%s15237_s28 + $0xe8] sm:$0xff]   ;;  %v11759_v33 = vld [vmem:[%s15237_s28 + $0x78] sm:$0xff]  }
  0x6d   :  { %1765 = vmatprep.subr.bf16.mxu1 %v12604_v1  ;;  %v11760_v34 = vld [vmem:[%s15237_s28 + $0xf8] sm:$0xff]   ;;  %v11761_v35 = vld [vmem:[%s15238_s0] ss:$8 sps:$4 sm:$0xff]   ;;  %v11767_v46 = vld [vmem:[%s15238_s0 + $0x24] ss:$8 sps:$4 sm:$0xff]  }
  0x6e   :  { %v11764_v37 = vld [vmem:[%s15238_s0 + $0x14] ss:$8 sps:$4 sm:$0xff]   ;;  %v11766_v44 = vld [vmem:[%s15238_s0 + $0x10] ss:$8 sps:$4 sm:$0xff]   ;;  %v11769_v47 = vld [vmem:[%s15238_s0 + $0x20] ss:$8 sps:$4 sm:$0xff]  }
  0x6f   :  { %1061 = vmatpush1.bf16.msra.mxu0 %v11735_v8  ;;  %v11770_v48 = vld [vmem:[%s15238_s0 + $0x34] ss:$8 sps:$4 sm:$0xff]   ;;  %v11772_v49 = vld [vmem:[%s15238_s0 + $0x30] ss:$8 sps:$4 sm:$0xff]   ;;  %v11776_v50 = vld [vmem:[%s15238_s0 + $0x44] ss:$8 sps:$4 sm:$0xff]  }
  0x70   :  { %1766 = vmatpush1.bf16.msra.mxu1 %v11736_v9  ;;  %1062 = vmatprep.subr.bf16.mxu0 %v12604_v1  ;;  %v11779_v54 = vld [vmem:[%s15238_s0 + $0x40] ss:$8 sps:$4 sm:$0xff]   ;;  %v11780_v56 = vld [vmem:[%s15238_s0 + $0x54] ss:$8 sps:$4 sm:$0xff]   ;;  %v11782_v57 = vld [vmem:[%s15238_s0 + $0x50] ss:$8 sps:$4 sm:$0xff]  }
  0x71   :  { %1767 = vmatprep.subr.bf16.mxu1 %v12604_v1  ;;  %v11783_v58 = vld [vmem:[%s15238_s0 + $0x64] ss:$8 sps:$4 sm:$0xff]   ;;  %v11785_v59 = vld [vmem:[%s15238_s0 + $0x60] ss:$8 sps:$4 sm:$0xff]   ;;  %v11786_v60 = vld [vmem:[%s15238_s0 + $0x74] ss:$8 sps:$4 sm:$0xff]  }
  0x72   :  { %v11788_v61 = vld [vmem:[%s15238_s0 + $0x70] ss:$8 sps:$4 sm:$0xff]   ;;  %v11789_v62 = vld [vmem:[%s15238_s0 + $0x84] ss:$8 sps:$4 sm:$0xff]   ;;  %v11791_v63 = vld [vmem:[%s15238_s0 + $0x80] ss:$8 sps:$4 sm:$0xff]  }
  0x73   :  { %1063 = vmatpush1.bf16.msra.mxu0 %v11737_v10  ;;  %v11792_v0 = vld [vmem:[%s15238_s0 + $0x94] ss:$8 sps:$4 sm:$0xff]   ;;  %v11795_v2 = vld [vmem:[%s15238_s0 + $0xa4] ss:$8 sps:$4 sm:$0xff]   ;;  %v11797_v3 = vld [vmem:[%s15238_s0 + $0xa0] ss:$8 sps:$4 sm:$0xff]  }
  0x74   :  { %1768 = vmatpush1.bf16.msra.mxu1 %v11738_v11  ;;  %1064 = vmatprep.subr.bf16.mxu0 %v12604_v1  ;;  %v11798_v4 = vld [vmem:[%s15238_s0 + $0xb4] ss:$8 sps:$4 sm:$0xff]   ;;  %v11800_v5 = vld [vmem:[%s15238_s0 + $0xb0] ss:$8 sps:$4 sm:$0xff]   ;;  %v11804_v6 = vld [vmem:[%s15238_s0 + $0xc4] ss:$8 sps:$4 sm:$0xff]  }
  0x75   :  { %1769 = vmatprep.subr.bf16.mxu1 %v12604_v1  ;;  %v11807_v7 = vld [vmem:[%s15238_s0 + $0xc0] ss:$8 sps:$4 sm:$0xff]   ;;  %v11808_v8 = vld [vmem:[%s15238_s0 + $0xd4] ss:$8 sps:$4 sm:$0xff]  }
  0x76   :  { %v11857_v9 = vld [vmem:[#allocation3 + $0x58] sm:$0xff]  }
  0x77   :  { %1065 = vmatpush1.bf16.msra.mxu0 %v11739_v12  ;;  %v11858_v10 = vld [vmem:[#allocation3 + $0x18] sm:$0xff]  }
  0x78   :  { %1770 = vmatpush1.bf16.msra.mxu1 %v11740_v13  ;;  %1066 = vmatprep.subr.bf16.mxu0 %v12604_v1  ;;  %v11859_v11 = vld [vmem:[#allocation3 + $0xd8] sm:$0xff]  }
  0x79   :  { %1771 = vmatprep.subr.bf16.mxu1 %v12604_v1  ;;  %v11862_v12 = vld [vmem:[#allocation3 + $0x98] sm:$0xff]  }
  0x7a   :  { %v11810_v13 = vld [vmem:[%s15238_s0 + $0xd0] ss:$8 sps:$4 sm:$0xff]   ;;  %v11820_v20 = vld [vmem:[%s15238_s0 + $0x114] ss:$8 sps:$4 sm:$0xff]  }
  0x7b   :  { %1067 = vmatpush1.bf16.msra.mxu0 %v11741_v14  ;;  %v11811_v14 = vld [vmem:[%s15238_s0 + $0xe4] ss:$8 sps:$4 sm:$0xff]  }
  0x7c   :  { %1772 = vmatpush1.bf16.msra.mxu1 %v11742_v15  ;;  %1068 = vmatprep.subr.bf16.mxu0 %v12604_v1  ;;  %v11813_v15 = vld [vmem:[%s15238_s0 + $0xe0] ss:$8 sps:$4 sm:$0xff]  }
  0x7d   :  { %1773 = vmatprep.subr.bf16.mxu1 %v12604_v1 }
  0x7f   :  { %1069 = vmatpush1.bf16.msra.mxu0 %v11743_v16  ;;  %v11814_v16 = vld [vmem:[%s15238_s0 + $0xf4] ss:$8 sps:$4 sm:$0xff]  }
  0x80   :  { %1774 = vmatpush1.bf16.msra.mxu1 %v11744_v17  ;;  %1070 = vmatprep.subr.bf16.mxu0 %v12604_v1  ;;  %v11816_v17 = vld [vmem:[%s15238_s0 + $0xf0] ss:$8 sps:$4 sm:$0xff]  }
  0x81   :  { %1775 = vmatprep.subr.bf16.mxu1 %v12604_v1 }
  0x83   :  { %1071 = vmatpush1.bf16.msra.mxu0 %v11745_v18  ;;  %v11817_v18 = vld [vmem:[%s15238_s0 + $0x104] ss:$8 sps:$4 sm:$0xff]  }
  0x84   :  { %1776 = vmatpush1.bf16.msra.mxu1 %v11746_v19  ;;  %1072 = vmatprep.subr.bf16.mxu0 %v12604_v1  ;;  %v11819_v19 = vld [vmem:[%s15238_s0 + $0x100] ss:$8 sps:$4 sm:$0xff]  }
  0x85   :  { %1777 = vmatprep.subr.bf16.mxu1 %v12604_v1 }
  0x87   :  { %1073 = vmatpush1.bf16.msra.mxu0 %v11747_v21  ;;  %v11822_v21 = vld [vmem:[%s15238_s0 + $0x110] ss:$8 sps:$4 sm:$0xff]  }
  0x88   :  { %1778 = vmatpush1.bf16.msra.mxu1 %v11748_v22  ;;  %1074 = vmatprep.subr.bf16.mxu0 %v12604_v1  ;;  %v11823_v22 = vld [vmem:[%s15238_s0 + $0x124] ss:$8 sps:$4 sm:$0xff]  }
  0x89   :  { %1779 = vmatprep.subr.bf16.mxu1 %v12604_v1 }
  0x8b   :  { %1075 = vmatpush1.bf16.msra.mxu0 %v11749_v23  ;;  %v11825_v23 = vld [vmem:[%s15238_s0 + $0x120] ss:$8 sps:$4 sm:$0xff]  }
  0x8c   :  { %1780 = vmatpush1.bf16.msra.mxu1 %v11750_v24  ;;  %1076 = vmatprep.subr.bf16.mxu0 %v12604_v1  ;;  %v11826_v24 = vld [vmem:[%s15238_s0 + $0x134] ss:$8 sps:$4 sm:$0xff]  }
  0x8d   :  { %1781 = vmatprep.subr.bf16.mxu1 %v12604_v1 }
  0x8f   :  { %1077 = vmatpush1.bf16.msra.mxu0 %v11751_v25  ;;  %v11828_v25 = vld [vmem:[%s15238_s0 + $0x130] ss:$8 sps:$4 sm:$0xff]  }
  0x90   :  { %1782 = vmatpush1.bf16.msra.mxu1 %v11752_v26  ;;  %1078 = vmatprep.subr.bf16.mxu0 %v12604_v1  ;;  %v11832_v26 = vld [vmem:[%s15238_s0 + $0x144] ss:$8 sps:$4 sm:$0xff]  }
  0x91   :  { %1783 = vmatprep.subr.bf16.mxu1 %v12604_v1 }
  0x93   :  { %1079 = vmatpush1.bf16.msra.mxu0 %v11753_v27  ;;  %v11835_v27 = vld [vmem:[%s15238_s0 + $0x140] ss:$8 sps:$4 sm:$0xff]  }
  0x94   :  { %1784 = vmatpush1.bf16.msra.mxu1 %v11754_v28  ;;  %1080 = vmatprep.subr.bf16.mxu0 %v12604_v1  ;;  %v11836_v28 = vld [vmem:[%s15238_s0 + $0x154] ss:$8 sps:$4 sm:$0xff]  }
  0x95   :  { %1785 = vmatprep.subr.bf16.mxu1 %v12604_v1 }
  0x97   :  { %1081 = vmatpush1.bf16.msra.mxu0 %v11755_v29  ;;  %v11885_v29 = vld [vmem:[#allocation3 + $0x60] sm:$0xff]  }
  0x98   :  { %1786 = vmatpush1.bf16.msra.mxu1 %v11756_v30  ;;  %1082 = vmatprep.subr.bf16.mxu0 %v12604_v1  ;;  %v11886_v30 = vld [vmem:[#allocation3 + $0x20] sm:$0xff]  }
  0x99   :  { %1787 = vmatprep.subr.bf16.mxu1 %v12604_v1 }
  0x9b   :  { %1083 = vmatpush1.bf16.msra.mxu0 %v11757_v31  ;;  %v11887_v31 = vld [vmem:[#allocation3 + $0xe0] sm:$0xff]  }
  0x9c   :  { %1788 = vmatpush1.bf16.msra.mxu1 %v11758_v32  ;;  %1084 = vmatprep.subr.bf16.mxu0 %v12604_v1  ;;  %v11890_v32 = vld [vmem:[#allocation3 + $0xa0] sm:$0xff]  }
  0x9d   :  { %1789 = vmatprep.subr.bf16.mxu1 %v12604_v1  ;;  %v11794_v1 = vld [vmem:[%s15238_s0 + $0x90] ss:$8 sps:$4 sm:$0xff]  }
  0x9f   :  { %1085 = vmatpush1.bf16.msra.mxu0 %v11759_v33  ;;  %v11838_v33 = vld [vmem:[%s15238_s0 + $0x150] ss:$8 sps:$4 sm:$0xff]  }
  0xa0   :  { %1790 = vmatpush1.bf16.msra.mxu1 %v11760_v34  ;;  %10429 = vmatprep.subr.bf16.mxu0 %v11773_v36  ;;  %v11839_v34 = vld [vmem:[%s15238_s0 + $0x164] ss:$8 sps:$4 sm:$0xff]   ;;  %v11842_v36 = vld [vmem:[%s15238_s0 + $0x174] ss:$8 sps:$4 sm:$0xff]  }
  0xa1   :  { %10493 = vmatprep.subr.bf16.mxu1 %v11775_v38  ;;  %v11845_v38 = vld [vmem:[%s15238_s0 + $0x184] ss:$8 sps:$4 sm:$0xff]  }
  0xa2   :  { %1087 = vmatmul.mubr.bf16.vlgmr.msra.gmra.mrb[0].mxu0 %v11761_v35 }
  0xa3   :  { %1792 = vmatmul.mubr.bf16.vlgmr.msra.gmra.mrb[0].mxu1 %v11761_v35  ;;  %1094 = vmatprep.mubr.bf16.mxu0 %v11764_v37  ;;  %v11841_v35 = vld [vmem:[%s15238_s0 + $0x160] ss:$8 sps:$4 sm:$0xff]  }
  0xa4   :  { %1799 = vmatprep.mubr.bf16.mxu1 %v11764_v37  ;;  %10430 = vmatpush3.bf16.msra.mxu0 %v11774_v39  ;;  %v11844_v37 = vld [vmem:[%s15238_s0 + $0x170] ss:$8 sps:$4 sm:$0xff]   ;;  %v11847_v39 = vld [vmem:[%s15238_s0 + $0x180] ss:$8 sps:$4 sm:$0xff]  }
  0xa5   :  { %10494 = vmatpush3.bf16.msra.mxu1 %v11778_v40  ;;  %10431 = vmatprep.subr.bf16.mxu0 %v11801_v41  ;;  %v11848_v40 = vld [vmem:[%s15238_s0 + $0x194] ss:$8 sps:$4 sm:$0xff]   ;;  %v11850_v41 = vld [vmem:[%s15238_s0 + $0x190] ss:$8 sps:$4 sm:$0xff]  }
  0xa6   :  { %10495 = vmatprep.subr.bf16.mxu1 %v11803_v42  ;;  %v11851_v42 = vld [vmem:[%s15238_s0 + $0x1a4] ss:$8 sps:$4 sm:$0xff]  }
  0xa8   :  { %10432 = vmatpush3.bf16.msra.mxu0 %v11802_v43  ;;  %v11853_v43 = vld [vmem:[%s15238_s0 + $0x1a0] ss:$8 sps:$4 sm:$0xff]  }
  0xa9   :  { %10496 = vmatpush3.bf16.msra.mxu1 %v11806_v45  ;;  %10433 = vmatprep.subr.bf16.mxu0 %v11829_v51  ;;  %v11856_v45 = vld [vmem:[%s15238_s0 + $0x1b0] ss:$8 sps:$4 sm:$0xff]  }
  0xaa   :  { %1095 = vmatmul.mubr.bf16.gmra.mrb[4].mxu0 %v11766_v44  ;;  %10497 = vmatprep.subr.bf16.mxu1 %v11831_v53 }
  0xab   :  { %1800 = vmatmul.mubr.bf16.gmra.mrb[4].mxu1 %v11766_v44  ;;  %1102 = vmatprep.mubr.bf16.mxu0 %v11767_v46  ;;  %v11854_v44 = vld [vmem:[%s15238_s0 + $0x1b4] ss:$8 sps:$4 sm:$0xff]  }
  0xac   :  { %1807 = vmatprep.mubr.bf16.mxu1 %v11767_v46  ;;  %10434 = vmatpush3.bf16.msra.mxu0 %v11830_v52 }
  0xad   :  { %10498 = vmatpush3.bf16.msra.mxu1 %v11834_v55  ;;  %10435 = vmatprep.subr.bf16.mxu0 %v11857_v9  ;;  %v11866_v9 = vld [vmem:[%s15238_s0 + $0x1d0] ss:$8 sps:$4 sm:$0xff]  }
  0xae   :  { %10499 = vmatprep.subr.bf16.mxu1 %v11859_v11  ;;  %v11867_v11 = vld [vmem:[%s15238_s0 + $0x1e4] ss:$8 sps:$4 sm:$0xff]  }
  0xb0   :  { %10436 = vmatpush3.bf16.msra.mxu0 %v11858_v10 }
  0xb1   :  { %10500 = vmatpush3.bf16.msra.mxu1 %v11862_v12  ;;  %10437 = vmatprep.subr.bf16.mxu0 %v11885_v29 }
  0xb2   :  { %1103 = vmatmul.mubr.bf16.gmra.mrb[8].mxu0 %v11769_v47  ;;  %10501 = vmatprep.subr.bf16.mxu1 %v11887_v31 }
  0xb3   :  { %1808 = vmatmul.mubr.bf16.gmra.mrb[8].mxu1 %v11769_v47  ;;  %1110 = vmatprep.mubr.bf16.mxu0 %v11770_v48  ;;  %v11860_v47 = vld [vmem:[%s15238_s0 + $0x1c4] ss:$8 sps:$4 sm:$0xff]  }
  0xb4   :  { %1815 = vmatprep.mubr.bf16.mxu1 %v11770_v48  ;;  %10438 = vmatpush3.bf16.msra.mxu0 %v11886_v30 }
  0xb5   :  { %10502 = vmatpush3.bf16.msra.mxu1 %v11890_v32 }
  0xba   :  { %1111 = vmatmul.mubr.bf16.gmra.mrb[12].mxu0 %v11772_v49 }
  0xbb   :  { %1816 = vmatmul.mubr.bf16.gmra.mrb[12].mxu1 %v11772_v49  ;;  %1118 = vmatprep.mubr.bf16.mxu0 %v11776_v50 }
  0xbc   :  { %1823 = vmatprep.mubr.bf16.mxu1 %v11776_v50 }
  0xc2   :  { %1119 = vmatmul.mubr.bf16.gmra.mrb[16].mxu0 %v11779_v54 }
  0xc3   :  { %1824 = vmatmul.mubr.bf16.gmra.mrb[16].mxu1 %v11779_v54  ;;  %1126 = vmatprep.mubr.bf16.mxu0 %v11780_v56 }
  0xc4   :  { %1831 = vmatprep.mubr.bf16.mxu1 %v11780_v56 }
  0xca   :  { %1127 = vmatmul.mubr.bf16.gmra.mrb[20].mxu0 %v11782_v57 }
  0xcb   :  { %1832 = vmatmul.mubr.bf16.gmra.mrb[20].mxu1 %v11782_v57  ;;  %1134 = vmatprep.mubr.bf16.mxu0 %v11783_v58  ;;  %v11863_v57 = vld [vmem:[%s15238_s0 + $0x1c0] ss:$8 sps:$4 sm:$0xff]  }
  0xcc   :  { %1839 = vmatprep.mubr.bf16.mxu1 %v11783_v58 }
  0xd2   :  { %1135 = vmatmul.mubr.bf16.gmra.mrb[24].mxu0 %v11785_v59 }
  0xd3   :  { %1840 = vmatmul.mubr.bf16.gmra.mrb[24].mxu1 %v11785_v59  ;;  %1142 = vmatprep.mubr.bf16.mxu0 %v11786_v60  ;;  %v11864_v59 = vld [vmem:[%s15238_s0 + $0x1d4] ss:$8 sps:$4 sm:$0xff]  }
  0xd4   :  { %1847 = vmatprep.mubr.bf16.mxu1 %v11786_v60 }
  0xda   :  { %1143 = vmatmul.mubr.bf16.gmra.mrb[28].mxu0 %v11788_v61 }
  0xdb   :  { %1848 = vmatmul.mubr.bf16.gmra.mrb[28].mxu1 %v11788_v61  ;;  %1150 = vmatprep.mubr.bf16.mxu0 %v11789_v62 }
  0xdc   :  { %1855 = vmatprep.mubr.bf16.mxu1 %v11789_v62 }
  0xe2   :  { %1151 = vmatmul.mubr.bf16.gmra.mrb[32].mxu0 %v11791_v63 }
  0xe3   :  { %1856 = vmatmul.mubr.bf16.gmra.mrb[32].mxu1 %v11791_v63  ;;  %1158 = vmatprep.mubr.bf16.mxu0 %v11792_v0 }
  0xe4   :  { %1863 = vmatprep.mubr.bf16.mxu1 %v11792_v0  ;;  %v11913_v0 = vld [vmem:[#allocation3 + $0x68] sm:$0xff]  }
  0xe5   :  { %10439 = vmatprep.subr.bf16.mxu0 %v11913_v0  ;;  %v11946_v0 = vld [vmem:[#allocation3 + $0xb0] sm:$0xff]  }
  0xea   :  { %1159 = vmatmul.mubr.bf16.gmra.mrb[36].mxu0 %v11794_v1 }
  0xeb   :  { %1864 = vmatmul.mubr.bf16.gmra.mrb[36].mxu1 %v11794_v1  ;;  %1166 = vmatprep.mubr.bf16.mxu0 %v11795_v2 }
  0xec   :  { %1871 = vmatprep.mubr.bf16.mxu1 %v11795_v2 }
  0xf2   :  { %1167 = vmatmul.mubr.bf16.gmra.mrb[40].mxu0 %v11797_v3 }
  0xf3   :  { %1872 = vmatmul.mubr.bf16.gmra.mrb[40].mxu1 %v11797_v3  ;;  %1174 = vmatprep.mubr.bf16.mxu0 %v11798_v4 }
  0xf4   :  { %1879 = vmatprep.mubr.bf16.mxu1 %v11798_v4  ;;  %v11943_v4 = vld [vmem:[#allocation3 + $0xf0] sm:$0xff]  }
  0xfa   :  { %1175 = vmatmul.mubr.bf16.gmra.mrb[44].mxu0 %v11800_v5 }
  0xfb   :  { %1880 = vmatmul.mubr.bf16.gmra.mrb[44].mxu1 %v11800_v5  ;;  %1182 = vmatprep.mubr.bf16.mxu0 %v11804_v6 }
  0xfc   :  { %1887 = vmatprep.mubr.bf16.mxu1 %v11804_v6  ;;  %v11914_v6 = vld [vmem:[#allocation3 + $0x28] sm:$0xff]  }
  0xfd   :  { %10440 = vmatpush3.bf16.msra.mxu0 %v11914_v6 }
 0x102   :  { %1183 = vmatmul.mubr.bf16.gmra.mrb[48].mxu0 %v11807_v7 }
 0x103   :  { %1888 = vmatmul.mubr.bf16.gmra.mrb[48].mxu1 %v11807_v7  ;;  %1190 = vmatprep.mubr.bf16.mxu0 %v11808_v8  ;;  %v11915_v7 = vld [vmem:[#allocation3 + $0xe8] sm:$0xff]  }
 0x104   :  { %1895 = vmatprep.mubr.bf16.mxu1 %v11808_v8  ;;  %v11918_v8 = vld [vmem:[#allocation3 + $0xa8] sm:$0xff]   ;;  %10503 = vmatprep.subr.bf16.mxu1 %v11915_v7 }
 0x105   :  { %10504 = vmatpush3.bf16.msra.mxu1 %v11918_v8  ;;  %v11879_v7 = vld [vmem:[%s15238_s0 + $0x224] ss:$8 sps:$4 sm:$0xff]  }
 0x106   :  { %10505 = vmatprep.subr.bf16.mxu1 %v11943_v4  ;;  %v11897_v4 = vld [vmem:[%s15238_s0 + $0x260] ss:$8 sps:$4 sm:$0xff]  }
 0x109   :  { %10506 = vmatpush3.bf16.msra.mxu1 %v11946_v0 }
 0x10a   :  { %1191 = vmatmul.mubr.bf16.gmra.mrb[52].mxu0 %v11810_v13 }
 0x10b   :  { %1896 = vmatmul.mubr.bf16.gmra.mrb[52].mxu1 %v11810_v13  ;;  %1198 = vmatprep.mubr.bf16.mxu0 %v11811_v14 }
 0x10c   :  { %1903 = vmatprep.mubr.bf16.mxu1 %v11811_v14 }
 0x112   :  { %1199 = vmatmul.mubr.bf16.gmra.mrb[56].mxu0 %v11813_v15 }
 0x113   :  { %1904 = vmatmul.mubr.bf16.gmra.mrb[56].mxu1 %v11813_v15  ;;  %1206 = vmatprep.mubr.bf16.mxu0 %v11814_v16 }
 0x114   :  { %1911 = vmatprep.mubr.bf16.mxu1 %v11814_v16 }
 0x11a   :  { %1207 = vmatmul.mubr.bf16.gmra.mrb[60].mxu0 %v11816_v17 }
 0x11b   :  { %1912 = vmatmul.mubr.bf16.gmra.mrb[60].mxu1 %v11816_v17  ;;  %1214 = vmatprep.mubr.bf16.mxu0 %v11817_v18 }
 0x11c   :  { %1919 = vmatprep.mubr.bf16.mxu1 %v11817_v18 }
 0x122   :  { %1215 = vmatmul.mubr.bf16.gmra.mrb[64].mxu0 %v11819_v19 }
 0x123   :  { %1920 = vmatmul.mubr.bf16.gmra.mrb[64].mxu1 %v11819_v19  ;;  %1222 = vmatprep.mubr.bf16.mxu0 %v11820_v20 }
 0x124   :  { %1927 = vmatprep.mubr.bf16.mxu1 %v11820_v20 }
 0x12a   :  { %1223 = vmatmul.mubr.bf16.gmra.mrb[68].mxu0 %v11822_v21 }
 0x12b   :  { %1928 = vmatmul.mubr.bf16.gmra.mrb[68].mxu1 %v11822_v21  ;;  %1230 = vmatprep.mubr.bf16.mxu0 %v11823_v22  ;;  %v11869_v21 = vld [vmem:[%s15238_s0 + $0x1e0] ss:$8 sps:$4 sm:$0xff]  }
 0x12c   :  { %1935 = vmatprep.mubr.bf16.mxu1 %v11823_v22 }
 0x132   :  { %1231 = vmatmul.mubr.bf16.gmra.mrb[72].mxu0 %v11825_v23 }
 0x133   :  { %1936 = vmatmul.mubr.bf16.gmra.mrb[72].mxu1 %v11825_v23  ;;  %1238 = vmatprep.mubr.bf16.mxu0 %v11826_v24  ;;  %v11870_v23 = vld [vmem:[%s15238_s0 + $0x1f4] ss:$8 sps:$4 sm:$0xff]  }
 0x134   :  { %1943 = vmatprep.mubr.bf16.mxu1 %v11826_v24 }
 0x13a   :  { %1239 = vmatmul.mubr.bf16.gmra.mrb[76].mxu0 %v11828_v25 }
 0x13b   :  { %1944 = vmatmul.mubr.bf16.gmra.mrb[76].mxu1 %v11828_v25  ;;  %1246 = vmatprep.mubr.bf16.mxu0 %v11832_v26 }
 0x13c   :  { %1951 = vmatprep.mubr.bf16.mxu1 %v11832_v26 }
 0x142   :  { %1247 = vmatmul.mubr.bf16.gmra.mrb[80].mxu0 %v11835_v27 }
 0x143   :  { %1952 = vmatmul.mubr.bf16.gmra.mrb[80].mxu1 %v11835_v27  ;;  %1254 = vmatprep.mubr.bf16.mxu0 %v11836_v28 }
 0x144   :  { %1959 = vmatprep.mubr.bf16.mxu1 %v11836_v28 }
 0x14a   :  { %1255 = vmatmul.mubr.bf16.gmra.mrb[84].mxu0 %v11838_v33 }
 0x14b   :  { %1960 = vmatmul.mubr.bf16.gmra.mrb[84].mxu1 %v11838_v33  ;;  %1262 = vmatprep.mubr.bf16.mxu0 %v11839_v34  ;;  %v11872_v33 = vld [vmem:[%s15238_s0 + $0x1f0] ss:$8 sps:$4 sm:$0xff]  }
 0x14c   :  { %1967 = vmatprep.mubr.bf16.mxu1 %v11839_v34 }
 0x152   :  { %1263 = vmatmul.mubr.bf16.gmra.mrb[88].mxu0 %v11841_v35 }
 0x153   :  { %1968 = vmatmul.mubr.bf16.gmra.mrb[88].mxu1 %v11841_v35  ;;  %1270 = vmatprep.mubr.bf16.mxu0 %v11842_v36  ;;  %v11873_v35 = vld [vmem:[%s15238_s0 + $0x204] ss:$8 sps:$4 sm:$0xff]  }
 0x154   :  { %1975 = vmatprep.mubr.bf16.mxu1 %v11842_v36 }
 0x15a   :  { %1271 = vmatmul.mubr.bf16.gmra.mrb[92].mxu0 %v11844_v37 }
 0x15b   :  { %1976 = vmatmul.mubr.bf16.gmra.mrb[92].mxu1 %v11844_v37  ;;  %1278 = vmatprep.mubr.bf16.mxu0 %v11845_v38 }
 0x15c   :  { %1983 = vmatprep.mubr.bf16.mxu1 %v11845_v38 }
 0x162   :  { %1279 = vmatmul.mubr.bf16.gmra.mrb[96].mxu0 %v11847_v39 }
 0x163   :  { %1984 = vmatmul.mubr.bf16.gmra.mrb[96].mxu1 %v11847_v39  ;;  %1286 = vmatprep.mubr.bf16.mxu0 %v11848_v40 }
 0x164   :  { %1991 = vmatprep.mubr.bf16.mxu1 %v11848_v40 }
 0x16a   :  { %1287 = vmatmul.mubr.bf16.gmra.mrb[100].mxu0 %v11850_v41 }
 0x16b   :  { %1992 = vmatmul.mubr.bf16.gmra.mrb[100].mxu1 %v11850_v41  ;;  %1294 = vmatprep.mubr.bf16.mxu0 %v11851_v42 }
 0x16c   :  { %1999 = vmatprep.mubr.bf16.mxu1 %v11851_v42 }
 0x172   :  { %1295 = vmatmul.mubr.bf16.gmra.mrb[104].mxu0 %v11853_v43 }
 0x173   :  { %2000 = vmatmul.mubr.bf16.gmra.mrb[104].mxu1 %v11853_v43  ;;  %1302 = vmatprep.mubr.bf16.mxu0 %v11854_v44 }
 0x174   :  { %2007 = vmatprep.mubr.bf16.mxu1 %v11854_v44 }
 0x175   :  { %v13090_v46 = vpop.f32.mrb[0].mxu0 }
 0x176   :  { %v13095_v48 = vpop.f32.mrb[0].mxu1  ;;  %v1090_v49 = vpop.f32.mrb[1].mxu0 }
 0x177   :  { %v1795_v50 = vpop.f32.mrb[1].mxu1  ;;  %v13097_v51 = vpop.f32.mrb[2].mxu0  ;;  %v11876_v49 = vld [vmem:[%s15238_s0 + $0x214] ss:$8 sps:$4 sm:$0xff]  }
 0x178   :  { %v13101_v53 = vpop.f32.mrb[2].mxu1  ;;  %v1093_v54 = vpop.f32.mrb[3].mxu0 }
 0x179   :  { %v1798_v56 = vpop.f32.mrb[3].mxu1 }
 0x17a   :  { %1303 = vmatmul.mubr.bf16.gmra.mrb[108].mxu0 %v11856_v45 }
 0x17b   :  { %2008 = vmatmul.mubr.bf16.gmra.mrb[108].mxu1 %v11856_v45  ;;  %1310 = vmatprep.mubr.bf16.mxu0 %v11860_v47  ;;  %v11875_v45 = vld [vmem:[%s15238_s0 + $0x200] ss:$8 sps:$4 sm:$0xff]  }
 0x17c   :  { %2015 = vmatprep.mubr.bf16.mxu1 %v11860_v47 }
 0x17d   :  { %v13108_v58 = vpop.f32.mrb[4].mxu0 }
 0x17e   :  { %v13113_v60 = vpop.f32.mrb[4].mxu1  ;;  %v1098_v61 = vpop.f32.mrb[5].mxu0 }
 0x17f   :  { %v1803_v62 = vpop.f32.mrb[5].mxu1  ;;  %v13115_v63 = vpop.f32.mrb[6].mxu0 }
 0x180   :  { %v13119_v2 = vpop.f32.mrb[6].mxu1  ;;  %v1101_v3 = vpop.f32.mrb[7].mxu0 }
 0x181   :  { %v1806_v5 = vpop.f32.mrb[7].mxu1 }
 0x182   :  { %1311 = vmatmul.mubr.bf16.gmra.mrb[112].mxu0 %v11863_v57  ;;  %v11878_v5 = vld [vmem:[%s15238_s0 + $0x210] ss:$8 sps:$4 sm:$0xff]  }
 0x183   :  { %2016 = vmatmul.mubr.bf16.gmra.mrb[112].mxu1 %v11863_v57  ;;  %1318 = vmatprep.mubr.bf16.mxu0 %v11864_v59 }
 0x184   :  { %2023 = vmatprep.mubr.bf16.mxu1 %v11864_v59  ;;  %v11904_v59 = vld [vmem:[%s15238_s0 + $0x294] ss:$8 sps:$4 sm:$0xff]  }
 0x185   :  { %v13126_v10 = vpop.f32.mrb[8].mxu0 }
 0x186   :  { %v13131_v12 = vpop.f32.mrb[8].mxu1  ;;  %v1106_v13 = vpop.f32.mrb[9].mxu0 }
 0x187   :  { %15239 = vst [vmem:[#allocation13_spill] sm:$0xff] %v13131_v12  ;;  %v1811_v14 = vpop.f32.mrb[9].mxu1  ;;  %v13133_v15 = vpop.f32.mrb[10].mxu0 }
 0x188   :  { %v13137_v17 = vpop.f32.mrb[10].mxu1  ;;  %v1109_v18 = vpop.f32.mrb[11].mxu0 }
 0x189   :  { %15240 = vst [vmem:[#allocation14_spill] sm:$0xff] %v13137_v17  ;;  %v1814_v20 = vpop.f32.mrb[11].mxu1 }
 0x18a   :  { %1319 = vmatmul.mubr.bf16.gmra.mrb[116].mxu0 %v11866_v9 }
 0x18b   :  { %2024 = vmatmul.mubr.bf16.gmra.mrb[116].mxu1 %v11866_v9  ;;  %1326 = vmatprep.mubr.bf16.mxu0 %v11867_v11 }
 0x18c   :  { %2031 = vmatprep.mubr.bf16.mxu1 %v11867_v11 }
 0x18d   :  { %v13144_v22 = vpop.f32.mrb[12].mxu0 }
 0x18e   :  { %v13149_v24 = vpop.f32.mrb[12].mxu1  ;;  %v1114_v25 = vpop.f32.mrb[13].mxu0 }
 0x18f   :  { %15241 = vst [vmem:[#allocation15_spill] sm:$0xff] %v13149_v24  ;;  %v1819_v26 = vpop.f32.mrb[13].mxu1  ;;  %v13151_v27 = vpop.f32.mrb[14].mxu0  ;;  %v11881_v25 = vld [vmem:[%s15238_s0 + $0x220] ss:$8 sps:$4 sm:$0xff]  }
 0x190   :  { %v13155_v29 = vpop.f32.mrb[14].mxu1  ;;  %v1117_v30 = vpop.f32.mrb[15].mxu0 }
 0x191   :  { %15242 = vst [vmem:[#allocation16_spill] sm:$0xff] %v13155_v29  ;;  %v1822_v32 = vpop.f32.mrb[15].mxu1  ;;  %v11882_v30 = vld [vmem:[%s15238_s0 + $0x234] ss:$8 sps:$4 sm:$0xff]  }
 0x192   :  { %1327 = vmatmul.mubr.bf16.gmra.mrb[120].mxu0 %v11869_v21 }
 0x193   :  { %2032 = vmatmul.mubr.bf16.gmra.mrb[120].mxu1 %v11869_v21  ;;  %1334 = vmatprep.mubr.bf16.mxu0 %v11870_v23  ;;  %v11942_v21 = vld [vmem:[#allocation3 + $0x30] sm:$0xff]  }
 0x194   :  { %2039 = vmatprep.mubr.bf16.mxu1 %v11870_v23 }
 0x195   :  { %v13162_v34 = vpop.f32.mrb[16].mxu0 }
 0x196   :  { %v13167_v36 = vpop.f32.mrb[16].mxu1  ;;  %v1122_v37 = vpop.f32.mrb[17].mxu0 }
 0x197   :  { %v1827_v38 = vpop.f32.mrb[17].mxu1  ;;  %v13169_v39 = vpop.f32.mrb[18].mxu0 }
 0x198   :  { %v13173_v41 = vpop.f32.mrb[18].mxu1  ;;  %v1125_v42 = vpop.f32.mrb[19].mxu0 }
 0x199   :  { %v1830_v44 = vpop.f32.mrb[19].mxu1 }
 0x19a   :  { %1335 = vmatmul.mubr.bf16.gmra.mrb[124].mxu0 %v11872_v33 }
 0x19b   :  { %2040 = vmatmul.mubr.bf16.gmra.mrb[124].mxu1 %v11872_v33  ;;  %1342 = vmatprep.mubr.bf16.mxu0 %v11873_v35 }
 0x19c   :  { %2047 = vmatprep.mubr.bf16.mxu1 %v11873_v35 }
 0x19d   :  { %v13180_v47 = vpop.f32.mrb[20].mxu0 }
 0x19e   :  { %v13185_v50 = vpop.f32.mrb[20].mxu1  ;;  %v1130_v54 = vpop.f32.mrb[21].mxu0 }
 0x19f   :  { %v1835_v56 = vpop.f32.mrb[21].mxu1  ;;  %v13187_v57 = vpop.f32.mrb[22].mxu0  ;;  %v11884_v54 = vld [vmem:[%s15238_s0 + $0x230] ss:$8 sps:$4 sm:$0xff]  }
 0x1a0   :  { %v13191_v61 = vpop.f32.mrb[22].mxu1  ;;  %v1133_v62 = vpop.f32.mrb[23].mxu0 }
 0x1a1   :  { %v1838_v3 = vpop.f32.mrb[23].mxu1  ;;  %v11888_v62 = vld [vmem:[%s15238_s0 + $0x244] ss:$8 sps:$4 sm:$0xff]  }
 0x1a2   :  { %1343 = vmatmul.mubr.bf16.gmra.mrb[128].mxu0 %v11875_v45 }
 0x1a3   :  { %2048 = vmatmul.mubr.bf16.gmra.mrb[128].mxu1 %v11875_v45  ;;  %1350 = vmatprep.mubr.bf16.mxu0 %v11876_v49 }
 0x1a4   :  { %2055 = vmatprep.mubr.bf16.mxu1 %v11876_v49 }
 0x1a5   :  { %v13198_v6 = vpop.f32.mrb[24].mxu0 }
 0x1a6   :  { %v13203_v8 = vpop.f32.mrb[24].mxu1  ;;  %v1138_v9 = vpop.f32.mrb[25].mxu0 }
 0x1a7   :  { %15243 = vst [vmem:[#allocation17_spill] sm:$0xff] %v13203_v8  ;;  %v1843_v11 = vpop.f32.mrb[25].mxu1  ;;  %v13205_v13 = vpop.f32.mrb[26].mxu0  ;;  %v11971_v8 = vld [vmem:[#allocation3 + $0xf8] sm:$0xff]  }
 0x1a8   :  { %v13209_v18 = vpop.f32.mrb[26].mxu1  ;;  %v1141_v20 = vpop.f32.mrb[27].mxu0  ;;  %10507 = vmatprep.subr.bf16.mxu1 %v11971_v8  ;;  %v11925_v8 = vld [vmem:[%s15238_s0 + $0x2e0] ss:$8 sps:$4 sm:$0xff]  }
 0x1a9   :  { %15244 = vst [vmem:[#allocation18_spill] sm:$0xff] %v13209_v18  ;;  %v1846_v23 = vpop.f32.mrb[27].mxu1  ;;  %v11974_v18 = vld [vmem:[#allocation3 + $0xb8] sm:$0xff]  }
 0x1aa   :  { %1351 = vmatmul.mubr.bf16.gmra.mrb[132].mxu0 %v11878_v5  ;;  %10508 = vmatpush3.bf16.msra.mxu1 %v11974_v18 }
 0x1ab   :  { %2056 = vmatmul.mubr.bf16.gmra.mrb[132].mxu1 %v11878_v5  ;;  %1358 = vmatprep.mubr.bf16.mxu0 %v11879_v7 }
 0x1ac   :  { %2063 = vmatprep.mubr.bf16.mxu1 %v11879_v7 }
 0x1ad   :  { %v13216_v26 = vpop.f32.mrb[28].mxu0 }
 0x1ae   :  { %v13221_v32 = vpop.f32.mrb[28].mxu1  ;;  %v1146_v33 = vpop.f32.mrb[29].mxu0 }
 0x1af   :  { %15245 = vst [vmem:[#allocation19_spill] sm:$0xff] %v13221_v32  ;;  %v1851_v35 = vpop.f32.mrb[29].mxu1  ;;  %v13223_v37 = vpop.f32.mrb[30].mxu0  ;;  %v11891_v33 = vld [vmem:[%s15238_s0 + $0x240] ss:$8 sps:$4 sm:$0xff]  }
 0x1b0   :  { %v13227_v42 = vpop.f32.mrb[30].mxu1  ;;  %v1149_v44 = vpop.f32.mrb[31].mxu0 }
 0x1b1   :  { %15246 = vst [vmem:[#allocation20_spill] sm:$0xff] %v13227_v42  ;;  %v1854_v49 = vpop.f32.mrb[31].mxu1  ;;  %v11892_v44 = vld [vmem:[%s15238_s0 + $0x254] ss:$8 sps:$4 sm:$0xff]  }
 0x1b2   :  { %1359 = vmatmul.mubr.bf16.gmra.mrb[136].mxu0 %v11881_v25 }
 0x1b3   :  { %2064 = vmatmul.mubr.bf16.gmra.mrb[136].mxu1 %v11881_v25  ;;  %1366 = vmatprep.mubr.bf16.mxu0 %v11882_v30 }
 0x1b4   :  { %2071 = vmatprep.mubr.bf16.mxu1 %v11882_v30 }
 0x1b5   :  { %v13234_v56 = vpop.f32.mrb[32].mxu0 }
 0x1b6   :  { %v13239_v3 = vpop.f32.mrb[32].mxu1  ;;  %v1154_v5 = vpop.f32.mrb[33].mxu0 }
 0x1b7   :  { %v1859_v7 = vpop.f32.mrb[33].mxu1  ;;  %v13241_v9 = vpop.f32.mrb[34].mxu0 }
 0x1b8   :  { %v13245_v20 = vpop.f32.mrb[34].mxu1  ;;  %v1157_v23 = vpop.f32.mrb[35].mxu0 }
 0x1b9   :  { %v1862_v30 = vpop.f32.mrb[35].mxu1 }
 0x1ba   :  { %1367 = vmatmul.mubr.bf16.gmra.mrb[140].mxu0 %v11884_v54  ;;  %v11941_v30 = vld [vmem:[#allocation3 + $0x70] sm:$0xff]  }
 0x1bb   :  { %2072 = vmatmul.mubr.bf16.gmra.mrb[140].mxu1 %v11884_v54  ;;  %1374 = vmatprep.mubr.bf16.mxu0 %v11888_v62 }
 0x1bc   :  { %2079 = vmatprep.mubr.bf16.mxu1 %v11888_v62  ;;  %10441 = vmatprep.subr.bf16.mxu0 %v11941_v30 }
 0x1bd   :  { %v13252_v35 = vpop.f32.mrb[36].mxu0  ;;  %10442 = vmatpush3.bf16.msra.mxu0 %v11942_v21 }
 0x1be   :  { %v13257_v49 = vpop.f32.mrb[36].mxu1  ;;  %v1162_v5 = vpop.f32.mrb[37].mxu0 }
 0x1bf   :  { %v1867_v7 = vpop.f32.mrb[37].mxu1  ;;  %v13259_v23 = vpop.f32.mrb[38].mxu0  ;;  %v11894_v5 = vld [vmem:[%s15238_s0 + $0x250] ss:$8 sps:$4 sm:$0xff]  }
 0x1c0   :  { %v13263_v62 = vpop.f32.mrb[38].mxu1  ;;  %v1165_v31 = vpop.f32.mrb[39].mxu0 }
 0x1c1   :  { %v1870_v19 = vpop.f32.mrb[39].mxu1  ;;  %v11895_v31 = vld [vmem:[%s15238_s0 + $0x264] ss:$8 sps:$4 sm:$0xff]  }
 0x1c2   :  { %1375 = vmatmul.mubr.bf16.gmra.mrb[144].mxu0 %v11891_v33 }
 0x1c3   :  { %2080 = vmatmul.mubr.bf16.gmra.mrb[144].mxu1 %v11891_v33  ;;  %1382 = vmatprep.mubr.bf16.mxu0 %v11892_v44 }
 0x1c4   :  { %2087 = vmatprep.mubr.bf16.mxu1 %v11892_v44 }
 0x1c5   :  { %v13270_v7 = vpop.f32.mrb[40].mxu0 }
 0x1c6   :  { %v13275_v19 = vpop.f32.mrb[40].mxu1  ;;  %v1170_v30 = vpop.f32.mrb[41].mxu0 }
 0x1c7   :  { %15247 = vst [vmem:[#allocation21_spill] sm:$0xff] %v13275_v19  ;;  %v1875_v45 = vpop.f32.mrb[41].mxu1  ;;  %v13277_v33 = vpop.f32.mrb[42].mxu0 }
 0x1c8   :  { %v13281_v25 = vpop.f32.mrb[42].mxu1  ;;  %v1173_v21 = vpop.f32.mrb[43].mxu0  ;;  %v11898_v45 = vld [vmem:[%s15238_s0 + $0x274] ss:$8 sps:$4 sm:$0xff]  }
 0x1c9   :  { %15248 = vst [vmem:[#allocation22_spill] sm:$0xff] %v13281_v25  ;;  %v1878_v43 = vpop.f32.mrb[43].mxu1 }
 0x1ca   :  { %1383 = vmatmul.mubr.bf16.gmra.mrb[148].mxu0 %v11894_v5  ;;  %v11901_v43 = vld [vmem:[%s15238_s0 + $0x284] ss:$8 sps:$4 sm:$0xff]  }
 0x1cb   :  { %2088 = vmatmul.mubr.bf16.gmra.mrb[148].mxu1 %v11894_v5  ;;  %1390 = vmatprep.mubr.bf16.mxu0 %v11895_v31 }
 0x1cc   :  { %2095 = vmatprep.mubr.bf16.mxu1 %v11895_v31 }
 0x1cd   :  { %v13288_v0 = vpop.f32.mrb[44].mxu0 }
 0x1ce   :  { %v13293_v30 = vpop.f32.mrb[44].mxu1  ;;  %v1178_v21 = vpop.f32.mrb[45].mxu0 }
 0x1cf   :  { %15249 = vst [vmem:[#allocation23_spill] sm:$0xff] %v13293_v30  ;;  %v1883_v28 = vpop.f32.mrb[45].mxu1  ;;  %v13295_v55 = vpop.f32.mrb[46].mxu0 }
 0x1d0   :  { %v13299_v5 = vpop.f32.mrb[46].mxu1  ;;  %v1181_v31 = vpop.f32.mrb[47].mxu0  ;;  %v11900_v28 = vld [vmem:[%s15238_s0 + $0x270] ss:$8 sps:$4 sm:$0xff]  }
 0x1d1   :  { %15250 = vst [vmem:[#allocation24_spill] sm:$0xff] %v13299_v5  ;;  %v1886_v44 = vpop.f32.mrb[47].mxu1 }
 0x1d2   :  { %1391 = vmatmul.mubr.bf16.gmra.mrb[152].mxu0 %v11897_v4 }
 0x1d3   :  { %2096 = vmatmul.mubr.bf16.gmra.mrb[152].mxu1 %v11897_v4  ;;  %1398 = vmatprep.mubr.bf16.mxu0 %v11898_v45 }
 0x1d4   :  { %2103 = vmatprep.mubr.bf16.mxu1 %v11898_v45 }
 0x1d5   :  { %v13306_v21 = vpop.f32.mrb[48].mxu0 }
 0x1d6   :  { %v13311_v16 = vpop.f32.mrb[48].mxu1  ;;  %v1186_v31 = vpop.f32.mrb[49].mxu0 }
 0x1d7   :  { %v1891_v14 = vpop.f32.mrb[49].mxu1  ;;  %v13313_v38 = vpop.f32.mrb[50].mxu0 }
 0x1d8   :  { %v13317_v4 = vpop.f32.mrb[50].mxu1  ;;  %v1189_v45 = vpop.f32.mrb[51].mxu0  ;;  %v11903_v14 = vld [vmem:[%s15238_s0 + $0x280] ss:$8 sps:$4 sm:$0xff]  }
 0x1d9   :  { %v1894_v1 = vpop.f32.mrb[51].mxu1 }
 0x1da   :  { %1399 = vmatmul.mubr.bf16.gmra.mrb[156].mxu0 %v11900_v28  ;;  %v11907_v1 = vld [vmem:[%s15238_s0 + $0x2a4] ss:$8 sps:$4 sm:$0xff]  }
 0x1db   :  { %2104 = vmatmul.mubr.bf16.gmra.mrb[156].mxu1 %v11900_v28  ;;  %1406 = vmatprep.mubr.bf16.mxu0 %v11901_v43 }
 0x1dc   :  { %2111 = vmatprep.mubr.bf16.mxu1 %v11901_v43 }
 0x1dd   :  { %v13324_v31 = vpop.f32.mrb[52].mxu0 }
 0x1de   :  { %v13329_v11 = vpop.f32.mrb[52].mxu1  ;;  %v1194_v45 = vpop.f32.mrb[53].mxu0 }
 0x1df   :  { %v1899_v52 = vpop.f32.mrb[53].mxu1  ;;  %v13331_v54 = vpop.f32.mrb[54].mxu0 }
 0x1e0   :  { %v13335_v43 = vpop.f32.mrb[54].mxu1  ;;  %v1197_v28 = vpop.f32.mrb[55].mxu0  ;;  %v11906_v52 = vld [vmem:[%s15238_s0 + $0x290] ss:$8 sps:$4 sm:$0xff]  }
 0x1e1   :  { %v1902_v40 = vpop.f32.mrb[55].mxu1 }
 0x1e2   :  { %1407 = vmatmul.mubr.bf16.gmra.mrb[160].mxu0 %v11903_v14  ;;  %v11910_v40 = vld [vmem:[%s15238_s0 + $0x2b4] ss:$8 sps:$4 sm:$0xff]  }
 0x1e3   :  { %2112 = vmatmul.mubr.bf16.gmra.mrb[160].mxu1 %v11903_v14  ;;  %1414 = vmatprep.mubr.bf16.mxu0 %v11904_v59 }
 0x1e4   :  { %2119 = vmatprep.mubr.bf16.mxu1 %v11904_v59 }
 0x1e5   :  { %v13342_v45 = vpop.f32.mrb[56].mxu0 }
 0x1e6   :  { %v13347_v30 = vpop.f32.mrb[56].mxu1  ;;  %v1202_v28 = vpop.f32.mrb[57].mxu0 }
 0x1e7   :  { %15251 = vst [vmem:[#allocation25_spill] sm:$0xff] %v13347_v30  ;;  %v1907_v5 = vpop.f32.mrb[57].mxu1  ;;  %v13349_v44 = vpop.f32.mrb[58].mxu0 }
 0x1e8   :  { %v13353_v59 = vpop.f32.mrb[58].mxu1  ;;  %v1205_v14 = vpop.f32.mrb[59].mxu0  ;;  %v11909_v5 = vld [vmem:[%s15238_s0 + $0x2a0] ss:$8 sps:$4 sm:$0xff]  }
 0x1e9   :  { %15252 = vst [vmem:[#allocation26_spill] sm:$0xff] %v13353_v59  ;;  %v1910_v29 = vpop.f32.mrb[59].mxu1  ;;  %v11970_v59 = vld [vmem:[#allocation3 + $0x38] sm:$0xff]  }
 0x1ea   :  { %1415 = vmatmul.mubr.bf16.gmra.mrb[164].mxu0 %v11906_v52  ;;  %v11916_v29 = vld [vmem:[%s15238_s0 + $0x2c4] ss:$8 sps:$4 sm:$0xff]  }
 0x1eb   :  { %2120 = vmatmul.mubr.bf16.gmra.mrb[164].mxu1 %v11906_v52  ;;  %1422 = vmatprep.mubr.bf16.mxu0 %v11907_v1 }
 0x1ec   :  { %2127 = vmatprep.mubr.bf16.mxu1 %v11907_v1 }
 0x1ed   :  { %v13360_v28 = vpop.f32.mrb[60].mxu0 }
 0x1ee   :  { %v13365_v32 = vpop.f32.mrb[60].mxu1  ;;  %v1210_v14 = vpop.f32.mrb[61].mxu0 }
 0x1ef   :  { %15253 = vst [vmem:[#allocation27_spill] sm:$0xff] %v13365_v32  ;;  %v1915_v42 = vpop.f32.mrb[61].mxu1  ;;  %v13367_v24 = vpop.f32.mrb[62].mxu0 }
 0x1f0   :  { %v13371_v1 = vpop.f32.mrb[62].mxu1  ;;  %v1213_v52 = vpop.f32.mrb[63].mxu0  ;;  %v11912_v42 = vld [vmem:[%s15238_s0 + $0x2b0] ss:$8 sps:$4 sm:$0xff]  }
 0x1f1   :  { %15254 = vst [vmem:[#allocation28_spill] sm:$0xff] %v13371_v1  ;;  %v1918_v25 = vpop.f32.mrb[63].mxu1 }
 0x1f2   :  { %1423 = vmatmul.mubr.bf16.gmra.mrb[168].mxu0 %v11909_v5  ;;  %v11920_v25 = vld [vmem:[%s15238_s0 + $0x2d4] ss:$8 sps:$4 sm:$0xff]  }
 0x1f3   :  { %2128 = vmatmul.mubr.bf16.gmra.mrb[168].mxu1 %v11909_v5  ;;  %1430 = vmatprep.mubr.bf16.mxu0 %v11910_v40 }
 0x1f4   :  { %2135 = vmatprep.mubr.bf16.mxu1 %v11910_v40 }
 0x1f5   :  { %v13378_v14 = vpop.f32.mrb[64].mxu0 }
 0x1f6   :  { %15255 = vst [vmem:[#allocation29_spill] sm:$0xff] %v13378_v14  ;;  %v13383_v12 = vpop.f32.mrb[64].mxu1  ;;  %v1218_v52 = vpop.f32.mrb[65].mxu0 }
 0x1f7   :  { %15256 = vst [vmem:[#allocation30_spill] sm:$0xff] %v13383_v12  ;;  %v1923_v17 = vpop.f32.mrb[65].mxu1  ;;  %v13385_v19 = vpop.f32.mrb[66].mxu0 }
 0x1f8   :  { %15257 = vst [vmem:[#allocation31_spill] sm:$0xff] %v13385_v19  ;;  %v13389_v40 = vpop.f32.mrb[66].mxu1  ;;  %v1221_v5 = vpop.f32.mrb[67].mxu0  ;;  %v11919_v17 = vld [vmem:[%s15238_s0 + $0x2c0] ss:$8 sps:$4 sm:$0xff]  }
 0x1f9   :  { %15258 = vst [vmem:[#allocation32_spill] sm:$0xff] %v13389_v40  ;;  %v1926_v1 = vpop.f32.mrb[67].mxu1 }
 0x1fa   :  { %1431 = vmatmul.mubr.bf16.gmra.mrb[172].mxu0 %v11912_v42  ;;  %v11969_v1 = vld [vmem:[#allocation3 + $0x78] sm:$0xff]  }
 0x1fb   :  { %2136 = vmatmul.mubr.bf16.gmra.mrb[172].mxu1 %v11912_v42  ;;  %1438 = vmatprep.mubr.bf16.mxu0 %v11916_v29 }
 0x1fc   :  { %2143 = vmatprep.mubr.bf16.mxu1 %v11916_v29  ;;  %10443 = vmatprep.subr.bf16.mxu0 %v11969_v1 }
 0x1fd   :  { %v13396_v52 = vpop.f32.mrb[68].mxu0  ;;  %10444 = vmatpush3.bf16.msra.mxu0 %v11970_v59 }
 0x1fe   :  { %15259 = vst [vmem:[#allocation33_spill] sm:$0xff] %v13396_v52  ;;  %v13401_v14 = vpop.f32.mrb[68].mxu1  ;;  %v1226_v5 = vpop.f32.mrb[69].mxu0 }
 0x1ff   :  { %15260 = vst [vmem:[#allocation34_spill] sm:$0xff] %v13401_v14  ;;  %v1931_v19 = vpop.f32.mrb[69].mxu1  ;;  %v13403_v32 = vpop.f32.mrb[70].mxu0 }
 0x200   :  { %15261 = vst [vmem:[#allocation35_spill] sm:$0xff] %v13403_v32  ;;  %v13407_v42 = vpop.f32.mrb[70].mxu1  ;;  %v1229_v12 = vpop.f32.mrb[71].mxu0  ;;  %v11922_v19 = vld [vmem:[%s15238_s0 + $0x2d0] ss:$8 sps:$4 sm:$0xff]  }
 0x201   :  { %15262 = vst [vmem:[#allocation36_spill] sm:$0xff] %v13407_v42  ;;  %v1934_v30 = vpop.f32.mrb[71].mxu1  ;;  %v11923_v12 = vld [vmem:[%s15238_s0 + $0x2e4] ss:$8 sps:$4 sm:$0xff]  }
 0x202   :  { %1439 = vmatmul.mubr.bf16.gmra.mrb[176].mxu0 %v11919_v17 }
 0x203   :  { %2144 = vmatmul.mubr.bf16.gmra.mrb[176].mxu1 %v11919_v17  ;;  %1446 = vmatprep.mubr.bf16.mxu0 %v11920_v25 }
 0x204   :  { %2151 = vmatprep.mubr.bf16.mxu1 %v11920_v25 }
 0x205   :  { %v13414_v5 = vpop.f32.mrb[72].mxu0 }
 0x206   :  { %15263 = vst [vmem:[#allocation37_spill] sm:$0xff] %v13414_v5  ;;  %v13419_v30 = vpop.f32.mrb[72].mxu1  ;;  %v1234_v1 = vpop.f32.mrb[73].mxu0 }
 0x207   :  { %15264 = vst [vmem:[#allocation38_spill] sm:$0xff] %v13419_v30  ;;  %v1939_v40 = vpop.f32.mrb[73].mxu1  ;;  %v13421_v17 = vpop.f32.mrb[74].mxu0 }
 0x208   :  { %15265 = vst [vmem:[#allocation39_spill] sm:$0xff] %v13421_v17  ;;  %v13425_v29 = vpop.f32.mrb[74].mxu1  ;;  %v1237_v59 = vpop.f32.mrb[75].mxu0  ;;  %v11926_v40 = vld [vmem:[%s15238_s0 + $0x2f4] ss:$8 sps:$4 sm:$0xff]  }
 0x209   :  { %15266 = vst [vmem:[#allocation40_spill] sm:$0xff] %v13425_v29  ;;  %v1942_v42 = vpop.f32.mrb[75].mxu1 }
 0x20a   :  { %1447 = vmatmul.mubr.bf16.gmra.mrb[180].mxu0 %v11922_v19  ;;  %v11929_v42 = vld [vmem:[%s15238_s0 + $0x304] ss:$8 sps:$4 sm:$0xff]  }
 0x20b   :  { %2152 = vmatmul.mubr.bf16.gmra.mrb[180].mxu1 %v11922_v19  ;;  %1454 = vmatprep.mubr.bf16.mxu0 %v11923_v12 }
 0x20c   :  { %2159 = vmatprep.mubr.bf16.mxu1 %v11923_v12 }
 0x20d   :  { %v13432_v18 = vpop.f32.mrb[76].mxu0 }
 0x20e   :  { %15267 = vst [vmem:[#allocation41_spill] sm:$0xff] %v13432_v18  ;;  %v13437_v1 = vpop.f32.mrb[76].mxu1  ;;  %v1242_v59 = vpop.f32.mrb[77].mxu0 }
 0x20f   :  { %15268 = vst [vmem:[#allocation42_spill] sm:$0xff] %v13437_v1  ;;  %v1947_v25 = vpop.f32.mrb[77].mxu1  ;;  %v13439_v14 = vpop.f32.mrb[78].mxu0 }
 0x210   :  { %15269 = vst [vmem:[#allocation43_spill] sm:$0xff] %v13439_v14  ;;  %v13443_v19 = vpop.f32.mrb[78].mxu1  ;;  %v1245_v12 = vpop.f32.mrb[79].mxu0  ;;  %v11928_v25 = vld [vmem:[%s15238_s0 + $0x2f0] ss:$8 sps:$4 sm:$0xff]  }
 0x211   :  { %15270 = vst [vmem:[#allocation44_spill] sm:$0xff] %v13443_v19  ;;  %v1950_v29 = vpop.f32.mrb[79].mxu1 }
 0x212   :  { %1455 = vmatmul.mubr.bf16.gmra.mrb[184].mxu0 %v11925_v8  ;;  %v11932_v29 = vld [vmem:[%s15238_s0 + $0x314] ss:$8 sps:$4 sm:$0xff]  }
 0x213   :  { %2160 = vmatmul.mubr.bf16.gmra.mrb[184].mxu1 %v11925_v8  ;;  %1462 = vmatprep.mubr.bf16.mxu0 %v11926_v40 }
 0x214   :  { %2167 = vmatprep.mubr.bf16.mxu1 %v11926_v40 }
 0x215   :  { %v13450_v59 = vpop.f32.mrb[80].mxu0 }
 0x216   :  { %v13455_v18 = vpop.f32.mrb[80].mxu1  ;;  %v1250_v12 = vpop.f32.mrb[81].mxu0 }
 0x217   :  { %15271 = vst [vmem:[#allocation45_spill] sm:$0xff] %v13455_v18  ;;  %v1955_v14 = vpop.f32.mrb[81].mxu1  ;;  %v13457_v30 = vpop.f32.mrb[82].mxu0 }
 0x218   :  { %v13461_v8 = vpop.f32.mrb[82].mxu1  ;;  %v1253_v40 = vpop.f32.mrb[83].mxu0  ;;  %v11931_v14 = vld [vmem:[%s15238_s0 + $0x300] ss:$8 sps:$4 sm:$0xff]  }
 0x219   :  { %15272 = vst [vmem:[#allocation46_spill] sm:$0xff] %v13461_v8  ;;  %v1958_v19 = vpop.f32.mrb[83].mxu1 }
 0x21a   :  { %1463 = vmatmul.mubr.bf16.gmra.mrb[188].mxu0 %v11928_v25  ;;  %v11935_v19 = vld [vmem:[%s15238_s0 + $0x324] ss:$8 sps:$4 sm:$0xff]  }
 0x21b   :  { %2168 = vmatmul.mubr.bf16.gmra.mrb[188].mxu1 %v11928_v25  ;;  %1470 = vmatprep.mubr.bf16.mxu0 %v11929_v42 }
 0x21c   :  { %2175 = vmatprep.mubr.bf16.mxu1 %v11929_v42 }
 0x21d   :  { %v13468_v12 = vpop.f32.mrb[84].mxu0 }
 0x21e   :  { %15273 = vst [vmem:[#allocation47_spill] sm:$0xff] %v13468_v12  ;;  %v13473_v5 = vpop.f32.mrb[84].mxu1  ;;  %v1258_v40 = vpop.f32.mrb[85].mxu0 }
 0x21f   :  { %15274 = vst [vmem:[#allocation48_spill] sm:$0xff] %v13473_v5  ;;  %v1963_v17 = vpop.f32.mrb[85].mxu1  ;;  %v13475_v1 = vpop.f32.mrb[86].mxu0 }
 0x220   :  { %15275 = vst [vmem:[#allocation49_spill] sm:$0xff] %v13475_v1  ;;  %v13479_v42 = vpop.f32.mrb[86].mxu1  ;;  %v1261_v25 = vpop.f32.mrb[87].mxu0  ;;  %v11934_v17 = vld [vmem:[%s15238_s0 + $0x310] ss:$8 sps:$4 sm:$0xff]  }
 0x221   :  { %15276 = vst [vmem:[#allocation50_spill] sm:$0xff] %v13479_v42  ;;  %v1966_v8 = vpop.f32.mrb[87].mxu1 }
 0x222   :  { %1471 = vmatmul.mubr.bf16.gmra.mrb[192].mxu0 %v11931_v14  ;;  %v11938_v8 = vld [vmem:[%s15238_s0 + $0x334] ss:$8 sps:$4 sm:$0xff]  }
 0x223   :  { %2176 = vmatmul.mubr.bf16.gmra.mrb[192].mxu1 %v11931_v14  ;;  %1478 = vmatprep.mubr.bf16.mxu0 %v11932_v29 }
 0x224   :  { %2183 = vmatprep.mubr.bf16.mxu1 %v11932_v29 }
 0x225   :  { %v13486_v40 = vpop.f32.mrb[88].mxu0 }
 0x226   :  { %15277 = vst [vmem:[#allocation51_spill] sm:$0xff] %v13486_v40  ;;  %v13491_v52 = vpop.f32.mrb[88].mxu1  ;;  %v1266_v25 = vpop.f32.mrb[89].mxu0 }
 0x227   :  { %15278 = vst [vmem:[#allocation52_spill] sm:$0xff] %v13491_v52  ;;  %v1971_v32 = vpop.f32.mrb[89].mxu1  ;;  %v13493_v18 = vpop.f32.mrb[90].mxu0 }
 0x228   :  { %15279 = vst [vmem:[#allocation53_spill] sm:$0xff] %v13493_v18  ;;  %v13497_v29 = vpop.f32.mrb[90].mxu1  ;;  %v1269_v14 = vpop.f32.mrb[91].mxu0  ;;  %v11937_v32 = vld [vmem:[%s15238_s0 + $0x320] ss:$8 sps:$4 sm:$0xff]  }
 0x229   :  { %15280 = vst [vmem:[#allocation54_spill] sm:$0xff] %v13497_v29  ;;  %v1974_v42 = vpop.f32.mrb[91].mxu1 }
 0x22a   :  { %1479 = vmatmul.mubr.bf16.gmra.mrb[196].mxu0 %v11934_v17  ;;  %v11944_v42 = vld [vmem:[%s15238_s0 + $0x344] ss:$8 sps:$4 sm:$0xff]  }
 0x22b   :  { %2184 = vmatmul.mubr.bf16.gmra.mrb[196].mxu1 %v11934_v17  ;;  %1486 = vmatprep.mubr.bf16.mxu0 %v11935_v19 }
 0x22c   :  { %2191 = vmatprep.mubr.bf16.mxu1 %v11935_v19 }
 0x22d   :  { %v13504_v25 = vpop.f32.mrb[92].mxu0 }
 0x22e   :  { %15281 = vst [vmem:[#allocation55_spill] sm:$0xff] %v13504_v25  ;;  %v13509_v40 = vpop.f32.mrb[92].mxu1  ;;  %v1274_v14 = vpop.f32.mrb[93].mxu0 }
 0x22f   :  { %15282 = vst [vmem:[#allocation56_spill] sm:$0xff] %v13509_v40  ;;  %v1979_v18 = vpop.f32.mrb[93].mxu1  ;;  %v13511_v5 = vpop.f32.mrb[94].mxu0 }
 0x230   :  { %15283 = vst [vmem:[#allocation57_spill] sm:$0xff] %v13511_v5  ;;  %v13515_v19 = vpop.f32.mrb[94].mxu1  ;;  %v1277_v17 = vpop.f32.mrb[95].mxu0  ;;  %v11940_v18 = vld [vmem:[%s15238_s0 + $0x330] ss:$8 sps:$4 sm:$0xff]  }
 0x231   :  { %15284 = vst [vmem:[#allocation58_spill] sm:$0xff] %v13515_v19  ;;  %v1982_v29 = vpop.f32.mrb[95].mxu1 }
 0x232   :  { %1487 = vmatmul.mubr.bf16.gmra.mrb[200].mxu0 %v11937_v32  ;;  %v11948_v29 = vld [vmem:[%s15238_s0 + $0x354] ss:$8 sps:$4 sm:$0xff]  }
 0x233   :  { %2192 = vmatmul.mubr.bf16.gmra.mrb[200].mxu1 %v11937_v32  ;;  %1494 = vmatprep.mubr.bf16.mxu0 %v11938_v8 }
 0x234   :  { %2199 = vmatprep.mubr.bf16.mxu1 %v11938_v8 }
 0x235   :  { %v13522_v14 = vpop.f32.mrb[96].mxu0 }
 0x236   :  { %15285 = vst [vmem:[#allocation59_spill] sm:$0xff] %v13522_v14  ;;  %v13527_v25 = vpop.f32.mrb[96].mxu1  ;;  %v1282_v17 = vpop.f32.mrb[97].mxu0 }
 0x237   :  { %15286 = vst [vmem:[#allocation60_spill] sm:$0xff] %v13527_v25  ;;  %v1987_v5 = vpop.f32.mrb[97].mxu1  ;;  %v13529_v52 = vpop.f32.mrb[98].mxu0 }
 0x238   :  { %15287 = vst [vmem:[#allocation61_spill] sm:$0xff] %v13529_v52  ;;  %v13533_v8 = vpop.f32.mrb[98].mxu1  ;;  %v1285_v32 = vpop.f32.mrb[99].mxu0  ;;  %v11947_v5 = vld [vmem:[%s15238_s0 + $0x340] ss:$8 sps:$4 sm:$0xff]  }
 0x239   :  { %15288 = vst [vmem:[#allocation62_spill] sm:$0xff] %v13533_v8  ;;  %v1990_v19 = vpop.f32.mrb[99].mxu1  ;;  %v11987_v52 = vld [vmem:[#allocation3 + $0x1c0] sm:$0xff]  }
 0x23a   :  { %1495 = vmatmul.mubr.bf16.gmra.mrb[204].mxu0 %v11940_v18  ;;  %v11985_v19 = vld [vmem:[#allocation3 + $0x140] sm:$0xff]   ;;  %10621 = vmatprep.subr.bf16.mxu1 %v11987_v52 }
 0x23b   :  { %2200 = vmatmul.mubr.bf16.gmra.mrb[204].mxu1 %v11940_v18  ;;  %1502 = vmatprep.mubr.bf16.mxu0 %v11944_v42 }
 0x23c   :  { %2207 = vmatprep.mubr.bf16.mxu1 %v11944_v42  ;;  %10557 = vmatprep.subr.bf16.mxu0 %v11985_v19 }
 0x23d   :  { %v13540_v17 = vpop.f32.mrb[100].mxu0 }
 0x23e   :  { %15289 = vst [vmem:[#allocation63_spill] sm:$0xff] %v13540_v17  ;;  %v13545_v12 = vpop.f32.mrb[100].mxu1  ;;  %v1290_v32 = vpop.f32.mrb[101].mxu0 }
 0x23f   :  { %15290 = vst [vmem:[#allocation64_spill] sm:$0xff] %v13545_v12  ;;  %v1995_v1 = vpop.f32.mrb[101].mxu1  ;;  %v13547_v40 = vpop.f32.mrb[102].mxu0  ;;  %v11950_v32 = vld [vmem:[%s15238_s0 + $0x350] ss:$8 sps:$4 sm:$0xff]  }
 0x240   :  { %15291 = vst [vmem:[#allocation65_spill] sm:$0xff] %v13547_v40  ;;  %v13551_v18 = vpop.f32.mrb[102].mxu1  ;;  %v1293_v25 = vpop.f32.mrb[103].mxu0 }
 0x241   :  { %15292 = vst [vmem:[#allocation66_spill] sm:$0xff] %v13551_v18  ;;  %v1998_v14 = vpop.f32.mrb[103].mxu1 }
 0x242   :  { %1503 = vmatmul.mubr.bf16.gmra.mrb[208].mxu0 %v11947_v5  ;;  %v11951_v14 = vld [vmem:[%s15238_s0 + $0x364] ss:$8 sps:$4 sm:$0xff]  }
 0x243   :  { %2208 = vmatmul.mubr.bf16.gmra.mrb[208].mxu1 %v11947_v5  ;;  %1510 = vmatprep.mubr.bf16.mxu0 %v11948_v29 }
 0x244   :  { %2215 = vmatprep.mubr.bf16.mxu1 %v11948_v29 }
 0x245   :  { %v13555_v1 = vpop.f32.mrb[104].mxu0 }
 0x246   :  { %15293 = vst [vmem:[#allocation67_spill] sm:$0xff] %v13555_v1  ;;  %v13560_v42 = vpop.f32.mrb[104].mxu1  ;;  %v1298_v25 = vpop.f32.mrb[105].mxu0 }
 0x247   :  { %15294 = vst [vmem:[#allocation68_spill] sm:$0xff] %v13560_v42  ;;  %v2003_v19 = vpop.f32.mrb[105].mxu1  ;;  %v13565_v8 = vpop.f32.mrb[106].mxu0 }
 0x248   :  { %15295 = vst [vmem:[#allocation69_spill] sm:$0xff] %v13565_v8  ;;  %v13569_v52 = vpop.f32.mrb[106].mxu1  ;;  %v1301_v5 = vpop.f32.mrb[107].mxu0  ;;  %v11953_v19 = vld [vmem:[%s15238_s0 + $0x360] ss:$8 sps:$4 sm:$0xff]  }
 0x249   :  { %15296 = vst [vmem:[#allocation70_spill] sm:$0xff] %v13569_v52  ;;  %v2006_v18 = vpop.f32.mrb[107].mxu1  ;;  %v11954_v5 = vld [vmem:[%s15238_s0 + $0x374] ss:$8 sps:$4 sm:$0xff]  }
 0x24a   :  { %1511 = vmatmul.mubr.bf16.gmra.mrb[212].mxu0 %v11950_v32 }
 0x24b   :  { %2216 = vmatmul.mubr.bf16.gmra.mrb[212].mxu1 %v11950_v32  ;;  %1518 = vmatprep.mubr.bf16.mxu0 %v11951_v14 }
 0x24c   :  { %2223 = vmatprep.mubr.bf16.mxu1 %v11951_v14 }
 0x24d   :  { %v13573_v25 = vpop.f32.mrb[108].mxu0 }
 0x24e   :  { %15297 = vst [vmem:[#allocation71_spill] sm:$0xff] %v13573_v25  ;;  %v13578_v17 = vpop.f32.mrb[108].mxu1  ;;  %v1306_v29 = vpop.f32.mrb[109].mxu0 }
 0x24f   :  { %15298 = vst [vmem:[#allocation72_spill] sm:$0xff] %v13578_v17  ;;  %v2011_v1 = vpop.f32.mrb[109].mxu1  ;;  %v13583_v12 = vpop.f32.mrb[110].mxu0 }
 0x250   :  { %15299 = vst [vmem:[#allocation73_spill] sm:$0xff] %v13583_v12  ;;  %v13587_v32 = vpop.f32.mrb[110].mxu1  ;;  %v1309_v14 = vpop.f32.mrb[111].mxu0  ;;  %v11956_v1 = vld [vmem:[%s15238_s0 + $0x370] ss:$8 sps:$4 sm:$0xff]  }
 0x251   :  { %15300 = vst [vmem:[#allocation74_spill] sm:$0xff] %v13587_v32  ;;  %v2014_v52 = vpop.f32.mrb[111].mxu1  ;;  %v11957_v14 = vld [vmem:[%s15238_s0 + $0x384] ss:$8 sps:$4 sm:$0xff]  }
 0x252   :  { %1519 = vmatmul.mubr.bf16.gmra.mrb[216].mxu0 %v11953_v19 }
 0x253   :  { %2224 = vmatmul.mubr.bf16.gmra.mrb[216].mxu1 %v11953_v19  ;;  %1526 = vmatprep.mubr.bf16.mxu0 %v11954_v5 }
 0x254   :  { %2231 = vmatprep.mubr.bf16.mxu1 %v11954_v5 }
 0x255   :  { %v13591_v29 = vpop.f32.mrb[112].mxu0 }
 0x256   :  { %15301 = vst [vmem:[#allocation75_spill] sm:$0xff] %v13591_v29  ;;  %v13596_v8 = vpop.f32.mrb[112].mxu1  ;;  %v1314_v18 = vpop.f32.mrb[113].mxu0 }
 0x257   :  { %15302 = vst [vmem:[#allocation76_spill] sm:$0xff] %v13596_v8  ;;  %v2019_v25 = vpop.f32.mrb[113].mxu1  ;;  %v13601_v42 = vpop.f32.mrb[114].mxu0 }
 0x258   :  { %v13605_v19 = vpop.f32.mrb[114].mxu1  ;;  %v1317_v5 = vpop.f32.mrb[115].mxu0  ;;  %v11959_v25 = vld [vmem:[%s15238_s0 + $0x380] ss:$8 sps:$4 sm:$0xff]  }
 0x259   :  { %15303 = vst [vmem:[#allocation77_spill] sm:$0xff] %v13605_v19  ;;  %v2022_v32 = vpop.f32.mrb[115].mxu1  ;;  %v11960_v5 = vld [vmem:[%s15238_s0 + $0x394] ss:$8 sps:$4 sm:$0xff]  }
 0x25a   :  { %1527 = vmatmul.mubr.bf16.gmra.mrb[220].mxu0 %v11956_v1  ;;  %v11963_v32 = vld [vmem:[%s15238_s0 + $0x3a4] ss:$8 sps:$4 sm:$0xff]  }
 0x25b   :  { %2232 = vmatmul.mubr.bf16.gmra.mrb[220].mxu1 %v11956_v1  ;;  %1534 = vmatprep.mubr.bf16.mxu0 %v11957_v14 }
 0x25c   :  { %2239 = vmatprep.mubr.bf16.mxu1 %v11957_v14 }
 0x25d   :  { %v13609_v18 = vpop.f32.mrb[116].mxu0 }
 0x25e   :  { %15304 = vst [vmem:[#allocation78_spill] sm:$0xff] %v13609_v18  ;;  %v13614_v12 = vpop.f32.mrb[116].mxu1  ;;  %v1322_v52 = vpop.f32.mrb[117].mxu0 }
 0x25f   :  { %15305 = vst [vmem:[#allocation79_spill] sm:$0xff] %v13614_v12  ;;  %v2027_v40 = vpop.f32.mrb[117].mxu1  ;;  %v13619_v17 = vpop.f32.mrb[118].mxu0 }
 0x260   :  { %15306 = vst [vmem:[#allocation80_spill] sm:$0xff] %v13619_v17  ;;  %v13623_v1 = vpop.f32.mrb[118].mxu1  ;;  %v1325_v14 = vpop.f32.mrb[119].mxu0  ;;  %v11962_v40 = vld [vmem:[%s15238_s0 + $0x390] ss:$8 sps:$4 sm:$0xff]  }
 0x261   :  { %15307 = vst [vmem:[#allocation81_spill] sm:$0xff] %v13623_v1  ;;  %v2030_v19 = vpop.f32.mrb[119].mxu1 }
 0x262   :  { %1535 = vmatmul.mubr.bf16.gmra.mrb[224].mxu0 %v11959_v25  ;;  %v11966_v19 = vld [vmem:[%s15238_s0 + $0x3b4] ss:$8 sps:$4 sm:$0xff]  }
 0x263   :  { %2240 = vmatmul.mubr.bf16.gmra.mrb[224].mxu1 %v11959_v25  ;;  %1542 = vmatprep.mubr.bf16.mxu0 %v11960_v5 }
 0x264   :  { %2247 = vmatprep.mubr.bf16.mxu1 %v11960_v5 }
 0x265   :  { %v13630_v52 = vpop.f32.mrb[120].mxu0 }
 0x266   :  { %15308 = vst [vmem:[#allocation82_spill] sm:$0xff] %v13630_v52  ;;  %v13635_v18 = vpop.f32.mrb[120].mxu1  ;;  %v1330_v14 = vpop.f32.mrb[121].mxu0 }
 0x267   :  { %15309 = vst [vmem:[#allocation83_spill] sm:$0xff] %v13635_v18  ;;  %v2035_v17 = vpop.f32.mrb[121].mxu1  ;;  %v13637_v8 = vpop.f32.mrb[122].mxu0 }
 0x268   :  { %15310 = vst [vmem:[#allocation84_spill] sm:$0xff] %v13637_v8  ;;  %v13641_v25 = vpop.f32.mrb[122].mxu1  ;;  %v1333_v5 = vpop.f32.mrb[123].mxu0  ;;  %v11965_v17 = vld [vmem:[%s15238_s0 + $0x3a0] ss:$8 sps:$4 sm:$0xff]  }
 0x269   :  { %15311 = vst [vmem:[#allocation85_spill] sm:$0xff] %v13641_v25  ;;  %v2038_v1 = vpop.f32.mrb[123].mxu1 }
 0x26a   :  { %1543 = vmatmul.mubr.bf16.gmra.mrb[228].mxu0 %v11962_v40  ;;  %v11972_v1 = vld [vmem:[%s15238_s0 + $0x3c4] ss:$8 sps:$4 sm:$0xff]  }
 0x26b   :  { %2248 = vmatmul.mubr.bf16.gmra.mrb[228].mxu1 %v11962_v40  ;;  %1550 = vmatprep.mubr.bf16.mxu0 %v11963_v32 }
 0x26c   :  { %2255 = vmatprep.mubr.bf16.mxu1 %v11963_v32 }
 0x26d   :  { %v13648_v14 = vpop.f32.mrb[124].mxu0 }
 0x26e   :  { %15312 = vst [vmem:[#allocation86_spill] sm:$0xff] %v13648_v14  ;;  %v13653_v52 = vpop.f32.mrb[124].mxu1  ;;  %v1338_v5 = vpop.f32.mrb[125].mxu0 }
 0x26f   :  { %15313 = vst [vmem:[#allocation87_spill] sm:$0xff] %v13653_v52  ;;  %v2043_v8 = vpop.f32.mrb[125].mxu1  ;;  %v13655_v12 = vpop.f32.mrb[126].mxu0 }
 0x270   :  { %15314 = vst [vmem:[#allocation88_spill] sm:$0xff] %v13655_v12  ;;  %v13659_v32 = vpop.f32.mrb[126].mxu1  ;;  %v1341_v40 = vpop.f32.mrb[127].mxu0  ;;  %v11968_v8 = vld [vmem:[%s15238_s0 + $0x3b0] ss:$8 sps:$4 sm:$0xff]  }
 0x271   :  { %15315 = vst [vmem:[#allocation89_spill] sm:$0xff] %v13659_v32  ;;  %v2046_v25 = vpop.f32.mrb[127].mxu1 }
 0x272   :  { %1551 = vmatmul.mubr.bf16.gmra.mrb[232].mxu0 %v11965_v17 }
 0x273   :  { %2256 = vmatmul.mubr.bf16.gmra.mrb[232].mxu1 %v11965_v17  ;;  %1558 = vmatprep.mubr.bf16.mxu0 %v11966_v19 }
 0x274   :  { %2263 = vmatprep.mubr.bf16.mxu1 %v11966_v19 }
 0x275   :  { %v13666_v5 = vpop.f32.mrb[128].mxu0 }
 0x276   :  { %15316 = vst [vmem:[#allocation90_spill] sm:$0xff] %v13666_v5  ;;  %v13671_v14 = vpop.f32.mrb[128].mxu1  ;;  %v1346_v40 = vpop.f32.mrb[129].mxu0 }
 0x277   :  { %15317 = vst [vmem:[#allocation91_spill] sm:$0xff] %v13671_v14  ;;  %v2051_v12 = vpop.f32.mrb[129].mxu1  ;;  %v13673_v18 = vpop.f32.mrb[130].mxu0 }
 0x278   :  { %15318 = vst [vmem:[#allocation92_spill] sm:$0xff] %v13673_v18  ;;  %v13677_v19 = vpop.f32.mrb[130].mxu1  ;;  %v1349_v17 = vpop.f32.mrb[131].mxu0  ;;  %v11975_v12 = vld [vmem:[%s15238_s0 + $0x3c0] ss:$8 sps:$4 sm:$0xff]  }
 0x279   :  { %15319 = vst [vmem:[#allocation93_spill] sm:$0xff] %v13677_v19  ;;  %v2054_v32 = vpop.f32.mrb[131].mxu1 }
 0x27a   :  { %1559 = vmatmul.mubr.bf16.gmra.mrb[236].mxu0 %v11968_v8  ;;  %v11976_v32 = vld [vmem:[%s15238_s0 + $0x3d4] ss:$8 sps:$4 sm:$0xff]  }
 0x27b   :  { %2264 = vmatmul.mubr.bf16.gmra.mrb[236].mxu1 %v11968_v8  ;;  %1566 = vmatprep.mubr.bf16.mxu0 %v11972_v1 }
 0x27c   :  { %2271 = vmatprep.mubr.bf16.mxu1 %v11972_v1 }
 0x27d   :  { %v13684_v40 = vpop.f32.mrb[132].mxu0 }
 0x27e   :  { %15320 = vst [vmem:[#allocation94_spill] sm:$0xff] %v13684_v40  ;;  %v13686_v29 = vpop.f32.mrb[132].mxu1  ;;  %v1354_v25 = vpop.f32.mrb[133].mxu0 }
 0x27f   :  { %15321 = vst [vmem:[#allocation95_spill] sm:$0xff] %v13686_v29  ;;  %v2059_v5 = vpop.f32.mrb[133].mxu1  ;;  %v13688_v18 = vpop.f32.mrb[134].mxu0  ;;  %v11978_v25 = vld [vmem:[%s15238_s0 + $0x3d0] ss:$8 sps:$4 sm:$0xff]  }
 0x280   :  { %15322 = vst [vmem:[#allocation96_spill] sm:$0xff] %v13688_v18  ;;  %v13695_v1 = vpop.f32.mrb[134].mxu1  ;;  %v1357_v17 = vpop.f32.mrb[135].mxu0 }
 0x281   :  { %15323 = vst [vmem:[#allocation97_spill] sm:$0xff] %v13695_v1  ;;  %v2062_v14 = vpop.f32.mrb[135].mxu1  ;;  %v11979_v17 = vld [vmem:[%s15238_s0 + $0x3e4] ss:$8 sps:$4 sm:$0xff]  }
 0x282   :  { %1567 = vmatmul.mubr.bf16.gmra.mrb[240].mxu0 %v11975_v12  ;;  %v11981_v14 = vld [vmem:[%s15238_s0 + $0x3e0] ss:$8 sps:$4 sm:$0xff]  }
 0x283   :  { %2272 = vmatmul.mubr.bf16.gmra.mrb[240].mxu1 %v11975_v12  ;;  %1574 = vmatprep.mubr.bf16.mxu0 %v11976_v32 }
 0x284   :  { %2279 = vmatprep.mubr.bf16.mxu1 %v11976_v32 }
 0x285   :  { %v13699_v5 = vpop.f32.mrb[136].mxu0 }
 0x286   :  { %15324 = vst [vmem:[#allocation98_spill] sm:$0xff] %v13699_v5  ;;  %v13704_v19 = vpop.f32.mrb[136].mxu1  ;;  %v1362_v8 = vpop.f32.mrb[137].mxu0 }
 0x287   :  { %15325 = vst [vmem:[#allocation99_spill] sm:$0xff] %v13704_v19  ;;  %v2067_v40 = vpop.f32.mrb[137].mxu1  ;;  %v13709_v52 = vpop.f32.mrb[138].mxu0 }
 0x288   :  { %15326 = vst [vmem:[#allocation100_spill] sm:$0xff] %v13709_v52  ;;  %v13713_v12 = vpop.f32.mrb[138].mxu1  ;;  %v1365_v32 = vpop.f32.mrb[139].mxu0 }
 0x289   :  { %15327 = vst [vmem:[#allocation101_spill] sm:$0xff] %v13713_v12  ;;  %v2070_v1 = vpop.f32.mrb[139].mxu1 }
 0x28a   :  { %1575 = vmatmul.mubr.bf16.gmra.mrb[244].mxu0 %v11978_v25  ;;  %v11982_v1 = vld [vmem:[%s15238_s0 + $0x3f4] ss:$8 sps:$4 sm:$0xff]  }
 0x28b   :  { %2280 = vmatmul.mubr.bf16.gmra.mrb[244].mxu1 %v11978_v25  ;;  %1582 = vmatprep.mubr.bf16.mxu0 %v11979_v17  ;;  %v11984_v25 = vld [vmem:[%s15238_s0 + $0x3f0] ss:$8 sps:$4 sm:$0xff]  }
 0x28c   :  { %2287 = vmatprep.mubr.bf16.mxu1 %v11979_v17 }
 0x28d   :  { %v13717_v8 = vpop.f32.mrb[140].mxu0 }
 0x28e   :  { %15328 = vst [vmem:[#allocation102_spill] sm:$0xff] %v13717_v8  ;;  %v13719_v18 = vpop.f32.mrb[140].mxu1  ;;  %v1370_v40 = vpop.f32.mrb[141].mxu0 }
 0x28f   :  { %15329 = vst [vmem:[#allocation103_spill] sm:$0xff] %v13719_v18  ;;  %v2075_v5 = vpop.f32.mrb[141].mxu1  ;;  %v13724_v52 = vpop.f32.mrb[142].mxu0 }
 0x290   :  { %15330 = vst [vmem:[#allocation104_spill] sm:$0xff] %v13724_v52  ;;  %v13731_v17 = vpop.f32.mrb[142].mxu1  ;;  %v1373_v32 = vpop.f32.mrb[143].mxu0 }
 0x291   :  { %15331 = vst [vmem:[#allocation105_spill] sm:$0xff] %v13731_v17  ;;  %v2078_v29 = vpop.f32.mrb[143].mxu1 }
 0x292   :  { %1583 = vmatmul.mubr.bf16.gmra.mrb[248].mxu0 %v11981_v14 }
 0x293   :  { %2288 = vmatmul.mubr.bf16.gmra.mrb[248].mxu1 %v11981_v14  ;;  %1590 = vmatprep.mubr.bf16.mxu0 %v11982_v1 }
 0x294   :  { %2295 = vmatprep.mubr.bf16.mxu1 %v11982_v1 }
 0x295   :  { %v13735_v5 = vpop.f32.mrb[144].mxu0 }
 0x296   :  { %15332 = vst [vmem:[#allocation106_spill] sm:$0xff] %v13735_v5  ;;  %v13737_v19 = vpop.f32.mrb[144].mxu1  ;;  %v1378_v12 = vpop.f32.mrb[145].mxu0 }
 0x297   :  { %v2083_v8 = vpop.f32.mrb[145].mxu1  ;;  %v13742_v52 = vpop.f32.mrb[146].mxu0  ;;  %v15333_v12 = vpack.c.bf16 %v13169_v39, %v13162_v34  ;;  %v11986_v34 = vld [vmem:[#allocation3 + $0x100] sm:$0xff]  }
 0x298   :  { %v13746_v29 = vpop.f32.mrb[146].mxu1  ;;  %v1381_v14 = vpop.f32.mrb[147].mxu0  ;;  %v15334_v8 = vpack.c.bf16 %v13313_v38, %v13306_v21  ;;  %v11988_v21 = vld [vmem:[#allocation3 + $0x180] sm:$0xff]  }
 0x299   :  { %v2086_v40 = vpop.f32.mrb[147].mxu1 }
 0x29a   :  { %1591 = vmatmul.mubr.bf16.gmra.mrb[252].mxu0 %v11984_v25  ;;  %v15337_v40 = vpack.c.bf16 %v13187_v57, %v13180_v47 }
 0x29b   :  { %2296 = vmatmul.mubr.bf16.gmra.mrb[252].mxu1 %v11984_v25  ;;  %3431 = vmatprep.mubr.bf16.mxu0 %v15333_v12  ;;  %v11989_v12 = vld [vmem:[#allocation3 + $0x148] sm:$0xff]  }
 0x29c   :  { %3528 = vmatprep.mubr.bf16.mxu1 %v15334_v8  ;;  %v15335_v8 = vpack.c.bf16 %v13097_v51, %v13090_v46  ;;  %v11992_v46 = vld [vmem:[#allocation3 + $0x188] sm:$0xff]   ;;  %v11993_v51 = vld [vmem:[#allocation3 + $0x150] sm:$0xff]  }
 0x29d   :  { %v13756_v18 = vpop.f32.mrb[148].mxu0 }
 0x29e   :  { %v13758_v32 = vpop.f32.mrb[148].mxu1  ;;  %v1386_v17 = vpop.f32.mrb[149].mxu0 }
 0x29f   :  { %v2091_v14 = vpop.f32.mrb[149].mxu1  ;;  %v13760_v5 = vpop.f32.mrb[150].mxu0  ;;  %v11990_v17 = vld [vmem:[#allocation3 + $0x1c8] sm:$0xff]  }
 0x2a0   :  { %v13764_v25 = vpop.f32.mrb[150].mxu1  ;;  %v1389_v1 = vpop.f32.mrb[151].mxu0  ;;  %v15336_v14 = vpack.c.bf16 %v13241_v9, %v13234_v56  ;;  %v11994_v9 = vld [vmem:[#allocation3 + $0x1d0] sm:$0xff]  }
 0x2a1   :  { %v2094_v38 = vpop.f32.mrb[151].mxu1  ;;  %v15338_v1 = vpack.c.bf16 %v13331_v54, %v13324_v31 }
 0x2a2   :  { %3432 = vmatmul.mubr.bf16.vlgmr.msra.gmra.mrb[0].mxu0 %v15335_v8  ;;  %v11991_v38 = vld [vmem:[#allocation3 + $0x108] sm:$0xff]  }
 0x2a3   :  { %3529 = vmatmul.mubr.bf16.vlgmr.msra.gmra.mrb[0].mxu1 %v15336_v14  ;;  %3439 = vmatprep.mubr.bf16.mxu0 %v15337_v40  ;;  %v11995_v40 = vld [vmem:[#allocation3 + $0x110] sm:$0xff]  }
 0x2a4   :  { %3536 = vmatprep.mubr.bf16.mxu1 %v15338_v1  ;;  %10558 = vmatpush3.bf16.msra.mxu0 %v11986_v34  ;;  %v15339_v1 = vpack.c.bf16 %v13115_v63, %v13108_v58  ;;  %v12000_v58 = vld [vmem:[#allocation3 + $0x198] sm:$0xff]   ;;  %v12001_v63 = vld [vmem:[#allocation3 + $0x160] sm:$0xff]  }
 0x2a5   :  { %v13780_v39 = vpop.f32.mrb[152].mxu0  ;;  %10622 = vmatpush3.bf16.msra.mxu1 %v11988_v21  ;;  %10559 = vmatprep.subr.bf16.mxu0 %v11989_v12  ;;  %v11996_v12 = vld [vmem:[#allocation3 + $0x190] sm:$0xff]   ;;  %v15392_v34 = vld [vmem:[#allocation49_spill] sm:$0xff] }
 0x2a6   :  { %v13782_v8 = vpop.f32.mrb[152].mxu1  ;;  %v1394_v56 = vpop.f32.mrb[153].mxu0  ;;  %10623 = vmatprep.subr.bf16.mxu1 %v11990_v17  ;;  %v11997_v17 = vld [vmem:[#allocation3 + $0x158] sm:$0xff]  }
 0x2a7   :  { %v2099_v14 = vpop.f32.mrb[153].mxu1  ;;  %v13784_v47 = vpop.f32.mrb[154].mxu0  ;;  %v11998_v56 = vld [vmem:[#allocation3 + $0x1d8] sm:$0xff]  }
 0x2a8   :  { %v13788_v54 = vpop.f32.mrb[154].mxu1  ;;  %v1397_v31 = vpop.f32.mrb[155].mxu0  ;;  %10560 = vmatpush3.bf16.msra.mxu0 %v11991_v38  ;;  %v15340_v14 = vpack.c.bf16 %v13259_v23, %v13252_v35  ;;  %v15341_v38 = vpack.c.bf16 %v13205_v13, %v13198_v6  ;;  %v12002_v23 = vld [vmem:[#allocation3 + $0x1e0] sm:$0xff]   ;;  %v12030_v13 = vld [vmem:[#allocation3 + $0x2d8] sm:$0xff]  }
 0x2a9   :  { %v2102_v21 = vpop.f32.mrb[155].mxu1  ;;  %10624 = vmatpush3.bf16.msra.mxu1 %v11992_v46  ;;  %10561 = vmatprep.subr.bf16.mxu0 %v11993_v51  ;;  %v15342_v46 = vpack.c.bf16 %v13349_v44, %v13342_v45  ;;  %v11999_v51 = vld [vmem:[#allocation3 + $0x118] sm:$0xff]  }
 0x2aa   :  { %3440 = vmatmul.mubr.bf16.gmra.mrb[4].mxu0 %v15339_v1  ;;  %10625 = vmatprep.subr.bf16.mxu1 %v11994_v9  ;;  %v12004_v1 = vld [vmem:[#allocation3 + $0x1a0] sm:$0xff]  }
 0x2ab   :  { %3537 = vmatmul.mubr.bf16.gmra.mrb[4].mxu1 %v15340_v14  ;;  %3447 = vmatprep.mubr.bf16.mxu0 %v15341_v38  ;;  %v15343_v14 = vpack.c.bf16 %v13133_v15, %v13126_v10  ;;  %v12006_v38 = vld [vmem:[#allocation3 + $0x1e8] sm:$0xff]   ;;  %v12009_v15 = vld [vmem:[#allocation3 + $0x170] sm:$0xff]  }
 0x2ac   :  { %3544 = vmatprep.mubr.bf16.mxu1 %v15342_v46  ;;  %10562 = vmatpush3.bf16.msra.mxu0 %v11995_v40  ;;  %v12003_v40 = vld [vmem:[#allocation3 + $0x120] sm:$0xff]   ;;  %v15344_v46 = vpack.c.bf16 %v13277_v33, %v13270_v7  ;;  %v12008_v10 = vld [vmem:[#allocation3 + $0x1a8] sm:$0xff]   ;;  %v12010_v33 = vld [vmem:[#allocation3 + $0x1f0] sm:$0xff]  }
 0x2ad   :  { %v13804_v31 = vpop.f32.mrb[156].mxu0  ;;  %10626 = vmatpush3.bf16.msra.mxu1 %v11996_v12  ;;  %10563 = vmatprep.subr.bf16.mxu0 %v11997_v17  ;;  %v15390_v12 = vld [vmem:[#allocation59_spill] sm:$0xff] }
 0x2ae   :  { %v13806_v9 = vpop.f32.mrb[156].mxu1  ;;  %v1402_v35 = vpop.f32.mrb[157].mxu0  ;;  %10627 = vmatprep.subr.bf16.mxu1 %v11998_v56  ;;  %v12005_v56 = vld [vmem:[#allocation3 + $0x168] sm:$0xff]  }
 0x2af   :  { %v2107_v21 = vpop.f32.mrb[157].mxu1  ;;  %v13808_v6 = vpop.f32.mrb[158].mxu0 }
 0x2b0   :  { %v13812_v44 = vpop.f32.mrb[158].mxu1  ;;  %v1405_v45 = vpop.f32.mrb[159].mxu0  ;;  %10564 = vmatpush3.bf16.msra.mxu0 %v11999_v51  ;;  %v15345_v51 = vpack.c.bf16 %v13223_v37, %v13216_v26 }
 0x2b1   :  { %v2110_v17 = vpop.f32.mrb[159].mxu1  ;;  %10628 = vmatpush3.bf16.msra.mxu1 %v12000_v58  ;;  %10565 = vmatprep.subr.bf16.mxu0 %v12001_v63  ;;  %v15346_v58 = vpack.c.bf16 %v13367_v24, %v13360_v28  ;;  %v12007_v63 = vld [vmem:[#allocation3 + $0x128] sm:$0xff]   ;;  %v12011_v45 = vld [vmem:[#allocation3 + $0x130] sm:$0xff]  }
 0x2b2   :  { %3448 = vmatmul.mubr.bf16.gmra.mrb[8].mxu0 %v15343_v14  ;;  %10629 = vmatprep.subr.bf16.mxu1 %v12002_v23  ;;  %v15347_v14 = vpack.c.bf16 %v13151_v27, %v13144_v22  ;;  %v12016_v22 = vld [vmem:[#allocation3 + $0x1b8] sm:$0xff]   ;;  %v12017_v27 = vld [vmem:[#allocation3 + $0x240] sm:$0xff]   ;;  %v15415_v24 = vld [vmem:[#allocation67_spill] sm:$0xff] }
 0x2b3   :  { %3545 = vmatmul.mubr.bf16.gmra.mrb[8].mxu1 %v15344_v46  ;;  %3455 = vmatprep.mubr.bf16.mxu0 %v15345_v51  ;;  %v15348_v46 = vpack.c.bf16 %v13295_v55, %v13288_v0  ;;  %v15349_v51 = vpack.c.bf16 %v13173_v41, %v13167_v36  ;;  %v12019_v0 = vld [vmem:[#allocation3 + $0x2c0] sm:$0xff]  }
 0x2b4   :  { %3552 = vmatprep.mubr.bf16.mxu1 %v15346_v58  ;;  %10566 = vmatpush3.bf16.msra.mxu0 %v12003_v40  ;;  %v15350_v58 = vpack.c.bf16 %v13317_v4, %v13311_v16 }
 0x2b5   :  { %v13828_v35 = vpop.f32.mrb[160].mxu0  ;;  %10630 = vmatpush3.bf16.msra.mxu1 %v12004_v1  ;;  %10567 = vmatprep.subr.bf16.mxu0 %v12005_v56  ;;  %v12012_v1 = vld [vmem:[#allocation3 + $0x1b0] sm:$0xff]   ;;  %v12013_v56 = vld [vmem:[#allocation3 + $0x178] sm:$0xff]  }
 0x2b6   :  { %v13830_v23 = vpop.f32.mrb[160].mxu1  ;;  %v1410_v7 = vpop.f32.mrb[161].mxu0  ;;  %10631 = vmatprep.subr.bf16.mxu1 %v12006_v38  ;;  %v12014_v38 = vld [vmem:[#allocation3 + $0x1f8] sm:$0xff]  }
 0x2b7   :  { %v2115_v21 = vpop.f32.mrb[161].mxu1  ;;  %v13832_v26 = vpop.f32.mrb[162].mxu0 }
 0x2b8   :  { %v13836_v37 = vpop.f32.mrb[162].mxu1  ;;  %v1413_v28 = vpop.f32.mrb[163].mxu0  ;;  %10568 = vmatpush3.bf16.msra.mxu0 %v12007_v63  ;;  %v12015_v63 = vld [vmem:[#allocation3 + $0x138] sm:$0xff]  }
 0x2b9   :  { %v2118_v17 = vpop.f32.mrb[163].mxu1  ;;  %10632 = vmatpush3.bf16.msra.mxu1 %v12008_v10  ;;  %10569 = vmatprep.subr.bf16.mxu0 %v12009_v15  ;;  %v15351_v28 = vpack.c.bf16 %v13101_v53, %v13095_v48 }
 0x2ba   :  { %3456 = vmatmul.mubr.bf16.gmra.mrb[12].mxu0 %v15347_v14  ;;  %10633 = vmatprep.subr.bf16.mxu1 %v12010_v33  ;;  %v15353_v17 = vpack.c.bf16 %v13191_v61, %v13185_v50  ;;  %v15393_v33 = vld [vmem:[#allocation47_spill] sm:$0xff] }
 0x2bb   :  { %3553 = vmatmul.mubr.bf16.gmra.mrb[12].mxu1 %v15348_v46  ;;  %3463 = vmatprep.mubr.bf16.mxu0 %v15349_v51  ;;  %v15357_v51 = vld [vmem:[#allocation18_spill] sm:$0xff]  ;;  %v15394_v40 = vpack.c.bf16 %v15392_v34, %v15393_v33 }
 0x2bc   :  { %3560 = vmatprep.mubr.bf16.mxu1 %v15350_v58  ;;  %10570 = vmatpush3.bf16.msra.mxu0 %v12011_v45  ;;  %v15352_v45 = vpack.c.bf16 %v13245_v20, %v13239_v3  ;;  %v15358_v58 = vld [vmem:[#allocation17_spill] sm:$0xff] }
 0x2bd   :  { %v13852_v10 = vpop.f32.mrb[164].mxu0  ;;  %10634 = vmatpush3.bf16.msra.mxu1 %v12012_v1  ;;  %10571 = vmatprep.subr.bf16.mxu0 %v12013_v56  ;;  %v15354_v1 = vpack.c.bf16 %v13335_v43, %v13329_v11  ;;  %v15355_v11 = vpack.c.bf16 %v13119_v2, %v13113_v60  ;;  %v15356_v43 = vpack.c.bf16 %v13263_v62, %v13257_v49  ;;  %v15401_v3 = vld [vmem:[#allocation65_spill] sm:$0xff] }
 0x2be   :  { %v13854_v15 = vpop.f32.mrb[164].mxu1  ;;  %v1418_v55 = vpop.f32.mrb[165].mxu0  ;;  %10635 = vmatprep.subr.bf16.mxu1 %v12014_v38 }
 0x2bf   :  { %v2123_v7 = vpop.f32.mrb[165].mxu1  ;;  %v13856_v36 = vpop.f32.mrb[166].mxu0 }
 0x2c0   :  { %v13860_v41 = vpop.f32.mrb[166].mxu1  ;;  %v1421_v4 = vpop.f32.mrb[167].mxu0  ;;  %10572 = vmatpush3.bf16.msra.mxu0 %v12015_v63  ;;  %v15359_v63 = vpack.c.bf16 %v15357_v51, %v15358_v58  ;;  %v15374_v58 = vld [vmem:[#allocation28_spill] sm:$0xff] }
 0x2c1   :  { %v2126_v21 = vpop.f32.mrb[167].mxu1  ;;  %10636 = vmatpush3.bf16.msra.mxu1 %v12016_v22  ;;  %10685 = vmatprep.subr.bf16.mxu0 %v12017_v27  ;;  %v15360_v22 = vld [vmem:[#allocation26_spill] sm:$0xff]  ;;  %v15361_v27 = vld [vmem:[#allocation25_spill] sm:$0xff] }
 0x2c2   :  { %3464 = vmatmul.mubr.bf16.gmra.mrb[16].mxu0 %v15351_v28  ;;  %10749 = vmatprep.subr.bf16.mxu1 %v12019_v0  ;;  %v15362_v55 = vpack.c.bf16 %v15360_v22, %v15361_v27 }
 0x2c3   :  { %3561 = vmatmul.mubr.bf16.gmra.mrb[16].mxu1 %v15352_v45  ;;  %3471 = vmatprep.mubr.bf16.mxu0 %v15353_v17  ;;  %v15365_v17 = vld [vmem:[#allocation14_spill] sm:$0xff] }
 0x2c4   :  { %3568 = vmatprep.mubr.bf16.mxu1 %v15354_v1  ;;  %v15366_v1 = vld [vmem:[#allocation13_spill] sm:$0xff] }
 0x2c5   :  { %v13876_v56 = vpop.f32.mrb[168].mxu0 }
 0x2c6   :  { %v13878_v14 = vpop.f32.mrb[168].mxu1  ;;  %v1426_v38 = vpop.f32.mrb[169].mxu0 }
 0x2c7   :  { %v2131_v48 = vpop.f32.mrb[169].mxu1  ;;  %v13880_v53 = vpop.f32.mrb[170].mxu0  ;;  %v15367_v38 = vpack.c.bf16 %v15365_v17, %v15366_v1 }
 0x2c8   :  { %v13884_v20 = vpop.f32.mrb[170].mxu1  ;;  %v1429_v46 = vpop.f32.mrb[171].mxu0  ;;  %v15368_v48 = vld [vmem:[#allocation22_spill] sm:$0xff] }
 0x2c9   :  { %v2134_v61 = vpop.f32.mrb[171].mxu1  ;;  %v15369_v46 = vld [vmem:[#allocation21_spill] sm:$0xff] }
 0x2ca   :  { %3472 = vmatmul.mubr.bf16.gmra.mrb[20].mxu0 %v15355_v11  ;;  %v15370_v61 = vpack.c.bf16 %v15368_v48, %v15369_v46  ;;  %v15371_v11 = vld [vmem:[#allocation20_spill] sm:$0xff] }
 0x2cb   :  { %3569 = vmatmul.mubr.bf16.gmra.mrb[20].mxu1 %v15356_v43  ;;  %3479 = vmatprep.mubr.bf16.mxu0 %v15359_v63  ;;  %v15372_v43 = vld [vmem:[#allocation19_spill] sm:$0xff]  ;;  %v15377_v46 = vld [vmem:[#allocation16_spill] sm:$0xff] }
 0x2cc   :  { %3576 = vmatprep.mubr.bf16.mxu1 %v15362_v55  ;;  %v15373_v51 = vpack.c.bf16 %v15371_v11, %v15372_v43  ;;  %v15375_v63 = vld [vmem:[#allocation27_spill] sm:$0xff]  ;;  %v15380_v43 = vld [vmem:[#allocation24_spill] sm:$0xff] }
 0x2cd   :  { %v13900_v0 = vpop.f32.mrb[172].mxu0  ;;  %v15376_v22 = vpack.c.bf16 %v15374_v58, %v15375_v63  ;;  %v15383_v63 = vpack.c.bf16 %v13457_v30, %v13450_v59  ;;  %v12018_v30 = vld [vmem:[#allocation3 + $0x200] sm:$0xff]  }
 0x2ce   :  { %v13902_v7 = vpop.f32.mrb[172].mxu1  ;;  %v1434_v4 = vpop.f32.mrb[173].mxu0 }
 0x2cf   :  { %15363 = vst [vmem:[#allocation18_spill] sm:$0xff] %v13902_v7  ;;  %v2139_v21 = vpop.f32.mrb[173].mxu1  ;;  %v13904_v60 = vpop.f32.mrb[174].mxu0 }
 0x2d0   :  { %v13908_v49 = vpop.f32.mrb[174].mxu1  ;;  %v1437_v62 = vpop.f32.mrb[175].mxu0 }
 0x2d1   :  { %15364 = vst [vmem:[#allocation17_spill] sm:$0xff] %v13908_v49  ;;  %v2142_v45 = vpop.f32.mrb[175].mxu1 }
 0x2d2   :  { %3480 = vmatmul.mubr.bf16.gmra.mrb[24].mxu0 %v15367_v38  ;;  %v15396_v38 = vld [vmem:[#allocation78_spill] sm:$0xff] }
 0x2d3   :  { %3577 = vmatmul.mubr.bf16.gmra.mrb[24].mxu1 %v15370_v61  ;;  %3487 = vmatprep.mubr.bf16.mxu0 %v15373_v51  ;;  %v15378_v61 = vld [vmem:[#allocation15_spill] sm:$0xff] }
 0x2d4   :  { %3584 = vmatprep.mubr.bf16.mxu1 %v15376_v22  ;;  %v15379_v11 = vpack.c.bf16 %v15377_v46, %v15378_v61  ;;  %v15381_v51 = vld [vmem:[#allocation23_spill] sm:$0xff] }
 0x2d5   :  { %v13924_v27 = vpop.f32.mrb[176].mxu0  ;;  %v15382_v58 = vpack.c.bf16 %v15380_v43, %v15381_v51  ;;  %v15384_v22 = vld [vmem:[#allocation75_spill] sm:$0xff]  ;;  %v12020_v51 = vld [vmem:[#allocation3 + $0x280] sm:$0xff]  }
 0x2d6   :  { %v13926_v55 = vpop.f32.mrb[176].mxu1  ;;  %v1442_v4 = vpop.f32.mrb[177].mxu0 }
 0x2d7   :  { %v2147_v21 = vpop.f32.mrb[177].mxu1  ;;  %v13928_v62 = vpop.f32.mrb[178].mxu0  ;;  %v15385_v4 = vpack.c.bf16 %v13601_v42, %v15384_v22  ;;  %v15387_v22 = vld [vmem:[#allocation29_spill] sm:$0xff] }
 0x2d8   :  { %v13932_v17 = vpop.f32.mrb[178].mxu1  ;;  %v1445_v1 = vpop.f32.mrb[179].mxu0 }
 0x2d9   :  { %v2150_v48 = vpop.f32.mrb[179].mxu1 }
 0x2da   :  { %3488 = vmatmul.mubr.bf16.gmra.mrb[28].mxu0 %v15379_v11 }
 0x2db   :  { %3585 = vmatmul.mubr.bf16.gmra.mrb[28].mxu1 %v15382_v58  ;;  %3625 = vmatprep.mubr.bf16.mxu0 %v15383_v63  ;;  %v12021_v58 = vld [vmem:[#allocation3 + $0x248] sm:$0xff]   ;;  %v15386_v63 = vld [vmem:[#allocation31_spill] sm:$0xff] }
 0x2dc   :  { %3722 = vmatprep.mubr.bf16.mxu1 %v15385_v4  ;;  %v15388_v4 = vpack.c.bf16 %v15386_v63, %v15387_v22  ;;  %v12024_v63 = vld [vmem:[#allocation3 + $0x288] sm:$0xff]   ;;  %v12025_v22 = vld [vmem:[#allocation3 + $0x250] sm:$0xff]  }
 0x2dd   :  { %v13948_v21 = vpop.f32.mrb[180].mxu0 }
 0x2de   :  { %v13950_v1 = vpop.f32.mrb[180].mxu1  ;;  %v1450_v48 = vpop.f32.mrb[181].mxu0 }
 0x2df   :  { %v2155_v28 = vpop.f32.mrb[181].mxu1  ;;  %v13952_v46 = vpop.f32.mrb[182].mxu0  ;;  %v15389_v48 = vld [vmem:[#allocation61_spill] sm:$0xff] }
 0x2e0   :  { %v13956_v11 = vpop.f32.mrb[182].mxu1  ;;  %v1453_v43 = vpop.f32.mrb[183].mxu0  ;;  %v12022_v28 = vld [vmem:[#allocation3 + $0x2c8] sm:$0xff]   ;;  %v15391_v50 = vpack.c.bf16 %v15389_v48, %v15390_v12 }
 0x2e1   :  { %v2158_v42 = vpop.f32.mrb[183].mxu1  ;;  %v15395_v43 = vld [vmem:[#allocation80_spill] sm:$0xff] }
 0x2e2   :  { %3626 = vmatmul.mubr.bf16.vlgmr.msra.gmra.mrb[32].mxu0 %v15388_v4  ;;  %v15397_v2 = vpack.c.bf16 %v15395_v43, %v15396_v38  ;;  %v12023_v42 = vld [vmem:[#allocation3 + $0x208] sm:$0xff]   ;;  %v12027_v38 = vld [vmem:[#allocation3 + $0x210] sm:$0xff]  }
 0x2e3   :  { %3723 = vmatmul.mubr.bf16.vlgmr.msra.gmra.mrb[32].mxu1 %v15391_v50  ;;  %3633 = vmatprep.mubr.bf16.mxu0 %v15394_v40  ;;  %v12026_v50 = vld [vmem:[#allocation3 + $0x2d0] sm:$0xff]  }
 0x2e4   :  { %3730 = vmatprep.mubr.bf16.mxu1 %v15397_v2  ;;  %10686 = vmatpush3.bf16.msra.mxu0 %v12018_v30  ;;  %v15398_v43 = vld [vmem:[#allocation35_spill] sm:$0xff]  ;;  %v15407_v30 = vld [vmem:[#allocation84_spill] sm:$0xff] }
 0x2e5   :  { %v13972_v59 = vpop.f32.mrb[184].mxu0  ;;  %10750 = vmatpush3.bf16.msra.mxu1 %v12020_v51  ;;  %10687 = vmatprep.subr.bf16.mxu0 %v12021_v58  ;;  %v12028_v58 = vld [vmem:[#allocation3 + $0x290] sm:$0xff]  }
 0x2e6   :  { %v13974_v4 = vpop.f32.mrb[184].mxu1  ;;  %v1458_v12 = vpop.f32.mrb[185].mxu0  ;;  %10751 = vmatprep.subr.bf16.mxu1 %v12022_v28  ;;  %v12029_v28 = vld [vmem:[#allocation3 + $0x258] sm:$0xff]   ;;  %v15402_v40 = vld [vmem:[#allocation63_spill] sm:$0xff] }
 0x2e7   :  { %v2163_v48 = vpop.f32.mrb[185].mxu1  ;;  %v13976_v34 = vpop.f32.mrb[186].mxu0  ;;  %v15399_v12 = vld [vmem:[#allocation33_spill] sm:$0xff]  ;;  %v15403_v57 = vpack.c.bf16 %v15401_v3, %v15402_v40 }
 0x2e8   :  { %v13980_v33 = vpop.f32.mrb[186].mxu1  ;;  %v1461_v2 = vpop.f32.mrb[187].mxu0  ;;  %10688 = vmatpush3.bf16.msra.mxu0 %v12023_v42  ;;  %v15400_v48 = vpack.c.bf16 %v15398_v43, %v15399_v12  ;;  %v15404_v42 = vld [vmem:[#allocation53_spill] sm:$0xff] }
 0x2e9   :  { %v2166_v51 = vpop.f32.mrb[187].mxu1  ;;  %10752 = vmatpush3.bf16.msra.mxu1 %v12024_v63  ;;  %10689 = vmatprep.subr.bf16.mxu0 %v12025_v22  ;;  %v15405_v2 = vld [vmem:[#allocation51_spill] sm:$0xff]  ;;  %v12031_v22 = vld [vmem:[#allocation3 + $0x218] sm:$0xff]   ;;  %v12033_v43 = vld [vmem:[#allocation3 + $0x260] sm:$0xff]  }
 0x2ea   :  { %3634 = vmatmul.mubr.bf16.gmra.mrb[36].mxu0 %v15400_v48  ;;  %10753 = vmatprep.subr.bf16.mxu1 %v12026_v50  ;;  %v15406_v16 = vpack.c.bf16 %v15404_v42, %v15405_v2  ;;  %v15408_v51 = vld [vmem:[#allocation82_spill] sm:$0xff]  ;;  %v12032_v50 = vld [vmem:[#allocation3 + $0x298] sm:$0xff]   ;;  %v12035_v42 = vld [vmem:[#allocation3 + $0x220] sm:$0xff]  }
 0x2eb   :  { %3731 = vmatmul.mubr.bf16.gmra.mrb[36].mxu1 %v15403_v57  ;;  %v15409_v63 = vpack.c.bf16 %v15407_v30, %v15408_v51  ;;  %v12034_v57 = vld [vmem:[#allocation3 + $0x2e0] sm:$0xff]   ;;  %v15411_v51 = vld [vmem:[#allocation39_spill] sm:$0xff] }
 0x2ec   :  { %3641 = vmatprep.mubr.bf16.mxu0 %v15406_v16  ;;  %10690 = vmatpush3.bf16.msra.mxu0 %v12027_v38  ;;  %v12036_v2 = vld [vmem:[#allocation3 + $0x2a0] sm:$0xff]  }
 0x2ed   :  { %3738 = vmatprep.mubr.bf16.mxu1 %v15409_v63  ;;  %v13996_v61 = vpop.f32.mrb[188].mxu0  ;;  %10754 = vmatpush3.bf16.msra.mxu1 %v12028_v58  ;;  %v15412_v63 = vld [vmem:[#allocation37_spill] sm:$0xff]  ;;  %v15420_v58 = vld [vmem:[#allocation88_spill] sm:$0xff] }
 0x2ee   :  { %10691 = vmatprep.subr.bf16.mxu0 %v12029_v28  ;;  %v13998_v12 = vpop.f32.mrb[188].mxu1  ;;  %v1466_v3 = vpop.f32.mrb[189].mxu0  ;;  %10755 = vmatprep.subr.bf16.mxu1 %v12030_v13  ;;  %v12037_v13 = vld [vmem:[#allocation3 + $0x268] sm:$0xff]   ;;  %v15414_v16 = vld [vmem:[#allocation69_spill] sm:$0xff] }
 0x2ef   :  { %15410 = vst [vmem:[#allocation26_spill] sm:$0xff] %v13998_v12  ;;  %v2171_v40 = vpop.f32.mrb[189].mxu1  ;;  %v14000_v48 = vpop.f32.mrb[190].mxu0  ;;  %v15413_v3 = vpack.c.bf16 %v15411_v51, %v15412_v63  ;;  %v15416_v45 = vpack.c.bf16 %v15414_v16, %v15415_v24  ;;  %v12041_v51 = vld [vmem:[#allocation3 + $0x270] sm:$0xff]  }
 0x2f0   :  { %v14004_v30 = vpop.f32.mrb[190].mxu1  ;;  %v1469_v38 = vpop.f32.mrb[191].mxu0  ;;  %10692 = vmatpush3.bf16.msra.mxu0 %v12031_v22  ;;  %v12038_v40 = vld [vmem:[#allocation3 + $0x2e8] sm:$0xff]   ;;  %v15417_v22 = vld [vmem:[#allocation57_spill] sm:$0xff] }
 0x2f1   :  { %v2174_v28 = vpop.f32.mrb[191].mxu1  ;;  %10756 = vmatpush3.bf16.msra.mxu1 %v12032_v50  ;;  %10693 = vmatprep.subr.bf16.mxu0 %v12033_v43  ;;  %v15418_v38 = vld [vmem:[#allocation55_spill] sm:$0xff]  ;;  %v12039_v43 = vld [vmem:[#allocation3 + $0x228] sm:$0xff]  }
 0x2f2   :  { %3642 = vmatmul.mubr.bf16.gmra.mrb[40].mxu0 %v15413_v3  ;;  %10757 = vmatprep.subr.bf16.mxu1 %v12034_v57  ;;  %v15419_v7 = vpack.c.bf16 %v15417_v22, %v15418_v38  ;;  %v15421_v28 = vld [vmem:[#allocation86_spill] sm:$0xff]  ;;  %v12043_v22 = vld [vmem:[#allocation3 + $0x230] sm:$0xff]  }
 0x2f3   :  { %3739 = vmatmul.mubr.bf16.gmra.mrb[40].mxu1 %v15416_v45  ;;  %v15422_v50 = vpack.c.bf16 %v15420_v58, %v15421_v28  ;;  %v12040_v57 = vld [vmem:[#allocation3 + $0x2a8] sm:$0xff]   ;;  %v12042_v45 = vld [vmem:[#allocation3 + $0x2f0] sm:$0xff]  }
 0x2f4   :  { %3649 = vmatprep.mubr.bf16.mxu0 %v15419_v7  ;;  %10694 = vmatpush3.bf16.msra.mxu0 %v12035_v42  ;;  %v12044_v38 = vld [vmem:[#allocation3 + $0x2b0] sm:$0xff]   ;;  %v15430_v7 = vld [vmem:[#allocation73_spill] sm:$0xff] }
 0x2f5   :  { %3746 = vmatprep.mubr.bf16.mxu1 %v15422_v50  ;;  %v14020_v49 = vpop.f32.mrb[192].mxu0  ;;  %10758 = vmatpush3.bf16.msra.mxu1 %v12036_v2  ;;  %v15427_v28 = vld [vmem:[#allocation43_spill] sm:$0xff]  ;;  %v15428_v50 = vld [vmem:[#allocation41_spill] sm:$0xff] }
 0x2f6   :  { %15423 = vst [vmem:[#allocation25_spill] sm:$0xff] %v14020_v49  ;;  %10695 = vmatprep.subr.bf16.mxu0 %v12037_v13  ;;  %v14022_v63 = vpop.f32.mrb[192].mxu1  ;;  %v1474_v24 = vpop.f32.mrb[193].mxu0  ;;  %10759 = vmatprep.subr.bf16.mxu1 %v12038_v40  ;;  %v12045_v40 = vld [vmem:[#allocation3 + $0x278] sm:$0xff]   ;;  %v15431_v49 = vld [vmem:[#allocation71_spill] sm:$0xff]  ;;  %v15436_v2 = vld [vmem:[#allocation77_spill] sm:$0xff] }
 0x2f7   :  { %15424 = vst [vmem:[#allocation14_spill] sm:$0xff] %v14022_v63  ;;  %v2179_v16 = vpop.f32.mrb[193].mxu1  ;;  %v14024_v3 = vpop.f32.mrb[194].mxu0  ;;  %v15429_v24 = vpack.c.bf16 %v15427_v28, %v15428_v50  ;;  %v12049_v28 = vld [vmem:[#allocation3 + $0x340] sm:$0xff]  }
 0x2f8   :  { %15425 = vst [vmem:[#allocation13_spill] sm:$0xff] %v14024_v3  ;;  %v14028_v58 = vpop.f32.mrb[194].mxu1  ;;  %v1477_v42 = vpop.f32.mrb[195].mxu0  ;;  %10696 = vmatpush3.bf16.msra.mxu0 %v12039_v43  ;;  %v12046_v16 = vld [vmem:[#allocation3 + $0x2f8] sm:$0xff]   ;;  %v15432_v3 = vpack.c.bf16 %v15430_v7, %v15431_v49  ;;  %v15433_v43 = vld [vmem:[#allocation46_spill] sm:$0xff] }
 0x2f9   :  { %15426 = vst [vmem:[#allocation22_spill] sm:$0xff] %v14028_v58  ;;  %v2182_v13 = vpop.f32.mrb[195].mxu1  ;;  %10760 = vmatpush3.bf16.msra.mxu1 %v12040_v57  ;;  %10697 = vmatprep.subr.bf16.mxu0 %v12041_v51  ;;  %v15434_v42 = vld [vmem:[#allocation45_spill] sm:$0xff]  ;;  %v12047_v51 = vld [vmem:[#allocation3 + $0x238] sm:$0xff]  }
 0x2fa   :  { %3650 = vmatmul.mubr.bf16.gmra.mrb[44].mxu0 %v15429_v24  ;;  %10761 = vmatprep.subr.bf16.mxu1 %v12042_v45  ;;  %v15435_v12 = vpack.c.bf16 %v15433_v43, %v15434_v42  ;;  %v15437_v13 = vld [vmem:[#allocation76_spill] sm:$0xff]  ;;  %v15443_v42 = vld [vmem:[#allocation30_spill] sm:$0xff] }
 0x2fb   :  { %3747 = vmatmul.mubr.bf16.gmra.mrb[44].mxu1 %v15432_v3  ;;  %v15438_v57 = vpack.c.bf16 %v15436_v2, %v15437_v13  ;;  %v12048_v45 = vld [vmem:[#allocation3 + $0x2b8] sm:$0xff]   ;;  %v12051_v3 = vld [vmem:[#allocation3 + $0x3c0] sm:$0xff]   ;;  %v15445_v13 = vld [vmem:[#allocation62_spill] sm:$0xff] }
 0x2fc   :  { %3657 = vmatprep.mubr.bf16.mxu0 %v15435_v12  ;;  %10698 = vmatpush3.bf16.msra.mxu0 %v12043_v22  ;;  %v15442_v43 = vld [vmem:[#allocation32_spill] sm:$0xff] }
 0x2fd   :  { %3754 = vmatprep.mubr.bf16.mxu1 %v15438_v57  ;;  %v14044_v63 = vpop.f32.mrb[196].mxu0  ;;  %10762 = vmatpush3.bf16.msra.mxu1 %v12044_v38  ;;  %v15446_v57 = vld [vmem:[#allocation60_spill] sm:$0xff] }
 0x2fe   :  { %15439 = vst [vmem:[#allocation21_spill] sm:$0xff] %v14044_v63  ;;  %10699 = vmatprep.subr.bf16.mxu0 %v12045_v40  ;;  %v14046_v50 = vpop.f32.mrb[196].mxu1  ;;  %v1482_v49 = vpop.f32.mrb[197].mxu0  ;;  %10763 = vmatprep.subr.bf16.mxu1 %v12046_v16  ;;  %v15444_v16 = vpack.c.bf16 %v15442_v43, %v15443_v42  ;;  %v15449_v12 = vld [vmem:[#allocation48_spill] sm:$0xff] }
 0x2ff   :  { %15440 = vst [vmem:[#allocation20_spill] sm:$0xff] %v14046_v50  ;;  %v2187_v7 = vpop.f32.mrb[197].mxu1  ;;  %v14048_v24 = vpop.f32.mrb[198].mxu0  ;;  %v15447_v49 = vpack.c.bf16 %v15445_v13, %v15446_v57  ;;  %v15456_v57 = vld [vmem:[#allocation36_spill] sm:$0xff]  ;;  %v15466_v50 = vld [vmem:[#allocation83_spill] sm:$0xff] }
 0x300   :  { %v14052_v2 = vpop.f32.mrb[198].mxu1  ;;  %v1485_v22 = vpop.f32.mrb[199].mxu0  ;;  %10700 = vmatpush3.bf16.msra.mxu0 %v12047_v51  ;;  %v15448_v7 = vld [vmem:[#allocation50_spill] sm:$0xff]  ;;  %v15451_v51 = vld [vmem:[#allocation81_spill] sm:$0xff] }
 0x301   :  { %15441 = vst [vmem:[#allocation19_spill] sm:$0xff] %v14052_v2  ;;  %v2190_v40 = vpop.f32.mrb[199].mxu1  ;;  %10764 = vmatpush3.bf16.msra.mxu1 %v12048_v45  ;;  %10813 = vmatprep.subr.bf16.mxu0 %v12049_v28  ;;  %v15450_v58 = vpack.c.bf16 %v15448_v7, %v15449_v12  ;;  %v15452_v22 = vld [vmem:[#allocation79_spill] sm:$0xff]  ;;  %v15459_v7 = vld [vmem:[#allocation66_spill] sm:$0xff] }
 0x302   :  { %3658 = vmatmul.mubr.bf16.gmra.mrb[48].mxu0 %v15444_v16  ;;  %10877 = vmatprep.subr.bf16.mxu1 %v12051_v3  ;;  %v15453_v63 = vpack.c.bf16 %v15451_v51, %v15452_v22  ;;  %v15460_v51 = vld [vmem:[#allocation64_spill] sm:$0xff]  ;;  %v15465_v3 = vld [vmem:[#allocation85_spill] sm:$0xff] }
 0x303   :  { %3755 = vmatmul.mubr.bf16.gmra.mrb[48].mxu1 %v15447_v49  ;;  %3665 = vmatprep.mubr.bf16.mxu0 %v15450_v58  ;;  %v15461_v22 = vpack.c.bf16 %v15459_v7, %v15460_v51  ;;  %v15467_v2 = vpack.c.bf16 %v15465_v3, %v15466_v50  ;;  %v15472_v50 = vld [vmem:[#allocation40_spill] sm:$0xff] }
 0x304   :  { %3762 = vmatprep.mubr.bf16.mxu1 %v15453_v63  ;;  %v15457_v63 = vld [vmem:[#allocation34_spill] sm:$0xff] }
 0x305   :  { %v14068_v40 = vpop.f32.mrb[200].mxu0  ;;  %v15458_v49 = vpack.c.bf16 %v15456_v57, %v15457_v63  ;;  %v15481_v63 = vld [vmem:[#allocation89_spill] sm:$0xff] }
 0x306   :  { %v14070_v45 = vpop.f32.mrb[200].mxu1  ;;  %v1490_v28 = vpop.f32.mrb[201].mxu0 }
 0x307   :  { %15454 = vst [vmem:[#allocation28_spill] sm:$0xff] %v14070_v45  ;;  %v2195_v43 = vpop.f32.mrb[201].mxu1  ;;  %v14072_v42 = vpop.f32.mrb[202].mxu0  ;;  %v15462_v28 = vld [vmem:[#allocation54_spill] sm:$0xff] }
 0x308   :  { %v14076_v16 = vpop.f32.mrb[202].mxu1  ;;  %v1493_v13 = vpop.f32.mrb[203].mxu0  ;;  %v15463_v43 = vld [vmem:[#allocation52_spill] sm:$0xff] }
 0x309   :  { %15455 = vst [vmem:[#allocation27_spill] sm:$0xff] %v14076_v16  ;;  %v2198_v12 = vpop.f32.mrb[203].mxu1  ;;  %v15464_v38 = vpack.c.bf16 %v15462_v28, %v15463_v43  ;;  %v15476_v28 = vld [vmem:[#allocation68_spill] sm:$0xff] }
 0x30a   :  { %3666 = vmatmul.mubr.bf16.gmra.mrb[52].mxu0 %v15458_v49 }
 0x30b   :  { %3763 = vmatmul.mubr.bf16.gmra.mrb[52].mxu1 %v15461_v22  ;;  %3673 = vmatprep.mubr.bf16.mxu0 %v15464_v38  ;;  %v15475_v22 = vld [vmem:[#allocation70_spill] sm:$0xff] }
 0x30c   :  { %3770 = vmatprep.mubr.bf16.mxu1 %v15467_v2  ;;  %v15473_v2 = vld [vmem:[#allocation38_spill] sm:$0xff]  ;;  %v15477_v43 = vpack.c.bf16 %v15475_v22, %v15476_v28 }
 0x30d   :  { %v14092_v13 = vpop.f32.mrb[204].mxu0  ;;  %v15474_v3 = vpack.c.bf16 %v15472_v50, %v15473_v2  ;;  %v15492_v2 = vpack.c.bf16 %v13928_v62, %v13924_v27  ;;  %v12052_v62 = vld [vmem:[#allocation3 + $0x380] sm:$0xff]  }
 0x30e   :  { %15468 = vst [vmem:[#allocation16_spill] sm:$0xff] %v14092_v13  ;;  %v14094_v58 = vpop.f32.mrb[204].mxu1  ;;  %v1498_v12 = vpop.f32.mrb[205].mxu0  ;;  %v15482_v13 = vld [vmem:[#allocation87_spill] sm:$0xff] }
 0x30f   :  { %15469 = vst [vmem:[#allocation15_spill] sm:$0xff] %v14094_v58  ;;  %v2203_v45 = vpop.f32.mrb[205].mxu1  ;;  %v14096_v57 = vpop.f32.mrb[206].mxu0  ;;  %v15479_v12 = vld [vmem:[#allocation56_spill] sm:$0xff] }
 0x310   :  { %15470 = vst [vmem:[#allocation24_spill] sm:$0xff] %v14096_v57  ;;  %v14100_v49 = vpop.f32.mrb[206].mxu1  ;;  %v1501_v7 = vpop.f32.mrb[207].mxu0  ;;  %v15478_v45 = vld [vmem:[#allocation58_spill] sm:$0xff]  ;;  %v15483_v57 = vpack.c.bf16 %v15481_v63, %v15482_v13  ;;  %v15484_v13 = vld [vmem:[#allocation44_spill] sm:$0xff] }
 0x311   :  { %15471 = vst [vmem:[#allocation23_spill] sm:$0xff] %v14100_v49  ;;  %v2206_v51 = vpop.f32.mrb[207].mxu1  ;;  %v15480_v16 = vpack.c.bf16 %v15478_v45, %v15479_v12  ;;  %v15488_v45 = vld [vmem:[#allocation72_spill] sm:$0xff] }
 0x312   :  { %3674 = vmatmul.mubr.bf16.gmra.mrb[56].mxu0 %v15474_v3 }
 0x313   :  { %3771 = vmatmul.mubr.bf16.gmra.mrb[56].mxu1 %v15477_v43  ;;  %3681 = vmatprep.mubr.bf16.mxu0 %v15480_v16  ;;  %v15487_v43 = vld [vmem:[#allocation74_spill] sm:$0xff] }
 0x314   :  { %3778 = vmatprep.mubr.bf16.mxu1 %v15483_v57  ;;  %v15485_v57 = vld [vmem:[#allocation42_spill] sm:$0xff]  ;;  %v15489_v12 = vpack.c.bf16 %v15487_v43, %v15488_v45 }
 0x315   :  { %v14116_v7 = vpop.f32.mrb[208].mxu0  ;;  %v15486_v63 = vpack.c.bf16 %v15484_v13, %v15485_v57  ;;  %v15498_v57 = vpack.c.bf16 %v13760_v5, %v13756_v18  ;;  %v15503_v5 = vpack.c.bf16 %v13856_v36, %v13852_v10  ;;  %v12066_v36 = vld [vmem:[#allocation3 + $0x3e0] sm:$0xff]  }
 0x316   :  { %v14118_v38 = vpop.f32.mrb[208].mxu1  ;;  %v1506_v51 = vpop.f32.mrb[209].mxu0 }
 0x317   :  { %v2211_v58 = vpop.f32.mrb[209].mxu1  ;;  %v14120_v50 = vpop.f32.mrb[210].mxu0 }
 0x318   :  { %v14124_v3 = vpop.f32.mrb[210].mxu1  ;;  %v1509_v22 = vpop.f32.mrb[211].mxu0  ;;  %v15490_v58 = vld [vmem:[#allocation106_spill] sm:$0xff] }
 0x319   :  { %v2214_v28 = vpop.f32.mrb[211].mxu1  ;;  %v15491_v51 = vpack.c.bf16 %v13742_v52, %v15490_v58  ;;  %v12050_v52 = vld [vmem:[#allocation3 + $0x300] sm:$0xff]   ;;  %v15495_v58 = vld [vmem:[#allocation90_spill] sm:$0xff] }
 0x31a   :  { %3682 = vmatmul.mubr.bf16.gmra.mrb[60].mxu0 %v15486_v63 }
 0x31b   :  { %3779 = vmatmul.mubr.bf16.gmra.mrb[60].mxu1 %v15489_v12  ;;  %3819 = vmatprep.mubr.bf16.mxu0 %v15491_v51  ;;  %v15494_v12 = vld [vmem:[#allocation92_spill] sm:$0xff] }
 0x31c   :  { %3916 = vmatprep.mubr.bf16.mxu1 %v15492_v2  ;;  %v12053_v2 = vld [vmem:[#allocation3 + $0x348] sm:$0xff]   ;;  %v15496_v51 = vpack.c.bf16 %v15494_v12, %v15495_v58  ;;  %v12057_v58 = vld [vmem:[#allocation3 + $0x350] sm:$0xff]  }
 0x31d   :  { %v14140_v22 = vpop.f32.mrb[212].mxu0  ;;  %v12056_v12 = vld [vmem:[#allocation3 + $0x388] sm:$0xff]  }
 0x31e   :  { %v14142_v16 = vpop.f32.mrb[212].mxu1  ;;  %v1514_v28 = vpop.f32.mrb[213].mxu0 }
 0x31f   :  { %15493 = vst [vmem:[#allocation75_spill] sm:$0xff] %v14142_v16  ;;  %v2219_v49 = vpop.f32.mrb[213].mxu1  ;;  %v14144_v13 = vpop.f32.mrb[214].mxu0  ;;  %v15497_v28 = vpack.c.bf16 %v13832_v26, %v13828_v35  ;;  %v12058_v26 = vld [vmem:[#allocation3 + $0x3d0] sm:$0xff]   ;;  %v12062_v16 = vld [vmem:[#allocation3 + $0x3d8] sm:$0xff]  }
 0x320   :  { %v14148_v63 = vpop.f32.mrb[214].mxu1  ;;  %v1517_v43 = vpop.f32.mrb[215].mxu0  ;;  %v12054_v49 = vld [vmem:[#allocation3 + $0x3c8] sm:$0xff]  }
 0x321   :  { %v2222_v27 = vpop.f32.mrb[215].mxu1  ;;  %v15499_v43 = vpack.c.bf16 %v13952_v46, %v13948_v21 }
 0x322   :  { %3820 = vmatmul.mubr.bf16.vlgmr.msra.gmra.mrb[64].mxu0 %v15496_v51  ;;  %v12055_v27 = vld [vmem:[#allocation3 + $0x308] sm:$0xff]  }
 0x323   :  { %3917 = vmatmul.mubr.bf16.vlgmr.msra.gmra.mrb[64].mxu1 %v15497_v28  ;;  %3827 = vmatprep.mubr.bf16.mxu0 %v15498_v57  ;;  %v12059_v57 = vld [vmem:[#allocation3 + $0x310] sm:$0xff]  }
 0x324   :  { %3924 = vmatprep.mubr.bf16.mxu1 %v15499_v43  ;;  %10814 = vmatpush3.bf16.msra.mxu0 %v12050_v52  ;;  %v15500_v43 = vld [vmem:[#allocation96_spill] sm:$0xff] }
 0x325   :  { %v14164_v45 = vpop.f32.mrb[216].mxu0  ;;  %10878 = vmatpush3.bf16.msra.mxu1 %v12052_v62  ;;  %10815 = vmatprep.subr.bf16.mxu0 %v12053_v2  ;;  %v12060_v2 = vld [vmem:[#allocation3 + $0x390] sm:$0xff]  }
 0x326   :  { %v14166_v51 = vpop.f32.mrb[216].mxu1  ;;  %v1522_v35 = vpop.f32.mrb[217].mxu0  ;;  %10879 = vmatprep.subr.bf16.mxu1 %v12054_v49  ;;  %v12061_v49 = vld [vmem:[#allocation3 + $0x358] sm:$0xff]  }
 0x327   :  { %v2227_v28 = vpop.f32.mrb[217].mxu1  ;;  %v14168_v18 = vpop.f32.mrb[218].mxu0  ;;  %v15501_v35 = vld [vmem:[#allocation94_spill] sm:$0xff] }
 0x328   :  { %v14172_v21 = vpop.f32.mrb[218].mxu1  ;;  %v1525_v46 = vpop.f32.mrb[219].mxu0  ;;  %10816 = vmatpush3.bf16.msra.mxu0 %v12055_v27  ;;  %v15502_v28 = vpack.c.bf16 %v15500_v43, %v15501_v35  ;;  %v15504_v27 = vpack.c.bf16 %v13784_v47, %v13780_v39  ;;  %v12068_v35 = vld [vmem:[#allocation3 + $0x3a0] sm:$0xff]  }
 0x329   :  { %v2358_v52 = vpack.c.bf16 %v14172_v21, %v14166_v51  ;;  %v2230_v62 = vpop.f32.mrb[219].mxu1  ;;  %10880 = vmatpush3.bf16.msra.mxu1 %v12056_v12  ;;  %10817 = vmatprep.subr.bf16.mxu0 %v12057_v58  ;;  %v15505_v12 = vpack.c.bf16 %v13976_v34, %v13972_v59  ;;  %v12063_v58 = vld [vmem:[#allocation3 + $0x318] sm:$0xff]  }
 0x32a   :  { %3828 = vmatmul.mubr.bf16.gmra.mrb[68].mxu0 %v15502_v28  ;;  %10881 = vmatprep.subr.bf16.mxu1 %v12058_v26  ;;  %v12064_v26 = vld [vmem:[#allocation3 + $0x398] sm:$0xff]   ;;  %v12065_v62 = vld [vmem:[#allocation3 + $0x360] sm:$0xff]  }
 0x32b   :  { %3925 = vmatmul.mubr.bf16.gmra.mrb[68].mxu1 %v15503_v5  ;;  %3835 = vmatprep.mubr.bf16.mxu0 %v15504_v27  ;;  %v15506_v28 = vld [vmem:[#allocation100_spill] sm:$0xff]  ;;  %v15507_v27 = vld [vmem:[#allocation98_spill] sm:$0xff] }
 0x32c   :  { %3932 = vmatprep.mubr.bf16.mxu1 %v15505_v12  ;;  %10818 = vmatpush3.bf16.msra.mxu0 %v12059_v57  ;;  %v12067_v57 = vld [vmem:[#allocation3 + $0x320] sm:$0xff]   ;;  %v15508_v12 = vpack.c.bf16 %v15506_v28, %v15507_v27 }
 0x32d   :  { %v14188_v46 = vpop.f32.mrb[220].mxu0  ;;  %10882 = vmatpush3.bf16.msra.mxu1 %v12060_v2  ;;  %10819 = vmatprep.subr.bf16.mxu0 %v12061_v49 }
 0x32e   :  { %v14190_v43 = vpop.f32.mrb[220].mxu1  ;;  %v1530_v10 = vpop.f32.mrb[221].mxu0  ;;  %10883 = vmatprep.subr.bf16.mxu1 %v12062_v16  ;;  %v12069_v16 = vld [vmem:[#allocation3 + $0x368] sm:$0xff]  }
 0x32f   :  { %v2235_v5 = vpop.f32.mrb[221].mxu1  ;;  %v14192_v39 = vpop.f32.mrb[222].mxu0  ;;  %v12070_v10 = vld [vmem:[#allocation3 + $0x3e8] sm:$0xff]  }
 0x330   :  { %v1654_v47 = vpack.c.bf16 %v14192_v39, %v14188_v46  ;;  %v14196_v59 = vpop.f32.mrb[222].mxu1  ;;  %v1533_v34 = vpop.f32.mrb[223].mxu0  ;;  %10820 = vmatpush3.bf16.msra.mxu0 %v12063_v58  ;;  %v15509_v5 = vpack.c.bf16 %v13880_v53, %v13876_v56  ;;  %v15510_v58 = vpack.c.bf16 %v13808_v6, %v13804_v31  ;;  %v12074_v53 = vld [vmem:[#allocation3 + $0x3f0] sm:$0xff]  }
 0x331   :  { %v2359_v2 = vpack.c.bf16 %v14196_v59, %v14190_v43  ;;  %v2238_v49 = vpop.f32.mrb[223].mxu1  ;;  %10884 = vmatpush3.bf16.msra.mxu1 %v12064_v26  ;;  %10821 = vmatprep.subr.bf16.mxu0 %v12065_v62  ;;  %v15511_v26 = vpack.c.bf16 %v14000_v48, %v13996_v61  ;;  %v12071_v62 = vld [vmem:[#allocation3 + $0x328] sm:$0xff]  }
 0x332   :  { %3836 = vmatmul.mubr.bf16.gmra.mrb[72].mxu0 %v15508_v12  ;;  %10885 = vmatprep.subr.bf16.mxu1 %v12066_v36  ;;  %v12072_v36 = vld [vmem:[#allocation3 + $0x3a8] sm:$0xff]   ;;  %v12073_v49 = vld [vmem:[#allocation3 + $0x370] sm:$0xff]  }
 0x333   :  { %3933 = vmatmul.mubr.bf16.gmra.mrb[72].mxu1 %v15509_v5  ;;  %3843 = vmatprep.mubr.bf16.mxu0 %v15510_v58  ;;  %v12076_v12 = vld [vmem:[#allocation3 + $0x3b0] sm:$0xff]   ;;  %v15512_v5 = vld [vmem:[#allocation104_spill] sm:$0xff]  ;;  %v15513_v58 = vld [vmem:[#allocation102_spill] sm:$0xff] }
 0x334   :  { %3940 = vmatprep.mubr.bf16.mxu1 %v15511_v26  ;;  %10822 = vmatpush3.bf16.msra.mxu0 %v12067_v57  ;;  %v12075_v57 = vld [vmem:[#allocation3 + $0x330] sm:$0xff]   ;;  %v15514_v26 = vpack.c.bf16 %v15512_v5, %v15513_v58 }
 0x335   :  { %v14212_v34 = vpop.f32.mrb[224].mxu0  ;;  %10886 = vmatpush3.bf16.msra.mxu1 %v12068_v35  ;;  %10823 = vmatprep.subr.bf16.mxu0 %v12069_v16 }
 0x336   :  { %v14214_v28 = vpop.f32.mrb[224].mxu1  ;;  %v1538_v56 = vpop.f32.mrb[225].mxu0  ;;  %10887 = vmatprep.subr.bf16.mxu1 %v12070_v10  ;;  %v12077_v10 = vld [vmem:[#allocation3 + $0x378] sm:$0xff]  }
 0x337   :  { %v2243_v27 = vpop.f32.mrb[225].mxu1  ;;  %v14216_v31 = vpop.f32.mrb[226].mxu0  ;;  %v12078_v56 = vld [vmem:[#allocation3 + $0x3f8] sm:$0xff]  }
 0x338   :  { %v1655_v6 = vpack.c.bf16 %v14216_v31, %v14212_v34  ;;  %v14220_v61 = vpop.f32.mrb[226].mxu1  ;;  %v1541_v48 = vpop.f32.mrb[227].mxu0  ;;  %10824 = vmatpush3.bf16.msra.mxu0 %v12071_v62  ;;  %v15515_v27 = vpack.c.bf16 %v13904_v60, %v13900_v0  ;;  %v15516_v62 = vpack.c.bf16 %v13746_v29, %v13737_v19  ;;  %v15548_v31 = vld [vmem:[#allocation21_spill] sm:$0xff] }
 0x339   :  { %v2360_v35 = vpack.c.bf16 %v14220_v61, %v14214_v28  ;;  %v2246_v16 = vpop.f32.mrb[227].mxu1  ;;  %10888 = vmatpush3.bf16.msra.mxu1 %v12072_v36  ;;  %10825 = vmatprep.subr.bf16.mxu0 %v12073_v49  ;;  %v15517_v36 = vpack.c.bf16 %v13932_v17, %v13926_v55  ;;  %v12079_v49 = vld [vmem:[#allocation3 + $0x338] sm:$0xff]  }
 0x33a   :  { %3844 = vmatmul.mubr.bf16.gmra.mrb[76].mxu0 %v15514_v26  ;;  %10889 = vmatprep.subr.bf16.mxu1 %v12074_v53  ;;  %v12080_v53 = vld [vmem:[#allocation3 + $0x3b8] sm:$0xff]   ;;  %v15521_v26 = vpack.c.bf16 %v13836_v37, %v13830_v23 }
 0x33b   :  { %3941 = vmatmul.mubr.bf16.gmra.mrb[76].mxu1 %v15515_v27  ;;  %3851 = vmatprep.mubr.bf16.mxu0 %v15516_v62  ;;  %v15523_v27 = vpack.c.bf16 %v13956_v11, %v13950_v1  ;;  %v15524_v1 = vld [vmem:[#allocation97_spill] sm:$0xff]  ;;  %v15525_v11 = vld [vmem:[#allocation95_spill] sm:$0xff] }
 0x33c   :  { %3948 = vmatprep.mubr.bf16.mxu1 %v15517_v36  ;;  %10826 = vmatpush3.bf16.msra.mxu0 %v12075_v57 }
 0x33d   :  { %v14236_v48 = vpop.f32.mrb[228].mxu0  ;;  %10890 = vmatpush3.bf16.msra.mxu1 %v12076_v12  ;;  %10827 = vmatprep.subr.bf16.mxu0 %v12077_v10  ;;  %v15518_v12 = vld [vmem:[#allocation93_spill] sm:$0xff]  ;;  %v15519_v10 = vld [vmem:[#allocation91_spill] sm:$0xff] }
 0x33e   :  { %v14238_v16 = vpop.f32.mrb[228].mxu1  ;;  %v1546_v5 = vpop.f32.mrb[229].mxu0  ;;  %10891 = vmatprep.subr.bf16.mxu1 %v12078_v56  ;;  %v15520_v58 = vpack.c.bf16 %v15518_v12, %v15519_v10  ;;  %v15522_v56 = vpack.c.bf16 %v13764_v25, %v13758_v32  ;;  %v15528_v12 = vpack.c.bf16 %v13788_v54, %v13782_v8  ;;  %v15529_v10 = vpack.c.bf16 %v13980_v33, %v13974_v4  ;;  %v15530_v4 = vld [vmem:[#allocation101_spill] sm:$0xff]  ;;  %v15531_v33 = vld [vmem:[#allocation99_spill] sm:$0xff] }
 0x33f   :  { %v2251_v0 = vpop.f32.mrb[229].mxu1  ;;  %v14240_v60 = vpop.f32.mrb[230].mxu0 }
 0x340   :  { %v1656_v19 = vpack.c.bf16 %v14240_v60, %v14236_v48  ;;  %v14244_v29 = vpop.f32.mrb[230].mxu1  ;;  %v1549_v55 = vpop.f32.mrb[231].mxu0  ;;  %10828 = vmatpush3.bf16.msra.mxu0 %v12079_v49  ;;  %v15551_v60 = vpack.c.bf16 %v14072_v42, %v14068_v40 }
 0x341   :  { %v2361_v17 = vpack.c.bf16 %v14244_v29, %v14238_v16  ;;  %v2254_v57 = vpop.f32.mrb[231].mxu1  ;;  %10892 = vmatpush3.bf16.msra.mxu1 %v12080_v53  ;;  %v15526_v55 = vpack.c.bf16 %v15524_v1, %v15525_v11  ;;  %v15534_v1 = vpack.c.bf16 %v13812_v44, %v13806_v9  ;;  %v15535_v11 = vld [vmem:[#allocation26_spill] sm:$0xff]  ;;  %v15537_v9 = vld [vmem:[#allocation105_spill] sm:$0xff]  ;;  %v15538_v44 = vld [vmem:[#allocation103_spill] sm:$0xff] }
 0x342   :  { %3852 = vmatmul.mubr.bf16.gmra.mrb[80].mxu0 %v15520_v58  ;;  %v15527_v57 = vpack.c.bf16 %v13860_v41, %v13854_v15 }
 0x343   :  { %3949 = vmatmul.mubr.bf16.gmra.mrb[80].mxu1 %v15521_v26  ;;  %3859 = vmatprep.mubr.bf16.mxu0 %v15522_v56 }
 0x344   :  { %3956 = vmatprep.mubr.bf16.mxu1 %v15523_v27 }
 0x345   :  { %v14260_v62 = vpop.f32.mrb[232].mxu0 }
 0x346   :  { %v14262_v36 = vpop.f32.mrb[232].mxu1  ;;  %v1554_v49 = vpop.f32.mrb[233].mxu0 }
 0x347   :  { %v2259_v53 = vpop.f32.mrb[233].mxu1  ;;  %v14264_v5 = vpop.f32.mrb[234].mxu0 }
 0x348   :  { %v1657_v23 = vpack.c.bf16 %v14264_v5, %v14260_v62  ;;  %v14268_v37 = vpop.f32.mrb[234].mxu1  ;;  %v1557_v0 = vpop.f32.mrb[235].mxu0 }
 0x349   :  { %v2362_v32 = vpack.c.bf16 %v14268_v37, %v14262_v36  ;;  %v2262_v25 = vpop.f32.mrb[235].mxu1  ;;  %v15532_v0 = vpack.c.bf16 %v15530_v4, %v15531_v33  ;;  %v15539_v33 = vpack.c.bf16 %v15537_v9, %v15538_v44 }
 0x34a   :  { %3860 = vmatmul.mubr.bf16.gmra.mrb[84].mxu0 %v15526_v55  ;;  %v15533_v25 = vpack.c.bf16 %v13884_v20, %v13878_v14  ;;  %v15536_v55 = vpack.c.bf16 %v14004_v30, %v15535_v11  ;;  %v15540_v30 = vld [vmem:[#allocation17_spill] sm:$0xff] }
 0x34b   :  { %3957 = vmatmul.mubr.bf16.gmra.mrb[84].mxu1 %v15527_v57  ;;  %3867 = vmatprep.mubr.bf16.mxu0 %v15528_v12 }
 0x34c   :  { %3964 = vmatprep.mubr.bf16.mxu1 %v15529_v10 }
 0x34d   :  { %v14284_v58 = vpop.f32.mrb[236].mxu0 }
 0x34e   :  { %v14286_v26 = vpop.f32.mrb[236].mxu1  ;;  %v1562_v56 = vpop.f32.mrb[237].mxu0 }
 0x34f   :  { %v2267_v27 = vpop.f32.mrb[237].mxu1  ;;  %v14288_v49 = vpop.f32.mrb[238].mxu0 }
 0x350   :  { %v1658_v15 = vpack.c.bf16 %v14288_v49, %v14284_v58  ;;  %v14292_v41 = vpop.f32.mrb[238].mxu1  ;;  %v1565_v53 = vpop.f32.mrb[239].mxu0 }
 0x351   :  { %v2363_v8 = vpack.c.bf16 %v14292_v41, %v14286_v26  ;;  %v2270_v54 = vpop.f32.mrb[239].mxu1 }
 0x352   :  { %3868 = vmatmul.mubr.bf16.gmra.mrb[88].mxu0 %v15532_v0  ;;  %v15541_v0 = vld [vmem:[#allocation18_spill] sm:$0xff] }
 0x353   :  { %3965 = vmatmul.mubr.bf16.gmra.mrb[88].mxu1 %v15533_v25  ;;  %3875 = vmatprep.mubr.bf16.mxu0 %v15534_v1  ;;  %v15542_v25 = vpack.c.bf16 %v15540_v30, %v15541_v0  ;;  %v15543_v1 = vpack.c.bf16 %v14120_v50, %v14116_v7  ;;  %v15545_v30 = vld [vmem:[#allocation25_spill] sm:$0xff]  ;;  %v15547_v7 = vpack.c.bf16 %v14144_v13, %v14140_v22 }
 0x354   :  { %3972 = vmatprep.mubr.bf16.mxu1 %v15536_v55  ;;  %v15550_v22 = vpack.c.bf16 %v14168_v18, %v14164_v45 }
 0x355   :  { %v1568_v57 = vpop.f32.mrb[240].mxu0 }
 0x356   :  { %v14308_v12 = vpop.f32.mrb[240].mxu1  ;;  %v1570_v10 = vpop.f32.mrb[241].mxu0 }
 0x357   :  { %v2275_v56 = vpop.f32.mrb[241].mxu1  ;;  %v1571_v27 = vpop.f32.mrb[242].mxu0 }
 0x358   :  { %v1659_v53 = vpack.c.bf16 %v1571_v27, %v1568_v57  ;;  %v14310_v54 = vpop.f32.mrb[242].mxu1  ;;  %v1573_v4 = vpop.f32.mrb[243].mxu0 }
 0x359   :  { %v2364_v14 = vpack.c.bf16 %v14310_v54, %v14308_v12  ;;  %v2278_v20 = vpop.f32.mrb[243].mxu1 }
 0x35a   :  { %3876 = vmatmul.mubr.bf16.gmra.mrb[92].mxu0 %v15539_v33  ;;  %v15544_v33 = vld [vmem:[#allocation13_spill] sm:$0xff] }
 0x35b   :  { %3973 = vmatmul.mubr.bf16.gmra.mrb[92].mxu1 %v15542_v25  ;;  %4013 = vmatprep.mubr.bf16.mxu0 %v15543_v1  ;;  %v15546_v0 = vpack.c.bf16 %v15544_v33, %v15545_v30 }
 0x35c   :  { %4110 = vmatprep.mubr.bf16.mxu1 %v1659_v53 }
 0x35d   :  { %v1576_v11 = vpop.f32.mrb[244].mxu0 }
 0x35e   :  { %v14323_v55 = vpop.f32.mrb[244].mxu1  ;;  %v1578_v57 = vpop.f32.mrb[245].mxu0 }
 0x35f   :  { %v2283_v10 = vpop.f32.mrb[245].mxu1  ;;  %v1579_v56 = vpop.f32.mrb[246].mxu0 }
 0x360   :  { %v1660_v27 = vpack.c.bf16 %v1579_v56, %v1576_v11  ;;  %v14325_v4 = vpop.f32.mrb[246].mxu1  ;;  %v1581_v20 = vpop.f32.mrb[247].mxu0 }
 0x361   :  { %v2365_v9 = vpack.c.bf16 %v14325_v4, %v14323_v55  ;;  %v2286_v44 = vpop.f32.mrb[247].mxu1 }
 0x362   :  { %4014 = vmatmul.mubr.bf16.vlgmr.msra.gmra.mrb[96].mxu0 %v15546_v0 }
 0x363   :  { %4111 = vmatmul.mubr.bf16.vlgmr.msra.gmra.mrb[96].mxu1 %v1655_v6  ;;  %4021 = vmatprep.mubr.bf16.mxu0 %v15547_v7  ;;  %v15549_v6 = vpack.c.bf16 %v14048_v24, %v15548_v31 }
 0x364   :  { %4118 = vmatprep.mubr.bf16.mxu1 %v1660_v27 }
 0x365   :  { %v1584_v50 = vpop.f32.mrb[248].mxu0 }
 0x366   :  { %v14338_v53 = vpop.f32.mrb[248].mxu1  ;;  %v1586_v25 = vpop.f32.mrb[249].mxu0 }
 0x367   :  { %v2291_v1 = vpop.f32.mrb[249].mxu1  ;;  %v1587_v11 = vpop.f32.mrb[250].mxu0 }
 0x368   :  { %v1661_v57 = vpack.c.bf16 %v1587_v11, %v1584_v50  ;;  %v14340_v10 = vpop.f32.mrb[250].mxu1  ;;  %v1589_v56 = vpop.f32.mrb[251].mxu0 }
 0x369   :  { %v2366_v20 = vpack.c.bf16 %v14340_v10, %v14338_v53  ;;  %v2294_v34 = vpop.f32.mrb[251].mxu1  ;;  %v15554_v56 = vld [vmem:[#allocation16_spill] sm:$0xff] }
 0x36a   :  { %4022 = vmatmul.mubr.bf16.gmra.mrb[100].mxu0 %v15549_v6 }
 0x36b   :  { %4119 = vmatmul.mubr.bf16.gmra.mrb[100].mxu1 %v1656_v19  ;;  %4029 = vmatprep.mubr.bf16.mxu0 %v15550_v22  ;;  %v14371_v19 = vld [vmem:[%s15552_s26] ss:$0 sm:$0xff]  ;;  %v15556_v22 = vpack.c.bf16 %v14124_v3, %v14118_v38 }
 0x36c   :  { %4126 = vmatprep.mubr.bf16.mxu1 %v1661_v57 }
 0x36d   :  { %v1592_v13 = vpop.f32.mrb[252].mxu0 }
 0x36e   :  { %v14353_v27 = vpop.f32.mrb[252].mxu1  ;;  %v1594_v44 = vpop.f32.mrb[253].mxu0 }
 0x36f   :  { %v2299_v33 = vpop.f32.mrb[253].mxu1  ;;  %v1595_v30 = vpop.f32.mrb[254].mxu0 }
 0x370   :  { %v1662_v0 = vpack.c.bf16 %v1595_v30, %v1592_v13  ;;  %v14355_v7 = vpop.f32.mrb[254].mxu1  ;;  %v1597_v24 = vpop.f32.mrb[255].mxu0 }
 0x371   :  { %v2367_v50 = vpack.c.bf16 %v14355_v7, %v14353_v27  ;;  %v2302_v48 = vpop.f32.mrb[255].mxu1 }
 0x372   :  { %4030 = vmatmul.mubr.bf16.gmra.mrb[104].mxu0 %v15551_v60 }
 0x373   :  { %4127 = vmatmul.mubr.bf16.gmra.mrb[104].mxu1 %v1657_v23  ;;  %4037 = vmatprep.mubr.bf16.mxu0 %v1654_v47  ;;  %v15553_v47 = vld [vmem:[#allocation24_spill] sm:$0xff] }
 0x374   :  { %4134 = vmatprep.mubr.bf16.mxu1 %v1662_v0  ;;  %v15555_v34 = vpack.c.bf16 %v15553_v47, %v15554_v56 }
 0x375   :  { %v10445_v45 = vpop.f32.mrb[0].mxu0 }
 0x376   :  { %v10509_v18 = vpop.f32.mrb[0].mxu1  ;;  %v10446_v25 = vpop.f32.mrb[1].mxu0 }
 0x377   :  { %v10447_v1 = vadd.f32 %v10446_v25, %v10445_v45  ;;  %v10510_v40 = vpop.f32.mrb[1].mxu1  ;;  %v10448_v42 = vpop.f32.mrb[2].mxu0  ;;  %v15558_v25 = vld [vmem:[#allocation14_spill] sm:$0xff] }
 0x378   :  { %v10511_v11 = vadd.f32 %v10510_v40, %v10509_v18  ;;  %v10512_v57 = vpop.f32.mrb[2].mxu1  ;;  %v10449_v62 = vpop.f32.mrb[3].mxu0  ;;  %v15557_v18 = vld [vmem:[#allocation22_spill] sm:$0xff] }
 0x379   :  { %v3434_v5 = vadd.f32 %v10447_v1, %v14371_v19  ;;  %v10450_v23 = vadd.f32 %v10449_v62, %v10448_v42  ;;  %v10513_v46 = vpop.f32.mrb[3].mxu1  ;;  %v15559_v12 = vpack.c.bf16 %v15557_v18, %v15558_v25  ;;  %v15560_v1 = vld [vmem:[#allocation75_spill] sm:$0xff] }
 0x37a   :  { %v10514_v39 = vadd.f32 %v10513_v46, %v10512_v57  ;;  %4038 = vmatmul.mubr.bf16.gmra.mrb[108].mxu0 %v15555_v34  ;;  %v15561_v40 = vpack.c.bf16 %v14148_v63, %v15560_v1  ;;  %v15562_v34 = vld [vmem:[#allocation19_spill] sm:$0xff] }
 0x37b   :  { %v14377_v31 = vadd.f32 %v10511_v11, %v3434_v5  ;;  %v3437_v6 = vadd.f32 %v10450_v23, %v14371_v19  ;;  %4135 = vmatmul.mubr.bf16.gmra.mrb[108].mxu1 %v1658_v15  ;;  %4045 = vmatprep.mubr.bf16.mxu0 %v15556_v22 }
 0x37c   :  { %4142 = vmatprep.mubr.bf16.mxu1 %v2364_v14 }
 0x37d   :  { %v14389_v13 = vadd.f32 %v10514_v39, %v3437_v6  ;;  %v10451_v44 = vpop.f32.mrb[4].mxu0  ;;  %v15563_v6 = vld [vmem:[#allocation20_spill] sm:$0xff] }
 0x37e   :  { %v10515_v33 = vpop.f32.mrb[4].mxu1  ;;  %v10452_v30 = vpop.f32.mrb[5].mxu0  ;;  %v15564_v55 = vpack.c.bf16 %v15562_v34, %v15563_v6 }
 0x37f   :  { %v10453_v0 = vadd.f32 %v10452_v30, %v10451_v44  ;;  %v10516_v24 = vpop.f32.mrb[5].mxu1  ;;  %v10454_v48 = vpop.f32.mrb[6].mxu0 }
 0x380   :  { %v10517_v60 = vadd.f32 %v10516_v24, %v10515_v33  ;;  %v10518_v45 = vpop.f32.mrb[6].mxu1  ;;  %v10455_v58 = vpop.f32.mrb[7].mxu0 }
 0x381   :  { %v3442_v49 = vadd.f32 %v10453_v0, %v14371_v19  ;;  %v10456_v15 = vadd.f32 %v10455_v58, %v10454_v48  ;;  %v10519_v38 = vpop.f32.mrb[7].mxu1  ;;  %v15566_v58 = vld [vmem:[#allocation28_spill] sm:$0xff] }
 0x382   :  { %v10520_v3 = vadd.f32 %v10519_v38, %v10518_v45  ;;  %4046 = vmatmul.mubr.bf16.gmra.mrb[112].mxu0 %v15559_v12 }
 0x383   :  { %v14395_v54 = vadd.f32 %v10517_v60, %v3442_v49  ;;  %v3445_v14 = vadd.f32 %v10456_v15, %v14371_v19  ;;  %4143 = vmatmul.mubr.bf16.gmra.mrb[112].mxu1 %v2360_v35  ;;  %4053 = vmatprep.mubr.bf16.mxu0 %v15561_v40  ;;  %v15569_v40 = vld [vmem:[#allocation15_spill] sm:$0xff] }
 0x384   :  { %4150 = vmatprep.mubr.bf16.mxu1 %v2365_v9 }
 0x385   :  { %v14407_v42 = vadd.f32 %v10520_v3, %v3445_v14  ;;  %v10457_v11 = vpop.f32.mrb[8].mxu0 }
 0x386   :  { %v10521_v57 = vpop.f32.mrb[8].mxu1  ;;  %v10458_v62 = vpop.f32.mrb[9].mxu0 }
 0x387   :  { %v10459_v5 = vadd.f32 %v10458_v62, %v10457_v11  ;;  %v10522_v23 = vpop.f32.mrb[9].mxu1  ;;  %v10460_v46 = vpop.f32.mrb[10].mxu0 }
 0x388   :  { %v10523_v39 = vadd.f32 %v10522_v23, %v10521_v57  ;;  %v10524_v47 = vpop.f32.mrb[10].mxu1  ;;  %v10461_v28 = vpop.f32.mrb[11].mxu0 }
 0x389   :  { %v3450_v61 = vadd.f32 %v10459_v5, %v14371_v19  ;;  %v10462_v35 = vadd.f32 %v10461_v28, %v10460_v46  ;;  %v10525_v63 = vpop.f32.mrb[11].mxu1 }
 0x38a   :  { %v10526_v56 = vadd.f32 %v10525_v63, %v10524_v47  ;;  %4054 = vmatmul.mubr.bf16.gmra.mrb[116].mxu0 %v15564_v55 }
 0x38b   :  { %v14413_v4 = vadd.f32 %v10523_v39, %v3450_v61  ;;  %v3453_v9 = vadd.f32 %v10462_v35, %v14371_v19  ;;  %4151 = vmatmul.mubr.bf16.gmra.mrb[116].mxu1 %v2361_v17  ;;  %4061 = vmatprep.mubr.bf16.mxu0 %v2358_v52  ;;  %v15565_v52 = vld [vmem:[#allocation27_spill] sm:$0xff] }
 0x38c   :  { %4158 = vmatprep.mubr.bf16.mxu1 %v2366_v20  ;;  %v15567_v53 = vpack.c.bf16 %v15565_v52, %v15566_v58 }
 0x38d   :  { %v14425_v22 = vadd.f32 %v10526_v56, %v3453_v9  ;;  %v10463_v44 = vpop.f32.mrb[12].mxu0 }
 0x38e   :  { %v10527_v33 = vpop.f32.mrb[12].mxu1  ;;  %v10464_v30 = vpop.f32.mrb[13].mxu0 }
 0x38f   :  { %v10465_v0 = vadd.f32 %v10464_v30, %v10463_v44  ;;  %v10528_v24 = vpop.f32.mrb[13].mxu1  ;;  %v10466_v48 = vpop.f32.mrb[14].mxu0 }
 0x390   :  { %v10529_v60 = vadd.f32 %v10528_v24, %v10527_v33  ;;  %v10530_v45 = vpop.f32.mrb[14].mxu1  ;;  %v10467_v16 = vpop.f32.mrb[15].mxu0 }
 0x391   :  { %v3458_v29 = vadd.f32 %v10465_v0, %v14371_v19  ;;  %v10468_v17 = vadd.f32 %v10467_v16, %v10466_v48  ;;  %v10531_v51 = vpop.f32.mrb[15].mxu1 }
 0x392   :  { %v10532_v21 = vadd.f32 %v10531_v51, %v10530_v45  ;;  %4062 = vmatmul.mubr.bf16.gmra.mrb[120].mxu0 %v15567_v53 }
 0x393   :  { %v14431_v10 = vadd.f32 %v10529_v60, %v3458_v29  ;;  %v3461_v20 = vadd.f32 %v10468_v17, %v14371_v19  ;;  %4159 = vmatmul.mubr.bf16.gmra.mrb[120].mxu1 %v2362_v32  ;;  %4069 = vmatprep.mubr.bf16.mxu0 %v2359_v2  ;;  %v15568_v2 = vld [vmem:[#allocation23_spill] sm:$0xff] }
 0x394   :  { %4166 = vmatprep.mubr.bf16.mxu1 %v2367_v50  ;;  %v15570_v27 = vpack.c.bf16 %v15568_v2, %v15569_v40 }
 0x395   :  { %v14443_v49 = vadd.f32 %v10532_v21, %v3461_v20  ;;  %v10469_v15 = vpop.f32.mrb[16].mxu0 }
 0x396   :  { %v10533_v38 = vpop.f32.mrb[16].mxu1  ;;  %v10470_v3 = vpop.f32.mrb[17].mxu0 }
 0x397   :  { %v10471_v18 = vadd.f32 %v10470_v3, %v10469_v15  ;;  %v10534_v25 = vpop.f32.mrb[17].mxu1  ;;  %v10472_v12 = vpop.f32.mrb[18].mxu0 }
 0x398   :  { %v10535_v14 = vadd.f32 %v10534_v25, %v10533_v38  ;;  %v10536_v1 = vpop.f32.mrb[18].mxu1  ;;  %v10473_v36 = vpop.f32.mrb[19].mxu0 }
 0x399   :  { %v3466_v37 = vadd.f32 %v10471_v18, %v14371_v19  ;;  %v10474_v32 = vadd.f32 %v10473_v36, %v10472_v12  ;;  %v10537_v43 = vpop.f32.mrb[19].mxu1 }
 0x39a   :  { %v10538_v59 = vadd.f32 %v10537_v43, %v10536_v1  ;;  %4070 = vmatmul.mubr.bf16.gmra.mrb[124].mxu0 %v15570_v27 }
 0x39b   :  { %v14449_v7 = vadd.f32 %v10535_v14, %v3466_v37  ;;  %v3469_v50 = vadd.f32 %v10474_v32, %v14371_v19  ;;  %4167 = vmatmul.mubr.bf16.gmra.mrb[124].mxu1 %v2363_v8 }
 0x39d   :  { %v14455_v11 = vadd.f32 %v10538_v59, %v3469_v50  ;;  %v10475_v57 = vpop.f32.mrb[20].mxu0 }
 0x39e   :  { %v10539_v62 = vpop.f32.mrb[20].mxu1  ;;  %v10476_v5 = vpop.f32.mrb[21].mxu0 }
 0x39f   :  { %v10477_v23 = vadd.f32 %v10476_v5, %v10475_v57  ;;  %v10540_v46 = vpop.f32.mrb[21].mxu1  ;;  %v10478_v39 = vpop.f32.mrb[22].mxu0 }
 0x3a0   :  { %v10541_v47 = vadd.f32 %v10540_v46, %v10539_v62  ;;  %v10542_v28 = vpop.f32.mrb[22].mxu1  ;;  %v10479_v61 = vpop.f32.mrb[23].mxu0 }
 0x3a1   :  { %v3474_v35 = vadd.f32 %v10477_v23, %v14371_v19  ;;  %v10480_v63 = vadd.f32 %v10479_v61, %v10478_v39  ;;  %v10543_v56 = vpop.f32.mrb[23].mxu1 }
 0x3a2   :  { %v10544_v34 = vadd.f32 %v10543_v56, %v10542_v28 }
 0x3a3   :  { %v14458_v6 = vadd.f32 %v10541_v47, %v3474_v35  ;;  %v3477_v26 = vadd.f32 %v10480_v63, %v14371_v19 }
 0x3a5   :  { %v14461_v41 = vadd.f32 %v10544_v34, %v3477_v26  ;;  %v10481_v8 = vpop.f32.mrb[24].mxu0 }
 0x3a6   :  { %v10545_v55 = vpop.f32.mrb[24].mxu1  ;;  %v10482_v9 = vpop.f32.mrb[25].mxu0 }
 0x3a7   :  { %v10483_v44 = vadd.f32 %v10482_v9, %v10481_v8  ;;  %v10546_v33 = vpop.f32.mrb[25].mxu1  ;;  %v10484_v30 = vpop.f32.mrb[26].mxu0 }
 0x3a8   :  { %v10547_v0 = vadd.f32 %v10546_v33, %v10545_v55  ;;  %v10548_v24 = vpop.f32.mrb[26].mxu1  ;;  %v10485_v48 = vpop.f32.mrb[27].mxu0 }
 0x3a9   :  { %v3482_v60 = vadd.f32 %v10483_v44, %v14371_v19  ;;  %v10486_v45 = vadd.f32 %v10485_v48, %v10484_v30  ;;  %v10549_v16 = vpop.f32.mrb[27].mxu1 }
 0x3aa   :  { %v10550_v29 = vadd.f32 %v10549_v16, %v10548_v24 }
 0x3ab   :  { %v14464_v17 = vadd.f32 %v10547_v0, %v3482_v60  ;;  %v3485_v51 = vadd.f32 %v10486_v45, %v14371_v19 }
 0x3ad   :  { %v14467_v21 = vadd.f32 %v10550_v29, %v3485_v51  ;;  %v10487_v52 = vpop.f32.mrb[28].mxu0 }
 0x3ae   :  { %v10551_v58 = vpop.f32.mrb[28].mxu1  ;;  %v10488_v53 = vpop.f32.mrb[29].mxu0 }
 0x3af   :  { %v10489_v20 = vadd.f32 %v10488_v53, %v10487_v52  ;;  %v10552_v15 = vpop.f32.mrb[29].mxu1  ;;  %v10490_v38 = vpop.f32.mrb[30].mxu0 }
 0x3b0   :  { %v10553_v3 = vadd.f32 %v10552_v15, %v10551_v58  ;;  %v10554_v18 = vpop.f32.mrb[30].mxu1  ;;  %v10491_v25 = vpop.f32.mrb[31].mxu0 }
 0x3b1   :  { %v3490_v12 = vadd.f32 %v10489_v20, %v14371_v19  ;;  %v10492_v14 = vadd.f32 %v10491_v25, %v10490_v38  ;;  %v10555_v1 = vpop.f32.mrb[31].mxu1 }
 0x3b2   :  { %v10556_v36 = vadd.f32 %v10555_v1, %v10554_v18 }
 0x3b3   :  { %v14470_v37 = vadd.f32 %v10553_v3, %v3490_v12  ;;  %v3493_v32 = vadd.f32 %v10492_v14, %v14371_v19 }
 0x3b5   :  { %v14473_v43 = vadd.f32 %v10556_v36, %v3493_v32  ;;  %v10573_v59 = vpop.f32.mrb[32].mxu0 }
 0x3b6   :  { %v10637_v2 = vpop.f32.mrb[32].mxu1  ;;  %v10574_v40 = vpop.f32.mrb[33].mxu0 }
 0x3b7   :  { %v10575_v27 = vadd.f32 %v10574_v40, %v10573_v59  ;;  %v10638_v50 = vpop.f32.mrb[33].mxu1  ;;  %v10576_v57 = vpop.f32.mrb[34].mxu0 }
 0x3b8   :  { %v10639_v62 = vadd.f32 %v10638_v50, %v10637_v2  ;;  %v10640_v5 = vpop.f32.mrb[34].mxu1  ;;  %v10577_v23 = vpop.f32.mrb[35].mxu0 }
 0x3b9   :  { %v3628_v46 = vadd.f32 %v10575_v27, %v14377_v31  ;;  %v10578_v39 = vadd.f32 %v10577_v23, %v10576_v57  ;;  %v10641_v47 = vpop.f32.mrb[35].mxu1 }
 0x3ba   :  { %v10642_v28 = vadd.f32 %v10641_v47, %v10640_v5 }
 0x3bb   :  { %v14476_v61 = vadd.f32 %v10639_v62, %v3628_v46  ;;  %v3631_v19 = vadd.f32 %v10578_v39, %v14389_v13 }
 0x3bd   :  { %v14479_v35 = vadd.f32 %v10642_v28, %v3631_v19  ;;  %v10579_v63 = vpop.f32.mrb[36].mxu0 }
 0x3be   :  { %v10643_v56 = vpop.f32.mrb[36].mxu1  ;;  %v10580_v34 = vpop.f32.mrb[37].mxu0 }
 0x3bf   :  { %v10581_v26 = vadd.f32 %v10580_v34, %v10579_v63  ;;  %v10644_v8 = vpop.f32.mrb[37].mxu1  ;;  %v10582_v55 = vpop.f32.mrb[38].mxu0 }
 0x3c0   :  { %v10645_v9 = vadd.f32 %v10644_v8, %v10643_v56  ;;  %v10646_v44 = vpop.f32.mrb[38].mxu1  ;;  %v10583_v33 = vpop.f32.mrb[39].mxu0 }
 0x3c1   :  { %v3636_v31 = vadd.f32 %v10581_v26, %v14395_v54  ;;  %v10584_v30 = vadd.f32 %v10583_v33, %v10582_v55  ;;  %v10647_v0 = vpop.f32.mrb[39].mxu1 }
 0x3c2   :  { %v10648_v24 = vadd.f32 %v10647_v0, %v10646_v44 }
 0x3c3   :  { %v14482_v48 = vadd.f32 %v10645_v9, %v3636_v31  ;;  %v3639_v13 = vadd.f32 %v10584_v30, %v14407_v42 }
 0x3c5   :  { %v14485_v60 = vadd.f32 %v10648_v24, %v3639_v13  ;;  %v10585_v45 = vpop.f32.mrb[40].mxu0  ;;  %v14508_v13 = vld [vmem:[%s15571_s1] sm:$0xff]  }
 0x3c6   :  { %v10649_v16 = vpop.f32.mrb[40].mxu1  ;;  %v10586_v29 = vpop.f32.mrb[41].mxu0  ;;  %11588 = vmatprep.mubr.msk.bf16.mxu0 %vm4343_vm0, %v14508_v13 }
 0x3c7   :  { %v10587_v51 = vadd.f32 %v10586_v29, %v10585_v45  ;;  %v10650_v52 = vpop.f32.mrb[41].mxu1  ;;  %v10588_v58 = vpop.f32.mrb[42].mxu0 }
 0x3c8   :  { %v10651_v53 = vadd.f32 %v10650_v52, %v10649_v16  ;;  %v10652_v20 = vpop.f32.mrb[42].mxu1  ;;  %v10589_v15 = vpop.f32.mrb[43].mxu0 }
 0x3c9   :  { %v3644_v54 = vadd.f32 %v10587_v51, %v14413_v4  ;;  %v10590_v38 = vadd.f32 %v10589_v15, %v10588_v58  ;;  %v10653_v3 = vpop.f32.mrb[43].mxu1 }
 0x3ca   :  { %v10654_v18 = vadd.f32 %v10653_v3, %v10652_v20 }
 0x3cb   :  { %v14488_v25 = vadd.f32 %v10651_v53, %v3644_v54  ;;  %v3647_v42 = vadd.f32 %v10590_v38, %v14425_v22  ;;  %v14519_v38 = vld [vmem:[%s15571_s1 + $0x60] sm:$0xff]  }
 0x3cc   :  { %11612 = vmatprep.mubr.msk.bf16.mxu1 %vm4343_vm0, %v14519_v38 }
 0x3cd   :  { %v14491_v12 = vadd.f32 %v10654_v18, %v3647_v42  ;;  %v10591_v14 = vpop.f32.mrb[44].mxu0 }
 0x3ce   :  { %v10655_v1 = vpop.f32.mrb[44].mxu1  ;;  %v10592_v36 = vpop.f32.mrb[45].mxu0 }
 0x3cf   :  { %v10593_v32 = vadd.f32 %v10592_v36, %v10591_v14  ;;  %v10656_v59 = vpop.f32.mrb[45].mxu1  ;;  %v10594_v2 = vpop.f32.mrb[46].mxu0 }
 0x3d0   :  { %v10657_v40 = vadd.f32 %v10656_v59, %v10655_v1  ;;  %v10658_v27 = vpop.f32.mrb[46].mxu1  ;;  %v10595_v50 = vpop.f32.mrb[47].mxu0 }
 0x3d1   :  { %v3652_v4 = vadd.f32 %v10593_v32, %v14431_v10  ;;  %v10596_v57 = vadd.f32 %v10595_v50, %v10594_v2  ;;  %v10659_v62 = vpop.f32.mrb[47].mxu1 }
 0x3d2   :  { %v10660_v5 = vadd.f32 %v10659_v62, %v10658_v27 }
 0x3d3   :  { %v14494_v23 = vadd.f32 %v10657_v40, %v3652_v4  ;;  %v3655_v22 = vadd.f32 %v10596_v57, %v14443_v49 }
 0x3d5   :  { %v14497_v46 = vadd.f32 %v10660_v5, %v3655_v22  ;;  %v10597_v39 = vpop.f32.mrb[48].mxu0 }
 0x3d6   :  { %v10661_v47 = vpop.f32.mrb[48].mxu1  ;;  %v10598_v28 = vpop.f32.mrb[49].mxu0 }
 0x3d7   :  { %v10599_v19 = vadd.f32 %v10598_v28, %v10597_v39  ;;  %v10662_v63 = vpop.f32.mrb[49].mxu1  ;;  %v10600_v56 = vpop.f32.mrb[50].mxu0 }
 0x3d8   :  { %v10663_v34 = vadd.f32 %v10662_v63, %v10661_v47  ;;  %v10664_v26 = vpop.f32.mrb[50].mxu1  ;;  %v10601_v8 = vpop.f32.mrb[51].mxu0 }
 0x3d9   :  { %v3660_v10 = vadd.f32 %v10599_v19, %v14449_v7  ;;  %v10602_v55 = vadd.f32 %v10601_v8, %v10600_v56  ;;  %v10665_v9 = vpop.f32.mrb[51].mxu1 }
 0x3da   :  { %v10666_v44 = vadd.f32 %v10665_v9, %v10664_v26 }
 0x3db   :  { %v14500_v33 = vadd.f32 %v10663_v34, %v3660_v10  ;;  %v3663_v49 = vadd.f32 %v10602_v55, %v14455_v11 }
 0x3dd   :  { %v14503_v31 = vadd.f32 %v10666_v44, %v3663_v49  ;;  %v10603_v30 = vpop.f32.mrb[52].mxu0 }
 0x3de   :  { %v10667_v0 = vpop.f32.mrb[52].mxu1  ;;  %v10604_v24 = vpop.f32.mrb[53].mxu0 }
 0x3df   :  { %v10605_v45 = vadd.f32 %v10604_v24, %v10603_v30  ;;  %v10668_v16 = vpop.f32.mrb[53].mxu1  ;;  %v10606_v7 = vpop.f32.mrb[54].mxu0 }
 0x3e0   :  { %v10669_v29 = vadd.f32 %v10668_v16, %v10667_v0  ;;  %v10670_v51 = vpop.f32.mrb[54].mxu1  ;;  %v10607_v52 = vpop.f32.mrb[55].mxu0 }
 0x3e1   :  { %v3668_v11 = vadd.f32 %v10605_v45, %v14458_v6  ;;  %v10608_v58 = vadd.f32 %v10607_v52, %v10606_v7  ;;  %v10671_v53 = vpop.f32.mrb[55].mxu1 }
 0x3e2   :  { %v10672_v20 = vadd.f32 %v10671_v53, %v10670_v51 }
 0x3e3   :  { %v14513_v15 = vadd.f32 %v10669_v29, %v3668_v11  ;;  %v3671_v54 = vadd.f32 %v10608_v58, %v14461_v41 }
 0x3e5   :  { %v14521_v3 = vadd.f32 %v10672_v20, %v3671_v54  ;;  %v10609_v18 = vpop.f32.mrb[56].mxu0 }
 0x3e6   :  { %v10673_v42 = vpop.f32.mrb[56].mxu1  ;;  %v10610_v6 = vpop.f32.mrb[57].mxu0 }
 0x3e7   :  { %v10611_v14 = vadd.f32 %v10610_v6, %v10609_v18  ;;  %v10674_v1 = vpop.f32.mrb[57].mxu1  ;;  %v10612_v36 = vpop.f32.mrb[58].mxu0 }
 0x3e8   :  { %v10675_v32 = vadd.f32 %v10674_v1, %v10673_v42  ;;  %v10676_v59 = vpop.f32.mrb[58].mxu1  ;;  %v10613_v2 = vpop.f32.mrb[59].mxu0 }
 0x3e9   :  { %v3676_v41 = vadd.f32 %v10611_v14, %v14464_v17  ;;  %v10614_v40 = vadd.f32 %v10613_v2, %v10612_v36  ;;  %v10677_v27 = vpop.f32.mrb[59].mxu1 }
 0x3ea   :  { %v10678_v50 = vadd.f32 %v10677_v27, %v10676_v59 }
 0x3eb   :  { %v14526_v4 = vadd.f32 %v10675_v32, %v3676_v41  ;;  %v3679_v57 = vadd.f32 %v10614_v40, %v14467_v21 }
 0x3ed   :  { %v14529_v62 = vadd.f32 %v10678_v50, %v3679_v57  ;;  %v10615_v5 = vpop.f32.mrb[60].mxu0 }
 0x3ee   :  { %v10679_v22 = vpop.f32.mrb[60].mxu1  ;;  %v10616_v39 = vpop.f32.mrb[61].mxu0 }
 0x3ef   :  { %v10617_v47 = vadd.f32 %v10616_v39, %v10615_v5  ;;  %v10680_v28 = vpop.f32.mrb[61].mxu1  ;;  %v10618_v19 = vpop.f32.mrb[62].mxu0 }
 0x3f0   :  { %v10681_v63 = vadd.f32 %v10680_v28, %v10679_v22  ;;  %v10682_v56 = vpop.f32.mrb[62].mxu1  ;;  %v10619_v34 = vpop.f32.mrb[63].mxu0 }
 0x3f1   :  { %v3684_v17 = vadd.f32 %v10617_v47, %v14470_v37  ;;  %v10620_v26 = vadd.f32 %v10619_v34, %v10618_v19  ;;  %v10683_v8 = vpop.f32.mrb[63].mxu1 }
 0x3f2   :  { %v10684_v10 = vadd.f32 %v10683_v8, %v10682_v56 }
 0x3f3   :  { %v14532_v55 = vadd.f32 %v10681_v63, %v3684_v17  ;;  %v3687_v21 = vadd.f32 %v10620_v26, %v14473_v43 }
 0x3f5   :  { %v14535_v9 = vadd.f32 %v10684_v10, %v3687_v21  ;;  %v10701_v44 = vpop.f32.mrb[64].mxu0 }
 0x3f6   :  { %v10765_v49 = vpop.f32.mrb[64].mxu1  ;;  %v10702_v30 = vpop.f32.mrb[65].mxu0 }
 0x3f7   :  { %v10703_v0 = vadd.f32 %v10702_v30, %v10701_v44  ;;  %v10766_v24 = vpop.f32.mrb[65].mxu1  ;;  %v10704_v45 = vpop.f32.mrb[66].mxu0 }
 0x3f8   :  { %v10767_v16 = vadd.f32 %v10766_v24, %v10765_v49  ;;  %v10768_v7 = vpop.f32.mrb[66].mxu1  ;;  %v10705_v29 = vpop.f32.mrb[67].mxu0 }
 0x3f9   :  { %v3822_v37 = vadd.f32 %v10703_v0, %v14476_v61  ;;  %v10706_v51 = vadd.f32 %v10705_v29, %v10704_v45  ;;  %v10769_v52 = vpop.f32.mrb[67].mxu1 }
 0x3fa   :  { %v10770_v11 = vadd.f32 %v10769_v52, %v10768_v7 }
 0x3fb   :  { %v14538_v58 = vadd.f32 %v10767_v16, %v3822_v37  ;;  %v3825_v43 = vadd.f32 %v10706_v51, %v14479_v35 }
 0x3fd   :  { %v14541_v53 = vadd.f32 %v10770_v11, %v3825_v43  ;;  %v10707_v20 = vpop.f32.mrb[68].mxu0 }
 0x3fe   :  { %v10771_v54 = vpop.f32.mrb[68].mxu1  ;;  %v10708_v18 = vpop.f32.mrb[69].mxu0 }
 0x3ff   :  { %v10709_v42 = vadd.f32 %v10708_v18, %v10707_v20  ;;  %v10772_v6 = vpop.f32.mrb[69].mxu1  ;;  %v10710_v14 = vpop.f32.mrb[70].mxu0 }
 0x400   :  { %v10773_v1 = vadd.f32 %v10772_v6, %v10771_v54  ;;  %v10774_v36 = vpop.f32.mrb[70].mxu1  ;;  %v10711_v32 = vpop.f32.mrb[71].mxu0 }
 0x401   :  { %v3830_v61 = vadd.f32 %v10709_v42, %v14482_v48  ;;  %v10712_v59 = vadd.f32 %v10711_v32, %v10710_v14  ;;  %v10775_v2 = vpop.f32.mrb[71].mxu1 }
 0x402   :  { %v10776_v41 = vadd.f32 %v10775_v2, %v10774_v36 }
 0x403   :  { %v14544_v40 = vadd.f32 %v10773_v1, %v3830_v61  ;;  %v3833_v35 = vadd.f32 %v10712_v59, %v14485_v60 }
 0x405   :  { %v14547_v27 = vadd.f32 %v10776_v41, %v3833_v35  ;;  %v10713_v50 = vpop.f32.mrb[72].mxu0 }
 0x406   :  { %v10777_v57 = vpop.f32.mrb[72].mxu1  ;;  %v10714_v5 = vpop.f32.mrb[73].mxu0 }
 0x407   :  { %v10715_v22 = vadd.f32 %v10714_v5, %v10713_v50  ;;  %v10778_v39 = vpop.f32.mrb[73].mxu1  ;;  %v10716_v47 = vpop.f32.mrb[74].mxu0 }
 0x408   :  { %v10779_v28 = vadd.f32 %v10778_v39, %v10777_v57  ;;  %v10780_v19 = vpop.f32.mrb[74].mxu1  ;;  %v10717_v63 = vpop.f32.mrb[75].mxu0 }
 0x409   :  { %v3838_v48 = vadd.f32 %v10715_v22, %v14488_v25  ;;  %v10718_v56 = vadd.f32 %v10717_v63, %v10716_v47  ;;  %v10781_v34 = vpop.f32.mrb[75].mxu1 }
 0x40a   :  { %v10782_v17 = vadd.f32 %v10781_v34, %v10780_v19 }
 0x40b   :  { %v14550_v26 = vadd.f32 %v10779_v28, %v3838_v48  ;;  %v3841_v60 = vadd.f32 %v10718_v56, %v14491_v12 }
 0x40d   :  { %v14553_v8 = vadd.f32 %v10782_v17, %v3841_v60  ;;  %v10719_v10 = vpop.f32.mrb[76].mxu0 }
 0x40e   :  { %v10783_v21 = vpop.f32.mrb[76].mxu1  ;;  %v10720_v44 = vpop.f32.mrb[77].mxu0 }
 0x40f   :  { %v10721_v49 = vadd.f32 %v10720_v44, %v10719_v10  ;;  %v10784_v30 = vpop.f32.mrb[77].mxu1  ;;  %v10722_v0 = vpop.f32.mrb[78].mxu0 }
 0x410   :  { %v10785_v24 = vadd.f32 %v10784_v30, %v10783_v21  ;;  %v10786_v45 = vpop.f32.mrb[78].mxu1  ;;  %v10723_v16 = vpop.f32.mrb[79].mxu0 }
 0x411   :  { %v3846_v25 = vadd.f32 %v10721_v49, %v14494_v23  ;;  %v10724_v7 = vadd.f32 %v10723_v16, %v10722_v0  ;;  %v10787_v29 = vpop.f32.mrb[79].mxu1 }
 0x412   :  { %v10788_v37 = vadd.f32 %v10787_v29, %v10786_v45 }
 0x413   :  { %v14556_v51 = vadd.f32 %v10785_v24, %v3846_v25  ;;  %v3849_v12 = vadd.f32 %v10724_v7, %v14497_v46 }
 0x415   :  { %v14559_v52 = vadd.f32 %v10788_v37, %v3849_v12  ;;  %v10725_v11 = vpop.f32.mrb[80].mxu0 }
 0x416   :  { %v10789_v43 = vpop.f32.mrb[80].mxu1  ;;  %v10726_v20 = vpop.f32.mrb[81].mxu0 }
 0x417   :  { %v10727_v54 = vadd.f32 %v10726_v20, %v10725_v11  ;;  %v10790_v18 = vpop.f32.mrb[81].mxu1  ;;  %v10728_v42 = vpop.f32.mrb[82].mxu0 }
 0x418   :  { %v10791_v6 = vadd.f32 %v10790_v18, %v10789_v43  ;;  %v10792_v14 = vpop.f32.mrb[82].mxu1  ;;  %v10729_v1 = vpop.f32.mrb[83].mxu0 }
 0x419   :  { %v3854_v23 = vadd.f32 %v10727_v54, %v14500_v33  ;;  %v10730_v36 = vadd.f32 %v10729_v1, %v10728_v42  ;;  %v10793_v32 = vpop.f32.mrb[83].mxu1 }
 0x41a   :  { %v10794_v61 = vadd.f32 %v10793_v32, %v10792_v14 }
 0x41b   :  { %v14562_v59 = vadd.f32 %v10791_v6, %v3854_v23  ;;  %v3857_v46 = vadd.f32 %v10730_v36, %v14503_v31 }
 0x41d   :  { %v14565_v2 = vadd.f32 %v10794_v61, %v3857_v46  ;;  %v10731_v41 = vpop.f32.mrb[84].mxu0 }
 0x41e   :  { %v10795_v35 = vpop.f32.mrb[84].mxu1  ;;  %v10732_v50 = vpop.f32.mrb[85].mxu0 }
 0x41f   :  { %v10733_v57 = vadd.f32 %v10732_v50, %v10731_v41  ;;  %v10796_v5 = vpop.f32.mrb[85].mxu1  ;;  %v10734_v22 = vpop.f32.mrb[86].mxu0 }
 0x420   :  { %v10797_v39 = vadd.f32 %v10796_v5, %v10795_v35  ;;  %v10798_v47 = vpop.f32.mrb[86].mxu1  ;;  %v10735_v28 = vpop.f32.mrb[87].mxu0 }
 0x421   :  { %v3862_v33 = vadd.f32 %v10733_v57, %v14513_v15  ;;  %v10736_v19 = vadd.f32 %v10735_v28, %v10734_v22  ;;  %v10799_v63 = vpop.f32.mrb[87].mxu1 }
 0x422   :  { %v10800_v48 = vadd.f32 %v10799_v63, %v10798_v47 }
 0x423   :  { %v14568_v56 = vadd.f32 %v10797_v39, %v3862_v33  ;;  %v3865_v31 = vadd.f32 %v10736_v19, %v14521_v3 }
 0x425   :  { %v14571_v34 = vadd.f32 %v10800_v48, %v3865_v31  ;;  %v10737_v17 = vpop.f32.mrb[88].mxu0 }
 0x426   :  { %v10801_v60 = vpop.f32.mrb[88].mxu1  ;;  %v10738_v10 = vpop.f32.mrb[89].mxu0 }
 0x427   :  { %v10739_v21 = vadd.f32 %v10738_v10, %v10737_v17  ;;  %v10802_v44 = vpop.f32.mrb[89].mxu1  ;;  %v10740_v49 = vpop.f32.mrb[90].mxu0 }
 0x428   :  { %v10803_v30 = vadd.f32 %v10802_v44, %v10801_v60  ;;  %v10804_v0 = vpop.f32.mrb[90].mxu1  ;;  %v10741_v24 = vpop.f32.mrb[91].mxu0 }
 0x429   :  { %v3870_v15 = vadd.f32 %v10739_v21, %v14526_v4  ;;  %v10742_v45 = vadd.f32 %v10741_v24, %v10740_v49  ;;  %v10805_v16 = vpop.f32.mrb[91].mxu1 }
 0x42a   :  { %v10806_v25 = vadd.f32 %v10805_v16, %v10804_v0 }
 0x42b   :  { %v14574_v7 = vadd.f32 %v10803_v30, %v3870_v15  ;;  %v3873_v3 = vadd.f32 %v10742_v45, %v14529_v62 }
 0x42d   :  { %v14577_v29 = vadd.f32 %v10806_v25, %v3873_v3  ;;  %v10743_v37 = vpop.f32.mrb[92].mxu0 }
 0x42e   :  { %v10807_v12 = vpop.f32.mrb[92].mxu1  ;;  %v10744_v11 = vpop.f32.mrb[93].mxu0 }
 0x42f   :  { %v10745_v43 = vadd.f32 %v10744_v11, %v10743_v37  ;;  %v10808_v20 = vpop.f32.mrb[93].mxu1  ;;  %v10746_v54 = vpop.f32.mrb[94].mxu0 }
 0x430   :  { %v10809_v18 = vadd.f32 %v10808_v20, %v10807_v12  ;;  %v10810_v42 = vpop.f32.mrb[94].mxu1  ;;  %v10747_v6 = vpop.f32.mrb[95].mxu0 }
 0x431   :  { %v3878_v4 = vadd.f32 %v10745_v43, %v14532_v55  ;;  %v10748_v14 = vadd.f32 %v10747_v6, %v10746_v54  ;;  %v10811_v1 = vpop.f32.mrb[95].mxu1 }
 0x432   :  { %v10812_v23 = vadd.f32 %v10811_v1, %v10810_v42 }
 0x433   :  { %v14580_v36 = vadd.f32 %v10809_v18, %v3878_v4  ;;  %v3881_v62 = vadd.f32 %v10748_v14, %v14535_v9 }
 0x435   :  { %v14583_v32 = vadd.f32 %v10812_v23, %v3881_v62  ;;  %v10829_v61 = vpop.f32.mrb[96].mxu0 }
 0x436   :  { %v10893_v46 = vpop.f32.mrb[96].mxu1  ;;  %v10830_v41 = vpop.f32.mrb[97].mxu0 }
 0x437   :  { %v10831_v35 = vadd.f32 %v10830_v41, %v10829_v61  ;;  %v10894_v50 = vpop.f32.mrb[97].mxu1  ;;  %v10832_v57 = vpop.f32.mrb[98].mxu0 }
 0x438   :  { %v10895_v5 = vadd.f32 %v10894_v50, %v10893_v46  ;;  %v10896_v22 = vpop.f32.mrb[98].mxu1  ;;  %v10833_v39 = vpop.f32.mrb[99].mxu0 }
 0x439   :  { %v4016_v55 = vadd.f32 %v10831_v35, %v14538_v58  ;;  %v10834_v47 = vadd.f32 %v10833_v39, %v10832_v57  ;;  %v10897_v28 = vpop.f32.mrb[99].mxu1 }
 0x43a   :  { %v10898_v33 = vadd.f32 %v10897_v28, %v10896_v22 }
 0x43b   :  { %v4113_v19 = vadd.f32 %v10895_v5, %v4016_v55  ;;  %v4019_v63 = vadd.f32 %v10834_v47, %v14541_v53 }
 0x43d   :  { %v4191_v9 = vmul.f32 0.2, %v4113_v19  ;;  %v4116_v48 = vadd.f32 %v10898_v33, %v4019_v63  ;;  %v10835_v31 = vpop.f32.mrb[100].mxu0  ;;  %vm4175_vm1 = vcmp.gt.f32.partialorder %v4113_v19, 0.0 }
 0x43e   :  { %v10899_v17 = vpop.f32.mrb[100].mxu1  ;;  %v10836_v60 = vpop.f32.mrb[101].mxu0 }
 0x43f   :  { %vm4176_vm2 = vcmp.gt.f32.partialorder %v4116_v48, 0.0  ;;  %v4192_v10 = vmul.f32 0.2, %v4116_v48  ;;  %v10837_v21 = vadd.f32 %v10836_v60, %v10835_v31  ;;  %v10900_v44 = vpop.f32.mrb[101].mxu1  ;;  %v10838_v49 = vpop.f32.mrb[102].mxu0  ;;  %v4207_v24 = vsel %vm4175_vm1, %v4113_v19, %v4191_v9 }
 0x440   :  { %v10901_v30 = vadd.f32 %v10900_v44, %v10899_v17  ;;  %v10902_v0 = vpop.f32.mrb[102].mxu1  ;;  %v10839_v58 = vpop.f32.mrb[103].mxu0 }
 0x441   :  { %v4208_v15 = vsel %vm4176_vm2, %v4116_v48, %v4192_v10  ;;  %v4024_v45 = vadd.f32 %v10837_v21, %v14544_v40  ;;  %v10840_v16 = vadd.f32 %v10839_v58, %v10838_v49  ;;  %v10903_v53 = vpop.f32.mrb[103].mxu1 }
 0x442   :  { %v10904_v25 = vadd.f32 %v10903_v53, %v10902_v0  ;;  %v4255_v3 = vpack.c.bf16 %v4208_v15, %v4207_v24 }
 0x443   :  { %v4121_v37 = vadd.f32 %v10901_v30, %v4024_v45  ;;  %v4027_v12 = vadd.f32 %v10840_v16, %v14547_v27 }
 0x444   :  { %11580 = vmatprep.subr.bf16.mxu0 %v4255_v3  ;;  %11712 = vmatprep.subr.bf16.mxu1 %v4255_v3 }
 0x445   :  { %v4193_v11 = vmul.f32 0.2, %v4121_v37  ;;  %v4124_v43 = vadd.f32 %v10904_v25, %v4027_v12  ;;  %v10841_v20 = vpop.f32.mrb[104].mxu0  ;;  %11581 = vmatpush3.bf16.msra.mxu0 %v4255_v3  ;;  %11716 = vmatpush3.bf16.msra.mxu1 %v4255_v3  ;;  %vm4177_vm3 = vcmp.gt.f32.partialorder %v4121_v37, 0.0 }
 0x446   :  { %v10905_v54 = vpop.f32.mrb[104].mxu1  ;;  %v10842_v18 = vpop.f32.mrb[105].mxu0 }
 0x447   :  { %vm4178_vm4 = vcmp.gt.f32.partialorder %v4124_v43, 0.0  ;;  %v4194_v42 = vmul.f32 0.2, %v4124_v43  ;;  %v10843_v40 = vadd.f32 %v10842_v18, %v10841_v20  ;;  %v10906_v6 = vpop.f32.mrb[105].mxu1  ;;  %v10844_v4 = vpop.f32.mrb[106].mxu0  ;;  %v4209_v62 = vsel %vm4177_vm3, %v4121_v37, %v4193_v11 }
 0x448   :  { %v10907_v14 = vadd.f32 %v10906_v6, %v10905_v54  ;;  %v10908_v1 = vpop.f32.mrb[106].mxu1  ;;  %v10845_v23 = vpop.f32.mrb[107].mxu0  ;;  %v12097_v6 = vld [vmem:[#allocation5 + $0x40] sm:$0xff]  }
 0x449   :  { %v4210_v27 = vsel %vm4178_vm4, %v4124_v43, %v4194_v42  ;;  %v4032_v61 = vadd.f32 %v10843_v40, %v14550_v26  ;;  %v10846_v46 = vadd.f32 %v10845_v23, %v10844_v4  ;;  %v10909_v41 = vpop.f32.mrb[107].mxu1  ;;  %v14603_v23 = vld [vmem:[%s15571_s1 + $0x8] sm:$0xff]  }
 0x44a   :  { %v10910_v35 = vadd.f32 %v10909_v41, %v10908_v1  ;;  %v4256_v50 = vpack.c.bf16 %v4210_v27, %v4209_v62  ;;  %v14598_v1 = vld [vmem:[%s15571_s1 + $0x68] sm:$0xff]  }
 0x44b   :  { %v4129_v57 = vadd.f32 %v10907_v14, %v4032_v61  ;;  %v4035_v5 = vadd.f32 %v10846_v46, %v14553_v8  ;;  %v14613_v61 = vld [vmem:[%s15571_s1 + $0x70] sm:$0xff]  }
 0x44c   :  { %11582 = vmatprep.subr.bf16.mxu0 %v4256_v50  ;;  %11713 = vmatprep.subr.bf16.mxu1 %v4256_v50 }
 0x44d   :  { %v4195_v22 = vmul.f32 0.2, %v4129_v57  ;;  %v4132_v39 = vadd.f32 %v10910_v35, %v4035_v5  ;;  %v10847_v55 = vpop.f32.mrb[108].mxu0  ;;  %11583 = vmatpush3.bf16.msra.mxu0 %v4256_v50  ;;  %11717 = vmatpush3.bf16.msra.mxu1 %v4256_v50  ;;  %vm4179_vm5 = vcmp.gt.f32.partialorder %v4129_v57, 0.0  ;;  %v12098_v35 = vld [vmem:[#allocation5] sm:$0xff]  }
 0x44e   :  { %v10911_v47 = vpop.f32.mrb[108].mxu1  ;;  %v10848_v28 = vpop.f32.mrb[109].mxu0 }
 0x44f   :  { %vm4180_vm6 = vcmp.gt.f32.partialorder %v4132_v39, 0.0  ;;  %v4196_v33 = vmul.f32 0.2, %v4132_v39  ;;  %v10849_v26 = vadd.f32 %v10848_v28, %v10847_v55  ;;  %v10912_v19 = vpop.f32.mrb[109].mxu1  ;;  %v10850_v63 = vpop.f32.mrb[110].mxu0  ;;  %v4211_v17 = vsel %vm4179_vm5, %v4129_v57, %v4195_v22 }
 0x450   :  { %v10913_v9 = vadd.f32 %v10912_v19, %v10911_v47  ;;  %v10914_v48 = vpop.f32.mrb[110].mxu1  ;;  %v10851_v31 = vpop.f32.mrb[111].mxu0 }
 0x451   :  { %v4212_v8 = vsel %vm4180_vm6, %v4132_v39, %v4196_v33  ;;  %v4040_v60 = vadd.f32 %v10849_v26, %v14556_v51  ;;  %v10852_v10 = vadd.f32 %v10851_v31, %v10850_v63  ;;  %v10915_v21 = vpop.f32.mrb[111].mxu1  ;;  %v12099_v39 = vld [vmem:[#allocation5 + $0x48] sm:$0xff]   ;;  %vm6459_vm6 = vcmask 1041408  }
 0x452   :  { %v10916_v44 = vadd.f32 %v10915_v21, %v10914_v48  ;;  %v4257_v49 = vpack.c.bf16 %v4212_v8, %v4211_v17  ;;  %v12100_v17 = vld [vmem:[#allocation5 + $0x8] sm:$0xff]   ;;  %v14634_v21 = vld [vmem:[%s15571_s1 + $0x78] sm:$0xff]  }
 0x453   :  { %v4137_v30 = vadd.f32 %v10913_v9, %v4040_v60  ;;  %v4043_v0 = vadd.f32 %v10852_v10, %v14559_v52  ;;  %v12103_v10 = vld [vmem:[#allocation5 + $0x50] sm:$0xff]  }
 0x454   :  { %11584 = vmatprep.subr.bf16.mxu0 %v4257_v49  ;;  %11714 = vmatprep.subr.bf16.mxu1 %v4257_v49 }
 0x455   :  { %v4197_v58 = vmul.f32 0.2, %v4137_v30  ;;  %v4140_v24 = vadd.f32 %v10916_v44, %v4043_v0  ;;  %v10853_v15 = vpop.f32.mrb[112].mxu0  ;;  %11585 = vmatpush3.bf16.msra.mxu0 %v4257_v49  ;;  %11718 = vmatpush3.bf16.msra.mxu1 %v4257_v49  ;;  %vm4181_vm7 = vcmp.gt.f32.partialorder %v4137_v30, 0.0 }
 0x456   :  { %v10917_v45 = vpop.f32.mrb[112].mxu1  ;;  %v10854_v16 = vpop.f32.mrb[113].mxu0 }
 0x457   :  { %vm4182_vm8 = vcmp.gt.f32.partialorder %v4140_v24, 0.0  ;;  %v4198_v53 = vmul.f32 0.2, %v4140_v24  ;;  %v10855_v51 = vadd.f32 %v10854_v16, %v10853_v15  ;;  %v10918_v25 = vpop.f32.mrb[113].mxu1  ;;  %v10856_v3 = vpop.f32.mrb[114].mxu0  ;;  %v4213_v43 = vsel %vm4181_vm7, %v4137_v30, %v4197_v58 }
 0x458   :  { %v10919_v37 = vadd.f32 %v10918_v25, %v10917_v45  ;;  %v10920_v12 = vpop.f32.mrb[114].mxu1  ;;  %v10857_v11 = vpop.f32.mrb[115].mxu0  ;;  %vm12606_vm7 = vmmov 0  }
 0x459   :  { %v4214_v52 = vsel %vm4182_vm8, %v4140_v24, %v4198_v53  ;;  %v4048_v20 = vadd.f32 %v10855_v51, %v14562_v59  ;;  %v10858_v54 = vadd.f32 %v10857_v11, %v10856_v3  ;;  %v10921_v18 = vpop.f32.mrb[115].mxu1  ;;  %v12104_v24 = vld [vmem:[#allocation5 + $0x10] sm:$0xff]   ;;  %v12105_v51 = vld [vmem:[#allocation5 + $0x58] sm:$0xff]  }
 0x45a   :  { %v10922_v42 = vadd.f32 %v10921_v18, %v10920_v12  ;;  %v4258_v40 = vpack.c.bf16 %v4214_v52, %v4213_v43 }
 0x45b   :  { %v4145_v4 = vadd.f32 %v10919_v37, %v4048_v20  ;;  %v4051_v14 = vadd.f32 %v10858_v54, %v14565_v2  ;;  %v14608_v2 = vld [vmem:[%s15571_s1 + $0x10] sm:$0xff]  }
 0x45c   :  { %11586 = vmatprep.subr.bf16.mxu0 %v4258_v40  ;;  %11715 = vmatprep.subr.bf16.mxu1 %v4258_v40 }
 0x45d   :  { %vm4183_vm9 = vcmp.gt.f32.partialorder %v4145_v4, 0.0  ;;  %v4199_v59 = vmul.f32 0.2, %v4145_v4  ;;  %v4148_v62 = vadd.f32 %v10922_v42, %v4051_v14  ;;  %v10859_v27 = vpop.f32.mrb[116].mxu0  ;;  %11587 = vmatpush3.bf16.msra.mxu0 %v4258_v40  ;;  %11719 = vmatpush3.bf16.msra.mxu1 %v4258_v40  ;;  %v12107_v42 = vld [vmem:[#allocation5 + $0x18] sm:$0xff]  }
 0x45e   :  { %v10923_v46 = vpop.f32.mrb[116].mxu1  ;;  %v10860_v41 = vpop.f32.mrb[117].mxu0  ;;  %10981 = vmatprep.subr.bf16.mxu0 %v12097_v6 }
 0x45f   :  { %vm4184_vm10 = vcmp.gt.f32.partialorder %v4148_v62, 0.0  ;;  %v4200_v50 = vmul.f32 0.2, %v4148_v62  ;;  %v10861_v57 = vadd.f32 %v10860_v41, %v10859_v27  ;;  %v10924_v5 = vpop.f32.mrb[117].mxu1  ;;  %v10862_v22 = vpop.f32.mrb[118].mxu0  ;;  %v4215_v33 = vsel %vm4183_vm9, %v4145_v4, %v4199_v59  ;;  %v12109_v4 = vld [vmem:[#allocation5 + $0x60] sm:$0xff]  }
 0x460   :  { %v10925_v55 = vadd.f32 %v10924_v5, %v10923_v46  ;;  %v10926_v47 = vpop.f32.mrb[118].mxu1  ;;  %v10863_v28 = vpop.f32.mrb[119].mxu0  ;;  %11613 = vmatmul.mubr.msk.bf16.vlgmr.msra.gmra.mrb[128].mxu1 %vm4343_vm0, %v14598_v1  ;;  %11589 = vmatmul.mubr.msk.bf16.vlgmr.msra.gmra.mrb[128].mxu0 %vm4343_vm0, %v14603_v23  ;;  %v12111_v46 = vld [vmem:[#allocation5 + $0x20] sm:$0xff]   ;;  %v12113_v5 = vld [vmem:[#allocation5 + $0x68] sm:$0xff]   ;;  %vm7924_vm9 = vcmask 31744  }
 0x461   :  { %v4056_v26 = vadd.f32 %v10861_v57, %v14568_v56  ;;  %v10864_v19 = vadd.f32 %v10863_v28, %v10862_v22  ;;  %v10927_v63 = vpop.f32.mrb[119].mxu1  ;;  %v4216_v9 = vsel %vm4184_vm10, %v4148_v62, %v4200_v50  ;;  %11592 = vmatprep.mubr.msk.bf16.mxu0 %vm4343_vm0, %v14608_v2  ;;  %11616 = vmatprep.mubr.msk.bf16.mxu1 %vm4343_vm0, %v14613_v61  ;;  %v14629_v56 = vld [vmem:[%s15571_s1 + $0x18] sm:$0xff]   ;;  %v14661_v62 = vld [vmem:[%s15571_s1 + $0x30] sm:$0xff]   ;;  %vm8134_vm10 = vcmask 1040384  }
 0x462   :  { %v10928_v48 = vadd.f32 %v10927_v63, %v10926_v47  ;;  %v4259_v31 = vpack.c.bf16 %v4216_v9, %v4215_v33  ;;  %10982 = vmatpush3.bf16.msra.mxu0 %v12098_v35 }
 0x463   :  { %v4153_v8 = vadd.f32 %v10925_v55, %v4056_v26  ;;  %v4059_v60 = vadd.f32 %v10864_v19, %v14571_v34  ;;  %10983 = vmatprep.subr.bf16.mxu0 %v12099_v39  ;;  %v14639_v34 = vld [vmem:[%s15571_s1 + $0x20] sm:$0xff]  }
 0x464   :  { %11620 = vmatprep.subr.bf16.mxu1 %v4259_v31 }
 0x465   :  { %vm4185_vm11 = vcmp.gt.f32.partialorder %v4153_v8, 0.0  ;;  %v4201_v44 = vmul.f32 0.2, %v4153_v8  ;;  %v4156_v49 = vadd.f32 %v10928_v48, %v4059_v60  ;;  %v10865_v30 = vpop.f32.mrb[120].mxu0  ;;  %11621 = vmatpush3.bf16.msra.mxu1 %v4259_v31  ;;  %v12115_v48 = vld [vmem:[#allocation5 + $0x28] sm:$0xff]  }
 0x466   :  { %v10929_v0 = vpop.f32.mrb[120].mxu1  ;;  %v10866_v58 = vpop.f32.mrb[121].mxu0  ;;  %10984 = vmatpush3.bf16.msra.mxu0 %v12100_v17 }
 0x467   :  { %vm4186_vm12 = vcmp.gt.f32.partialorder %v4156_v49, 0.0  ;;  %v4202_v15 = vmul.f32 0.2, %v4156_v49  ;;  %v10867_v45 = vadd.f32 %v10866_v58, %v10865_v30  ;;  %v10930_v16 = vpop.f32.mrb[121].mxu1  ;;  %v10868_v53 = vpop.f32.mrb[122].mxu0  ;;  %10985 = vmatprep.subr.bf16.mxu0 %v12103_v10  ;;  %v4217_v12 = vsel %vm4185_vm11, %v4153_v8, %v4201_v44  ;;  %v12117_v8 = vld [vmem:[#allocation5 + $0x70] sm:$0xff]  }
 0x468   :  { %v10931_v25 = vadd.f32 %v10930_v16, %v10929_v0  ;;  %v10932_v3 = vpop.f32.mrb[122].mxu1  ;;  %v10869_v37 = vpop.f32.mrb[123].mxu0  ;;  %11593 = vmatmul.mubr.msk.bf16.gmra.mrb[132].mxu0 %vm4343_vm0, %v14629_v56  ;;  %11617 = vmatmul.mubr.msk.bf16.gmra.mrb[132].mxu1 %vm4343_vm0, %v14634_v21  ;;  %v12093_v44 = vld [vmem:[%s15571_s1 + $0x40] sm:$0xff]   ;;  %vm8135_vm11 = vsmask.f32 256 }
 0x469   :  { %v4064_v11 = vadd.f32 %v10867_v45, %v14574_v7  ;;  %v10870_v43 = vadd.f32 %v10869_v37, %v10868_v53  ;;  %v10933_v52 = vpop.f32.mrb[123].mxu1  ;;  %v4218_v20 = vsel %vm4186_vm12, %v4156_v49, %v4202_v15  ;;  %11628 = vmatprep.mubr.msk.bf16.mxu1 %vm4343_vm0, %v14508_v13  ;;  %11596 = vmatprep.mubr.msk.bf16.mxu0 %vm4343_vm0, %v14639_v34  ;;  %v14656_v7 = vld [vmem:[%s15571_s1 + $0x28] sm:$0xff]   ;;  %v12119_v49 = vld [vmem:[#allocation5 + $0x30] sm:$0xff]   ;;  %vm14937_vm12 = vmand %vm8134_vm10, %vm8135_vm11 }
 0x46a   :  { %v10934_v54 = vadd.f32 %v10933_v52, %v10932_v3  ;;  %v4260_v18 = vpack.c.bf16 %v4218_v20, %v4217_v12  ;;  %10986 = vmatpush3.bf16.msra.mxu0 %v12104_v24  ;;  %v12101_v24 = vld [vmem:[#allocation5 + $0xc0] sm:$0xff]   ;;  %v12095_v45 = vld [vmem:[%s15571_s1 + $0x50] sm:$0xff]   ;;  %v12096_v3 = vld [vmem:[%s15571_s1 + $0x58] sm:$0xff]  }
 0x46b   :  { %v4161_v40 = vadd.f32 %v10931_v25, %v4064_v11  ;;  %v4067_v6 = vadd.f32 %v10870_v43, %v14577_v29  ;;  %10987 = vmatprep.subr.bf16.mxu0 %v12105_v51  ;;  %v12094_v15 = vld [vmem:[%s15571_s1 + $0x48] sm:$0xff]   ;;  %v12110_v25 = vld [vmem:[#allocation5 + $0xd0] sm:$0xff]   ;;  %v12114_v12 = vld [vmem:[#allocation5 + $0xd8] sm:$0xff]  }
 0x46c   :  { %11622 = vmatprep.subr.bf16.mxu1 %v4260_v18  ;;  %v12102_v16 = vld [vmem:[#allocation5 + $0x80] sm:$0xff]   ;;  %v12106_v53 = vld [vmem:[#allocation5 + $0xc8] sm:$0xff]   ;;  %v12112_v37 = vld [vmem:[#allocation5 + $0x90] sm:$0xff]  }
 0x46d   :  { %v4203_v14 = vmul.f32 0.2, %v4161_v40  ;;  %v4164_v13 = vadd.f32 %v10934_v54, %v4067_v6  ;;  %v10871_v59 = vpop.f32.mrb[124].mxu0  ;;  %11623 = vmatpush3.bf16.msra.mxu1 %v4260_v18  ;;  %vm4187_vm13 = vcmp.gt.f32.partialorder %v4161_v40, 0.0  ;;  %v12108_v51 = vld [vmem:[#allocation5 + $0x88] sm:$0xff]   ;;  %v12120_v11 = vld [vmem:[#allocation5 + $0xa0] sm:$0xff]  }
 0x46e   :  { %v10935_v27 = vpop.f32.mrb[124].mxu1  ;;  %v10872_v29 = vpop.f32.mrb[125].mxu0  ;;  %10988 = vmatpush3.bf16.msra.mxu0 %v12107_v42  ;;  %v12124_v43 = vld [vmem:[#allocation5 + $0xa8] sm:$0xff]   ;;  %v12123_v52 = vld [vmem:[#allocation5 + $0x38] sm:$0xff]   ;;  %v12125_v20 = vld [vmem:[#allocation5 + $0xf0] sm:$0xff]  }
 0x46f   :  { %vm4188_vm14 = vcmp.gt.f32.partialorder %v4164_v13, 0.0  ;;  %v4204_v41 = vmul.f32 0.2, %v4164_v13  ;;  %v10873_v35 = vadd.f32 %v10872_v29, %v10871_v59  ;;  %v10936_v50 = vpop.f32.mrb[125].mxu1  ;;  %v10874_v57 = vpop.f32.mrb[126].mxu0  ;;  %10989 = vmatprep.subr.bf16.mxu0 %v12109_v4  ;;  %v4219_v26 = vsel %vm4187_vm13, %v4161_v40, %v4203_v14  ;;  %v12126_v54 = vld [vmem:[#allocation5 + $0x140] sm:$0xff]  }
 0x470   :  { %v10937_v22 = vadd.f32 %v10936_v50, %v10935_v27  ;;  %v10938_v39 = vpop.f32.mrb[126].mxu1  ;;  %v10875_v55 = vpop.f32.mrb[127].mxu0  ;;  %11597 = vmatmul.mubr.msk.bf16.gmra.mrb[136].mxu0 %vm4343_vm0, %v14656_v7  ;;  %v12131_v18 = vld [vmem:[#allocation5 + $0xb8] sm:$0xff]   ;;  %v12128_v59 = vld [vmem:[#allocation5 + $0x100] sm:$0xff]  }
 0x471   :  { %v4072_v47 = vadd.f32 %v10873_v35, %v14580_v36  ;;  %v10876_v28 = vadd.f32 %v10875_v55, %v10874_v57  ;;  %v10939_v33 = vpop.f32.mrb[127].mxu1  ;;  %v4220_v19 = vsel %vm4188_vm14, %v4164_v13, %v4204_v41  ;;  %11600 = vmatprep.mubr.msk.bf16.mxu0 %vm4343_vm0, %v14661_v62  ;;  %v12092_v36 = vld [vmem:[%s15571_s1 + $0x38] sm:$0xff]   ;;  %v12132_v35 = vld [vmem:[#allocation5 + $0x108] sm:$0xff]   ;;  %vm9664_vm14 = vcmask 1024  }
 0x472   :  { %v10940_v63 = vadd.f32 %v10939_v33, %v10938_v39  ;;  %v4261_v9 = vpack.c.bf16 %v4220_v19, %v4219_v26  ;;  %10990 = vmatpush3.bf16.msra.mxu0 %v12111_v46  ;;  %v12130_v46 = vld [vmem:[#allocation5 + $0x148] sm:$0xff]   ;;  %v12133_v57 = vld [vmem:[#allocation5 + $0x150] sm:$0xff]   ;;  %v12136_v19 = vld [vmem:[#allocation5 + $0x180] sm:$0xff]  }
 0x473   :  { %v4169_v31 = vadd.f32 %v10937_v22, %v4072_v47  ;;  %v4075_v17 = vadd.f32 %v10876_v28, %v14583_v32  ;;  %10991 = vmatprep.subr.bf16.mxu0 %v12113_v5  ;;  %v12135_v26 = vld [vmem:[#allocation5 + $0x110] sm:$0xff]  }
 0x474   :  { %11624 = vmatprep.subr.bf16.mxu1 %v4261_v9 }
 0x475   :  { %v4205_v60 = vmul.f32 0.2, %v4169_v31  ;;  %v4172_v10 = vadd.f32 %v10940_v63, %v4075_v17  ;;  %11625 = vmatpush3.bf16.msra.mxu1 %v4261_v9  ;;  %vm4189_vm15 = vcmp.gt.f32.partialorder %v4169_v31, 0.0  ;;  %v12138_v17 = vld [vmem:[#allocation5 + $0x1c8] sm:$0xff]  }
 0x476   :  { %10992 = vmatpush3.bf16.msra.mxu0 %v12115_v48 }
 0x477   :  { %vm4190_vm1 = vcmp.gt.f32.partialorder %v4172_v10, 0.0  ;;  %v4206_v30 = vmul.f32 0.2, %v4172_v10  ;;  %10993 = vmatprep.subr.bf16.mxu0 %v12117_v8  ;;  %v4221_v32 = vsel %vm4189_vm15, %v4169_v31, %v4205_v60  ;;  %v12137_v31 = vld [vmem:[#allocation5 + $0x158] sm:$0xff]   ;;  %v12140_v60 = vld [vmem:[#allocation5 + $0x188] sm:$0xff]  }
 0x478   :  { %11601 = vmatmul.mubr.msk.bf16.gmra.mrb[140].mxu0 %vm4343_vm0, %v12092_v36 }
 0x479   :  { %v4222_v0 = vsel %vm4190_vm1, %v4172_v10, %v4206_v30  ;;  %11604 = vmatprep.mubr.msk.bf16.mxu0 %vm4343_vm0, %v12093_v44  ;;  %v12141_v10 = vld [vmem:[#allocation5 + $0x160] sm:$0xff]  }
 0x47a   :  { %v4262_v58 = vpack.c.bf16 %v4222_v0, %v4221_v32  ;;  %10994 = vmatpush3.bf16.msra.mxu0 %v12119_v49  ;;  %v12143_v0 = vld [vmem:[#allocation5 + $0x120] sm:$0xff]  }
 0x47c   :  { %11626 = vmatprep.subr.bf16.mxu1 %v4262_v58 }
 0x47d   :  { %11627 = vmatpush3.bf16.msra.mxu1 %v4262_v58  ;;  %v12144_v58 = vld [vmem:[#allocation5 + $0x190] sm:$0xff]  }
 0x47e   :  { %11009 = vmatprep.subr.bf16.mxu1 %v12101_v24 }
 0x480   :  { %11629 = vmatmul.mubr.msk.bf16.vlgmr.msra.gmra.mrb[136].mxu1 %vm4343_vm0, %v14603_v23  ;;  %11605 = vmatmul.mubr.msk.bf16.gmra.mrb[144].mxu0 %vm4343_vm0, %v12094_v15  ;;  %v12116_v23 = vld [vmem:[#allocation5 + $0x98] sm:$0xff]  }
 0x481   :  { %11632 = vmatprep.mubr.msk.bf16.mxu1 %vm4343_vm0, %v14608_v2  ;;  %11608 = vmatprep.mubr.msk.bf16.mxu0 %vm4343_vm0, %v12095_v45  ;;  %v12118_v2 = vld [vmem:[#allocation5 + $0xe0] sm:$0xff]  }
 0x482   :  { %11010 = vmatpush3.bf16.msra.mxu1 %v12102_v16  ;;  %v12146_v16 = vld [vmem:[#allocation5 + $0x1d8] sm:$0xff]  }
 0x483   :  { %11011 = vmatprep.subr.bf16.mxu1 %v12106_v53 }
 0x486   :  { %11012 = vmatpush3.bf16.msra.mxu1 %v12108_v51  ;;  %v12147_v51 = vld [vmem:[#allocation5 + $0x128] sm:$0xff]  }
 0x487   :  { %11013 = vmatprep.subr.bf16.mxu1 %v12110_v25  ;;  %v12148_v25 = vld [vmem:[#allocation5 + $0x198] sm:$0xff]  }
 0x488   :  { %11633 = vmatmul.mubr.msk.bf16.gmra.mrb[140].mxu1 %vm4343_vm0, %v14629_v56  ;;  %11609 = vmatmul.mubr.msk.bf16.gmra.mrb[148].mxu0 %vm4343_vm0, %v12096_v3  ;;  %v12121_v56 = vld [vmem:[#allocation5 + $0x78] sm:$0xff]  }
 0x489   :  { %11636 = vmatprep.mubr.msk.bf16.mxu1 %vm4343_vm0, %v14639_v34  ;;  %v12122_v34 = vld [vmem:[#allocation5 + $0xe8] sm:$0xff]   ;;  %10995 = vmatprep.subr.bf16.mxu0 %v12121_v56  ;;  %v12152_v56 = vld [vmem:[#allocation5 + $0x1a0] sm:$0xff]  }
 0x48a   :  { %11014 = vmatpush3.bf16.msra.mxu1 %v12112_v37  ;;  %10996 = vmatpush3.bf16.msra.mxu0 %v12123_v52  ;;  %v12150_v37 = vld [vmem:[#allocation5 + $0x1e0] sm:$0xff]   ;;  %v12153_v52 = vld [vmem:[#allocation5 + $0x178] sm:$0xff]  }
 0x48b   :  { %11015 = vmatprep.subr.bf16.mxu1 %v12114_v12  ;;  %11037 = vmatprep.subr.bf16.mxu0 %v12126_v54 }
 0x48e   :  { %11016 = vmatpush3.bf16.msra.mxu1 %v12116_v23 }
 0x48f   :  { %11017 = vmatprep.subr.bf16.mxu1 %v12118_v2 }
 0x490   :  { %11637 = vmatmul.mubr.msk.bf16.gmra.mrb[144].mxu1 %vm4343_vm0, %v14656_v7 }
 0x491   :  { %11640 = vmatprep.mubr.msk.bf16.mxu1 %vm4343_vm0, %v14661_v62 }
 0x492   :  { %11018 = vmatpush3.bf16.msra.mxu1 %v12120_v11  ;;  %v12151_v11 = vld [vmem:[#allocation5 + $0x130] sm:$0xff]  }
 0x493   :  { %11019 = vmatprep.subr.bf16.mxu1 %v12122_v34 }
 0x496   :  { %11020 = vmatpush3.bf16.msra.mxu1 %v12124_v43 }
 0x497   :  { %11021 = vmatprep.subr.bf16.mxu1 %v12125_v20  ;;  %v12154_v20 = vld [vmem:[#allocation5 + $0x1e8] sm:$0xff]  }
 0x498   :  { %11641 = vmatmul.mubr.msk.bf16.gmra.mrb[148].mxu1 %vm4343_vm0, %v12092_v36  ;;  %v12139_v36 = vld [vmem:[#allocation5 + $0x118] sm:$0xff]  }
 0x499   :  { %11644 = vmatprep.mubr.msk.bf16.mxu1 %vm4343_vm0, %v12093_v44  ;;  %v12142_v44 = vld [vmem:[#allocation5 + $0x1d0] sm:$0xff]  }
 0x4a0   :  { %11645 = vmatmul.mubr.msk.bf16.gmra.mrb[152].mxu1 %vm4343_vm0, %v12094_v15 }
 0x4a1   :  { %11648 = vmatprep.mubr.msk.bf16.mxu1 %vm4343_vm0, %v12095_v45  ;;  %v12145_v45 = vld [vmem:[#allocation5 + $0x168] sm:$0xff]  }
 0x4a8   :  { %11649 = vmatmul.mubr.msk.bf16.gmra.mrb[156].mxu1 %vm4343_vm0, %v12096_v3  ;;  %v12149_v3 = vld [vmem:[#allocation5 + $0x170] sm:$0xff]  }
 0x4a9   :  { %11652 = vmatprep.mubr.msk.bf16.mxu1 %vm4343_vm0, %v14519_v38  ;;  %v12127_v38 = vld [vmem:[#allocation5 + $0xb0] sm:$0xff]  }
 0x4aa   :  { %11022 = vmatpush3.bf16.msra.mxu1 %v12127_v38  ;;  %v12155_v38 = vld [vmem:[#allocation5 + $0x138] sm:$0xff]  }
 0x4b0   :  { %11653 = vmatmul.mubr.msk.bf16.gmra.mrb[160].mxu1 %vm4343_vm0, %v14598_v1  ;;  %v12129_v1 = vld [vmem:[#allocation5 + $0xf8] sm:$0xff]  }
 0x4b1   :  { %11656 = vmatprep.mubr.msk.bf16.mxu1 %vm4343_vm0, %v14613_v61  ;;  %11023 = vmatprep.subr.bf16.mxu1 %v12129_v1  ;;  %v12134_v61 = vld [vmem:[#allocation5 + $0x1c0] sm:$0xff]   ;;  %v12156_v1 = vld [vmem:[#allocation5 + $0x1a8] sm:$0xff]  }
 0x4b2   :  { %11024 = vmatpush3.bf16.msra.mxu1 %v12131_v18 }
 0x4b3   :  { %11065 = vmatprep.subr.bf16.mxu1 %v12134_v61  ;;  %v12157_v61 = vld [vmem:[#allocation5 + $0x1f0] sm:$0xff]  }
 0x4b8   :  { %11657 = vmatmul.mubr.msk.bf16.gmra.mrb[164].mxu1 %vm4343_vm0, %v14634_v21  ;;  %vm6264_vm0 = vcmask 130048  }
 0x533   :  { %v11590_v42 = vpop.f32.mrb[128].mxu0  ;;  %v14715_v40 = vpop.f32.mrb[128].mxu1 }
 0x534   :  { %v4426_v6 = vpop.f32.mrb[129].mxu0  ;;  %v14717_v4 = vpop.f32.mrb[129].mxu1 }
 0x535   :  { %v11591_v21 = vpop.f32.mrb[130].mxu0  ;;  %v14719_v7 = vpop.f32.mrb[130].mxu1 }
 0x536   :  { %v4554_v14 = vpack.c.bf16 %v11591_v21, %v11590_v42  ;;  %v4429_v13 = vpop.f32.mrb[131].mxu0  ;;  %v4566_v62 = vpack.c.bf16 %v14719_v7, %v14715_v40  ;;  %v14723_v27 = vpop.f32.mrb[131].mxu1  ;;  %v12158_v42 = vld [vmem:[#allocation5 + $0x240] sm:$0xff]   ;;  %v12209_v40 = vld [vmem:[#allocation5 + $0x368] sm:$0xff]  }
 0x537   :  { %v4553_v29 = vpack.c.bf16 %v4429_v13, %v4426_v6  ;;  %v4565_v41 = vpack.c.bf16 %v14723_v27, %v14717_v4 }
 0x538   :  { %5809 = vmatprep.mubr.bf16.mxu0 %v4554_v14 }
 0x539   :  { %5810 = vmatmul.mubr.bf16.vlgmr.msra.gmra.mrb[152].mxu0 %v4553_v29 }
 0x53a   :  { %11038 = vmatpush3.bf16.msra.mxu0 %v12128_v59 }
 0x53b   :  { %v11594_v50 = vpop.f32.mrb[132].mxu0  ;;  %11039 = vmatprep.subr.bf16.mxu0 %v12130_v46  ;;  %v14727_v5 = vpop.f32.mrb[132].mxu1 }
 0x53c   :  { %v4442_v22 = vpop.f32.mrb[133].mxu0  ;;  %v14729_v39 = vpop.f32.mrb[133].mxu1 }
 0x53d   :  { %v11595_v55 = vpop.f32.mrb[134].mxu0  ;;  %v14731_v47 = vpop.f32.mrb[134].mxu1 }
 0x53e   :  { %v4556_v28 = vpack.c.bf16 %v11595_v55, %v11594_v50  ;;  %11040 = vmatpush3.bf16.msra.mxu0 %v12132_v35  ;;  %v4445_v33 = vpop.f32.mrb[135].mxu0  ;;  %v4568_v63 = vpack.c.bf16 %v14731_v47, %v14727_v5  ;;  %v14735_v9 = vpop.f32.mrb[135].mxu1  ;;  %v12159_v35 = vld [vmem:[#allocation5 + $0x1b0] sm:$0xff]   ;;  %v12161_v55 = vld [vmem:[#allocation5 + $0x1f8] sm:$0xff]   ;;  %v12220_v5 = vld [vmem:[#allocation5 + $0x3a8] sm:$0xff]  }
 0x53f   :  { %v4555_v48 = vpack.c.bf16 %v4445_v33, %v4442_v22  ;;  %11041 = vmatprep.subr.bf16.mxu0 %v12133_v57  ;;  %v4567_v8 = vpack.c.bf16 %v14735_v9, %v14729_v39  ;;  %v12163_v33 = vld [vmem:[#allocation5 + $0x1b8] sm:$0xff]   ;;  %v12221_v47 = vld [vmem:[#allocation5 + $0x3f0] sm:$0xff]  }
 0x540   :  { %5858 = vmatprep.mubr.bf16.mxu1 %v4556_v28 }
 0x541   :  { %5859 = vmatmul.mubr.bf16.vlgmr.msra.gmra.mrb[168].mxu1 %v4555_v48 }
 0x542   :  { %11042 = vmatpush3.bf16.msra.mxu0 %v12135_v26  ;;  %11066 = vmatpush3.bf16.msra.mxu1 %v12136_v19  ;;  %v12166_v19 = vld [vmem:[#allocation5 + $0x2c0] sm:$0xff]  }
 0x543   :  { %11043 = vmatprep.subr.bf16.mxu0 %v12137_v31  ;;  %11067 = vmatprep.subr.bf16.mxu1 %v12138_v17  ;;  %v14739_v49 = vpop.f32.mrb[136].mxu0 }
 0x544   :  { %v14741_v30 = vpop.f32.mrb[137].mxu0 }
 0x545   :  { %v11599_v32 = vpop.f32.mrb[138].mxu0 }
 0x546   :  { %11044 = vmatpush3.bf16.msra.mxu0 %v12139_v36  ;;  %11068 = vmatpush3.bf16.msra.mxu1 %v12140_v60  ;;  %v4558_v24 = vpack.c.bf16 %v11599_v32, %v14739_v49  ;;  %v14744_v15 = vpop.f32.mrb[139].mxu0  ;;  %v12160_v49 = vld [vmem:[#allocation5 + $0x200] sm:$0xff]  }
 0x547   :  { %11045 = vmatprep.subr.bf16.mxu0 %v12141_v10  ;;  %11069 = vmatprep.subr.bf16.mxu1 %v12142_v44  ;;  %v4557_v53 = vpack.c.bf16 %v14744_v15, %v14741_v30  ;;  %v12171_v30 = vld [vmem:[#allocation5 + $0x218] sm:$0xff]   ;;  %v12172_v15 = vld [vmem:[#allocation5 + $0x288] sm:$0xff]  }
 0x54a   :  { %11046 = vmatpush3.bf16.msra.mxu0 %v12143_v0  ;;  %11070 = vmatpush3.bf16.msra.mxu1 %v12144_v58 }
 0x54b   :  { %11047 = vmatprep.subr.bf16.mxu0 %v12145_v45  ;;  %11071 = vmatprep.subr.bf16.mxu1 %v12146_v16  ;;  %v14748_v12 = vpop.f32.mrb[140].mxu0  ;;  %v12164_v16 = vld [vmem:[#allocation5 + $0x208] sm:$0xff]  }
 0x54c   :  { %v14750_v23 = vpop.f32.mrb[141].mxu0 }
 0x54d   :  { %v14752_v2 = vpop.f32.mrb[142].mxu0 }
 0x54e   :  { %11048 = vmatpush3.bf16.msra.mxu0 %v12147_v51  ;;  %11072 = vmatpush3.bf16.msra.mxu1 %v12148_v25  ;;  %v4560_v34 = vpack.c.bf16 %v14752_v2, %v14748_v12  ;;  %v14756_v43 = vpop.f32.mrb[143].mxu0  ;;  %v12165_v25 = vld [vmem:[#allocation5 + $0x250] sm:$0xff]  }
 0x54f   :  { %11049 = vmatprep.subr.bf16.mxu0 %v12149_v3  ;;  %11073 = vmatprep.subr.bf16.mxu1 %v12150_v37  ;;  %v4559_v54 = vpack.c.bf16 %v14756_v43, %v14750_v23  ;;  %v12177_v43 = vld [vmem:[#allocation5 + $0x268] sm:$0xff]  }
 0x552   :  { %11050 = vmatpush3.bf16.msra.mxu0 %v12151_v11  ;;  %11074 = vmatpush3.bf16.msra.mxu1 %v12152_v56  ;;  %v12167_v11 = vld [vmem:[#allocation5 + $0x210] sm:$0xff]   ;;  %v12168_v56 = vld [vmem:[#allocation5 + $0x280] sm:$0xff]  }
 0x553   :  { %v11630_v18 = vpop.f32.mrb[136].mxu1  ;;  %11051 = vmatprep.subr.bf16.mxu0 %v12153_v52  ;;  %11075 = vmatprep.subr.bf16.mxu1 %v12154_v20  ;;  %v14760_v6 = vpop.f32.mrb[144].mxu0  ;;  %v12169_v20 = vld [vmem:[#allocation5 + $0x258] sm:$0xff]  }
 0x554   :  { %v4603_v21 = vpop.f32.mrb[137].mxu1  ;;  %v14762_v14 = vpop.f32.mrb[145].mxu0 }
 0x555   :  { %v11631_v13 = vpop.f32.mrb[138].mxu1  ;;  %v14764_v59 = vpop.f32.mrb[146].mxu0 }
 0x556   :  { %v4731_v29 = vpack.c.bf16 %v11631_v13, %v11630_v18  ;;  %v4606_v46 = vpop.f32.mrb[139].mxu1  ;;  %11052 = vmatpush3.bf16.msra.mxu0 %v12155_v38  ;;  %11076 = vmatpush3.bf16.msra.mxu1 %v12156_v1  ;;  %v4562_v50 = vpack.c.bf16 %v14764_v59, %v14760_v6  ;;  %v14768_v57 = vpop.f32.mrb[147].mxu0  ;;  %v12170_v38 = vld [vmem:[#allocation5 + $0x2c8] sm:$0xff]   ;;  %v12174_v1 = vld [vmem:[#allocation5 + $0x2d0] sm:$0xff]  }
 0x557   :  { %v4730_v22 = vpack.c.bf16 %v4606_v46, %v4603_v21  ;;  %11077 = vmatprep.subr.bf16.mxu1 %v12157_v61  ;;  %11093 = vmatprep.subr.bf16.mxu0 %v12158_v42  ;;  %v4561_v28 = vpack.c.bf16 %v14768_v57, %v14762_v14  ;;  %v12175_v21 = vld [vmem:[#allocation5 + $0x220] sm:$0xff]   ;;  %v12176_v13 = vld [vmem:[#allocation5 + $0x290] sm:$0xff]   ;;  %v12179_v59 = vld [vmem:[#allocation5 + $0x228] sm:$0xff]  }
 0x558   :  { %5817 = vmatprep.mubr.bf16.mxu0 %v4731_v29  ;;  %v12180_v29 = vld [vmem:[#allocation5 + $0x298] sm:$0xff]   ;;  %v12181_v46 = vld [vmem:[#allocation5 + $0x270] sm:$0xff]  }
 0x559   :  { %5818 = vmatmul.mubr.bf16.gmra.mrb[156].mxu0 %v4730_v22 }
 0x55a   :  { %5907 = vmatprep.mubr.bf16.mxu0 %v4558_v24  ;;  %11078 = vmatpush3.bf16.msra.mxu1 %v12159_v35  ;;  %v12162_v24 = vld [vmem:[#allocation5 + $0x248] sm:$0xff]   ;;  %v12182_v35 = vld [vmem:[#allocation5 + $0x2e0] sm:$0xff]  }
 0x55b   :  { %v11634_v26 = vpop.f32.mrb[140].mxu1  ;;  %11079 = vmatprep.subr.bf16.mxu1 %v12161_v55  ;;  %v14772_v48 = vpop.f32.mrb[148].mxu0 }
 0x55c   :  { %v4619_v31 = vpop.f32.mrb[141].mxu1  ;;  %v14774_v17 = vpop.f32.mrb[149].mxu0 }
 0x55d   :  { %v11635_v36 = vpop.f32.mrb[142].mxu1  ;;  %v14776_v60 = vpop.f32.mrb[150].mxu0 }
 0x55e   :  { %v4733_v10 = vpack.c.bf16 %v11635_v36, %v11634_v26  ;;  %v4622_v44 = vpop.f32.mrb[143].mxu1  ;;  %11080 = vmatpush3.bf16.msra.mxu1 %v12163_v33  ;;  %v4564_v32 = vpack.c.bf16 %v14776_v60, %v14772_v48  ;;  %v14780_v0 = vpop.f32.mrb[151].mxu0  ;;  %v12183_v33 = vld [vmem:[#allocation5 + $0x230] sm:$0xff]   ;;  %v12184_v26 = vld [vmem:[#allocation5 + $0x2a0] sm:$0xff]   ;;  %v12185_v36 = vld [vmem:[#allocation5 + $0x278] sm:$0xff]  }
 0x55f   :  { %v4732_v58 = vpack.c.bf16 %v4622_v44, %v4619_v31  ;;  %11121 = vmatprep.subr.bf16.mxu1 %v12166_v19  ;;  %v4563_v45 = vpack.c.bf16 %v14780_v0, %v14774_v17  ;;  %v12189_v48 = vld [vmem:[#allocation5 + $0x2f0] sm:$0xff]   ;;  %v12190_v60 = vld [vmem:[#allocation5 + $0x340] sm:$0xff]  }
 0x560   :  { %5866 = vmatprep.mubr.bf16.mxu1 %v4733_v10  ;;  %v12186_v10 = vld [vmem:[#allocation5 + $0x2e8] sm:$0xff]  }
 0x561   :  { %5867 = vmatmul.mubr.bf16.gmra.mrb[172].mxu1 %v4732_v58  ;;  %5908 = vmatmul.mubr.bf16.vlgmr.msra.gmra.mrb[160].mxu0 %v4557_v53  ;;  %v12188_v58 = vld [vmem:[#allocation5 + $0x2a8] sm:$0xff]  }
 0x562   :  { %11094 = vmatpush3.bf16.msra.mxu0 %v12160_v49  ;;  %5956 = vmatprep.mubr.bf16.mxu1 %v4560_v34  ;;  %v12173_v34 = vld [vmem:[#allocation5 + $0x260] sm:$0xff]   ;;  %v12187_v49 = vld [vmem:[#allocation5 + $0x238] sm:$0xff]  }
 0x563   :  { %v11638_v51 = vpop.f32.mrb[144].mxu1  ;;  %11095 = vmatprep.subr.bf16.mxu0 %v12162_v24 }
 0x564   :  { %v4635_v3 = vpop.f32.mrb[145].mxu1 }
 0x565   :  { %v11639_v37 = vpop.f32.mrb[146].mxu1 }
 0x566   :  { %v4735_v12 = vpack.c.bf16 %v11639_v37, %v11638_v51  ;;  %11096 = vmatpush3.bf16.msra.mxu0 %v12164_v16  ;;  %v4638_v2 = vpop.f32.mrb[147].mxu1  ;;  %v12191_v51 = vld [vmem:[#allocation5 + $0x2b0] sm:$0xff]  }
 0x567   :  { %v4734_v52 = vpack.c.bf16 %v4638_v2, %v4635_v3  ;;  %11097 = vmatprep.subr.bf16.mxu0 %v12165_v25  ;;  %v12192_v25 = vld [vmem:[#allocation5 + $0x300] sm:$0xff]   ;;  %v12194_v2 = vld [vmem:[#allocation5 + $0x348] sm:$0xff]  }
 0x568   :  { %5915 = vmatprep.mubr.bf16.mxu0 %v4735_v12  ;;  %v12193_v12 = vld [vmem:[#allocation5 + $0x2f8] sm:$0xff]  }
 0x569   :  { %5916 = vmatmul.mubr.bf16.gmra.mrb[164].mxu0 %v4734_v52  ;;  %5957 = vmatmul.mubr.bf16.vlgmr.msra.gmra.mrb[176].mxu1 %v4559_v54  ;;  %v12178_v54 = vld [vmem:[#allocation5 + $0x2d8] sm:$0xff]   ;;  %v12196_v52 = vld [vmem:[#allocation5 + $0x308] sm:$0xff]  }
 0x56a   :  { %11098 = vmatpush3.bf16.msra.mxu0 %v12167_v11  ;;  %11122 = vmatpush3.bf16.msra.mxu1 %v12168_v56  ;;  %v12195_v56 = vld [vmem:[#allocation5 + $0x2b8] sm:$0xff]  }
 0x56b   :  { %v11642_v53 = vpop.f32.mrb[148].mxu1  ;;  %11099 = vmatprep.subr.bf16.mxu0 %v12169_v20  ;;  %11123 = vmatprep.subr.bf16.mxu1 %v12170_v38  ;;  %v12197_v20 = vld [vmem:[#allocation5 + $0x350] sm:$0xff]   ;;  %v12198_v38 = vld [vmem:[#allocation5 + $0x3c0] sm:$0xff]  }
 0x56c   :  { %v4651_v18 = vpop.f32.mrb[149].mxu1  ;;  %6005 = vmatprep.mubr.bf16.mxu0 %v4562_v50 }
 0x56d   :  { %v11643_v61 = vpop.f32.mrb[150].mxu1 }
 0x56e   :  { %v4737_v42 = vpack.c.bf16 %v11643_v61, %v11642_v53  ;;  %11100 = vmatpush3.bf16.msra.mxu0 %v12171_v30  ;;  %11124 = vmatpush3.bf16.msra.mxu1 %v12172_v15  ;;  %v4654_v6 = vpop.f32.mrb[151].mxu1  ;;  %v12202_v61 = vld [vmem:[#allocation5 + $0x3c8] sm:$0xff]  }
 0x56f   :  { %v4736_v23 = vpack.c.bf16 %v4654_v6, %v4651_v18  ;;  %11101 = vmatprep.subr.bf16.mxu0 %v12173_v34  ;;  %11125 = vmatprep.subr.bf16.mxu1 %v12174_v1  ;;  %v12199_v34 = vld [vmem:[#allocation5 + $0x310] sm:$0xff]   ;;  %v12201_v1 = vld [vmem:[#allocation5 + $0x358] sm:$0xff]   ;;  %v12204_v6 = vld [vmem:[#allocation5 + $0x388] sm:$0xff]  }
 0x570   :  { %5964 = vmatprep.mubr.bf16.mxu1 %v4737_v42  ;;  %v12203_v42 = vld [vmem:[#allocation5 + $0x318] sm:$0xff]  }
 0x571   :  { %5965 = vmatmul.mubr.bf16.gmra.mrb[180].mxu1 %v4736_v23  ;;  %v12206_v23 = vld [vmem:[#allocation5 + $0x3d0] sm:$0xff]  }
 0x572   :  { %11102 = vmatpush3.bf16.msra.mxu0 %v12175_v21  ;;  %11126 = vmatpush3.bf16.msra.mxu1 %v12176_v13  ;;  %v12205_v21 = vld [vmem:[#allocation5 + $0x360] sm:$0xff]  }
 0x573   :  { %11103 = vmatprep.subr.bf16.mxu0 %v12177_v43  ;;  %11127 = vmatprep.subr.bf16.mxu1 %v12178_v54  ;;  %v11646_v50 = vpop.f32.mrb[152].mxu1 }
 0x574   :  { %v4667_v22 = vpop.f32.mrb[153].mxu1  ;;  %6054 = vmatprep.mubr.bf16.mxu1 %v4564_v32 }
 0x575   :  { %v11647_v55 = vpop.f32.mrb[154].mxu1 }
 0x576   :  { %11104 = vmatpush3.bf16.msra.mxu0 %v12179_v59  ;;  %11128 = vmatpush3.bf16.msra.mxu1 %v12180_v29  ;;  %v4739_v19 = vpack.c.bf16 %v11647_v55, %v11646_v50  ;;  %v4670_v31 = vpop.f32.mrb[155].mxu1  ;;  %v12207_v59 = vld [vmem:[#allocation5 + $0x320] sm:$0xff]   ;;  %v12211_v29 = vld [vmem:[#allocation5 + $0x328] sm:$0xff]  }
 0x577   :  { %11105 = vmatprep.subr.bf16.mxu0 %v12181_v46  ;;  %11129 = vmatprep.subr.bf16.mxu1 %v12182_v35  ;;  %v4738_v44 = vpack.c.bf16 %v4670_v31, %v4667_v22  ;;  %v12212_v46 = vld [vmem:[#allocation5 + $0x398] sm:$0xff]   ;;  %v12213_v35 = vld [vmem:[#allocation5 + $0x370] sm:$0xff]   ;;  %v12214_v50 = vld [vmem:[#allocation5 + $0x3e0] sm:$0xff]  }
 0x578   :  { %v12215_v22 = vld [vmem:[#allocation5 + $0x330] sm:$0xff]   ;;  %v12216_v55 = vld [vmem:[#allocation5 + $0x3a0] sm:$0xff]   ;;  %v12223_v31 = vld [vmem:[#allocation5 + $0x3f8] sm:$0xff]  }
 0x57a   :  { %11106 = vmatpush3.bf16.msra.mxu0 %v12183_v33  ;;  %11130 = vmatpush3.bf16.msra.mxu1 %v12184_v26  ;;  %v12217_v33 = vld [vmem:[#allocation5 + $0x378] sm:$0xff]   ;;  %v12218_v26 = vld [vmem:[#allocation5 + $0x3e8] sm:$0xff]  }
 0x57b   :  { %11107 = vmatprep.subr.bf16.mxu0 %v12185_v36  ;;  %11131 = vmatprep.subr.bf16.mxu1 %v12186_v10  ;;  %v11650_v32 = vpop.f32.mrb[156].mxu1  ;;  %v12224_v36 = vld [vmem:[#allocation5 + $0x3b8] sm:$0xff]  }
 0x57c   :  { %v14793_v24 = vpop.f32.mrb[157].mxu1 }
 0x57d   :  { %v11651_v16 = vpop.f32.mrb[158].mxu1 }
 0x57e   :  { %11108 = vmatpush3.bf16.msra.mxu0 %v12187_v49  ;;  %11132 = vmatpush3.bf16.msra.mxu1 %v12188_v58  ;;  %v4741_v3 = vpack.c.bf16 %v11651_v16, %v11650_v32  ;;  %v4686_v37 = vpop.f32.mrb[159].mxu1  ;;  %v10010_v58 = vld [vmem:[%s15096_s6] ss:$0 sm:$0xff] }
 0x57f   :  { %11133 = vmatprep.subr.bf16.mxu1 %v12189_v48  ;;  %11149 = vmatprep.subr.bf16.mxu0 %v12190_v60  ;;  %v4740_v11 = vpack.c.bf16 %v4686_v37, %v14793_v24 }
 0x581   :  { %6006 = vmatmul.mubr.bf16.vlgmr.msra.gmra.mrb[168].mxu0 %v4561_v28  ;;  %v12200_v28 = vld [vmem:[#allocation5 + $0x380] sm:$0xff]  }
 0x582   :  { %11134 = vmatpush3.bf16.msra.mxu1 %v12191_v51  ;;  %11150 = vmatpush3.bf16.msra.mxu0 %v12192_v25 }
 0x583   :  { %11135 = vmatprep.subr.bf16.mxu1 %v12193_v12  ;;  %11151 = vmatprep.subr.bf16.mxu0 %v12194_v2  ;;  %v14799_v30 = vpop.f32.mrb[160].mxu1 }
 0x584   :  { %6013 = vmatprep.mubr.bf16.mxu0 %v4739_v19  ;;  %v14801_v15 = vpop.f32.mrb[161].mxu1  ;;  %v12219_v19 = vld [vmem:[#allocation5 + $0x338] sm:$0xff]  }
 0x585   :  { %v14803_v53 = vpop.f32.mrb[162].mxu1 }
 0x586   :  { %11136 = vmatpush3.bf16.msra.mxu1 %v12195_v56  ;;  %11152 = vmatpush3.bf16.msra.mxu0 %v12196_v52  ;;  %v4743_v14 = vpack.c.bf16 %v14803_v53, %v14799_v30  ;;  %v14807_v57 = vpop.f32.mrb[163].mxu1 }
 0x587   :  { %11153 = vmatprep.subr.bf16.mxu0 %v12197_v20  ;;  %11177 = vmatprep.subr.bf16.mxu1 %v12198_v38  ;;  %v4742_v18 = vpack.c.bf16 %v14807_v57, %v14801_v15 }
 0x589   :  { %6014 = vmatmul.mubr.bf16.gmra.mrb[172].mxu0 %v4738_v44  ;;  %6055 = vmatmul.mubr.bf16.vlgmr.msra.gmra.mrb[184].mxu1 %v4563_v45  ;;  %v12208_v45 = vld [vmem:[#allocation5 + $0x390] sm:$0xff]  }
 0x58a   :  { %11154 = vmatpush3.bf16.msra.mxu0 %v12199_v34  ;;  %6103 = vmatprep.mubr.bf16.mxu0 %v4566_v62  ;;  %v12210_v62 = vld [vmem:[#allocation5 + $0x3d8] sm:$0xff]  }
 0x58b   :  { %11178 = vmatpush3.bf16.msra.mxu1 %v12200_v28  ;;  %11155 = vmatprep.subr.bf16.mxu0 %v12201_v1  ;;  %v11658_v13 = vpop.f32.mrb[164].mxu1 }
 0x58c   :  { %11179 = vmatprep.subr.bf16.mxu1 %v12202_v61  ;;  %6062 = vmatprep.mubr.bf16.mxu1 %v4741_v3  ;;  %v4715_v43 = vpop.f32.mrb[165].mxu1 }
 0x58d   :  { %v11659_v54 = vpop.f32.mrb[166].mxu1 }
 0x58e   :  { %11156 = vmatpush3.bf16.msra.mxu0 %v12203_v42  ;;  %v4745_v17 = vpack.c.bf16 %v11659_v54, %v11658_v13  ;;  %v4718_v0 = vpop.f32.mrb[167].mxu1 }
 0x58f   :  { %11180 = vmatpush3.bf16.msra.mxu1 %v12204_v6  ;;  %11157 = vmatprep.subr.bf16.mxu0 %v12205_v21  ;;  %v4744_v7 = vpack.c.bf16 %v4718_v0, %v4715_v43 }
 0x590   :  { %11181 = vmatprep.subr.bf16.mxu1 %v12206_v23 }
 0x591   :  { %6063 = vmatmul.mubr.bf16.gmra.mrb[188].mxu1 %v4740_v11 }
 0x592   :  { %11158 = vmatpush3.bf16.msra.mxu0 %v12207_v59  ;;  %6152 = vmatprep.mubr.bf16.mxu1 %v4568_v63  ;;  %v12222_v63 = vld [vmem:[#allocation5 + $0x3b0] sm:$0xff]  }
 0x593   :  { %11182 = vmatpush3.bf16.msra.mxu1 %v12208_v45  ;;  %11159 = vmatprep.subr.bf16.mxu0 %v12209_v40 }
 0x594   :  { %11183 = vmatprep.subr.bf16.mxu1 %v12210_v62 }
 0x596   :  { %11160 = vmatpush3.bf16.msra.mxu0 %v12211_v29 }
 0x597   :  { %11184 = vmatpush3.bf16.msra.mxu1 %v12212_v46  ;;  %11161 = vmatprep.subr.bf16.mxu0 %v12213_v35  ;;  %v12225_v46 = vld [vmem:[%s15099_s9] sm:$0xff]  }
 0x598   :  { %11185 = vmatprep.subr.bf16.mxu1 %v12214_v50 }
 0x59a   :  { %11162 = vmatpush3.bf16.msra.mxu0 %v12215_v22 }
 0x59b   :  { %11186 = vmatpush3.bf16.msra.mxu1 %v12216_v55  ;;  %11163 = vmatprep.subr.bf16.mxu0 %v12217_v33 }
 0x59c   :  { %11187 = vmatprep.subr.bf16.mxu1 %v12218_v26 }
 0x59e   :  { %11164 = vmatpush3.bf16.msra.mxu0 %v12219_v19 }
 0x59f   :  { %11188 = vmatpush3.bf16.msra.mxu1 %v12220_v5 }
 0x5a0   :  { %11189 = vmatprep.subr.bf16.mxu1 %v12221_v47 }
 0x5a1   :  { %6104 = vmatmul.mubr.bf16.vlgmr.msra.gmra.mrb[176].mxu0 %v4565_v41 }
 0x5a2   :  { %6111 = vmatprep.mubr.bf16.mxu0 %v4743_v14 }
 0x5a3   :  { %11190 = vmatpush3.bf16.msra.mxu1 %v12222_v63 }
 0x5a4   :  { %11191 = vmatprep.subr.bf16.mxu1 %v12223_v31 }
 0x5a7   :  { %11192 = vmatpush3.bf16.msra.mxu1 %v12224_v36 }
 0x5a9   :  { %6112 = vmatmul.mubr.bf16.gmra.mrb[180].mxu0 %v4742_v18 }
 0x5aa   :  { %6153 = vmatmul.mubr.bf16.vlgmr.msra.gmra.mrb[192].mxu1 %v4567_v8  ;;  %11662 = vmatprep.mubr.msk.bf16.mxu0 %vm6264_vm0, %v12225_v46 }
 0x5ab   :  { %6160 = vmatprep.mubr.bf16.mxu1 %v4745_v17 }
 0x5b2   :  { %6161 = vmatmul.mubr.bf16.gmra.mrb[196].mxu1 %v4744_v7 }
 0x5b3   :  { %11672 = vmatprep.mubr.msk.bf16.mxu1 %vm6264_vm0, %v12225_v46 }
 0x60c   :  { %v10997_v4 = vpop.f32.mrb[152].mxu0 }
 0x60d   :  { %v10998_v27 = vpop.f32.mrb[153].mxu0 }
 0x60e   :  { %v10999_v41 = vadd.f32 %v10998_v27, %v10997_v4  ;;  %v11000_v10 = vpop.f32.mrb[154].mxu0 }
 0x60f   :  { %v11001_v44 = vpop.f32.mrb[155].mxu0 }
 0x610   :  { %v11002_v49 = vadd.f32 %v11001_v44, %v11000_v10  ;;  %v5812_v32 = vadd.f32 %v10999_v41, %v10010_v58 }
 0x612   :  { %v5815_v39 = vadd.f32 %v11002_v49, %v10010_v58 }
 0x614   :  { %v11025_v48 = vpop.f32.mrb[168].mxu1 }
 0x615   :  { %v11026_v60 = vpop.f32.mrb[169].mxu1 }
 0x616   :  { %v11027_v24 = vadd.f32 %v11026_v60, %v11025_v48  ;;  %v11028_v16 = vpop.f32.mrb[170].mxu1 }
 0x617   :  { %v11029_v51 = vpop.f32.mrb[171].mxu1 }
 0x618   :  { %v5861_v9 = vadd.f32 %v11027_v24, %v5812_v32  ;;  %v11030_v8 = vadd.f32 %v11029_v51, %v11028_v16 }
 0x61a   :  { %v5864_v25 = vadd.f32 %v11030_v8, %v5815_v39 }
 0x62c   :  { %v11003_v3 = vpop.f32.mrb[156].mxu0 }
 0x62d   :  { %v11004_v37 = vpop.f32.mrb[157].mxu0 }
 0x62e   :  { %v11005_v12 = vadd.f32 %v11004_v37, %v11003_v3  ;;  %v11006_v2 = vpop.f32.mrb[158].mxu0 }
 0x62f   :  { %v11007_v11 = vpop.f32.mrb[159].mxu0 }
 0x630   :  { %v11008_v56 = vadd.f32 %v11007_v11, %v11006_v2  ;;  %v5820_v15 = vadd.f32 %v11005_v12, %v10010_v58 }
 0x632   :  { %v5823_v28 = vadd.f32 %v11008_v56, %v10010_v58 }
 0x634   :  { %v11053_v52 = vpop.f32.mrb[160].mxu0  ;;  %v11031_v20 = vpop.f32.mrb[172].mxu1 }
 0x635   :  { %v11054_v38 = vpop.f32.mrb[161].mxu0  ;;  %v11032_v30 = vpop.f32.mrb[173].mxu1 }
 0x636   :  { %v11055_v53 = vadd.f32 %v11054_v38, %v11053_v52  ;;  %v11056_v34 = vpop.f32.mrb[162].mxu0  ;;  %v11033_v14 = vadd.f32 %v11032_v30, %v11031_v20  ;;  %v11034_v57 = vpop.f32.mrb[174].mxu1 }
 0x637   :  { %v11057_v1 = vpop.f32.mrb[163].mxu0  ;;  %v11035_v18 = vpop.f32.mrb[175].mxu1 }
 0x638   :  { %v5910_v61 = vadd.f32 %v11055_v53, %v5861_v9  ;;  %v11058_v42 = vadd.f32 %v11057_v1, %v11056_v34  ;;  %v5869_v6 = vadd.f32 %v11033_v14, %v5820_v15  ;;  %v11036_v21 = vadd.f32 %v11035_v18, %v11034_v57 }
 0x63a   :  { %v5913_v13 = vadd.f32 %v11058_v42, %v5864_v25  ;;  %v5872_v23 = vadd.f32 %v11036_v21, %v5823_v28 }
 0x63c   :  { %v11059_v43 = vpop.f32.mrb[164].mxu0  ;;  %v11081_v54 = vpop.f32.mrb[176].mxu1 }
 0x63d   :  { %v11060_v59 = vpop.f32.mrb[165].mxu0  ;;  %v11082_v17 = vpop.f32.mrb[177].mxu1 }
 0x63e   :  { %v11061_v0 = vadd.f32 %v11060_v59, %v11059_v43  ;;  %v11083_v45 = vadd.f32 %v11082_v17, %v11081_v54  ;;  %v11062_v40 = vpop.f32.mrb[166].mxu0  ;;  %v11084_v7 = vpop.f32.mrb[178].mxu1 }
 0x63f   :  { %v11063_v62 = vpop.f32.mrb[167].mxu0  ;;  %v11085_v29 = vpop.f32.mrb[179].mxu1 }
 0x640   :  { %v5918_v35 = vadd.f32 %v11061_v0, %v5869_v6  ;;  %v5959_v50 = vadd.f32 %v11083_v45, %v5910_v61  ;;  %v11064_v22 = vadd.f32 %v11063_v62, %v11062_v40  ;;  %v11086_v55 = vadd.f32 %v11085_v29, %v11084_v7 }
 0x642   :  { %v5921_v33 = vadd.f32 %v11064_v22, %v5872_v23  ;;  %v5962_v26 = vadd.f32 %v11086_v55, %v5913_v13 }
 0x644   :  { %v11087_v19 = vpop.f32.mrb[180].mxu1 }
 0x645   :  { %v11088_v5 = vpop.f32.mrb[181].mxu1 }
 0x646   :  { %v11089_v47 = vadd.f32 %v11088_v5, %v11087_v19  ;;  %v11090_v63 = vpop.f32.mrb[182].mxu1 }
 0x647   :  { %v11091_v31 = vpop.f32.mrb[183].mxu1 }
 0x648   :  { %v5967_v36 = vadd.f32 %v11089_v47, %v5918_v35  ;;  %v11092_v4 = vadd.f32 %v11091_v31, %v11090_v63 }
 0x64a   :  { %v5970_v27 = vadd.f32 %v11092_v4, %v5921_v33 }
 0x654   :  { %v11109_v41 = vpop.f32.mrb[168].mxu0 }
 0x655   :  { %v11110_v10 = vpop.f32.mrb[169].mxu0 }
 0x656   :  { %v11111_v44 = vadd.f32 %v11110_v10, %v11109_v41  ;;  %v11112_v49 = vpop.f32.mrb[170].mxu0 }
 0x657   :  { %v11113_v58 = vpop.f32.mrb[171].mxu0 }
 0x658   :  { %v6008_v48 = vadd.f32 %v11111_v44, %v5959_v50  ;;  %v11114_v60 = vadd.f32 %v11113_v58, %v11112_v49 }
 0x65a   :  { %v6011_v32 = vadd.f32 %v11114_v60, %v5962_v26 }
 0x65c   :  { %v11115_v24 = vpop.f32.mrb[172].mxu0  ;;  %v11137_v16 = vpop.f32.mrb[184].mxu1 }
 0x65d   :  { %v11116_v51 = vpop.f32.mrb[173].mxu0  ;;  %v11138_v39 = vpop.f32.mrb[185].mxu1 }
 0x65e   :  { %v11117_v9 = vadd.f32 %v11116_v51, %v11115_v24  ;;  %v11139_v8 = vadd.f32 %v11138_v39, %v11137_v16  ;;  %v11118_v25 = vpop.f32.mrb[174].mxu0  ;;  %v11140_v3 = vpop.f32.mrb[186].mxu1 }
 0x65f   :  { %v11119_v37 = vpop.f32.mrb[175].mxu0  ;;  %v11141_v12 = vpop.f32.mrb[187].mxu1 }
 0x660   :  { %v6016_v2 = vadd.f32 %v11117_v9, %v5967_v36  ;;  %v6057_v11 = vadd.f32 %v11139_v8, %v6008_v48  ;;  %v11120_v56 = vadd.f32 %v11119_v37, %v11118_v25  ;;  %v11142_v52 = vadd.f32 %v11141_v12, %v11140_v3 }
 0x662   :  { %v6019_v20 = vadd.f32 %v11120_v56, %v5970_v27  ;;  %v6060_v38 = vadd.f32 %v11142_v52, %v6011_v32 }
 0x664   :  { %v11143_v30 = vpop.f32.mrb[188].mxu1 }
 0x665   :  { %v11144_v15 = vpop.f32.mrb[189].mxu1 }
 0x666   :  { %v11145_v53 = vadd.f32 %v11144_v15, %v11143_v30  ;;  %v11146_v34 = vpop.f32.mrb[190].mxu1 }
 0x667   :  { %v11147_v14 = vpop.f32.mrb[191].mxu1 }
 0x668   :  { %v6065_v57 = vadd.f32 %v11145_v53, %v6016_v2  ;;  %v11148_v28 = vadd.f32 %v11147_v14, %v11146_v34  ;;  %v6203_v34 = vlaneseq }
 0x66a   :  { %v6068_v1 = vadd.f32 %v11148_v28, %v6019_v20  ;;  %v6204_v14 = vshrl.u32 %v6203_v34, 7  ;;  %v12261_v34 = vld [vmem:[#allocation7 + $0x140] sm:$0xff]  }
 0x66c   :  { %v14843_v28 = vsub.s32 0, %v6204_v14  ;;  %v12263_v14 = vld [vmem:[#allocation7 + $0x1c0] sm:$0xff]  }
 0x674   :  { %v11165_v18 = vpop.f32.mrb[176].mxu0 }
 0x675   :  { %v11166_v61 = vpop.f32.mrb[177].mxu0 }
 0x676   :  { %v11167_v42 = vadd.f32 %v11166_v61, %v11165_v18  ;;  %v11168_v6 = vpop.f32.mrb[178].mxu0  ;;  %v6199_v61 = vld [vmem:[%s15098_s8] sm:$0x1] }
 0x677   :  { %v11169_v21 = vpop.f32.mrb[179].mxu0 }
 0x678   :  { %v6106_v13 = vadd.f32 %v11167_v42, %v6057_v11  ;;  %v11170_v23 = vadd.f32 %v11169_v21, %v11168_v6 }
 0x67a   :  { %v6109_v43 = vadd.f32 %v11170_v23, %v6060_v38 }
 0x67c   :  { %v11171_v54 = vpop.f32.mrb[180].mxu0 }
 0x67d   :  { %v11193_v59 = vpop.f32.mrb[192].mxu1  ;;  %v11172_v17 = vpop.f32.mrb[181].mxu0 }
 0x67e   :  { %v11173_v0 = vadd.f32 %v11172_v17, %v11171_v54  ;;  %v11194_v45 = vpop.f32.mrb[193].mxu1  ;;  %v11174_v40 = vpop.f32.mrb[182].mxu0 }
 0x67f   :  { %v11195_v7 = vadd.f32 %v11194_v45, %v11193_v59  ;;  %v11196_v62 = vpop.f32.mrb[194].mxu1  ;;  %v11175_v29 = vpop.f32.mrb[183].mxu0 }
 0x680   :  { %v6114_v46 = vadd.f32 %v11173_v0, %v6065_v57  ;;  %v11176_v35 = vadd.f32 %v11175_v29, %v11174_v40  ;;  %v11197_v50 = vpop.f32.mrb[195].mxu1  ;;  %v6195_v57 = vld [vmem:[%s15097_s7] sm:$0x1] }
 0x681   :  { %v6155_v22 = vadd.f32 %v11195_v7, %v6106_v13  ;;  %v11198_v55 = vadd.f32 %v11197_v50, %v11196_v62 }
 0x682   :  { %v6117_v33 = vadd.f32 %v11176_v35, %v6068_v1 }
 0x683   :  { %v6158_v26 = vadd.f32 %v11198_v55, %v6109_v43  ;;  %v6179_v19 = vmul.f32 %v6155_v22, %v6155_v22 }
 0x685   :  { %v6169_v5 = vadd.f32 %v6158_v26, %v6155_v22  ;;  %v6180_v47 = vmul.f32 %v6158_v26, %v6158_v26  ;;  %v11199_v63 = vpop.f32.mrb[196].mxu1 }
 0x686   :  { %v11200_v31 = vpop.f32.mrb[197].mxu1 }
 0x687   :  { %v6183_v36 = vadd.f32 %v6180_v47, %v6179_v19  ;;  %v11201_v4 = vadd.f32 %v11200_v31, %v11199_v63  ;;  %v11202_v27 = vpop.f32.mrb[198].mxu1  ;;  %v12226_v47 = vld [vmem:[%s15099_s9 + $0x8] sm:$0xff]   ;;  %v12227_v63 = vld [vmem:[%s15099_s9 + $0x10] sm:$0xff]  }
 0x688   :  { %v11203_v41 = vpop.f32.mrb[199].mxu1  ;;  %v12230_v31 = vld [vmem:[#allocation7] sm:$0xff]  }
 0x689   :  { %v6163_v10 = vadd.f32 %v11201_v4, %v6114_v46  ;;  %v11204_v44 = vadd.f32 %v11203_v41, %v11202_v27  ;;  %v12233_v4 = vld [vmem:[#allocation7 + $0x48] sm:$0xff]  }
 0x68a   :  { %v12235_v27 = vld [vmem:[#allocation7 + $0xc8] sm:$0xff]  }
 0x68b   :  { %v6170_v49 = vadd.f32 %v6169_v5, %v6163_v10  ;;  %v6181_v58 = vmul.f32 %v6163_v10, %v6163_v10  ;;  %v6166_v48 = vadd.f32 %v11204_v44, %v6117_v33  ;;  %v12231_v5 = vld [vmem:[#allocation7 + $0xc0] sm:$0xff]   ;;  %v12234_v41 = vld [vmem:[#allocation7 + $0x8] sm:$0xff]   ;;  %v12237_v44 = vld [vmem:[#allocation7 + $0x50] sm:$0xff]  }
 0x68d   :  { %v6184_v60 = vadd.f32 %v6183_v36, %v6181_v58  ;;  %v6171_v32 = vadd.f32 %v6170_v49, %v6166_v48  ;;  %v6182_v24 = vmul.f32 %v6166_v48, %v6166_v48  ;;  %v12232_v36 = vld [vmem:[#allocation7 + $0x80] sm:$0xff]   ;;  %v12228_v49 = vld [vmem:[%s15099_s9 + $0x18] sm:$0xff]  }
 0x68e   :  { %v12239_v58 = vld [vmem:[#allocation7 + $0xd0] sm:$0xff]  }
 0x68f   :  { %v6172_v16 = vrot.slane %v6171_v32, 4  ;;  %v6185_v51 = vadd.f32 %v6184_v60, %v6182_v24  ;;  %v12240_v60 = vld [vmem:[#allocation7 + $0x90] sm:$0xff]   ;;  %v12243_v24 = vld [vmem:[#allocation7 + $0xd8] sm:$0xff]  }
 0x691   :  { %v6173_v39 = vadd.f32 %v6172_v16, %v6171_v32  ;;  %v6186_v9 = vrot.slane %v6185_v51, 4  ;;  %v12241_v32 = vld [vmem:[#allocation7 + $0x58] sm:$0xff]  }
 0x692   :  { %v12242_v16 = vld [vmem:[#allocation7 + $0x18] sm:$0xff]  }
 0x693   :  { %v6174_v8 = vrot.slane %v6173_v39, 2  ;;  %v6187_v25 = vadd.f32 %v6186_v9, %v6185_v51  ;;  %v12244_v51 = vld [vmem:[#allocation7 + $0x98] sm:$0xff]   ;;  %v12247_v9 = vld [vmem:[#allocation7 + $0xe0] sm:$0xff]  }
 0x695   :  { %v6175_v3 = vadd.f32 %v6174_v8, %v6173_v39  ;;  %v6188_v37 = vrot.slane %v6187_v25, 2  ;;  %v12245_v39 = vld [vmem:[#allocation7 + $0x60] sm:$0xff]  }
 0x696   :  { %v12246_v8 = vld [vmem:[#allocation7 + $0x20] sm:$0xff]  }
 0x697   :  { %v6176_v12 = vrot.slane %v6175_v3, 1  ;;  %v6189_v2 = vadd.f32 %v6188_v37, %v6187_v25  ;;  %v12248_v25 = vld [vmem:[#allocation7 + $0xa0] sm:$0xff]   ;;  %v12251_v37 = vld [vmem:[#allocation7 + $0xe8] sm:$0xff]  }
 0x699   :  { %v6177_v11 = vadd.f32 %v6176_v12, %v6175_v3  ;;  %v6190_v56 = vrot.slane %v6189_v2, 1  ;;  %v12249_v3 = vld [vmem:[#allocation7 + $0x68] sm:$0xff]  }
 0x69a   :  { %v12250_v12 = vld [vmem:[#allocation7 + $0x28] sm:$0xff]  }
 0x69b   :  { %v6178_v52 = vmul.f32 0.03125, %v6177_v11  ;;  %v6191_v20 = vadd.f32 %v6190_v56, %v6189_v2  ;;  %v12252_v2 = vld [vmem:[#allocation7 + $0xa8] sm:$0xff]   ;;  %v12253_v11 = vld [vmem:[#allocation7 + $0x70] sm:$0xff]  }
 0x69c   :  { %v12254_v56 = vld [vmem:[#allocation7 + $0x30] sm:$0xff]  }
 0x69d   :  { %v6192_v38 = vmul.f32 0.03125, %v6191_v20  ;;  %v6193_v30 = vmul.f32 %v6178_v52, %v6178_v52  ;;  %v12256_v20 = vld [vmem:[#allocation7 + $0xb0] sm:$0xff]  }
 0x69f   :  { %v6194_v15 = vsub.f32 %v6192_v38, %v6193_v30  ;;  %v12257_v38 = vld [vmem:[#allocation7 + $0x78] sm:$0xff]  }
 0x6a0   :  { %v12258_v30 = vld [vmem:[#allocation7 + $0x38] sm:$0xff]  }
 0x6a1   :  { %v6196_v53 = vadd.f32 1e-05, %v6194_v15  ;;  %v12259_v15 = vld [vmem:[#allocation7 + $0xf8] sm:$0xff]  }
 0x6a3   :  { %12494 = vrsqrt.f32 %v6196_v53  ;;  %v12260_v53 = vld [vmem:[#allocation7 + $0xb8] sm:$0xff]  }
 0x6ad   :  { %v12495_v1 = vpop.eup %12494 }
 0x6ae   :  { %v6198_v18 = vmul.f32 %v12495_v1, %v6195_v57 }
 0x6b0   :  { %v6200_v42 = vmul.f32 %v6198_v18, %v6178_v52  ;;  %v6206_v6 = vrot.slane %v6198_v18, %v14843_v28  ;;  %v12255_v52 = vld [vmem:[#allocation7 + $0xf0] sm:$0xff]  }
 0x6b2   :  { %v6201_v21 = vsub.f32 %v6199_v61, %v6200_v42  ;;  %v6211_v13 = vmul.f32 %v6206_v6, %v6166_v48  ;;  %v6208_v23 = vmul.f32 %v6206_v6, %v6155_v22  ;;  %v6209_v43 = vmul.f32 %v6206_v6, %v6158_v26  ;;  %v12229_v26 = vld [vmem:[#allocation7 + $0x40] sm:$0xff]   ;;  %v12238_v48 = vld [vmem:[#allocation7 + $0x10] sm:$0xff]  }
 0x6b3   :  { %v6210_v54 = vmul.f32 %v6206_v6, %v6163_v10  ;;  %v12236_v10 = vld [vmem:[#allocation7 + $0x88] sm:$0xff]  }
 0x6b4   :  { %v6216_v59 = vrot.slane %v6201_v21, %v14843_v28 }
 0x6b6   :  { %v6221_v17 = vadd.f32 %v6216_v59, %v6211_v13  ;;  %v6218_v0 = vadd.f32 %v6216_v59, %v6208_v23  ;;  %v6219_v45 = vadd.f32 %v6216_v59, %v6209_v43  ;;  %v6220_v40 = vadd.f32 %v6216_v59, %v6210_v54 }
 0x6b8   :  { %vm6222_vm2 = vcmp.gt.f32.partialorder %v6218_v0, 0.0  ;;  %vm6223_vm3 = vcmp.gt.f32.partialorder %v6219_v45, 0.0  ;;  %v6226_v7 = vmul.f32 0.2, %v6218_v0  ;;  %v6227_v62 = vmul.f32 0.2, %v6219_v45 }
 0x6b9   :  { %vm6224_vm4 = vcmp.gt.f32.partialorder %v6220_v40, 0.0  ;;  %vm6225_vm5 = vcmp.gt.f32.partialorder %v6221_v17, 0.0  ;;  %v6228_v29 = vmul.f32 0.2, %v6220_v40  ;;  %v6229_v46 = vmul.f32 0.2, %v6221_v17 }
 0x6ba   :  { %v6230_v35 = vsel %vm6222_vm2, %v6218_v0, %v6226_v7  ;;  %v6231_v50 = vsel %vm6223_vm3, %v6219_v45, %v6227_v62 }
 0x6bb   :  { %v6242_v55 = vpack.c.bf16 %v6231_v50, %v6230_v35  ;;  %v6232_v22 = vsel %vm6224_vm4, %v6220_v40, %v6228_v29  ;;  %v6233_v33 = vsel %vm6225_vm5, %v6221_v17, %v6229_v46  ;;  %v12262_v35 = vld [vmem:[#allocation7 + $0x100] sm:$0xff]  }
 0x6bc   :  { %v6243_v19 = vpack.c.bf16 %v6233_v33, %v6232_v22 }
 0x6bd   :  { %11660 = vmatprep.subr.bf16.mxu0 %v6242_v55 }
 0x6be   :  { %11670 = vmatprep.subr.bf16.mxu1 %v6243_v19  ;;  %11661 = vmatpush3.bf16.msra.mxu0 %v6242_v55 }
 0x6bf   :  { %11671 = vmatpush3.bf16.msra.mxu1 %v6243_v19  ;;  %11215 = vmatprep.subr.bf16.mxu0 %v12229_v26  ;;  %v12265_v19 = vld [vmem:[#allocation7 + $0x148] sm:$0xff]  }
 0x6c0   :  { %11237 = vmatprep.subr.bf16.mxu1 %v12231_v5 }
 0x6c1   :  { %11663 = vmatmul.mubr.msk.bf16.vlgmr.msra.gmra.mrb[184].mxu0 %vm6264_vm0, %v12226_v47 }
 0x6c2   :  { %11673 = vmatmul.mubr.msk.bf16.vlgmr.msra.gmra.mrb[200].mxu1 %vm6264_vm0, %v12226_v47  ;;  %11666 = vmatprep.mubr.msk.bf16.mxu0 %vm6264_vm0, %v12227_v63 }
 0x6c3   :  { %11676 = vmatprep.mubr.msk.bf16.mxu1 %vm6264_vm0, %v12227_v63  ;;  %11216 = vmatpush3.bf16.msra.mxu0 %v12230_v31 }
 0x6c4   :  { %11238 = vmatpush3.bf16.msra.mxu1 %v12232_v36  ;;  %11217 = vmatprep.subr.bf16.mxu0 %v12233_v4 }
 0x6c5   :  { %11239 = vmatprep.subr.bf16.mxu1 %v12235_v27 }
 0x6c7   :  { %11218 = vmatpush3.bf16.msra.mxu0 %v12234_v41 }
 0x6c8   :  { %11240 = vmatpush3.bf16.msra.mxu1 %v12236_v10  ;;  %11219 = vmatprep.subr.bf16.mxu0 %v12237_v44  ;;  %v12264_v10 = vld [vmem:[#allocation7 + $0x180] sm:$0xff]  }
 0x6c9   :  { %11667 = vmatmul.mubr.msk.bf16.gmra.mrb[188].mxu0 %vm6264_vm0, %v12228_v49  ;;  %11241 = vmatprep.subr.bf16.mxu1 %v12239_v58 }
 0x6ca   :  { %11677 = vmatmul.mubr.msk.bf16.gmra.mrb[204].mxu1 %vm6264_vm0, %v12228_v49 }
 0x6cb   :  { %11220 = vmatpush3.bf16.msra.mxu0 %v12238_v48 }
 0x6cc   :  { %11242 = vmatpush3.bf16.msra.mxu1 %v12240_v60  ;;  %11221 = vmatprep.subr.bf16.mxu0 %v12241_v32  ;;  %v12266_v60 = vld [vmem:[#allocation7 + $0x108] sm:$0xff]  }
 0x6cd   :  { %11243 = vmatprep.subr.bf16.mxu1 %v12243_v24  ;;  %v12267_v32 = vld [vmem:[#allocation7 + $0x1c8] sm:$0xff]  }
 0x6cf   :  { %11222 = vmatpush3.bf16.msra.mxu0 %v12242_v16 }
 0x6d0   :  { %11244 = vmatpush3.bf16.msra.mxu1 %v12244_v51  ;;  %11223 = vmatprep.subr.bf16.mxu0 %v12245_v39  ;;  %v12269_v39 = vld [vmem:[#allocation7 + $0x150] sm:$0xff]  }
 0x6d1   :  { %11245 = vmatprep.subr.bf16.mxu1 %v12247_v9 }
 0x6d3   :  { %11224 = vmatpush3.bf16.msra.mxu0 %v12246_v8 }
 0x6d4   :  { %11246 = vmatpush3.bf16.msra.mxu1 %v12248_v25  ;;  %11225 = vmatprep.subr.bf16.mxu0 %v12249_v3 }
 0x6d5   :  { %11247 = vmatprep.subr.bf16.mxu1 %v12251_v37 }
 0x6d7   :  { %11226 = vmatpush3.bf16.msra.mxu0 %v12250_v12 }
 0x6d8   :  { %11248 = vmatpush3.bf16.msra.mxu1 %v12252_v2  ;;  %11227 = vmatprep.subr.bf16.mxu0 %v12253_v11  ;;  %v12268_v11 = vld [vmem:[#allocation7 + $0x188] sm:$0xff]  }
 0x6d9   :  { %11249 = vmatprep.subr.bf16.mxu1 %v12255_v52 }
 0x6db   :  { %11228 = vmatpush3.bf16.msra.mxu0 %v12254_v56 }
 0x6dc   :  { %11250 = vmatpush3.bf16.msra.mxu1 %v12256_v20  ;;  %11229 = vmatprep.subr.bf16.mxu0 %v12257_v38 }
 0x6dd   :  { %11251 = vmatprep.subr.bf16.mxu1 %v12259_v15  ;;  %v12271_v15 = vld [vmem:[#allocation7 + $0x1d0] sm:$0xff]  }
 0x6df   :  { %11230 = vmatpush3.bf16.msra.mxu0 %v12258_v30  ;;  %v12270_v30 = vld [vmem:[#allocation7 + $0x110] sm:$0xff]  }
 0x6e0   :  { %11252 = vmatpush3.bf16.msra.mxu1 %v12260_v53  ;;  %11259 = vmatprep.subr.bf16.mxu0 %v12261_v34 }
 0x6e1   :  { %11281 = vmatprep.subr.bf16.mxu1 %v12263_v14 }
 0x794   :  { %v11664_v57 = vpop.f32.mrb[184].mxu0 }
 0x795   :  { %v11674_v1 = vpop.f32.mrb[200].mxu1  ;;  %v6311_v18 = vpop.f32.mrb[185].mxu0 }
 0x796   :  { %v6396_v61 = vpop.f32.mrb[201].mxu1  ;;  %v11665_v42 = vpop.f32.mrb[186].mxu0 }
 0x797   :  { %v6343_v6 = vpack.c.bf16 %v11665_v42, %v11664_v57  ;;  %v11675_v21 = vpop.f32.mrb[202].mxu1  ;;  %v6314_v13 = vpop.f32.mrb[187].mxu0 }
 0x798   :  { %v6428_v23 = vpack.c.bf16 %v11675_v21, %v11674_v1  ;;  %v6342_v43 = vpack.c.bf16 %v6314_v13, %v6311_v18  ;;  %v6399_v54 = vpop.f32.mrb[203].mxu1  ;;  %v12273_v1 = vld [vmem:[#allocation7 + $0x158] sm:$0xff]  }
 0x799   :  { %v6352_v59 = vrot.slane %v6343_v6, 4  ;;  %v6427_v17 = vpack.c.bf16 %v6399_v54, %v6396_v61  ;;  %v6351_v0 = vrot.slane %v6343_v6, 2  ;;  %v6353_v55 = vrot.slane %v6343_v6, 6 }
 0x79a   :  { %v6438_v45 = vrot.slane %v6428_v23, 6  ;;  %v10154_v40 = vrot.slane %v6428_v23, 10  ;;  %v6348_v7 = vrot.slane %v6342_v43, 4  ;;  %v6347_v62 = vrot.slane %v6342_v43, 2 }
 0x79b   :  { %v6434_v29 = vrot.slane %v6427_v17, 6  ;;  %v10152_v46 = vrot.slane %v6427_v17, 10  ;;  %v6482_v50 = vsel %vm6459_vm6, %v6351_v0, %v6428_v23  ;;  %v6349_v36 = vrot.slane %v6342_v43, 6 }
 0x79c   :  { %v14867_v22 = vsel %vm6459_vm6, %v6343_v6, %v6438_v45  ;;  %v14870_v33 = vsel %vm6459_vm6, %v6352_v59, %v10154_v40  ;;  %v6466_v26 = vsel %vm6459_vm6, %v6347_v62, %v6427_v17  ;;  %v6452_v5 = vrot.slane %v6438_v45, 6  ;;  %v11668_v47 = vpop.f32.mrb[188].mxu0  ;;  %v12274_v59 = vld [vmem:[#allocation7 + $0x118] sm:$0xff]   ;;  %v12277_v45 = vld [vmem:[#allocation7 + $0x160] sm:$0xff]  }
 0x79d   :  { %v6462_v63 = vsel %vm6459_vm6, %v6342_v43, %v6434_v29  ;;  %v6470_v31 = vsel %vm6459_vm6, %v6348_v7, %v10152_v46  ;;  %7587 = vmatprep.mubr.bf16.mxu0 %v6466_v26  ;;  %v6449_v4 = vrot.slane %v6434_v29, 6  ;;  %v11678_v27 = vpop.f32.mrb[204].mxu1  ;;  %v6327_v41 = vpop.f32.mrb[189].mxu0  ;;  %v12272_v43 = vld [vmem:[#allocation7 + $0x190] sm:$0xff]   ;;  %v12275_v17 = vld [vmem:[#allocation7 + $0x1d8] sm:$0xff]   ;;  %v12278_v7 = vld [vmem:[#allocation7 + $0x120] sm:$0xff]  }
 0x79e   :  { %7588 = vmatmul.mubr.bf16.vlgmr.msra.gmra.mrb[192].mxu0 %v6462_v63  ;;  %v6490_v44 = vsel %vm6459_vm6, %v6353_v55, %v6452_v5  ;;  %v6412_v49 = vpop.f32.mrb[205].mxu1  ;;  %v11669_v58 = vpop.f32.mrb[190].mxu0  ;;  %v12276_v40 = vld [vmem:[#allocation7 + $0x198] sm:$0xff]   ;;  %v12279_v62 = vld [vmem:[#allocation7 + $0x1e0] sm:$0xff]   ;;  %v12281_v29 = vld [vmem:[#allocation7 + $0x168] sm:$0xff]  }
 0x79f   :  { %11260 = vmatpush3.bf16.msra.mxu0 %v12262_v35  ;;  %v6474_v48 = vsel %vm6459_vm6, %v6349_v36, %v6449_v4  ;;  %7667 = vmatprep.mubr.bf16.mxu0 %v6482_v50  ;;  %v6345_v24 = vpack.c.bf16 %v11669_v58, %v11668_v47  ;;  %v11679_v16 = vpop.f32.mrb[206].mxu1  ;;  %v6330_v51 = vpop.f32.mrb[191].mxu0  ;;  %v12280_v46 = vld [vmem:[#allocation7 + $0x1a0] sm:$0xff]   ;;  %v12282_v35 = vld [vmem:[#allocation7 + $0x128] sm:$0xff]   ;;  %v12285_v55 = vld [vmem:[#allocation7 + $0x170] sm:$0xff]  }
 0x7a0   :  { %7627 = vmatprep.mubr.bf16.mxu1 %v6474_v48  ;;  %11261 = vmatprep.subr.bf16.mxu0 %v12265_v19  ;;  %v6430_v9 = vpack.c.bf16 %v11679_v16, %v11678_v27  ;;  %v6344_v8 = vpack.c.bf16 %v6330_v51, %v6327_v41  ;;  %v6415_v25 = vpop.f32.mrb[207].mxu1  ;;  %v12283_v50 = vld [vmem:[#allocation7 + $0x1e8] sm:$0xff]   ;;  %v12286_v19 = vld [vmem:[#allocation7 + $0x130] sm:$0xff]   ;;  %v12289_v47 = vld [vmem:[#allocation7 + $0x178] sm:$0xff]  }
 0x7a1   :  { %7628 = vmatmul.mubr.bf16.vlgmr.msra.gmra.mrb[208].mxu1 %v6470_v31  ;;  %v6360_v3 = vrot.slane %v6345_v24, 4  ;;  %v6429_v37 = vpack.c.bf16 %v6415_v25, %v6412_v49  ;;  %v6359_v12 = vrot.slane %v6345_v24, 2  ;;  %v6361_v2 = vrot.slane %v6345_v24, 6  ;;  %v12284_v26 = vld [vmem:[#allocation7 + $0x1a8] sm:$0xff]   ;;  %v12287_v5 = vld [vmem:[#allocation7 + $0x1f0] sm:$0xff]   ;;  %v12290_v31 = vld [vmem:[#allocation7 + $0x138] sm:$0xff]  }
 0x7a2   :  { %11282 = vmatpush3.bf16.msra.mxu1 %v12264_v10  ;;  %7707 = vmatprep.mubr.bf16.mxu1 %v6490_v44  ;;  %v6446_v56 = vrot.slane %v6430_v9, 6  ;;  %v10158_v52 = vrot.slane %v6430_v9, 10  ;;  %v6356_v20 = vrot.slane %v6344_v8, 4  ;;  %v6355_v38 = vrot.slane %v6344_v8, 2  ;;  %v12288_v63 = vld [vmem:[#allocation7 + $0x1b0] sm:$0xff]   ;;  %v12291_v36 = vld [vmem:[#allocation7 + $0x1f8] sm:$0xff]  }
 0x7a3   :  { %11262 = vmatpush3.bf16.msra.mxu0 %v12266_v60  ;;  %11283 = vmatprep.subr.bf16.mxu1 %v12267_v32  ;;  %v6442_v53 = vrot.slane %v6429_v37, 6  ;;  %v10156_v34 = vrot.slane %v6429_v37, 10  ;;  %v6357_v14 = vrot.slane %v6344_v8, 6  ;;  %v14878_v57 = vsel %vm6459_vm6, %v6359_v12, %v6430_v9  ;;  %v12293_v4 = vld [vmem:[#allocation7 + $0x240] sm:$0xff]   ;;  %v12292_v27 = vld [vmem:[#allocation7 + $0x1b8] sm:$0xff]   ;;  %v12297_v44 = vld [vmem:[#allocation7 + $0x248] sm:$0xff]  }
 0x7a4   :  { %11263 = vmatprep.subr.bf16.mxu0 %v12269_v39  ;;  %v14881_v18 = vsel %vm6459_vm6, %v6345_v24, %v6446_v56  ;;  %v14884_v61 = vsel %vm6459_vm6, %v6360_v3, %v10158_v52  ;;  %v14887_v42 = vsel %vm6459_vm6, %v6355_v38, %v6429_v37  ;;  %v6458_v6 = vrot.slane %v6446_v56, 6  ;;  %v12294_v41 = vld [vmem:[#allocation7 + $0x200] sm:$0xff]   ;;  %v12298_v58 = vld [vmem:[#allocation7 + $0x208] sm:$0xff]   ;;  %v12301_v60 = vld [vmem:[#allocation7 + $0x250] sm:$0xff]  }
 0x7a5   :  { %v14890_v21 = vsel %vm6459_vm6, %v6344_v8, %v6442_v53  ;;  %v14893_v13 = vsel %vm6459_vm6, %v6356_v20, %v10156_v34  ;;  %v6455_v23 = vrot.slane %v6442_v53, 6  ;;  %v12295_v10 = vld [vmem:[#allocation7 + $0x2c0] sm:$0xff]   ;;  %v12299_v48 = vld [vmem:[#allocation7 + $0x2c8] sm:$0xff]   ;;  %v12302_v24 = vld [vmem:[#allocation7 + $0x210] sm:$0xff]  }
 0x7a6   :  { %11284 = vmatpush3.bf16.msra.mxu1 %v12268_v11  ;;  %v14896_v54 = vsel %vm6459_vm6, %v6361_v2, %v6458_v6  ;;  %v12296_v49 = vld [vmem:[#allocation7 + $0x280] sm:$0xff]   ;;  %v12300_v32 = vld [vmem:[#allocation7 + $0x288] sm:$0xff]   ;;  %v12303_v16 = vld [vmem:[#allocation7 + $0x2d0] sm:$0xff]  }
 0x7a7   :  { %11264 = vmatpush3.bf16.msra.mxu0 %v12270_v30  ;;  %11285 = vmatprep.subr.bf16.mxu1 %v12271_v15  ;;  %v6506_v0 = vsel %vm6459_vm6, %v6357_v14, %v6455_v23  ;;  %v12304_v51 = vld [vmem:[#allocation7 + $0x290] sm:$0xff]   ;;  %v12306_v39 = vld [vmem:[#allocation7 + $0x218] sm:$0xff]   ;;  %v12309_v8 = vld [vmem:[#allocation7 + $0x260] sm:$0xff]  }
 0x7a8   :  { %11265 = vmatprep.subr.bf16.mxu0 %v12273_v1  ;;  %v12307_v9 = vld [vmem:[#allocation7 + $0x2d8] sm:$0xff]   ;;  %v12311_v3 = vld [vmem:[#allocation7 + $0x2e0] sm:$0xff]   ;;  %v12313_v37 = vld [vmem:[#allocation7 + $0x268] sm:$0xff]  }
 0x7a9   :  { %v12308_v25 = vld [vmem:[#allocation7 + $0x298] sm:$0xff]   ;;  %v12312_v12 = vld [vmem:[#allocation7 + $0x2a0] sm:$0xff]   ;;  %v12314_v2 = vld [vmem:[#allocation7 + $0x228] sm:$0xff]  }
 0x7aa   :  { %11286 = vmatpush3.bf16.msra.mxu1 %v12272_v43  ;;  %v12315_v11 = vld [vmem:[#allocation7 + $0x2e8] sm:$0xff]   ;;  %v12317_v56 = vld [vmem:[#allocation7 + $0x270] sm:$0xff]   ;;  %v12321_v30 = vld [vmem:[#allocation7 + $0x278] sm:$0xff]  }
 0x7ab   :  { %11266 = vmatpush3.bf16.msra.mxu0 %v12274_v59  ;;  %11287 = vmatprep.subr.bf16.mxu1 %v12275_v17  ;;  %v12316_v52 = vld [vmem:[#allocation7 + $0x2a8] sm:$0xff]   ;;  %v12318_v20 = vld [vmem:[#allocation7 + $0x230] sm:$0xff]   ;;  %v12322_v53 = vld [vmem:[#allocation7 + $0x238] sm:$0xff]  }
 0x7ac   :  { %11267 = vmatprep.subr.bf16.mxu0 %v12277_v45  ;;  %v12319_v38 = vld [vmem:[#allocation7 + $0x2f0] sm:$0xff]   ;;  %v12323_v34 = vld [vmem:[#allocation7 + $0x2f8] sm:$0xff]   ;;  %v12325_v14 = vld [vmem:[#allocation7 + $0x340] sm:$0xff]  }
 0x7ad   :  { %v12320_v15 = vld [vmem:[#allocation7 + $0x2b0] sm:$0xff]   ;;  %v12324_v1 = vld [vmem:[#allocation7 + $0x2b8] sm:$0xff]   ;;  %v12327_v6 = vld [vmem:[#allocation7 + $0x3c0] sm:$0xff]  }
 0x7ae   :  { %11288 = vmatpush3.bf16.msra.mxu1 %v12276_v40  ;;  %v12329_v23 = vld [vmem:[#allocation7 + $0x348] sm:$0xff]   ;;  %v12328_v43 = vld [vmem:[#allocation7 + $0x380] sm:$0xff]   ;;  %v12334_v40 = vld [vmem:[#allocation7 + $0x310] sm:$0xff]  }
 0x7af   :  { %11268 = vmatpush3.bf16.msra.mxu0 %v12278_v7  ;;  %11289 = vmatprep.subr.bf16.mxu1 %v12279_v62  ;;  %v12330_v59 = vld [vmem:[#allocation7 + $0x308] sm:$0xff]   ;;  %v12335_v7 = vld [vmem:[#allocation7 + $0x3d0] sm:$0xff]  }
 0x7b0   :  { %11269 = vmatprep.subr.bf16.mxu0 %v12281_v29  ;;  %v12331_v17 = vld [vmem:[#allocation7 + $0x3c8] sm:$0xff]   ;;  %v12336_v62 = vld [vmem:[#allocation7 + $0x390] sm:$0xff]   ;;  %v12338_v29 = vld [vmem:[#allocation7 + $0x318] sm:$0xff]  }
 0x7b1   :  { %v12332_v45 = vld [vmem:[#allocation7 + $0x388] sm:$0xff]  }
 0x7b2   :  { %11290 = vmatpush3.bf16.msra.mxu1 %v12280_v46  ;;  %v12339_v46 = vld [vmem:[#allocation7 + $0x3d8] sm:$0xff]  }
 0x7b3   :  { %11270 = vmatpush3.bf16.msra.mxu0 %v12282_v35  ;;  %11291 = vmatprep.subr.bf16.mxu1 %v12283_v50  ;;  %v12342_v35 = vld [vmem:[#allocation7 + $0x320] sm:$0xff]   ;;  %v12345_v50 = vld [vmem:[#allocation7 + $0x368] sm:$0xff]  }
 0x7b4   :  { %11271 = vmatprep.subr.bf16.mxu0 %v12285_v55  ;;  %v12344_v55 = vld [vmem:[#allocation7 + $0x3a0] sm:$0xff]  }
 0x7b6   :  { %11292 = vmatpush3.bf16.msra.mxu1 %v12284_v26  ;;  %v12346_v26 = vld [vmem:[#allocation7 + $0x328] sm:$0xff]  }
 0x7b7   :  { %11272 = vmatpush3.bf16.msra.mxu0 %v12286_v19  ;;  %11293 = vmatprep.subr.bf16.mxu1 %v12287_v5  ;;  %v12347_v19 = vld [vmem:[#allocation7 + $0x3e8] sm:$0xff]   ;;  %v12349_v5 = vld [vmem:[#allocation7 + $0x370] sm:$0xff]  }
 0x7b8   :  { %11273 = vmatprep.subr.bf16.mxu0 %v12289_v47  ;;  %v12348_v47 = vld [vmem:[#allocation7 + $0x3a8] sm:$0xff]  }
 0x7ba   :  { %11294 = vmatpush3.bf16.msra.mxu1 %v12288_v63  ;;  %v12350_v63 = vld [vmem:[#allocation7 + $0x330] sm:$0xff]  }
 0x7bb   :  { %11274 = vmatpush3.bf16.msra.mxu0 %v12290_v31  ;;  %11295 = vmatprep.subr.bf16.mxu1 %v12291_v36  ;;  %v12351_v31 = vld [vmem:[#allocation7 + $0x3f0] sm:$0xff]   ;;  %v12353_v36 = vld [vmem:[#allocation7 + $0x378] sm:$0xff]  }
 0x7bc   :  { %11303 = vmatprep.subr.bf16.mxu0 %v12293_v4  ;;  %v12352_v4 = vld [vmem:[#allocation7 + $0x3b0] sm:$0xff]  }
 0x7be   :  { %11296 = vmatpush3.bf16.msra.mxu1 %v12292_v27  ;;  %7668 = vmatmul.mubr.bf16.vlgmr.msra.gmra.mrb[196].mxu0 %v14867_v22  ;;  %v12305_v22 = vld [vmem:[#allocation7 + $0x258] sm:$0xff]  }
 0x7bf   :  { %11304 = vmatpush3.bf16.msra.mxu0 %v12294_v41  ;;  %11325 = vmatprep.subr.bf16.mxu1 %v12295_v10  ;;  %v12354_v27 = vld [vmem:[#allocation7 + $0x338] sm:$0xff]  }
 0x7c0   :  { %11305 = vmatprep.subr.bf16.mxu0 %v12297_v44  ;;  %7747 = vmatprep.mubr.bf16.mxu0 %v14887_v42  ;;  %v12326_v42 = vld [vmem:[#allocation7 + $0x300] sm:$0xff]   ;;  %v12355_v41 = vld [vmem:[#allocation7 + $0x3f8] sm:$0xff]  }
 0x7c1   :  { %7708 = vmatmul.mubr.bf16.vlgmr.msra.gmra.mrb[212].mxu1 %v14870_v33  ;;  %v12310_v33 = vld [vmem:[#allocation7 + $0x220] sm:$0xff]   ;;  %v12356_v10 = vld [vmem:[#allocation7 + $0x3b8] sm:$0xff]  }
 0x7c2   :  { %11326 = vmatpush3.bf16.msra.mxu1 %v12296_v49  ;;  %7787 = vmatprep.mubr.bf16.mxu1 %v6506_v0  ;;  %v12333_v0 = vld [vmem:[#allocation7 + $0x350] sm:$0xff]   ;;  %v10159_v49 = vld [vmem:[%s15101_s11] ss:$0 sm:$0xff] }
 0x7c3   :  { %11306 = vmatpush3.bf16.msra.mxu0 %v12298_v58  ;;  %11327 = vmatprep.subr.bf16.mxu1 %v12299_v48 }
 0x7c4   :  { %11307 = vmatprep.subr.bf16.mxu0 %v12301_v60 }
 0x7c6   :  { %11328 = vmatpush3.bf16.msra.mxu1 %v12300_v32 }
 0x7c7   :  { %11308 = vmatpush3.bf16.msra.mxu0 %v12302_v24  ;;  %11329 = vmatprep.subr.bf16.mxu1 %v12303_v16 }
 0x7c8   :  { %11309 = vmatprep.subr.bf16.mxu0 %v12305_v22 }
 0x7ca   :  { %11330 = vmatpush3.bf16.msra.mxu1 %v12304_v51 }
 0x7cb   :  { %11310 = vmatpush3.bf16.msra.mxu0 %v12306_v39  ;;  %11331 = vmatprep.subr.bf16.mxu1 %v12307_v9 }
 0x7cc   :  { %11311 = vmatprep.subr.bf16.mxu0 %v12309_v8 }
 0x7ce   :  { %11332 = vmatpush3.bf16.msra.mxu1 %v12308_v25  ;;  %v12605_v25 = vmov 0.0  }
 0x7cf   :  { %11312 = vmatpush3.bf16.msra.mxu0 %v12310_v33  ;;  %11333 = vmatprep.subr.bf16.mxu1 %v12311_v3 }
 0x7d0   :  { %11313 = vmatprep.subr.bf16.mxu0 %v12313_v37 }
 0x7d2   :  { %11334 = vmatpush3.bf16.msra.mxu1 %v12312_v12 }
 0x7d3   :  { %11314 = vmatpush3.bf16.msra.mxu0 %v12314_v2  ;;  %11335 = vmatprep.subr.bf16.mxu1 %v12315_v11 }
 0x7d4   :  { %11315 = vmatprep.subr.bf16.mxu0 %v12317_v56 }
 0x7d6   :  { %11336 = vmatpush3.bf16.msra.mxu1 %v12316_v52 }
 0x7d7   :  { %11316 = vmatpush3.bf16.msra.mxu0 %v12318_v20  ;;  %11337 = vmatprep.subr.bf16.mxu1 %v12319_v38 }
 0x7d8   :  { %11317 = vmatprep.subr.bf16.mxu0 %v12321_v30 }
 0x7da   :  { %11338 = vmatpush3.bf16.msra.mxu1 %v12320_v15 }
 0x7db   :  { %11318 = vmatpush3.bf16.msra.mxu0 %v12322_v53  ;;  %11339 = vmatprep.subr.bf16.mxu1 %v12323_v34 }
 0x7dc   :  { %11347 = vmatprep.subr.bf16.mxu0 %v12325_v14 }
 0x7de   :  { %11340 = vmatpush3.bf16.msra.mxu1 %v12324_v1  ;;  %7748 = vmatmul.mubr.bf16.vlgmr.msra.gmra.mrb[200].mxu0 %v14890_v21  ;;  %v12337_v21 = vld [vmem:[#allocation7 + $0x358] sm:$0xff]  }
 0x7df   :  { %11348 = vmatpush3.bf16.msra.mxu0 %v12326_v42  ;;  %11369 = vmatprep.subr.bf16.mxu1 %v12327_v6 }
 0x7e0   :  { %11349 = vmatprep.subr.bf16.mxu0 %v12329_v23  ;;  %7827 = vmatprep.mubr.bf16.mxu0 %v14878_v57  ;;  %v12341_v57 = vld [vmem:[#allocation7 + $0x360] sm:$0xff]  }
 0x7e1   :  { %7788 = vmatmul.mubr.bf16.vlgmr.msra.gmra.mrb[216].mxu1 %v14893_v13  ;;  %v12340_v13 = vld [vmem:[#allocation7 + $0x398] sm:$0xff]  }
 0x7e2   :  { %11370 = vmatpush3.bf16.msra.mxu1 %v12328_v43  ;;  %7867 = vmatprep.mubr.bf16.mxu1 %v14896_v54  ;;  %v12343_v54 = vld [vmem:[#allocation7 + $0x3e0] sm:$0xff]  }
 0x7e3   :  { %11350 = vmatpush3.bf16.msra.mxu0 %v12330_v59  ;;  %11371 = vmatprep.subr.bf16.mxu1 %v12331_v17 }
 0x7e4   :  { %11351 = vmatprep.subr.bf16.mxu0 %v12333_v0 }
 0x7e6   :  { %11372 = vmatpush3.bf16.msra.mxu1 %v12332_v45 }
 0x7e7   :  { %11352 = vmatpush3.bf16.msra.mxu0 %v12334_v40  ;;  %11373 = vmatprep.subr.bf16.mxu1 %v12335_v7 }
 0x7e8   :  { %11353 = vmatprep.subr.bf16.mxu0 %v12337_v21 }
 0x7ea   :  { %11374 = vmatpush3.bf16.msra.mxu1 %v12336_v62 }
 0x7eb   :  { %11354 = vmatpush3.bf16.msra.mxu0 %v12338_v29  ;;  %11375 = vmatprep.subr.bf16.mxu1 %v12339_v46 }
 0x7ec   :  { %11355 = vmatprep.subr.bf16.mxu0 %v12341_v57 }
 0x7ee   :  { %11376 = vmatpush3.bf16.msra.mxu1 %v12340_v13 }
 0x7ef   :  { %11356 = vmatpush3.bf16.msra.mxu0 %v12342_v35  ;;  %11377 = vmatprep.subr.bf16.mxu1 %v12343_v54 }
 0x7f0   :  { %11357 = vmatprep.subr.bf16.mxu0 %v12345_v50 }
 0x7f2   :  { %11378 = vmatpush3.bf16.msra.mxu1 %v12344_v55 }
 0x7f3   :  { %11358 = vmatpush3.bf16.msra.mxu0 %v12346_v26  ;;  %11379 = vmatprep.subr.bf16.mxu1 %v12347_v19 }
 0x7f4   :  { %11359 = vmatprep.subr.bf16.mxu0 %v12349_v5 }
 0x7f6   :  { %11380 = vmatpush3.bf16.msra.mxu1 %v12348_v47 }
 0x7f7   :  { %11360 = vmatpush3.bf16.msra.mxu0 %v12350_v63  ;;  %11381 = vmatprep.subr.bf16.mxu1 %v12351_v31 }
 0x7f8   :  { %11361 = vmatprep.subr.bf16.mxu0 %v12353_v36 }
 0x7fa   :  { %11382 = vmatpush3.bf16.msra.mxu1 %v12352_v4 }
 0x7fb   :  { %11362 = vmatpush3.bf16.msra.mxu0 %v12354_v27  ;;  %11383 = vmatprep.subr.bf16.mxu1 %v12355_v41 }
 0x7fc   :  { %11680 = vmatprep.subr.bf16.mxu0 %v12605_v25 }
 0x7fe   :  { %11384 = vmatpush3.bf16.msra.mxu1 %v12356_v10  ;;  %7828 = vmatmul.mubr.bf16.vlgmr.msra.gmra.mrb[204].mxu0 %v14881_v18 }
 0x7ff   :  { %11686 = vmatprep.subr.bf16.mxu1 %v12605_v25  ;;  %11682 = vmatprep.mubr.msk.bf16.mxu0 %vm12606_vm7, %v12605_v25 }
 0x801   :  { %7868 = vmatmul.mubr.bf16.vlgmr.msra.gmra.mrb[220].mxu1 %v14884_v61 }
 0x802   :  { %11688 = vmatprep.mubr.msk.bf16.mxu1 %vm12606_vm7, %v12605_v25 }
 0x871   :  { %v11231_v44 = vpop.f32.mrb[192].mxu0 }
 0x872   :  { %v11232_v58 = vpop.f32.mrb[193].mxu0 }
 0x873   :  { %v11233_v48 = vadd.f32 %v11232_v58, %v11231_v44  ;;  %v11234_v60 = vpop.f32.mrb[194].mxu0 }
 0x874   :  { %v11253_v32 = vpop.f32.mrb[208].mxu1  ;;  %v11235_v24 = vpop.f32.mrb[195].mxu0 }
 0x875   :  { %v7590_v16 = vadd.f32 %v11233_v48, %v10159_v49  ;;  %v11254_v22 = vpop.f32.mrb[209].mxu1 }
 0x876   :  { %v11255_v51 = vadd.f32 %v11254_v22, %v11253_v32  ;;  %v11256_v39 = vpop.f32.mrb[210].mxu1  ;;  %v7892_v32 = vld [vmem:[%s15102_s12] sm:$0x1] }
 0x877   :  { %v11257_v9 = vpop.f32.mrb[211].mxu1  ;;  %v7896_v22 = vld [vmem:[%s15103_s13] sm:$0x1] }
 0x878   :  { %v7630_v8 = vadd.f32 %v11255_v51, %v7590_v16 }
 0x891   :  { %v11275_v18 = vpop.f32.mrb[196].mxu0 }
 0x892   :  { %v11276_v61 = vpop.f32.mrb[197].mxu0 }
 0x893   :  { %v11277_v33 = vadd.f32 %v11276_v61, %v11275_v18  ;;  %v11278_v3 = vpop.f32.mrb[198].mxu0 }
 0x894   :  { %v11297_v37 = vpop.f32.mrb[212].mxu1  ;;  %v11279_v12 = vpop.f32.mrb[199].mxu0 }
 0x895   :  { %v7670_v2 = vadd.f32 %v11277_v33, %v7630_v8  ;;  %v11298_v11 = vpop.f32.mrb[213].mxu1  ;;  %v12358_v12 = vld [vmem:[#allocation8 + $0x40] sm:$0xff]  }
 0x896   :  { %v11299_v56 = vadd.f32 %v11298_v11, %v11297_v37  ;;  %v11300_v52 = vpop.f32.mrb[214].mxu1 }
 0x897   :  { %v11301_v20 = vpop.f32.mrb[215].mxu1  ;;  %v12360_v52 = vld [vmem:[#allocation8 + $0xc0] sm:$0xff]  }
 0x898   :  { %v7710_v38 = vadd.f32 %v11299_v56, %v7670_v2  ;;  %v12357_v56 = vld [vmem:[%s15104_s14] sm:$0xff]  }
 0x899   :  { %v12359_v20 = vld [vmem:[#allocation8] sm:$0xff]  }
 0x8b1   :  { %v11319_v30 = vpop.f32.mrb[200].mxu0 }
 0x8b2   :  { %v11320_v15 = vpop.f32.mrb[201].mxu0 }
 0x8b3   :  { %v11321_v53 = vadd.f32 %v11320_v15, %v11319_v30  ;;  %v11322_v34 = vpop.f32.mrb[202].mxu0  ;;  %v12362_v30 = vld [vmem:[#allocation8 + $0x48] sm:$0xff]   ;;  %v12361_v15 = vld [vmem:[#allocation8 + $0x80] sm:$0xff]  }
 0x8b4   :  { %v11341_v14 = vpop.f32.mrb[216].mxu1  ;;  %v11323_v1 = vpop.f32.mrb[203].mxu0  ;;  %v12363_v34 = vld [vmem:[#allocation8 + $0x8] sm:$0xff]  }
 0x8b5   :  { %v7750_v42 = vadd.f32 %v11321_v53, %v7710_v38  ;;  %v11342_v6 = vpop.f32.mrb[217].mxu1  ;;  %v12364_v53 = vld [vmem:[#allocation8 + $0xc8] sm:$0xff]  }
 0x8b6   :  { %v11343_v23 = vadd.f32 %v11342_v6, %v11341_v14  ;;  %v11344_v43 = vpop.f32.mrb[218].mxu1  ;;  %v12366_v14 = vld [vmem:[#allocation8 + $0x50] sm:$0xff]   ;;  %v12365_v1 = vld [vmem:[#allocation8 + $0x88] sm:$0xff]  }
 0x8b7   :  { %v11345_v59 = vpop.f32.mrb[219].mxu1  ;;  %v12367_v6 = vld [vmem:[#allocation8 + $0x10] sm:$0xff]  }
 0x8b8   :  { %v7790_v17 = vadd.f32 %v11343_v23, %v7750_v42  ;;  %v12368_v42 = vld [vmem:[#allocation8 + $0xd0] sm:$0xff]   ;;  %v12370_v23 = vld [vmem:[#allocation8 + $0x58] sm:$0xff]  }
 0x8b9   :  { %v12369_v43 = vld [vmem:[#allocation8 + $0x90] sm:$0xff]   ;;  %v12372_v59 = vld [vmem:[#allocation8 + $0xd8] sm:$0xff]  }
 0x8d1   :  { %v11363_v0 = vpop.f32.mrb[204].mxu0 }
 0x8d2   :  { %v11364_v45 = vpop.f32.mrb[205].mxu0 }
 0x8d3   :  { %v11365_v40 = vadd.f32 %v11364_v45, %v11363_v0  ;;  %v11366_v7 = vpop.f32.mrb[206].mxu0  ;;  %v12374_v0 = vld [vmem:[#allocation8 + $0x60] sm:$0xff]   ;;  %v12373_v45 = vld [vmem:[#allocation8 + $0x98] sm:$0xff]  }
 0x8d4   :  { %v11385_v21 = vpop.f32.mrb[220].mxu1  ;;  %v11367_v62 = vpop.f32.mrb[207].mxu0  ;;  %v12375_v7 = vld [vmem:[#allocation8 + $0x20] sm:$0xff]  }
 0x8d5   :  { %v7830_v29 = vadd.f32 %v11365_v40, %v7790_v17  ;;  %v11386_v46 = vpop.f32.mrb[221].mxu1  ;;  %v12371_v17 = vld [vmem:[#allocation8 + $0x18] sm:$0xff]   ;;  %v12376_v40 = vld [vmem:[#allocation8 + $0xe0] sm:$0xff]  }
 0x8d6   :  { %v11387_v57 = vadd.f32 %v11386_v46, %v11385_v21  ;;  %v11388_v13 = vpop.f32.mrb[222].mxu1  ;;  %v12378_v21 = vld [vmem:[#allocation8 + $0x68] sm:$0xff]   ;;  %v12377_v62 = vld [vmem:[#allocation8 + $0xa0] sm:$0xff]  }
 0x8d7   :  { %v11389_v35 = vpop.f32.mrb[223].mxu1  ;;  %v12380_v46 = vld [vmem:[#allocation8 + $0xe8] sm:$0xff]   ;;  %v12382_v13 = vld [vmem:[#allocation8 + $0x70] sm:$0xff]  }
 0x8d8   :  { %v7870_v54 = vadd.f32 %v11387_v57, %v7830_v29  ;;  %v12379_v29 = vld [vmem:[#allocation8 + $0x28] sm:$0xff]   ;;  %v12383_v35 = vld [vmem:[#allocation8 + $0x30] sm:$0xff]  }
 0x8d9   :  { %v12381_v57 = vld [vmem:[#allocation8 + $0xa8] sm:$0xff]  }
 0x8da   :  { %v7875_v50 = vrot.slane %v7870_v54, 4  ;;  %v7882_v55 = vmul.f32 %v7870_v54, %v7870_v54 }
 0x8dc   :  { %v7876_v26 = vadd.f32 %v7875_v50, %v7870_v54  ;;  %v7883_v19 = vrot.slane %v7882_v55, 4  ;;  %v12385_v50 = vld [vmem:[#allocation8 + $0xb0] sm:$0xff]  }
 0x8de   :  { %v7877_v5 = vrot.slane %v7876_v26, 2  ;;  %v7884_v47 = vadd.f32 %v7883_v19, %v7882_v55  ;;  %v12386_v55 = vld [vmem:[#allocation8 + $0x78] sm:$0xff]  }
 0x8df   :  { %v12388_v19 = vld [vmem:[#allocation8 + $0xf8] sm:$0xff]  }
 0x8e0   :  { %v7878_v63 = vadd.f32 %v7877_v5, %v7876_v26  ;;  %v7885_v31 = vrot.slane %v7884_v47, 2  ;;  %v12387_v26 = vld [vmem:[#allocation8 + $0x38] sm:$0xff]  }
 0x8e1   :  { %v12389_v5 = vld [vmem:[#allocation8 + $0xb8] sm:$0xff]  }
 0x8e2   :  { %v7879_v36 = vrot.slane %v7878_v63, 1  ;;  %v7886_v4 = vadd.f32 %v7885_v31, %v7884_v47  ;;  %v12390_v47 = vld [vmem:[#allocation8 + $0x140] sm:$0xff]  }
 0x8e4   :  { %v7880_v27 = vadd.f32 %v7879_v36, %v7878_v63  ;;  %v7887_v41 = vrot.slane %v7886_v4, 1  ;;  %v12392_v63 = vld [vmem:[#allocation8 + $0x1c0] sm:$0xff]  }
 0x8e6   :  { %v7881_v10 = vmul.f32 0.125, %v7880_v27  ;;  %v7888_v44 = vadd.f32 %v7887_v41, %v7886_v4 }
 0x8e8   :  { %v7889_v49 = vmul.f32 0.125, %v7888_v44  ;;  %v7890_v58 = vmul.f32 %v7881_v10, %v7881_v10 }
 0x8ea   :  { %v7891_v48 = vsub.f32 %v7889_v49, %v7890_v58 }
 0x8ec   :  { %v7893_v60 = vadd.f32 1e-05, %v7891_v48 }
 0x8ee   :  { %12496 = vrsqrt.f32 %v7893_v60 }
 0x8f8   :  { %v12497_v24 = vpop.eup %12496 }
 0x8f9   :  { %v7895_v16 = vmul.f32 %v12497_v24, %v7892_v32  ;;  %v12414_v32 = vld [vmem:[#allocation8 + $0x170] sm:$0xff]  }
 0x8fb   :  { %v7903_v51 = vrot.slane %v7895_v16, %v14843_v28  ;;  %v7897_v39 = vmul.f32 %v7895_v16, %v7881_v10 }
 0x8fd   :  { %v7898_v9 = vsub.f32 %v7896_v22, %v7897_v39  ;;  %v7905_v8 = vmul.f32 %v7903_v51, %v7870_v54  ;;  %v12384_v54 = vld [vmem:[#allocation8 + $0xf0] sm:$0xff]  }
 0x8ff   :  { %v7910_v18 = vrot.slane %v7898_v9, %v14843_v28 }
 0x901   :  { %v7912_v61 = vadd.f32 %v7910_v18, %v7905_v8 }
 0x903   :  { %vm7913_vm8 = vcmp.gt.f32.partialorder %v7912_v61, 0.0  ;;  %v7914_v33 = vmul.f32 0.2, %v7912_v61 }
 0x905   :  { %v7915_v3 = vsel %vm7913_vm8, %v7912_v61, %v7914_v33 }
 0x906   :  { %v7918_v37 = vpack.c.bf16 %v7915_v3, %v7915_v3 }
 0x908   :  { %v7929_v2 = vsel %vm6459_vm6, %v7918_v37, 0  ;;  %v8007_v11 = vrot.slane %v7918_v37, 2 }
 0x909   :  { %11681 = vmatpush3.bf16.msra.mxu0 %v7929_v2 }
 0x90a   :  { %v8009_v38 = vsel %vm6459_vm6, %v8007_v11, 0  ;;  %11395 = vmatprep.subr.bf16.mxu0 %v12358_v12 }
 0x90b   :  { %11687 = vmatpush3.bf16.msra.mxu1 %v8009_v38 }
 0x90c   :  { %11683 = vmatmul.mubr.msk.bf16.vlgmr.msra.gmra.mrb[208].mxu0 %vm7924_vm9, %v12357_v56  ;;  %11417 = vmatprep.subr.bf16.mxu1 %v12360_v52  ;;  %v12391_v52 = vld [vmem:[#allocation8 + $0x100] sm:$0xff]  }
 0x90d   :  { %11396 = vmatpush3.bf16.msra.mxu0 %v12359_v20 }
 0x90e   :  { %11689 = vmatmul.mubr.msk.bf16.vlgmr.msra.gmra.mrb[224].mxu1 %vm7924_vm9, %v12357_v56  ;;  %11397 = vmatprep.subr.bf16.mxu0 %v12362_v30 }
 0x90f   :  { %11418 = vmatpush3.bf16.msra.mxu1 %v12361_v15 }
 0x910   :  { %11419 = vmatprep.subr.bf16.mxu1 %v12364_v53 }
 0x911   :  { %11398 = vmatpush3.bf16.msra.mxu0 %v12363_v34 }
 0x912   :  { %11399 = vmatprep.subr.bf16.mxu0 %v12366_v14 }
 0x913   :  { %11420 = vmatpush3.bf16.msra.mxu1 %v12365_v1  ;;  %v12394_v1 = vld [vmem:[#allocation8 + $0x148] sm:$0xff]  }
 0x914   :  { %11421 = vmatprep.subr.bf16.mxu1 %v12368_v42 }
 0x915   :  { %11400 = vmatpush3.bf16.msra.mxu0 %v12367_v6  ;;  %v12393_v6 = vld [vmem:[#allocation8 + $0x180] sm:$0xff]  }
 0x916   :  { %11401 = vmatprep.subr.bf16.mxu0 %v12370_v23 }
 0x917   :  { %11422 = vmatpush3.bf16.msra.mxu1 %v12369_v43 }
 0x918   :  { %11423 = vmatprep.subr.bf16.mxu1 %v12372_v59 }
 0x919   :  { %11402 = vmatpush3.bf16.msra.mxu0 %v12371_v17 }
 0x91a   :  { %11403 = vmatprep.subr.bf16.mxu0 %v12374_v0 }
 0x91b   :  { %11424 = vmatpush3.bf16.msra.mxu1 %v12373_v45  ;;  %v12396_v45 = vld [vmem:[#allocation8 + $0x1c8] sm:$0xff]  }
 0x91c   :  { %11425 = vmatprep.subr.bf16.mxu1 %v12376_v40 }
 0x91d   :  { %11404 = vmatpush3.bf16.msra.mxu0 %v12375_v7 }
 0x91e   :  { %11405 = vmatprep.subr.bf16.mxu0 %v12378_v21 }
 0x91f   :  { %11426 = vmatpush3.bf16.msra.mxu1 %v12377_v62  ;;  %v12395_v62 = vld [vmem:[#allocation8 + $0x108] sm:$0xff]  }
 0x920   :  { %11427 = vmatprep.subr.bf16.mxu1 %v12380_v46 }
 0x921   :  { %11406 = vmatpush3.bf16.msra.mxu0 %v12379_v29 }
 0x922   :  { %11407 = vmatprep.subr.bf16.mxu0 %v12382_v13 }
 0x923   :  { %11428 = vmatpush3.bf16.msra.mxu1 %v12381_v57 }
 0x924   :  { %11429 = vmatprep.subr.bf16.mxu1 %v12384_v54 }
 0x925   :  { %11408 = vmatpush3.bf16.msra.mxu0 %v12383_v35  ;;  %v12398_v35 = vld [vmem:[#allocation8 + $0x150] sm:$0xff]  }
 0x926   :  { %11409 = vmatprep.subr.bf16.mxu0 %v12386_v55 }
 0x927   :  { %11430 = vmatpush3.bf16.msra.mxu1 %v12385_v50 }
 0x928   :  { %11431 = vmatprep.subr.bf16.mxu1 %v12388_v19  ;;  %v12397_v19 = vld [vmem:[#allocation8 + $0x188] sm:$0xff]  }
 0x929   :  { %11410 = vmatpush3.bf16.msra.mxu0 %v12387_v26 }
 0x92a   :  { %11439 = vmatprep.subr.bf16.mxu0 %v12390_v47 }
 0x92b   :  { %11432 = vmatpush3.bf16.msra.mxu1 %v12389_v5 }
 0x92c   :  { %11461 = vmatprep.subr.bf16.mxu1 %v12392_v63 }
 0x9df   :  { %v7965_v31 = vpop.f32.mrb[208].mxu0 }
 0x9e0   :  { %v11684_v36 = vpop.f32.mrb[209].mxu0 }
 0x9e1   :  { %v8045_v4 = vpop.f32.mrb[224].mxu1  ;;  %v7968_v27 = vpop.f32.mrb[210].mxu0  ;;  %v12400_v36 = vld [vmem:[#allocation8 + $0x1d0] sm:$0xff]  }
 0x9e2   :  { %v11690_v41 = vpop.f32.mrb[225].mxu1  ;;  %v14930_v10 = vpack.c.bf16 %v7968_v27, %v7965_v31  ;;  %v11685_v44 = vpop.f32.mrb[211].mxu0 }
 0x9e3   :  { %v8048_v49 = vpop.f32.mrb[226].mxu1 }
 0x9e4   :  { %v14932_v58 = vpack.c.bf16 %v8048_v49, %v8045_v4  ;;  %v14935_v48 = vshrl.u32 %v14930_v10, 16  ;;  %v11691_v60 = vpop.f32.mrb[227].mxu1  ;;  %v7978_v24 = vrot.slane %v14930_v10, 1  ;;  %v7982_v16 = vrot.slane %v14930_v10, 2  ;;  %v12399_v49 = vld [vmem:[#allocation8 + $0x110] sm:$0xff]  }
 0x9e5   :  { %v7986_v22 = vrot.slane %v14930_v10, 3  ;;  %v7990_v51 = vrot.slane %v14930_v10, 4  ;;  %v7994_v21 = vrot.slane %v14930_v10, 5 }
 0x9e6   :  { %v14946_v39 = vshrl.u32 %v14932_v58, 16  ;;  %v8071_v9 = vshll.u32 %v14932_v58, 16  ;;  %v7980_v8 = vrot.slane %v14935_v48, 1  ;;  %v8057_v18 = vrot.slane %v14932_v58, 1 }
 0x9e7   :  { %v7984_v61 = vrot.slane %v14935_v48, 2  ;;  %v7988_v33 = vrot.slane %v14935_v48, 3  ;;  %v8059_v3 = vrot.slane %v14932_v58, 2  ;;  %v7992_v37 = vrot.slane %v14935_v48, 4 }
 0x9e8   :  { %v8074_v12 = vshll.u32 %v14946_v39, 16  ;;  %v8137_v2 = vsel %vm14937_vm12, %v14930_v10, %v8071_v9  ;;  %v8058_v11 = vrot.slane %v14946_v39, 1  ;;  %v8077_v56 = vshll.u32 %v8057_v18, 16  ;;  %v12401_v18 = vld [vmem:[#allocation8 + $0x190] sm:$0xff]  }
 0x9e9   :  { %v8060_v20 = vrot.slane %v14946_v39, 2  ;;  %v8062_v38 = vrot.slane %v14946_v39, 3  ;;  %v8083_v30 = vshll.u32 %v8059_v3, 16  ;;  %v8064_v15 = vrot.slane %v14946_v39, 4  ;;  %v12404_v3 = vld [vmem:[#allocation8 + $0x1d8] sm:$0xff]  }
 0x9ea   :  { %v8138_v53 = vsel %vm14937_vm12, %v14935_v48, %v8074_v12  ;;  %v8080_v34 = vshll.u32 %v8058_v11, 16  ;;  %v8139_v14 = vsel %vm14937_vm12, %v7978_v24, %v8077_v56  ;;  %v8061_v42 = vrot.slane %v14932_v58, 3  ;;  %v12403_v12 = vld [vmem:[#allocation8 + $0x118] sm:$0xff]   ;;  %v12406_v11 = vld [vmem:[#allocation8 + $0x160] sm:$0xff]  }
 0x9eb   :  { %9216 = vmatprep.mubr.bf16.mxu0 %v8138_v53  ;;  %v8086_v23 = vshll.u32 %v8060_v20, 16  ;;  %v8092_v43 = vshll.u32 %v8062_v38, 16  ;;  %v14971_v59 = vsel %vm14937_vm12, %v7982_v16, %v8083_v30  ;;  %v8098_v17 = vshll.u32 %v8064_v15, 16  ;;  %v12405_v56 = vld [vmem:[#allocation8 + $0x198] sm:$0xff]   ;;  %v12410_v20 = vld [vmem:[#allocation8 + $0x168] sm:$0xff]   ;;  %v12409_v38 = vld [vmem:[#allocation8 + $0x1a0] sm:$0xff]  }
 0x9ec   :  { %9217 = vmatmul.mubr.bf16.vlgmr.msra.gmra.mrb[212].mxu0 %v8137_v2  ;;  %v8140_v0 = vsel %vm14937_vm12, %v7980_v8, %v8080_v34  ;;  %v8089_v40 = vshll.u32 %v8061_v42, 16  ;;  %v8066_v7 = vrot.slane %v14946_v39, 5  ;;  %v8063_v13 = vrot.slane %v14932_v58, 4  ;;  %v12412_v30 = vld [vmem:[#allocation8 + $0x1e8] sm:$0xff]   ;;  %v12416_v34 = vld [vmem:[#allocation8 + $0x1f0] sm:$0xff]  }
 0x9ed   :  { %11440 = vmatpush3.bf16.msra.mxu0 %v12391_v52  ;;  %9256 = vmatprep.mubr.bf16.mxu1 %v8140_v0  ;;  %v8142_v29 = vsel %vm14937_vm12, %v7984_v61, %v8086_v23  ;;  %v8144_v46 = vsel %vm14937_vm12, %v7988_v33, %v8092_v43  ;;  %v14983_v57 = vsel %vm14937_vm12, %v7992_v37, %v8098_v17  ;;  %v7996_v50 = vrot.slane %v14935_v48, 5  ;;  %v12408_v52 = vld [vmem:[#allocation8 + $0x1e0] sm:$0xff]   ;;  %v12411_v15 = vld [vmem:[#allocation8 + $0x128] sm:$0xff]   ;;  %v12417_v42 = vld [vmem:[#allocation8 + $0x1b0] sm:$0xff]  }
 0x9ee   :  { %9257 = vmatmul.mubr.bf16.vlgmr.msra.gmra.mrb[228].mxu1 %v8139_v14  ;;  %11441 = vmatprep.subr.bf16.mxu0 %v12394_v1  ;;  %v14988_v54 = vsel %vm14937_vm12, %v7986_v22, %v8089_v40  ;;  %v8104_v55 = vshll.u32 %v8066_v7, 16  ;;  %v8068_v26 = vrot.slane %v14946_v39, 6  ;;  %v8095_v5 = vshll.u32 %v8063_v13, 16  ;;  %v12413_v53 = vld [vmem:[#allocation8 + $0x1a8] sm:$0xff]   ;;  %v12415_v14 = vld [vmem:[#allocation8 + $0x130] sm:$0xff]   ;;  %v12418_v1 = vld [vmem:[#allocation8 + $0x178] sm:$0xff]  }
 0x9ef   :  { %11462 = vmatpush3.bf16.msra.mxu1 %v12393_v6  ;;  %9296 = vmatprep.mubr.bf16.mxu0 %v8142_v29  ;;  %v8000_v47 = vrot.slane %v14935_v48, 6  ;;  %v8065_v63 = vrot.slane %v14932_v58, 5  ;;  %v8070_v31 = vrot.slane %v14946_v39, 7  ;;  %v8004_v41 = vrot.slane %v14935_v48, 7  ;;  %v12402_v39 = vld [vmem:[#allocation8 + $0x158] sm:$0xff]   ;;  %v12422_v43 = vld [vmem:[#allocation8 + $0x240] sm:$0xff]  }
 0x9f0   :  { %11463 = vmatprep.subr.bf16.mxu1 %v12396_v45  ;;  %9336 = vmatprep.mubr.bf16.mxu1 %v8144_v46  ;;  %v14997_v4 = vsel %vm14937_vm12, %v7996_v50, %v8104_v55  ;;  %v8110_v27 = vshll.u32 %v8068_v26, 16  ;;  %v8067_v44 = vrot.slane %v14932_v58, 6  ;;  %v15005_v60 = vsel %vm14937_vm12, %v7990_v51, %v8095_v5  ;;  %v12420_v6 = vld [vmem:[#allocation8 + $0x1f8] sm:$0xff]   ;;  %v12424_v0 = vld [vmem:[#allocation8 + $0x2c0] sm:$0xff]   ;;  %v12426_v40 = vld [vmem:[#allocation8 + $0x248] sm:$0xff]  }
 0x9f1   :  { %11442 = vmatpush3.bf16.msra.mxu0 %v12395_v62  ;;  %v8101_v24 = vshll.u32 %v8065_v63, 16  ;;  %v8116_v16 = vshll.u32 %v8070_v31, 16  ;;  %v8069_v22 = vrot.slane %v14932_v58, 7  ;;  %v7998_v48 = vrot.slane %v14930_v10, 6  ;;  %v12419_v23 = vld [vmem:[#allocation8 + $0x138] sm:$0xff]   ;;  %v12423_v45 = vld [vmem:[#allocation8 + $0x200] sm:$0xff]  }
 0x9f2   :  { %11443 = vmatprep.subr.bf16.mxu0 %v12398_v35  ;;  %v15010_v9 = vsel %vm14937_vm12, %v8000_v47, %v8110_v27  ;;  %v8107_v8 = vshll.u32 %v8067_v44, 16  ;;  %v8002_v58 = vrot.slane %v14930_v10, 7  ;;  %v12407_v10 = vld [vmem:[#allocation8 + $0x120] sm:$0xff]   ;;  %v12421_v17 = vld [vmem:[#allocation8 + $0x1b8] sm:$0xff]   ;;  %v12427_v62 = vld [vmem:[#allocation8 + $0x208] sm:$0xff]  }
 0x9f3   :  { %11464 = vmatpush3.bf16.msra.mxu1 %v12397_v19  ;;  %v15015_v61 = vsel %vm14937_vm12, %v7994_v21, %v8101_v24  ;;  %v15019_v51 = vsel %vm14937_vm12, %v8004_v41, %v8116_v16  ;;  %v8113_v33 = vshll.u32 %v8069_v22, 16  ;;  %v12425_v7 = vld [vmem:[#allocation8 + $0x280] sm:$0xff]   ;;  %v12428_v21 = vld [vmem:[#allocation8 + $0x2c8] sm:$0xff]   ;;  %v12430_v29 = vld [vmem:[#allocation8 + $0x250] sm:$0xff]  }
 0x9f4   :  { %11465 = vmatprep.subr.bf16.mxu1 %v12400_v36  ;;  %v15024_v37 = vsel %vm14937_vm12, %v7998_v48, %v8107_v8  ;;  %v12429_v46 = vld [vmem:[#allocation8 + $0x288] sm:$0xff]   ;;  %v12432_v13 = vld [vmem:[#allocation8 + $0x2d0] sm:$0xff]   ;;  %v12436_v55 = vld [vmem:[#allocation8 + $0x2d8] sm:$0xff]  }
 0x9f5   :  { %11444 = vmatpush3.bf16.msra.mxu0 %v12399_v49  ;;  %v15028_v2 = vsel %vm14937_vm12, %v8002_v58, %v8113_v33  ;;  %v12431_v35 = vld [vmem:[#allocation8 + $0x210] sm:$0xff]   ;;  %v12437_v26 = vld [vmem:[#allocation8 + $0x298] sm:$0xff]   ;;  %v12440_v19 = vld [vmem:[#allocation8 + $0x2e0] sm:$0xff]  }
 0x9f6   :  { %11445 = vmatprep.subr.bf16.mxu0 %v12402_v39  ;;  %v12433_v50 = vld [vmem:[#allocation8 + $0x290] sm:$0xff]   ;;  %v12439_v5 = vld [vmem:[#allocation8 + $0x220] sm:$0xff]   ;;  %v12442_v47 = vld [vmem:[#allocation8 + $0x268] sm:$0xff]  }
 0x9f7   :  { %11466 = vmatpush3.bf16.msra.mxu1 %v12401_v18  ;;  %v12441_v63 = vld [vmem:[#allocation8 + $0x2a0] sm:$0xff]   ;;  %v12444_v31 = vld [vmem:[#allocation8 + $0x2e8] sm:$0xff]   ;;  %v12448_v41 = vld [vmem:[#allocation8 + $0x2f0] sm:$0xff]  }
 0x9f8   :  { %11467 = vmatprep.subr.bf16.mxu1 %v12404_v3  ;;  %v12443_v36 = vld [vmem:[#allocation8 + $0x228] sm:$0xff]   ;;  %v12447_v44 = vld [vmem:[#allocation8 + $0x230] sm:$0xff]   ;;  %v12450_v49 = vld [vmem:[#allocation8 + $0x278] sm:$0xff]  }
 0x9f9   :  { %11446 = vmatpush3.bf16.msra.mxu0 %v12403_v12  ;;  %v12445_v27 = vld [vmem:[#allocation8 + $0x2a8] sm:$0xff]   ;;  %v12449_v24 = vld [vmem:[#allocation8 + $0x2b0] sm:$0xff]   ;;  %v12452_v16 = vld [vmem:[#allocation8 + $0x2f8] sm:$0xff]  }
 0x9fa   :  { %11447 = vmatprep.subr.bf16.mxu0 %v12406_v11  ;;  %v12451_v22 = vld [vmem:[#allocation8 + $0x238] sm:$0xff]   ;;  %v12454_v39 = vld [vmem:[#allocation8 + $0x340] sm:$0xff]   ;;  %v12458_v58 = vld [vmem:[#allocation8 + $0x348] sm:$0xff]  }
 0x9fb   :  { %11468 = vmatpush3.bf16.msra.mxu1 %v12405_v56  ;;  %v12453_v48 = vld [vmem:[#allocation8 + $0x2b8] sm:$0xff]   ;;  %v12456_v8 = vld [vmem:[#allocation8 + $0x3c0] sm:$0xff]   ;;  %v12460_v3 = vld [vmem:[#allocation8 + $0x3c8] sm:$0xff]  }
 0x9fc   :  { %11469 = vmatprep.subr.bf16.mxu1 %v12408_v52  ;;  %v12455_v18 = vld [vmem:[#allocation8 + $0x300] sm:$0xff]   ;;  %v12459_v12 = vld [vmem:[#allocation8 + $0x308] sm:$0xff]   ;;  %v12462_v11 = vld [vmem:[#allocation8 + $0x350] sm:$0xff]  }
 0x9fd   :  { %11448 = vmatpush3.bf16.msra.mxu0 %v12407_v10  ;;  %v12457_v33 = vld [vmem:[#allocation8 + $0x380] sm:$0xff]   ;;  %v12461_v56 = vld [vmem:[#allocation8 + $0x388] sm:$0xff]   ;;  %v12464_v52 = vld [vmem:[#allocation8 + $0x3d0] sm:$0xff]  }
 0x9fe   :  { %11449 = vmatprep.subr.bf16.mxu0 %v12410_v20  ;;  %v12463_v10 = vld [vmem:[#allocation8 + $0x310] sm:$0xff]  }
 0x9ff   :  { %11470 = vmatpush3.bf16.msra.mxu1 %v12409_v38  ;;  %v12465_v20 = vld [vmem:[#allocation8 + $0x390] sm:$0xff]   ;;  %v12468_v38 = vld [vmem:[#allocation8 + $0x3d8] sm:$0xff]  }
 0xa00   :  { %11471 = vmatprep.subr.bf16.mxu1 %v12412_v30  ;;  %v12469_v30 = vld [vmem:[#allocation8 + $0x398] sm:$0xff]  }
 0xa01   :  { %11450 = vmatpush3.bf16.msra.mxu0 %v12411_v15  ;;  %v12472_v15 = vld [vmem:[#allocation8 + $0x3e0] sm:$0xff]  }
 0xa02   :  { %11451 = vmatprep.subr.bf16.mxu0 %v12414_v32  ;;  %v12474_v32 = vld [vmem:[#allocation8 + $0x368] sm:$0xff]  }
 0xa03   :  { %11472 = vmatpush3.bf16.msra.mxu1 %v12413_v53  ;;  %v12473_v53 = vld [vmem:[#allocation8 + $0x3a0] sm:$0xff]  }
 0xa04   :  { %11473 = vmatprep.subr.bf16.mxu1 %v12416_v34  ;;  %v12476_v34 = vld [vmem:[#allocation8 + $0x3e8] sm:$0xff]  }
 0xa05   :  { %11452 = vmatpush3.bf16.msra.mxu0 %v12415_v14  ;;  %v12475_v14 = vld [vmem:[#allocation8 + $0x328] sm:$0xff]  }
 0xa06   :  { %11453 = vmatprep.subr.bf16.mxu0 %v12418_v1  ;;  %v12478_v1 = vld [vmem:[#allocation8 + $0x370] sm:$0xff]  }
 0xa07   :  { %11474 = vmatpush3.bf16.msra.mxu1 %v12417_v42  ;;  %v12477_v42 = vld [vmem:[#allocation8 + $0x3a8] sm:$0xff]  }
 0xa08   :  { %11475 = vmatprep.subr.bf16.mxu1 %v12420_v6  ;;  %v12480_v6 = vld [vmem:[#allocation8 + $0x3f0] sm:$0xff]  }
 0xa09   :  { %11454 = vmatpush3.bf16.msra.mxu0 %v12419_v23  ;;  %v12479_v23 = vld [vmem:[#allocation8 + $0x330] sm:$0xff]  }
 0xa0a   :  { %11483 = vmatprep.subr.bf16.mxu0 %v12422_v43  ;;  %v12482_v43 = vld [vmem:[#allocation8 + $0x378] sm:$0xff]  }
 0xa0b   :  { %11476 = vmatpush3.bf16.msra.mxu1 %v12421_v17  ;;  %v12481_v17 = vld [vmem:[#allocation8 + $0x3b0] sm:$0xff]  }
 0xa0c   :  { %9297 = vmatmul.mubr.bf16.vlgmr.msra.gmra.mrb[216].mxu0 %v14971_v59  ;;  %11505 = vmatprep.subr.bf16.mxu1 %v12424_v0  ;;  %v12434_v59 = vld [vmem:[#allocation8 + $0x258] sm:$0xff]  }
 0xa0d   :  { %11484 = vmatpush3.bf16.msra.mxu0 %v12423_v45  ;;  %9376 = vmatprep.mubr.bf16.mxu0 %v14983_v57  ;;  %v12435_v57 = vld [vmem:[#allocation8 + $0x218] sm:$0xff]  }
 0xa0e   :  { %9337 = vmatmul.mubr.bf16.vlgmr.msra.gmra.mrb[232].mxu1 %v14988_v54  ;;  %11485 = vmatprep.subr.bf16.mxu0 %v12426_v40  ;;  %v12438_v54 = vld [vmem:[#allocation8 + $0x260] sm:$0xff]   ;;  %v12484_v0 = vld [vmem:[#allocation8 + $0x3f8] sm:$0xff]  }
 0xa0f   :  { %11506 = vmatpush3.bf16.msra.mxu1 %v12425_v7  ;;  %9416 = vmatprep.mubr.bf16.mxu1 %v14997_v4  ;;  %v12446_v4 = vld [vmem:[#allocation8 + $0x270] sm:$0xff]   ;;  %v12483_v45 = vld [vmem:[#allocation8 + $0x338] sm:$0xff]  }
 0xa10   :  { %11507 = vmatprep.subr.bf16.mxu1 %v12428_v21  ;;  %v12485_v40 = vld [vmem:[#allocation8 + $0x3b8] sm:$0xff]  }
 0xa11   :  { %11486 = vmatpush3.bf16.msra.mxu0 %v12427_v62  ;;  %v12486_v21 = vld [vmem:[%s15109_s19] sm:$0xff]  }
 0xa12   :  { %11487 = vmatprep.subr.bf16.mxu0 %v12430_v29  ;;  %v10291_v62 = vld [vmem:[%s15106_s16] ss:$0 sm:$0xff] }
 0xa13   :  { %11508 = vmatpush3.bf16.msra.mxu1 %v12429_v46 }
 0xa14   :  { %11509 = vmatprep.subr.bf16.mxu1 %v12432_v13 }
 0xa15   :  { %11488 = vmatpush3.bf16.msra.mxu0 %v12431_v35 }
 0xa16   :  { %11489 = vmatprep.subr.bf16.mxu0 %v12434_v59 }
 0xa17   :  { %11510 = vmatpush3.bf16.msra.mxu1 %v12433_v50 }
 0xa18   :  { %11511 = vmatprep.subr.bf16.mxu1 %v12436_v55 }
 0xa19   :  { %11490 = vmatpush3.bf16.msra.mxu0 %v12435_v57  ;;  %v12487_v57 = vld [vmem:[%s15109_s19 + $0x8] sm:$0xff]  }
 0xa1a   :  { %11491 = vmatprep.subr.bf16.mxu0 %v12438_v54 }
 0xa1b   :  { %11512 = vmatpush3.bf16.msra.mxu1 %v12437_v26 }
 0xa1c   :  { %11513 = vmatprep.subr.bf16.mxu1 %v12440_v19  ;;  %v12488_v19 = vld [vmem:[%s15109_s19 + $0x10] sm:$0xff]  }
 0xa1d   :  { %11492 = vmatpush3.bf16.msra.mxu0 %v12439_v5  ;;  %v12489_v5 = vld [vmem:[%s15109_s19 + $0x18] sm:$0xff]  }
 0xa1e   :  { %11493 = vmatprep.subr.bf16.mxu0 %v12442_v47  ;;  %v12490_v47 = vld [vmem:[%s15109_s19 + $0x20] sm:$0xff]  }
 0xa1f   :  { %11514 = vmatpush3.bf16.msra.mxu1 %v12441_v63  ;;  %v12491_v63 = vld [vmem:[%s15109_s19 + $0x28] sm:$0xff]  }
 0xa20   :  { %11515 = vmatprep.subr.bf16.mxu1 %v12444_v31  ;;  %v12492_v31 = vld [vmem:[%s15109_s19 + $0x30] sm:$0xff]  }
 0xa21   :  { %11494 = vmatpush3.bf16.msra.mxu0 %v12443_v36  ;;  %v12493_v36 = vld [vmem:[%s15109_s19 + $0x38] sm:$0xff]  }
 0xa22   :  { %11495 = vmatprep.subr.bf16.mxu0 %v12446_v4 }
 0xa23   :  { %11516 = vmatpush3.bf16.msra.mxu1 %v12445_v27 }
 0xa24   :  { %11517 = vmatprep.subr.bf16.mxu1 %v12448_v41 }
 0xa25   :  { %11496 = vmatpush3.bf16.msra.mxu0 %v12447_v44 }
 0xa26   :  { %11497 = vmatprep.subr.bf16.mxu0 %v12450_v49 }
 0xa27   :  { %11518 = vmatpush3.bf16.msra.mxu1 %v12449_v24 }
 0xa28   :  { %11519 = vmatprep.subr.bf16.mxu1 %v12452_v16 }
 0xa29   :  { %11498 = vmatpush3.bf16.msra.mxu0 %v12451_v22 }
 0xa2a   :  { %11527 = vmatprep.subr.bf16.mxu0 %v12454_v39 }
 0xa2b   :  { %11520 = vmatpush3.bf16.msra.mxu1 %v12453_v48 }
 0xa2c   :  { %9377 = vmatmul.mubr.bf16.vlgmr.msra.gmra.mrb[220].mxu0 %v15005_v60  ;;  %11549 = vmatprep.subr.bf16.mxu1 %v12456_v8  ;;  %v12466_v60 = vld [vmem:[#allocation8 + $0x358] sm:$0xff]  }
 0xa2d   :  { %11528 = vmatpush3.bf16.msra.mxu0 %v12455_v18  ;;  %9456 = vmatprep.mubr.bf16.mxu0 %v15010_v9  ;;  %v12467_v9 = vld [vmem:[#allocation8 + $0x318] sm:$0xff]  }
 0xa2e   :  { %9417 = vmatmul.mubr.bf16.vlgmr.msra.gmra.mrb[236].mxu1 %v15015_v61  ;;  %11529 = vmatprep.subr.bf16.mxu0 %v12458_v58  ;;  %v12470_v61 = vld [vmem:[#allocation8 + $0x360] sm:$0xff]  }
 0xa2f   :  { %11550 = vmatpush3.bf16.msra.mxu1 %v12457_v33  ;;  %9496 = vmatprep.mubr.bf16.mxu1 %v15019_v51  ;;  %v12471_v51 = vld [vmem:[#allocation8 + $0x320] sm:$0xff]  }
 0xa30   :  { %11551 = vmatprep.subr.bf16.mxu1 %v12460_v3 }
 0xa31   :  { %11530 = vmatpush3.bf16.msra.mxu0 %v12459_v12 }
 0xa32   :  { %11531 = vmatprep.subr.bf16.mxu0 %v12462_v11 }
 0xa33   :  { %11552 = vmatpush3.bf16.msra.mxu1 %v12461_v56 }
 0xa34   :  { %11553 = vmatprep.subr.bf16.mxu1 %v12464_v52 }
 0xa35   :  { %11532 = vmatpush3.bf16.msra.mxu0 %v12463_v10 }
 0xa36   :  { %11533 = vmatprep.subr.bf16.mxu0 %v12466_v60 }
 0xa37   :  { %11554 = vmatpush3.bf16.msra.mxu1 %v12465_v20 }
 0xa38   :  { %11555 = vmatprep.subr.bf16.mxu1 %v12468_v38 }
 0xa39   :  { %11534 = vmatpush3.bf16.msra.mxu0 %v12467_v9 }
 0xa3a   :  { %11535 = vmatprep.subr.bf16.mxu0 %v12470_v61 }
 0xa3b   :  { %11556 = vmatpush3.bf16.msra.mxu1 %v12469_v30 }
 0xa3c   :  { %11557 = vmatprep.subr.bf16.mxu1 %v12472_v15 }
 0xa3d   :  { %11536 = vmatpush3.bf16.msra.mxu0 %v12471_v51 }
 0xa3e   :  { %11537 = vmatprep.subr.bf16.mxu0 %v12474_v32 }
 0xa3f   :  { %11558 = vmatpush3.bf16.msra.mxu1 %v12473_v53 }
 0xa40   :  { %11559 = vmatprep.subr.bf16.mxu1 %v12476_v34 }
 0xa41   :  { %11538 = vmatpush3.bf16.msra.mxu0 %v12475_v14 }
 0xa42   :  { %11539 = vmatprep.subr.bf16.mxu0 %v12478_v1 }
 0xa43   :  { %11560 = vmatpush3.bf16.msra.mxu1 %v12477_v42 }
 0xa44   :  { %11561 = vmatprep.subr.bf16.mxu1 %v12480_v6 }
 0xa45   :  { %11540 = vmatpush3.bf16.msra.mxu0 %v12479_v23 }
 0xa46   :  { %11541 = vmatprep.subr.bf16.mxu0 %v12482_v43 }
 0xa47   :  { %11562 = vmatpush3.bf16.msra.mxu1 %v12481_v17 }
 0xa48   :  { %11563 = vmatprep.subr.bf16.mxu1 %v12484_v0 }
 0xa49   :  { %11542 = vmatpush3.bf16.msra.mxu0 %v12483_v45 }
 0xa4a   :  { %11692 = vmatprep.subr.bf16.mxu0 %v12605_v25 }
 0xa4b   :  { %11564 = vmatpush3.bf16.msra.mxu1 %v12485_v40 }
 0xa4c   :  { %9457 = vmatmul.mubr.bf16.vlgmr.msra.gmra.mrb[224].mxu0 %v15024_v37 }
 0xa4d   :  { %11708 = vmatprep.mubr.msk.bf16.mxu0 %vm12606_vm7, %v12605_v25  ;;  %11693 = vmatpush3.bf16.msra.mxu0 %v12486_v21 }
 0xa4e   :  { %9497 = vmatmul.mubr.bf16.vlgmr.msra.gmra.mrb[240].mxu1 %v15028_v2  ;;  %11694 = vmatprep.subr.bf16.mxu0 %v12605_v25 }
 0xa51   :  { %11695 = vmatpush3.bf16.msra.mxu0 %v12487_v57 }
 0xa52   :  { %11696 = vmatprep.subr.bf16.mxu0 %v12605_v25 }
 0xa55   :  { %11697 = vmatpush3.bf16.msra.mxu0 %v12488_v19 }
 0xa56   :  { %11698 = vmatprep.subr.bf16.mxu0 %v12605_v25 }
 0xa59   :  { %11699 = vmatpush3.bf16.msra.mxu0 %v12489_v5 }
 0xa5a   :  { %11700 = vmatprep.subr.bf16.mxu0 %v12605_v25 }
 0xa5d   :  { %11701 = vmatpush3.bf16.msra.mxu0 %v12490_v47  ;;  %v9527_v47 = vld [vmem:[%s15108_s18] sm:$0x1] }
 0xa5e   :  { %11702 = vmatprep.subr.bf16.mxu0 %v12605_v25 }
 0xa61   :  { %11703 = vmatpush3.bf16.msra.mxu0 %v12491_v63 }
 0xa62   :  { %11704 = vmatprep.subr.bf16.mxu0 %v12605_v25 }
 0xa65   :  { %11705 = vmatpush3.bf16.msra.mxu0 %v12492_v31 }
 0xa66   :  { %11706 = vmatprep.subr.bf16.mxu0 %v12605_v25 }
 0xa69   :  { %11707 = vmatpush3.bf16.msra.mxu0 %v12493_v36 }
 0xabf   :  { %v11411_v7 = vpop.f32.mrb[212].mxu0 }
 0xac0   :  { %v11412_v29 = vpop.f32.mrb[213].mxu0 }
 0xac1   :  { %v11413_v46 = vadd.f32 %v11412_v29, %v11411_v7  ;;  %v11414_v13 = vpop.f32.mrb[214].mxu0  ;;  %v11433_v35 = vpop.f32.mrb[228].mxu1 }
 0xac2   :  { %v11415_v37 = vpop.f32.mrb[215].mxu0  ;;  %v11434_v59 = vpop.f32.mrb[229].mxu1 }
 0xac3   :  { %v9219_v50 = vadd.f32 %v11413_v46, %v10291_v62  ;;  %v11435_v2 = vadd.f32 %v11434_v59, %v11433_v35  ;;  %v11436_v55 = vpop.f32.mrb[230].mxu1 }
 0xac4   :  { %v11437_v54 = vpop.f32.mrb[231].mxu1 }
 0xac5   :  { %v9259_v26 = vadd.f32 %v11435_v2, %v9219_v50 }
 0xadf   :  { %v11455_v4 = vpop.f32.mrb[216].mxu0 }
 0xae0   :  { %v11456_v27 = vpop.f32.mrb[217].mxu0 }
 0xae1   :  { %v11457_v41 = vadd.f32 %v11456_v27, %v11455_v4  ;;  %v11458_v44 = vpop.f32.mrb[218].mxu0  ;;  %v11477_v49 = vpop.f32.mrb[232].mxu1 }
 0xae2   :  { %v11459_v24 = vpop.f32.mrb[219].mxu0  ;;  %v11478_v16 = vpop.f32.mrb[233].mxu1 }
 0xae3   :  { %v9299_v22 = vadd.f32 %v11457_v41, %v9259_v26  ;;  %v11479_v39 = vadd.f32 %v11478_v16, %v11477_v49  ;;  %v11480_v48 = vpop.f32.mrb[234].mxu1  ;;  %v9523_v26 = vld [vmem:[%s15107_s17] sm:$0x1] }
 0xae4   :  { %v11481_v8 = vpop.f32.mrb[235].mxu1  ;;  %v10420_v16 = vld [vmem:[#allocation2] ss:$0 sm:$0xff] }
 0xae5   :  { %v9339_v18 = vadd.f32 %v11479_v39, %v9299_v22 }
 0xaff   :  { %v11499_v58 = vpop.f32.mrb[220].mxu0 }
 0xb00   :  { %v11500_v33 = vpop.f32.mrb[221].mxu0 }
 0xb01   :  { %v11501_v3 = vadd.f32 %v11500_v33, %v11499_v58  ;;  %v11502_v12 = vpop.f32.mrb[222].mxu0  ;;  %v11521_v11 = vpop.f32.mrb[236].mxu1 }
 0xb02   :  { %v11503_v56 = vpop.f32.mrb[223].mxu0  ;;  %v11522_v25 = vpop.f32.mrb[237].mxu1 }
 0xb03   :  { %v9379_v52 = vadd.f32 %v11501_v3, %v9339_v18  ;;  %v11523_v10 = vadd.f32 %v11522_v25, %v11521_v11  ;;  %v11524_v60 = vpop.f32.mrb[238].mxu1 }
 0xb04   :  { %v11525_v20 = vpop.f32.mrb[239].mxu1 }
 0xb05   :  { %v9419_v38 = vadd.f32 %v11523_v10, %v9379_v52 }
 0xb1f   :  { %v11543_v9 = vpop.f32.mrb[224].mxu0 }
 0xb20   :  { %v11544_v61 = vpop.f32.mrb[225].mxu0 }
 0xb21   :  { %v11545_v30 = vadd.f32 %v11544_v61, %v11543_v9  ;;  %v11546_v15 = vpop.f32.mrb[226].mxu0  ;;  %v11565_v51 = vpop.f32.mrb[240].mxu1 }
 0xb22   :  { %v11547_v32 = vpop.f32.mrb[227].mxu0  ;;  %v11566_v53 = vpop.f32.mrb[241].mxu1 }
 0xb23   :  { %v9459_v34 = vadd.f32 %v11545_v30, %v9419_v38  ;;  %v11567_v14 = vadd.f32 %v11566_v53, %v11565_v51  ;;  %v11568_v1 = vpop.f32.mrb[242].mxu1 }
 0xb24   :  { %v11569_v42 = vpop.f32.mrb[243].mxu1 }
 0xb25   :  { %v9499_v6 = vadd.f32 %v11567_v14, %v9459_v34 }
 0xb27   :  { %v9504_v23 = vsel %vm6459_vm6, %v9499_v6, 0.0  ;;  %v9512_v43 = vmul.f32 %v9499_v6, %v9499_v6 }
 0xb28   :  { %v9505_v17 = vrot.slane %v9504_v23, 4 }
 0xb29   :  { %v9513_v0 = vsel %vm6459_vm6, %v9512_v43, 0.0 }
 0xb2a   :  { %v9506_v45 = vadd.f32 %v9505_v17, %v9504_v23  ;;  %v9514_v40 = vrot.slane %v9513_v0, 4 }
 0xb2c   :  { %v9507_v7 = vrot.slane %v9506_v45, 2  ;;  %v9515_v21 = vadd.f32 %v9514_v40, %v9513_v0 }
 0xb2e   :  { %v9508_v62 = vadd.f32 %v9507_v7, %v9506_v45  ;;  %v9516_v29 = vrot.slane %v9515_v21, 2 }
 0xb30   :  { %v9509_v46 = vrot.slane %v9508_v62, 1  ;;  %v9517_v13 = vadd.f32 %v9516_v29, %v9515_v21 }
 0xb32   :  { %v9510_v35 = vadd.f32 %v9509_v46, %v9508_v62  ;;  %v9518_v37 = vrot.slane %v9517_v13, 1 }
 0xb34   :  { %v9511_v59 = vmul.f32 0.5, %v9510_v35  ;;  %v9519_v50 = vadd.f32 %v9518_v37, %v9517_v13 }
 0xb36   :  { %v9520_v2 = vmul.f32 0.5, %v9519_v50  ;;  %v9521_v55 = vmul.f32 %v9511_v59, %v9511_v59 }
 0xb38   :  { %v9522_v57 = vsub.f32 %v9520_v2, %v9521_v55 }
 0xb3a   :  { %v9524_v54 = vadd.f32 1e-05, %v9522_v57 }
 0xb3c   :  { %12498 = vrsqrt.f32 %v9524_v54 }
 0xb46   :  { %v12499_v19 = vpop.eup %12498 }
 0xb47   :  { %v9526_v5 = vmul.f32 %v12499_v19, %v9523_v26 }
 0xb49   :  { %v9528_v63 = vmul.f32 %v9526_v5, %v9511_v59  ;;  %v9534_v31 = vrot.slane %v9526_v5, %v14843_v28 }
 0xb4b   :  { %v9529_v36 = vsub.f32 %v9527_v47, %v9528_v63  ;;  %v9536_v4 = vmul.f32 %v9534_v31, %v9499_v6 }
 0xb4d   :  { %v9541_v27 = vrot.slane %v9529_v36, %v14843_v28 }
 0xb4f   :  { %v9543_v41 = vadd.f32 %v9541_v27, %v9536_v4 }
 0xb51   :  { %vm9544_vm13 = vcmp.gt.f32.partialorder %v9543_v41, 0.0  ;;  %v9545_v44 = vmul.f32 0.2, %v9543_v41 }
 0xb53   :  { %v9546_v49 = vsel %vm9544_vm13, %v9543_v41, %v9545_v44 }
 0xb54   :  { %v9547_v24 = vpack.c.bf16 %v9546_v49, %v9546_v49 }
 0xb56   :  { %11709 = vmatmul.mubr.bf16.vlgmr.msra.gmra.mrb[228].mxu0 %v9547_v24 }
 0xc29   :  { %v9653_v22 = vpop.f32.mrb[228].mxu0 }
 0xc2a   :  { %v9654_v39 = vadd.f32 %v10420_v16, %v9653_v22  ;;  %v11710_v48 = vpop.f32.mrb[229].mxu0 }
 0xc2b   :  { %v9656_v8 = vpop.f32.mrb[230].mxu0 }
 0xc2c   :  { %v9659_v18 = vsub.f32 0.0, %v9654_v39  ;;  %v11711_v58 = vpop.f32.mrb[231].mxu0 }
 0xc2e   :  { %v9660_v33 = vmul.f32 1.442695, %v9659_v18 }
 0xc30   :  { %12500 = vpow2.f32 %v9660_v33 }
 0xc3a   :  { %v12501_v3 = vpop.eup %12500 }
 0xc3b   :  { %v9662_v12 = vadd.f32 1.0, %v12501_v3 }
 0xc3d   :  { %12502 = vrcp.f32 %v9662_v12 }
 0xc47   :  { %v12503_v28 = vpop.eup %12502 }
 0xc48   :  { %9665 = vst.msk [vmem:[%s15574_s29] sm:$0x3] %vm9664_vm14, %v12503_v28 }
 0xc49   :  { %9670 = vsyncpa [#allocation4], 1 }
 0xc4a   :  { %9671 = vsyncpa [#allocation6], 1 }
 0xc4b   :  { %9672 = vsyncpa [#allocation9], 1 }

</bundles_post_ra>
